<compile_context>
chip_gen: v7x
topology: tpu7x:2x2x1
jax: 0.10.0
libtpu: 0.0.40
codegen_flags: <defaults>
</compile_context>

<pallas_src>
import numpy as np
from functools import partial

import jax
import jax.numpy as jnp
from jax.experimental import pallas as pl
from jax.experimental.pallas import tpu as pltpu


# --------------------------------- geometry helpers ---------------------------------

def _round_up(n, m):
    return (n + m - 1) // m * m


def _geom(h, w, batch):
    """Padded-flat geometry at resolution (h, w) with batch concatenated on the lane dim."""
    s = (h + 2) * (w + 2)                 # per-batch padded-flat size
    st = _round_up(batch * s, 128)        # lane-padded total width (review: 128-multiple)
    wp = w + 2
    po = wp + 1                           # flat index of interior pixel (0, 0)
    n = batch * s - 2 * wp - 2            # span covering every valid conv-output pixel
    return s, st, wp, po, n


def _interior_mask(h, w, batch):
    """(1, St) mask: 1 on interior pixels of every batch block, 0 on pad ring / lane tail."""
    s = (h + 2) * (w + 2)
    st = _round_up(batch * s, 128)
    m = np.zeros((batch, h + 2, w + 2), np.float32)
    m[:, 1:h + 1, 1:w + 1] = 1.0
    out = np.zeros((1, st), np.float32)
    out[0, :batch * s] = m.reshape(-1)
    return jnp.asarray(out)


# ------------------------ separable resample matrices (pool / bicubic) ------------------------

def _avgpool_axis_matrix(n):
    """Per-axis matrix of F.avg_pool2d(x, 2, stride=2) (floors odd n like PyTorch)."""
    m = np.zeros((n // 2, n), np.float32)
    for j in range(n // 2):
        m[j, 2 * j] = 0.5
        m[j, 2 * j + 1] = 0.5
    return m


def _cubic_w(t, A=-0.75):
    t = abs(t)
    if t <= 1.0:
        return (A + 2.0) * t ** 3 - (A + 3.0) * t ** 2 + 1.0
    if t < 2.0:
        return A * t ** 3 - 5.0 * A * t ** 2 + 8.0 * A * t - 4.0 * A
    return 0.0


def _bicubic_axis_matrix(n_out, n_in):
    """Per-axis matrix of F.interpolate(mode='bicubic', align_corners=True), a=-0.75."""
    m = np.zeros((n_out, n_in), np.float64)
    scale = (n_in - 1) / (n_out - 1) if (n_out > 1 and n_in > 1) else 0.0
    for p in range(n_out):
        src = p * scale
        x0 = int(np.floor(src))
        frac = src - x0
        for k in range(-1, 3):
            w = _cubic_w(k - frac)
            idx = min(max(x0 + k, 0), n_in - 1)
            m[p, idx] += w
    return m.astype(np.float32)


def _padded_flat_matrix(mh, mw, batch):
    """Fold per-axis resample matrices + un-pad + re-pad + batch-block-diagonal into one
    (St_in, St_out) matrix acting on the lane dim of padded-flat-batch-concat activations."""
    p, h_in = mh.shape
    q, w_in = mw.shape
    wp_in, wp_out = w_in + 2, q + 2
    s_in, s_out = (h_in + 2) * wp_in, (p + 2) * wp_out
    st_in = _round_up(batch * s_in, 128)
    st_out = _round_up(batch * s_out, 128)
    m = np.zeros((st_in, st_out), np.float32)
    kron = np.kron(mh, mw)                                     # (P*Q, Hin*Win)
    in_idx = ((np.arange(h_in)[:, None] + 1) * wp_in
              + (np.arange(w_in)[None, :] + 1)).reshape(-1)
    out_idx = ((np.arange(p)[:, None] + 1) * wp_out
               + (np.arange(q)[None, :] + 1)).reshape(-1)
    for b in range(batch):
        m[np.ix_(b * s_in + in_idx, b * s_out + out_idx)] = kron.T
    return jnp.asarray(m)


# ------------------------------- fused ConvBlock body -------------------------------

_TAPS = tuple((dy, dx) for dy in range(3) for dx in range(3))


def _cb_apply(x, imask, stack_ref, cbuf_ref, Wp, PO, N,
              w1_r, s1_r, b1_r, w2_r, s2_r, b2_r, w3_r, s3_r, b3_r):
    """One ConvBlock(F -> F): (BN+ReLU -> 3x3 conv) x3, channel concat, residual add.

    x:      (F, St) f32 padded-flat (batch concatenated on the lane dim).
    imask:  (1, St) interior mask (pad ring / lane tail / inter-batch gap = 0).
    Each conv is ONE MXU dot on a (9*Cin, N) stacked activation (single-dot rewrite).
    Returns the (F, St) block output (concat + residual) as a value.
    """
    F = x.shape[0]
    F2, F4 = F // 2, F // 4

    def conv(act, w_r, cin):
        # 9 lane-shifted copies written once into the stack scratch, then one dot.
        for t, (dy, dx) in enumerate(_TAPS):
            off = dy * Wp + dx
            stack_ref[t * cin:(t + 1) * cin, 0:N] = act[:, off:off + N]
        return jnp.dot(w_r[...],
                       stack_ref[0:9 * cin, 0:N].astype(jnp.bfloat16),
                       preferred_element_type=jnp.float32)          # (cout, N) f32

    # Zero the concat buffer ONCE per call: keeps the pad ring at exactly 0 (and finite)
    # so the next stage's masked activations never touch uninitialized VMEM.
    cbuf_ref[...] = jnp.zeros_like(cbuf_ref)

    # out1 = conv1(relu(bn1(x)))          F -> F/2
    a1 = jnp.maximum(x * s1_r[...] + b1_r[...], 0.0) * imask
    cbuf_ref[0:F2, PO:PO + N] = conv(a1, w1_r, F)

    # out2 = conv2(relu(bn2(out1)))       F/2 -> F/4
    a2 = jnp.maximum(cbuf_ref[0:F2, :] * s2_r[...] + b2_r[...], 0.0) * imask
    cbuf_ref[F2:F2 + F4, PO:PO + N] = conv(a2, w2_r, F2)

    # out3 = conv3(relu(bn3(out2)))       F/4 -> F/4
    a3 = jnp.maximum(cbuf_ref[F2:F2 + F4, :] * s3_r[...] + b3_r[...], 0.0) * imask
    cbuf_ref[F2 + F4:F, PO:PO + N] = conv(a3, w3_r, F4)

    # concat([out1, out2, out3]) + residual as ONE full-width add (no sliced adds).
    return cbuf_ref[...] + x


# ----------------------------------- fused kernels -----------------------------------

def _head_kernel(geom_h, geom_l, F, x_ref, mh_ref, ml_ref, pool_ref, *refs):
    """Per-level head: up1 = ConvBlock_b1(inp); low1 = ConvBlock_b2(avg_pool2d(inp))."""
    Wp_h, PO_h, N_h = geom_h
    Wp_l, PO_l, N_l = geom_l
    blk1 = refs[0:9]
    blk2 = refs[9:18]
    up1_ref, low1_ref = refs[18], refs[19]
    stack, cbuf_h, cbuf_l = refs[20], refs[21], refs[22]

    x = x_ref[...]
    up1_ref[...] = _cb_apply(x, mh_ref[...], stack, cbuf_h, Wp_h, PO_h, N_h, *blk1)

    # avg_pool2d(inp, 2, stride=2): one resident-matrix matmul (un-pad/re-pad folded in).
    pooled = jnp.dot(x.astype(jnp.bfloat16), pool_ref[...],
                     preferred_element_type=jnp.float32)
    low1_ref[...] = _cb_apply(pooled, ml_ref[...], stack, cbuf_l, Wp_l, PO_l, N_l, *blk2)


def _tail_kernel(geom_l, F, has_plus, low_ref, up1_ref, ml_ref, up_ref, *refs):
    """Per-level tail: [low2 = ConvBlock_b2plus(low1)]; low3 = ConvBlock_b3(low2);
    out = up1 + bicubic_upsample(low3)."""
    Wp, PO, N = geom_l
    i = 9 if has_plus else 0
    blk3 = refs[i:i + 9]
    out_ref = refs[i + 9]
    stack = refs[i + 10]
    cbuf_a = refs[i + 11]
    imask = ml_ref[...]

    x = low_ref[...]
    if has_plus:
        blk_plus = refs[0:9]
        cbuf_b = refs[i + 12]
        x = _cb_apply(x, imask, stack, cbuf_a, Wp, PO, N, *blk_plus)
        low3 = _cb_apply(x, imask, stack, cbuf_b, Wp, PO, N, *blk3)
    else:
        low3 = _cb_apply(x, imask, stack, cbuf_a, Wp, PO, N, *blk3)

    # up2 = bicubic upsample (resident matrix matmul) fused with the residual add.
    out_ref[...] = up1_ref[...] + jnp.dot(low3.astype(jnp.bfloat16), up_ref[...],
                                          preferred_element_type=jnp.float32)


def _full_spec(shape):
    n = len(shape)
    return pl.BlockSpec(shape, lambda i, n=n: (0,) * n)


def _head_call(x, blk1, blk2, h, w, batch, F):
    _, st_h, wp_h, po_h, n_h = _geom(h, w, batch)
    hl, wl = h // 2, w // 2
    _, st_l, wp_l, po_l, n_l = _geom(hl, wl, batch)
    mh = _interior_mask(h, w, batch)
    ml = _interior_mask(hl, wl, batch)
    pool_m = _padded_flat_matrix(_avgpool_axis_matrix(h),
                                 _avgpool_axis_matrix(w), batch).astype(jnp.bfloat16)

    kernel = partial(_head_kernel, (wp_h, po_h, n_h), (wp_l, po_l, n_l), F)
    in_arrays = (x, mh, ml, pool_m) + tuple(blk1) + tuple(blk2)
    return pl.pallas_call(
        kernel,
        out_shape=(jax.ShapeDtypeStruct((F, st_h), jnp.float32),
                   jax.ShapeDtypeStruct((F, st_l), jnp.float32)),
        grid=(1,),
        in_specs=[_full_spec(a.shape) for a in in_arrays],
        out_specs=(_full_spec((F, st_h)), _full_spec((F, st_l))),
        scratch_shapes=[pltpu.VMEM((9 * F, st_h), jnp.float32),   # stacked-K activation
                        pltpu.VMEM((F, st_h), jnp.float32),       # concat buffer (full res)
                        pltpu.VMEM((F, st_l), jnp.float32)],      # concat buffer (half res)
        compiler_params=pltpu.CompilerParams(dimension_semantics=("arbitrary",)),
    )(*in_arrays)


def _tail_call(low_in, up1, blk3, blk_plus, h, w, batch, F):
    _, st_h, _, _, _ = _geom(h, w, batch)
    hl, wl = h // 2, w // 2
    _, st_l, wp_l, po_l, n_l = _geom(hl, wl, batch)
    ml = _interior_mask(hl, wl, batch)
    up_m = _padded_flat_matrix(_bicubic_axis_matrix(h, hl),
                               _bicubic_axis_matrix(w, wl), batch).astype(jnp.bfloat16)
    has_plus = blk_plus is not None

    kernel = partial(_tail_kernel, (wp_l, po_l, n_l), F, has_plus)
    in_arrays = (low_in, up1, ml, up_m) \
        + (tuple(blk_plus) if has_plus else ()) + tuple(blk3)
    scratch = [pltpu.VMEM((9 * F, st_l), jnp.float32),
               pltpu.VMEM((F, st_l), jnp.float32)]
    if has_plus:
        scratch.append(pltpu.VMEM((F, st_l), jnp.float32))
    return pl.pallas_call(
        kernel,
        out_shape=jax.ShapeDtypeStruct((F, st_h), jnp.float32),
        grid=(1,),
        in_specs=[_full_spec(a.shape) for a in in_arrays],
        out_specs=_full_spec((F, st_h)),
        scratch_shapes=scratch,
        compiler_params=pltpu.CompilerParams(dimension_semantics=("arbitrary",)),
    )(*in_arrays)


# ---------------------------------- HourGlass forward ----------------------------------

def hourglass_forward(x_flat, prepared, depth, H, W, batch, F):
    """x_flat: (F, St) padded-flat (batch on the lane dim) at resolution (H, W)."""
    def _forward(level, inp, h, w):
        up1, low1 = _head_call(inp, prepared[f'b1_{level}'], prepared[f'b2_{level}'],
                               h, w, batch, F)
        if level > 1:
            low2 = _forward(level - 1, low1, h // 2, w // 2)
            plus = None
        else:
            low2 = low1
            plus = prepared[f'b2_plus_{level}']
        return _tail_call(low2, up1, prepared[f'b3_{level}'], plus, h, w, batch, F)

    return _forward(depth, x_flat, H, W)


def hourglass_nchw(x_nchw, prepared, depth):
    """PyTorch-convention NCHW in / NCHW out."""
    B, F, H, W = x_nchw.shape
    S = (H + 2) * (W + 2)
    St = _round_up(B * S, 128)
    xp = jnp.pad(x_nchw, ((0, 0), (0, 0), (1, 1), (1, 1)))                    # zero ring
    x_flat = jnp.transpose(xp.reshape(B, F, S), (1, 0, 2)).reshape(F, B * S)
    x_flat = jnp.pad(x_flat, ((0, 0), (0, St - B * S)))                       # lane tail
    out_flat = hourglass_forward(x_flat, prepared, depth, H, W, B, F)
    out = out_flat[:, :B * S].reshape(F, B, H + 2, W + 2)
    return jnp.transpose(out, (1, 0, 2, 3))[:, :, 1:H + 1, 1:W + 1]


# ------------------------------- parameter init / prep -------------------------------
# BN is represented as inference-style per-channel affine (scale, bias).
# TODO(synk): training-mode BatchNorm running-statistics update is not implemented.

def init_conv_block_params(key, features):
    f2, f4 = features // 2, features // 4
    ks = jax.random.split(key, 9)
    n = lambda k, s, sc: sc * jax.random.normal(k, s, jnp.float32)
    return {
        'bn1_s': 1.0 + n(ks[0], (features,), 0.1), 'bn1_b': n(ks[1], (features,), 0.1),
        'conv1_w': n(ks[2], (3, 3, features, f2), 0.1),
        'bn2_s': 1.0 + n(ks[3], (f2,), 0.1),       'bn2_b': n(ks[4], (f2,), 0.1),
        'conv2_w': n(ks[5], (3, 3, f2, f4), 0.1),
        'bn3_s': 1.0 + n(ks[6], (f4,), 0.1),       'bn3_b': n(ks[7], (f4,), 0.1),
        'conv3_w': n(ks[8], (3, 3, f4, f4), 0.1),
    }


def init_hourglass_params(key, depth, features):
    names = []
    for level in range(depth, 0, -1):
        names += [f'b1_{level}', f'b2_{level}']
        if level == 1:
            names.append(f'b2_plus_{level}')
        names.append(f'b3_{level}')
    ks = jax.random.split(key, len(names))
    return {name: init_conv_block_params(k, features) for name, k in zip(names, ks)}


def prepare_conv_block_params(p):
    """One-time reformat to kernel layout: (Cout, 9*Cin) bf16 weights (tap-major K that
    matches the stacked activation) and (C, 1) f32 BN scale/bias columns."""
    def wmat(w):      # HWIO (3,3,Cin,Cout) -> (Cout, 9*Cin)
        return jnp.transpose(w, (3, 0, 1, 2)).reshape(w.shape[3], -1).astype(jnp.bfloat16)

    def col(v):
        return v.reshape(-1, 1).astype(jnp.float32)

    return (wmat(p['conv1_w']), col(p['bn1_s']), col(p['bn1_b']),
            wmat(p['conv2_w']), col(p['bn2_s']), col(p['bn2_b']),
            wmat(p['conv3_w']), col(p['bn3_s']), col(p['bn3_b']))


def prepare_hourglass_params(params):
    return {name: prepare_conv_block_params(p) for name, p in params.items()}


# ------------------------------------- main -------------------------------------

if __name__ == "__main__":
    key = jax.random.PRNGKey(0)
    k_x, k_p = jax.random.split(key)

    num_modules, depth, num_features = 1, 2, 16   # num_modules unused in forward (as in PyTorch)
    B, H, W = 2, 16, 16

    x_nchw = jax.random.normal(k_x, (B, num_features, H, W), jnp.float32)
    params = init_hourglass_params(k_p, depth, num_features)
    prepared = prepare_hourglass_params(params)   # one-time weight reformat (outside jit)

    fwd = jax.jit(hourglass_nchw, static_argnames=("depth",))
    out_nchw = fwd(x_nchw, prepared, depth=depth)
    jax.block_until_ready(out_nchw)

    assert out_nchw.shape == (B, num_features, H, W)
    assert bool(jnp.all(jnp.isfinite(out_nchw)))
    print("KERNEL_OK")
</pallas_src>

<mosaic_0001>
module attributes {stable_mosaic.version = 11 : i64} {
  func.func @_head_kernel(%arg0: i32, %arg1: memref<16x768xf32, #tpu.memory_space<vmem>>, %arg2: memref<1x768xf32, #tpu.memory_space<vmem>>, %arg3: memref<1x256xf32, #tpu.memory_space<vmem>>, %arg4: memref<768x256xbf16, #tpu.memory_space<vmem>>, %arg5: memref<8x144xbf16, #tpu.memory_space<vmem>>, %arg6: memref<16x1xf32, #tpu.memory_space<vmem>>, %arg7: memref<16x1xf32, #tpu.memory_space<vmem>>, %arg8: memref<4x72xbf16, #tpu.memory_space<vmem>>, %arg9: memref<8x1xf32, #tpu.memory_space<vmem>>, %arg10: memref<8x1xf32, #tpu.memory_space<vmem>>, %arg11: memref<4x36xbf16, #tpu.memory_space<vmem>>, %arg12: memref<4x1xf32, #tpu.memory_space<vmem>>, %arg13: memref<4x1xf32, #tpu.memory_space<vmem>>, %arg14: memref<8x144xbf16, #tpu.memory_space<vmem>>, %arg15: memref<16x1xf32, #tpu.memory_space<vmem>>, %arg16: memref<16x1xf32, #tpu.memory_space<vmem>>, %arg17: memref<4x72xbf16, #tpu.memory_space<vmem>>, %arg18: memref<8x1xf32, #tpu.memory_space<vmem>>, %arg19: memref<8x1xf32, #tpu.memory_space<vmem>>, %arg20: memref<4x36xbf16, #tpu.memory_space<vmem>>, %arg21: memref<4x1xf32, #tpu.memory_space<vmem>>, %arg22: memref<4x1xf32, #tpu.memory_space<vmem>>, %arg23: memref<16x768xf32, #tpu.memory_space<vmem>>, %arg24: memref<16x256xf32, #tpu.memory_space<vmem>>, %arg25: memref<144x768xf32, #tpu.memory_space<vmem>>, %arg26: memref<16x768xf32, #tpu.memory_space<vmem>>, %arg27: memref<16x256xf32, #tpu.memory_space<vmem>>) attributes {dimension_semantics = [#tpu.dimension_semantics<arbitrary>], iteration_bounds = array<i64: 1>, scalar_prefetch = 0 : i64, scratch_operands = 3 : i64, tpu.core_type = #tpu.core_type<tc>, window_params = [{pipeline_mode = #tpu.pipeline_mode<synchronous>, transform_indices = @transform_0, window_bounds = array<i64: 16, 768>}, {pipeline_mode = #tpu.pipeline_mode<synchronous>, transform_indices = @transform_1, window_bounds = array<i64: 1, 768>}, {pipeline_mode = #tpu.pipeline_mode<synchronous>, transform_indices = @transform_2, window_bounds = array<i64: 1, 256>}, {pipeline_mode = #tpu.pipeline_mode<synchronous>, transform_indices = @transform_3, window_bounds = array<i64: 768, 256>}, {pipeline_mode = #tpu.pipeline_mode<synchronous>, transform_indices = @transform_4, window_bounds = array<i64: 8, 144>}, {pipeline_mode = #tpu.pipeline_mode<synchronous>, transform_indices = @transform_5, window_bounds = array<i64: 16, 1>}, {pipeline_mode = #tpu.pipeline_mode<synchronous>, transform_indices = @transform_6, window_bounds = array<i64: 16, 1>}, {pipeline_mode = #tpu.pipeline_mode<synchronous>, transform_indices = @transform_7, window_bounds = array<i64: 4, 72>}, {pipeline_mode = #tpu.pipeline_mode<synchronous>, transform_indices = @transform_8, window_bounds = array<i64: 8, 1>}, {pipeline_mode = #tpu.pipeline_mode<synchronous>, transform_indices = @transform_9, window_bounds = array<i64: 8, 1>}, {pipeline_mode = #tpu.pipeline_mode<synchronous>, transform_indices = @transform_10, window_bounds = array<i64: 4, 36>}, {pipeline_mode = #tpu.pipeline_mode<synchronous>, transform_indices = @transform_11, window_bounds = array<i64: 4, 1>}, {pipeline_mode = #tpu.pipeline_mode<synchronous>, transform_indices = @transform_12, window_bounds = array<i64: 4, 1>}, {pipeline_mode = #tpu.pipeline_mode<synchronous>, transform_indices = @transform_13, window_bounds = array<i64: 8, 144>}, {pipeline_mode = #tpu.pipeline_mode<synchronous>, transform_indices = @transform_14, window_bounds = array<i64: 16, 1>}, {pipeline_mode = #tpu.pipeline_mode<synchronous>, transform_indices = @transform_15, window_bounds = array<i64: 16, 1>}, {pipeline_mode = #tpu.pipeline_mode<synchronous>, transform_indices = @transform_16, window_bounds = array<i64: 4, 72>}, {pipeline_mode = #tpu.pipeline_mode<synchronous>, transform_indices = @transform_17, window_bounds = array<i64: 8, 1>}, {pipeline_mode = #tpu.pipeline_mode<synchronous>, transform_indices = @transform_18, window_bounds = array<i64: 8, 1>}, {pipeline_mode = #tpu.pipeline_mode<synchronous>, transform_indices = @transform_19, window_bounds = array<i64: 4, 36>}, {pipeline_mode = #tpu.pipeline_mode<synchronous>, transform_indices = @transform_20, window_bounds = array<i64: 4, 1>}, {pipeline_mode = #tpu.pipeline_mode<synchronous>, transform_indices = @transform_21, window_bounds = array<i64: 4, 1>}, {pipeline_mode = #tpu.pipeline_mode<synchronous>, transform_indices = @transform_22, window_bounds = array<i64: 16, 768>}, {pipeline_mode = #tpu.pipeline_mode<synchronous>, transform_indices = @transform_23, window_bounds = array<i64: 16, 256>}]} {
    %c0 = arith.constant 0 : index
    %c0_0 = arith.constant 0 : index
    %0 = vector.load %arg1[%c0, %c0_0] : memref<16x768xf32, #tpu.memory_space<vmem>>, vector<16x768xf32>
    %c0_1 = arith.constant 0 : index
    %c0_2 = arith.constant 0 : index
    %1 = vector.load %arg2[%c0_1, %c0_2] : memref<1x768xf32, #tpu.memory_space<vmem>>, vector<1x768xf32>
    %cst = arith.constant 0.000000e+00 : f32
    %2 = vector.broadcast %cst : f32 to vector<16x768xf32>
    %c0_3 = arith.constant 0 : index
    %c0_4 = arith.constant 0 : index
    %3 = vector.load %arg26[%c0_3, %c0_4] : memref<16x768xf32, #tpu.memory_space<vmem>>, vector<16x768xf32>
    tpu.vector_store %arg26[%c0_3, %c0_4], %2 {strides = array<i32>} : memref<16x768xf32, #tpu.memory_space<vmem>>, vector<16x768xf32>,
    %c0_5 = arith.constant 0 : index
    %c0_6 = arith.constant 0 : index
    %4 = vector.load %arg6[%c0_5, %c0_6] : memref<16x1xf32, #tpu.memory_space<vmem>>, vector<16x1xf32>
    %5 = vector.broadcast %4 : vector<16x1xf32> to vector<16x768xf32>
    %6 = arith.mulf %0, %5 : vector<16x768xf32>
    %c0_7 = arith.constant 0 : index
    %c0_8 = arith.constant 0 : index
    %7 = vector.load %arg7[%c0_7, %c0_8] : memref<16x1xf32, #tpu.memory_space<vmem>>, vector<16x1xf32>
    %8 = vector.broadcast %7 : vector<16x1xf32> to vector<16x768xf32>
    %9 = arith.addf %6, %8 : vector<16x768xf32>
    %cst_9 = arith.constant 0.000000e+00 : f32
    %10 = vector.broadcast %cst_9 : f32 to vector<16x768xf32>
    %11 = arith.maximumf %9, %10 : vector<16x768xf32>
    %12 = vector.broadcast %1 : vector<1x768xf32> to vector<16x768xf32>
    %13 = arith.mulf %11, %12 : vector<16x768xf32>
    %14 = vector.extract_strided_slice %13 {offsets = [0, 0], sizes = [16, 610], strides = [1, 1]} : vector<16x768xf32> to vector<16x610xf32>
    %c0_10 = arith.constant 0 : index
    %c0_11 = arith.constant 0 : index
    %15 = vector.load %arg25[%c0_10, %c0_11] : memref<144x768xf32, #tpu.memory_space<vmem>>, vector<16x610xf32>
    tpu.vector_store %arg25[%c0_10, %c0_11], %14 {strides = array<i32>} : memref<144x768xf32, #tpu.memory_space<vmem>>, vector<16x610xf32>,
    %16 = vector.extract_strided_slice %13 {offsets = [0, 1], sizes = [16, 610], strides = [1, 1]} : vector<16x768xf32> to vector<16x610xf32>
    %c16 = arith.constant 16 : index
    %c0_12 = arith.constant 0 : index
    %17 = vector.load %arg25[%c16, %c0_12] : memref<144x768xf32, #tpu.memory_space<vmem>>, vector<16x610xf32>
    tpu.vector_store %arg25[%c16, %c0_12], %16 {strides = array<i32>} : memref<144x768xf32, #tpu.memory_space<vmem>>, vector<16x610xf32>,
    %18 = vector.extract_strided_slice %13 {offsets = [0, 2], sizes = [16, 610], strides = [1, 1]} : vector<16x768xf32> to vector<16x610xf32>
    %c32 = arith.constant 32 : index
    %c0_13 = arith.constant 0 : index
    %19 = vector.load %arg25[%c32, %c0_13] : memref<144x768xf32, #tpu.memory_space<vmem>>, vector<16x610xf32>
    tpu.vector_store %arg25[%c32, %c0_13], %18 {strides = array<i32>} : memref<144x768xf32, #tpu.memory_space<vmem>>, vector<16x610xf32>,
    %20 = vector.extract_strided_slice %13 {offsets = [0, 18], sizes = [16, 610], strides = [1, 1]} : vector<16x768xf32> to vector<16x610xf32>
    %c48 = arith.constant 48 : index
    %c0_14 = arith.constant 0 : index
    %21 = vector.load %arg25[%c48, %c0_14] : memref<144x768xf32, #tpu.memory_space<vmem>>, vector<16x610xf32>
    tpu.vector_store %arg25[%c48, %c0_14], %20 {strides = array<i32>} : memref<144x768xf32, #tpu.memory_space<vmem>>, vector<16x610xf32>,
    %22 = vector.extract_strided_slice %13 {offsets = [0, 19], sizes = [16, 610], strides = [1, 1]} : vector<16x768xf32> to vector<16x610xf32>
    %c64 = arith.constant 64 : index
    %c0_15 = arith.constant 0 : index
    %23 = vector.load %arg25[%c64, %c0_15] : memref<144x768xf32, #tpu.memory_space<vmem>>, vector<16x610xf32>
    tpu.vector_store %arg25[%c64, %c0_15], %22 {strides = array<i32>} : memref<144x768xf32, #tpu.memory_space<vmem>>, vector<16x610xf32>,
    %24 = vector.extract_strided_slice %13 {offsets = [0, 20], sizes = [16, 610], strides = [1, 1]} : vector<16x768xf32> to vector<16x610xf32>
    %c80 = arith.constant 80 : index
    %c0_16 = arith.constant 0 : index
    %25 = vector.load %arg25[%c80, %c0_16] : memref<144x768xf32, #tpu.memory_space<vmem>>, vector<16x610xf32>
    tpu.vector_store %arg25[%c80, %c0_16], %24 {strides = array<i32>} : memref<144x768xf32, #tpu.memory_space<vmem>>, vector<16x610xf32>,
    %26 = vector.extract_strided_slice %13 {offsets = [0, 36], sizes = [16, 610], strides = [1, 1]} : vector<16x768xf32> to vector<16x610xf32>
    %c96 = arith.constant 96 : index
    %c0_17 = arith.constant 0 : index
    %27 = vector.load %arg25[%c96, %c0_17] : memref<144x768xf32, #tpu.memory_space<vmem>>, vector<16x610xf32>
    tpu.vector_store %arg25[%c96, %c0_17], %26 {strides = array<i32>} : memref<144x768xf32, #tpu.memory_space<vmem>>, vector<16x610xf32>,
    %28 = vector.extract_strided_slice %13 {offsets = [0, 37], sizes = [16, 610], strides = [1, 1]} : vector<16x768xf32> to vector<16x610xf32>
    %c112 = arith.constant 112 : index
    %c0_18 = arith.constant 0 : index
    %29 = vector.load %arg25[%c112, %c0_18] : memref<144x768xf32, #tpu.memory_space<vmem>>, vector<16x610xf32>
    tpu.vector_store %arg25[%c112, %c0_18], %28 {strides = array<i32>} : memref<144x768xf32, #tpu.memory_space<vmem>>, vector<16x610xf32>,
    %30 = vector.extract_strided_slice %13 {offsets = [0, 38], sizes = [16, 610], strides = [1, 1]} : vector<16x768xf32> to vector<16x610xf32>
    %c128 = arith.constant 128 : index
    %c0_19 = arith.constant 0 : index
    %31 = vector.load %arg25[%c128, %c0_19] : memref<144x768xf32, #tpu.memory_space<vmem>>, vector<16x610xf32>
    tpu.vector_store %arg25[%c128, %c0_19], %30 {strides = array<i32>} : memref<144x768xf32, #tpu.memory_space<vmem>>, vector<16x610xf32>,
    %c0_20 = arith.constant 0 : index
    %c0_21 = arith.constant 0 : index
    %32 = vector.load %arg5[%c0_20, %c0_21] : memref<8x144xbf16, #tpu.memory_space<vmem>>, vector<8x144xbf16>
    %c0_22 = arith.constant 0 : index
    %c0_23 = arith.constant 0 : index
    %33 = vector.load %arg25[%c0_22, %c0_23] : memref<144x768xf32, #tpu.memory_space<vmem>>, vector<144x610xf32>
    %34 = arith.truncf %33 : vector<144x610xf32> to vector<144x610xbf16>
    %cst_24 = arith.constant dense<0.000000e+00> : vector<8x610xf32>
    %35 = tpu.matmul %32, %34, %cst_24 {dimension_numbers = #tpu.dot_dimension_numbers<[1], [0], [0], [1], [0, 0, 1, 1], [], []>} : vector<8x144xbf16>, vector<144x610xbf16>, vector<8x610xf32> -> vector<8x610xf32>
    %c0_25 = arith.constant 0 : index
    %c19 = arith.constant 19 : index
    %36 = vector.load %arg26[%c0_25, %c19] : memref<16x768xf32, #tpu.memory_space<vmem>>, vector<8x610xf32>
    tpu.vector_store %arg26[%c0_25, %c19], %35 {strides = array<i32>} : memref<16x768xf32, #tpu.memory_space<vmem>>, vector<8x610xf32>,
    %c0_26 = arith.constant 0 : index
    %c0_27 = arith.constant 0 : index
    %37 = vector.load %arg26[%c0_26, %c0_27] : memref<16x768xf32, #tpu.memory_space<vmem>>, vector<8x768xf32>
    %c0_28 = arith.constant 0 : index
    %c0_29 = arith.constant 0 : index
    %38 = vector.load %arg9[%c0_28, %c0_29] : memref<8x1xf32, #tpu.memory_space<vmem>>, vector<8x1xf32>
    %39 = vector.broadcast %38 : vector<8x1xf32> to vector<8x768xf32>
    %40 = arith.mulf %37, %39 : vector<8x768xf32>
    %c0_30 = arith.constant 0 : index
    %c0_31 = arith.constant 0 : index
    %41 = vector.load %arg10[%c0_30, %c0_31] : memref<8x1xf32, #tpu.memory_space<vmem>>, vector<8x1xf32>
    %42 = vector.broadcast %41 : vector<8x1xf32> to vector<8x768xf32>
    %43 = arith.addf %40, %42 : vector<8x768xf32>
    %cst_32 = arith.constant 0.000000e+00 : f32
    %44 = vector.broadcast %cst_32 : f32 to vector<8x768xf32>
    %45 = arith.maximumf %43, %44 : vector<8x768xf32>
    %46 = vector.broadcast %1 : vector<1x768xf32> to vector<8x768xf32>
    %47 = arith.mulf %45, %46 : vector<8x768xf32>
    %48 = vector.extract_strided_slice %47 {offsets = [0, 0], sizes = [8, 610], strides = [1, 1]} : vector<8x768xf32> to vector<8x610xf32>
    %c0_33 = arith.constant 0 : index
    %c0_34 = arith.constant 0 : index
    %49 = vector.load %arg25[%c0_33, %c0_34] : memref<144x768xf32, #tpu.memory_space<vmem>>, vector<8x610xf32>
    tpu.vector_store %arg25[%c0_33, %c0_34], %48 {strides = array<i32>} : memref<144x768xf32, #tpu.memory_space<vmem>>, vector<8x610xf32>,
    %50 = vector.extract_strided_slice %47 {offsets = [0, 1], sizes = [8, 610], strides = [1, 1]} : vector<8x768xf32> to vector<8x610xf32>
    %c8 = arith.constant 8 : index
    %c0_35 = arith.constant 0 : index
    %51 = vector.load %arg25[%c8, %c0_35] : memref<144x768xf32, #tpu.memory_space<vmem>>, vector<8x610xf32>
    tpu.vector_store %arg25[%c8, %c0_35], %50 {strides = array<i32>} : memref<144x768xf32, #tpu.memory_space<vmem>>, vector<8x610xf32>,
    %52 = vector.extract_strided_slice %47 {offsets = [0, 2], sizes = [8, 610], strides = [1, 1]} : vector<8x768xf32> to vector<8x610xf32>
    %c16_36 = arith.constant 16 : index
    %c0_37 = arith.constant 0 : index
    %53 = vector.load %arg25[%c16_36, %c0_37] : memref<144x768xf32, #tpu.memory_space<vmem>>, vector<8x610xf32>
    tpu.vector_store %arg25[%c16_36, %c0_37], %52 {strides = array<i32>} : memref<144x768xf32, #tpu.memory_space<vmem>>, vector<8x610xf32>,
    %54 = vector.extract_strided_slice %47 {offsets = [0, 18], sizes = [8, 610], strides = [1, 1]} : vector<8x768xf32> to vector<8x610xf32>
    %c24 = arith.constant 24 : index
    %c0_38 = arith.constant 0 : index
    %55 = vector.load %arg25[%c24, %c0_38] : memref<144x768xf32, #tpu.memory_space<vmem>>, vector<8x610xf32>
    tpu.vector_store %arg25[%c24, %c0_38], %54 {strides = array<i32>} : memref<144x768xf32, #tpu.memory_space<vmem>>, vector<8x610xf32>,
    %56 = vector.extract_strided_slice %47 {offsets = [0, 19], sizes = [8, 610], strides = [1, 1]} : vector<8x768xf32> to vector<8x610xf32>
    %c32_39 = arith.constant 32 : index
    %c0_40 = arith.constant 0 : index
    %57 = vector.load %arg25[%c32_39, %c0_40] : memref<144x768xf32, #tpu.memory_space<vmem>>, vector<8x610xf32>
    tpu.vector_store %arg25[%c32_39, %c0_40], %56 {strides = array<i32>} : memref<144x768xf32, #tpu.memory_space<vmem>>, vector<8x610xf32>,
    %58 = vector.extract_strided_slice %47 {offsets = [0, 20], sizes = [8, 610], strides = [1, 1]} : vector<8x768xf32> to vector<8x610xf32>
    %c40 = arith.constant 40 : index
    %c0_41 = arith.constant 0 : index
    %59 = vector.load %arg25[%c40, %c0_41] : memref<144x768xf32, #tpu.memory_space<vmem>>, vector<8x610xf32>
    tpu.vector_store %arg25[%c40, %c0_41], %58 {strides = array<i32>} : memref<144x768xf32, #tpu.memory_space<vmem>>, vector<8x610xf32>,
    %60 = vector.extract_strided_slice %47 {offsets = [0, 36], sizes = [8, 610], strides = [1, 1]} : vector<8x768xf32> to vector<8x610xf32>
    %c48_42 = arith.constant 48 : index
    %c0_43 = arith.constant 0 : index
    %61 = vector.load %arg25[%c48_42, %c0_43] : memref<144x768xf32, #tpu.memory_space<vmem>>, vector<8x610xf32>
    tpu.vector_store %arg25[%c48_42, %c0_43], %60 {strides = array<i32>} : memref<144x768xf32, #tpu.memory_space<vmem>>, vector<8x610xf32>,
    %62 = vector.extract_strided_slice %47 {offsets = [0, 37], sizes = [8, 610], strides = [1, 1]} : vector<8x768xf32> to vector<8x610xf32>
    %c56 = arith.constant 56 : index
    %c0_44 = arith.constant 0 : index
    %63 = vector.load %arg25[%c56, %c0_44] : memref<144x768xf32, #tpu.memory_space<vmem>>, vector<8x610xf32>
    tpu.vector_store %arg25[%c56, %c0_44], %62 {strides = array<i32>} : memref<144x768xf32, #tpu.memory_space<vmem>>, vector<8x610xf32>,
    %64 = vector.extract_strided_slice %47 {offsets = [0, 38], sizes = [8, 610], strides = [1, 1]} : vector<8x768xf32> to vector<8x610xf32>
    %c64_45 = arith.constant 64 : index
    %c0_46 = arith.constant 0 : index
    %65 = vector.load %arg25[%c64_45, %c0_46] : memref<144x768xf32, #tpu.memory_space<vmem>>, vector<8x610xf32>
    tpu.vector_store %arg25[%c64_45, %c0_46], %64 {strides = array<i32>} : memref<144x768xf32, #tpu.memory_space<vmem>>, vector<8x610xf32>,
    %c0_47 = arith.constant 0 : index
    %c0_48 = arith.constant 0 : index
    %66 = vector.load %arg8[%c0_47, %c0_48] : memref<4x72xbf16, #tpu.memory_space<vmem>>, vector<4x72xbf16>
    %c0_49 = arith.constant 0 : index
    %c0_50 = arith.constant 0 : index
    %67 = vector.load %arg25[%c0_49, %c0_50] : memref<144x768xf32, #tpu.memory_space<vmem>>, vector<72x610xf32>
    %68 = arith.truncf %67 : vector<72x610xf32> to vector<72x610xbf16>
    %cst_51 = arith.constant dense<0.000000e+00> : vector<4x610xf32>
    %69 = tpu.matmul %66, %68, %cst_51 {dimension_numbers = #tpu.dot_dimension_numbers<[1], [0], [0], [1], [0, 0, 1, 1], [], []>} : vector<4x72xbf16>, vector<72x610xbf16>, vector<4x610xf32> -> vector<4x610xf32>
    %c8_52 = arith.constant 8 : index
    %c19_53 = arith.constant 19 : index
    %70 = vector.load %arg26[%c8_52, %c19_53] : memref<16x768xf32, #tpu.memory_space<vmem>>, vector<4x610xf32>
    tpu.vector_store %arg26[%c8_52, %c19_53], %69 {strides = array<i32>} : memref<16x768xf32, #tpu.memory_space<vmem>>, vector<4x610xf32>,
    %c8_54 = arith.constant 8 : index
    %c0_55 = arith.constant 0 : index
    %71 = vector.load %arg26[%c8_54, %c0_55] : memref<16x768xf32, #tpu.memory_space<vmem>>, vector<4x768xf32>
    %c0_56 = arith.constant 0 : index
    %c0_57 = arith.constant 0 : index
    %72 = vector.load %arg12[%c0_56, %c0_57] : memref<4x1xf32, #tpu.memory_space<vmem>>, vector<4x1xf32>
    %73 = vector.broadcast %72 : vector<4x1xf32> to vector<4x768xf32>
    %74 = arith.mulf %71, %73 : vector<4x768xf32>
    %c0_58 = arith.constant 0 : index
    %c0_59 = arith.constant 0 : index
    %75 = vector.load %arg13[%c0_58, %c0_59] : memref<4x1xf32, #tpu.memory_space<vmem>>, vector<4x1xf32>
    %76 = vector.broadcast %75 : vector<4x1xf32> to vector<4x768xf32>
    %77 = arith.addf %74, %76 : vector<4x768xf32>
    %cst_60 = arith.constant 0.000000e+00 : f32
    %78 = vector.broadcast %cst_60 : f32 to vector<4x768xf32>
    %79 = arith.maximumf %77, %78 : vector<4x768xf32>
    %80 = vector.broadcast %1 : vector<1x768xf32> to vector<4x768xf32>
    %81 = arith.mulf %79, %80 : vector<4x768xf32>
    %82 = vector.extract_strided_slice %81 {offsets = [0, 0], sizes = [4, 610], strides = [1, 1]} : vector<4x768xf32> to vector<4x610xf32>
    %c0_61 = arith.constant 0 : index
    %c0_62 = arith.constant 0 : index
    %83 = vector.load %arg25[%c0_61, %c0_62] : memref<144x768xf32, #tpu.memory_space<vmem>>, vector<4x610xf32>
    tpu.vector_store %arg25[%c0_61, %c0_62], %82 {strides = array<i32>} : memref<144x768xf32, #tpu.memory_space<vmem>>, vector<4x610xf32>,
    %84 = vector.extract_strided_slice %81 {offsets = [0, 1], sizes = [4, 610], strides = [1, 1]} : vector<4x768xf32> to vector<4x610xf32>
    %c4 = arith.constant 4 : index
    %c0_63 = arith.constant 0 : index
    %85 = vector.load %arg25[%c4, %c0_63] : memref<144x768xf32, #tpu.memory_space<vmem>>, vector<4x610xf32>
    tpu.vector_store %arg25[%c4, %c0_63], %84 {strides = array<i32>} : memref<144x768xf32, #tpu.memory_space<vmem>>, vector<4x610xf32>,
    %86 = vector.extract_strided_slice %81 {offsets = [0, 2], sizes = [4, 610], strides = [1, 1]} : vector<4x768xf32> to vector<4x610xf32>
    %c8_64 = arith.constant 8 : index
    %c0_65 = arith.constant 0 : index
    %87 = vector.load %arg25[%c8_64, %c0_65] : memref<144x768xf32, #tpu.memory_space<vmem>>, vector<4x610xf32>
    tpu.vector_store %arg25[%c8_64, %c0_65], %86 {strides = array<i32>} : memref<144x768xf32, #tpu.memory_space<vmem>>, vector<4x610xf32>,
    %88 = vector.extract_strided_slice %81 {offsets = [0, 18], sizes = [4, 610], strides = [1, 1]} : vector<4x768xf32> to vector<4x610xf32>
    %c12 = arith.constant 12 : index
    %c0_66 = arith.constant 0 : index
    %89 = vector.load %arg25[%c12, %c0_66] : memref<144x768xf32, #tpu.memory_space<vmem>>, vector<4x610xf32>
    tpu.vector_store %arg25[%c12, %c0_66], %88 {strides = array<i32>} : memref<144x768xf32, #tpu.memory_space<vmem>>, vector<4x610xf32>,
    %90 = vector.extract_strided_slice %81 {offsets = [0, 19], sizes = [4, 610], strides = [1, 1]} : vector<4x768xf32> to vector<4x610xf32>
    %c16_67 = arith.constant 16 : index
    %c0_68 = arith.constant 0 : index
    %91 = vector.load %arg25[%c16_67, %c0_68] : memref<144x768xf32, #tpu.memory_space<vmem>>, vector<4x610xf32>
    tpu.vector_store %arg25[%c16_67, %c0_68], %90 {strides = array<i32>} : memref<144x768xf32, #tpu.memory_space<vmem>>, vector<4x610xf32>,
    %92 = vector.extract_strided_slice %81 {offsets = [0, 20], sizes = [4, 610], strides = [1, 1]} : vector<4x768xf32> to vector<4x610xf32>
    %c20 = arith.constant 20 : index
    %c0_69 = arith.constant 0 : index
    %93 = vector.load %arg25[%c20, %c0_69] : memref<144x768xf32, #tpu.memory_space<vmem>>, vector<4x610xf32>
    tpu.vector_store %arg25[%c20, %c0_69], %92 {strides = array<i32>} : memref<144x768xf32, #tpu.memory_space<vmem>>, vector<4x610xf32>,
    %94 = vector.extract_strided_slice %81 {offsets = [0, 36], sizes = [4, 610], strides = [1, 1]} : vector<4x768xf32> to vector<4x610xf32>
    %c24_70 = arith.constant 24 : index
    %c0_71 = arith.constant 0 : index
    %95 = vector.load %arg25[%c24_70, %c0_71] : memref<144x768xf32, #tpu.memory_space<vmem>>, vector<4x610xf32>
    tpu.vector_store %arg25[%c24_70, %c0_71], %94 {strides = array<i32>} : memref<144x768xf32, #tpu.memory_space<vmem>>, vector<4x610xf32>,
    %96 = vector.extract_strided_slice %81 {offsets = [0, 37], sizes = [4, 610], strides = [1, 1]} : vector<4x768xf32> to vector<4x610xf32>
    %c28 = arith.constant 28 : index
    %c0_72 = arith.constant 0 : index
    %97 = vector.load %arg25[%c28, %c0_72] : memref<144x768xf32, #tpu.memory_space<vmem>>, vector<4x610xf32>
    tpu.vector_store %arg25[%c28, %c0_72], %96 {strides = array<i32>} : memref<144x768xf32, #tpu.memory_space<vmem>>, vector<4x610xf32>,
    %98 = vector.extract_strided_slice %81 {offsets = [0, 38], sizes = [4, 610], strides = [1, 1]} : vector<4x768xf32> to vector<4x610xf32>
    %c32_73 = arith.constant 32 : index
    %c0_74 = arith.constant 0 : index
    %99 = vector.load %arg25[%c32_73, %c0_74] : memref<144x768xf32, #tpu.memory_space<vmem>>, vector<4x610xf32>
    tpu.vector_store %arg25[%c32_73, %c0_74], %98 {strides = array<i32>} : memref<144x768xf32, #tpu.memory_space<vmem>>, vector<4x610xf32>,
    %c0_75 = arith.constant 0 : index
    %c0_76 = arith.constant 0 : index
    %100 = vector.load %arg11[%c0_75, %c0_76] : memref<4x36xbf16, #tpu.memory_space<vmem>>, vector<4x36xbf16>
    %c0_77 = arith.constant 0 : index
    %c0_78 = arith.constant 0 : index
    %101 = vector.load %arg25[%c0_77, %c0_78] : memref<144x768xf32, #tpu.memory_space<vmem>>, vector<36x610xf32>
    %102 = arith.truncf %101 : vector<36x610xf32> to vector<36x610xbf16>
    %cst_79 = arith.constant dense<0.000000e+00> : vector<4x610xf32>
    %103 = tpu.matmul %100, %102, %cst_79 {dimension_numbers = #tpu.dot_dimension_numbers<[1], [0], [0], [1], [0, 0, 1, 1], [], []>} : vector<4x36xbf16>, vector<36x610xbf16>, vector<4x610xf32> -> vector<4x610xf32>
    %c12_80 = arith.constant 12 : index
    %c19_81 = arith.constant 19 : index
    %104 = vector.load %arg26[%c12_80, %c19_81] : memref<16x768xf32, #tpu.memory_space<vmem>>, vector<4x610xf32>
    tpu.vector_store %arg26[%c12_80, %c19_81], %103 {strides = array<i32>} : memref<16x768xf32, #tpu.memory_space<vmem>>, vector<4x610xf32>,
    %c0_82 = arith.constant 0 : index
    %c0_83 = arith.constant 0 : index
    %105 = vector.load %arg26[%c0_82, %c0_83] : memref<16x768xf32, #tpu.memory_space<vmem>>, vector<16x768xf32>
    %106 = arith.addf %105, %0 : vector<16x768xf32>
    %c0_84 = arith.constant 0 : index
    %c0_85 = arith.constant 0 : index
    %107 = vector.load %arg23[%c0_84, %c0_85] : memref<16x768xf32, #tpu.memory_space<vmem>>, vector<16x768xf32>
    tpu.vector_store %arg23[%c0_84, %c0_85], %106 {strides = array<i32>} : memref<16x768xf32, #tpu.memory_space<vmem>>, vector<16x768xf32>,
    %108 = arith.truncf %0 : vector<16x768xf32> to vector<16x768xbf16>
    %c0_86 = arith.constant 0 : index
    %c0_87 = arith.constant 0 : index
    %109 = vector.load %arg4[%c0_86, %c0_87] : memref<768x256xbf16, #tpu.memory_space<vmem>>, vector<768x256xbf16>
    %cst_88 = arith.constant dense<0.000000e+00> : vector<16x256xf32>
    %110 = tpu.matmul %108, %109, %cst_88 {dimension_numbers = #tpu.dot_dimension_numbers<[1], [0], [0], [1], [0, 0, 1, 1], [], []>} : vector<16x768xbf16>, vector<768x256xbf16>, vector<16x256xf32> -> vector<16x256xf32>
    %c0_89 = arith.constant 0 : index
    %c0_90 = arith.constant 0 : index
    %111 = vector.load %arg3[%c0_89, %c0_90] : memref<1x256xf32, #tpu.memory_space<vmem>>, vector<1x256xf32>
    %cst_91 = arith.constant 0.000000e+00 : f32
    %112 = vector.broadcast %cst_91 : f32 to vector<16x256xf32>
    %c0_92 = arith.constant 0 : index
    %c0_93 = arith.constant 0 : index
    %113 = vector.load %arg27[%c0_92, %c0_93] : memref<16x256xf32, #tpu.memory_space<vmem>>, vector<16x256xf32>
    tpu.vector_store %arg27[%c0_92, %c0_93], %112 {strides = array<i32>} : memref<16x256xf32, #tpu.memory_space<vmem>>, vector<16x256xf32>,
    %c0_94 = arith.constant 0 : index
    %c0_95 = arith.constant 0 : index
    %114 = vector.load %arg15[%c0_94, %c0_95] : memref<16x1xf32, #tpu.memory_space<vmem>>, vector<16x1xf32>
    %115 = vector.broadcast %114 : vector<16x1xf32> to vector<16x256xf32>
    %116 = arith.mulf %110, %115 : vector<16x256xf32>
    %c0_96 = arith.constant 0 : index
    %c0_97 = arith.constant 0 : index
    %117 = vector.load %arg16[%c0_96, %c0_97] : memref<16x1xf32, #tpu.memory_space<vmem>>, vector<16x1xf32>
    %118 = vector.broadcast %117 : vector<16x1xf32> to vector<16x256xf32>
    %119 = arith.addf %116, %118 : vector<16x256xf32>
    %cst_98 = arith.constant 0.000000e+00 : f32
    %120 = vector.broadcast %cst_98 : f32 to vector<16x256xf32>
    %121 = arith.maximumf %119, %120 : vector<16x256xf32>
    %122 = vector.broadcast %111 : vector<1x256xf32> to vector<16x256xf32>
    %123 = arith.mulf %121, %122 : vector<16x256xf32>
    %124 = vector.extract_strided_slice %123 {offsets = [0, 0], sizes = [16, 178], strides = [1, 1]} : vector<16x256xf32> to vector<16x178xf32>
    %c0_99 = arith.constant 0 : index
    %c0_100 = arith.constant 0 : index
    %125 = vector.load %arg25[%c0_99, %c0_100] : memref<144x768xf32, #tpu.memory_space<vmem>>, vector<16x178xf32>
    tpu.vector_store %arg25[%c0_99, %c0_100], %124 {strides = array<i32>} : memref<144x768xf32, #tpu.memory_space<vmem>>, vector<16x178xf32>,
    %126 = vector.extract_strided_slice %123 {offsets = [0, 1], sizes = [16, 178], strides = [1, 1]} : vector<16x256xf32> to vector<16x178xf32>
    %c16_101 = arith.constant 16 : index
    %c0_102 = arith.constant 0 : index
    %127 = vector.load %arg25[%c16_101, %c0_102] : memref<144x768xf32, #tpu.memory_space<vmem>>, vector<16x178xf32>
    tpu.vector_store %arg25[%c16_101, %c0_102], %126 {strides = array<i32>} : memref<144x768xf32, #tpu.memory_space<vmem>>, vector<16x178xf32>,
    %128 = vector.extract_strided_slice %123 {offsets = [0, 2], sizes = [16, 178], strides = [1, 1]} : vector<16x256xf32> to vector<16x178xf32>
    %c32_103 = arith.constant 32 : index
    %c0_104 = arith.constant 0 : index
    %129 = vector.load %arg25[%c32_103, %c0_104] : memref<144x768xf32, #tpu.memory_space<vmem>>, vector<16x178xf32>
    tpu.vector_store %arg25[%c32_103, %c0_104], %128 {strides = array<i32>} : memref<144x768xf32, #tpu.memory_space<vmem>>, vector<16x178xf32>,
    %130 = vector.extract_strided_slice %123 {offsets = [0, 10], sizes = [16, 178], strides = [1, 1]} : vector<16x256xf32> to vector<16x178xf32>
    %c48_105 = arith.constant 48 : index
    %c0_106 = arith.constant 0 : index
    %131 = vector.load %arg25[%c48_105, %c0_106] : memref<144x768xf32, #tpu.memory_space<vmem>>, vector<16x178xf32>
    tpu.vector_store %arg25[%c48_105, %c0_106], %130 {strides = array<i32>} : memref<144x768xf32, #tpu.memory_space<vmem>>, vector<16x178xf32>,
    %132 = vector.extract_strided_slice %123 {offsets = [0, 11], sizes = [16, 178], strides = [1, 1]} : vector<16x256xf32> to vector<16x178xf32>
    %c64_107 = arith.constant 64 : index
    %c0_108 = arith.constant 0 : index
    %133 = vector.load %arg25[%c64_107, %c0_108] : memref<144x768xf32, #tpu.memory_space<vmem>>, vector<16x178xf32>
    tpu.vector_store %arg25[%c64_107, %c0_108], %132 {strides = array<i32>} : memref<144x768xf32, #tpu.memory_space<vmem>>, vector<16x178xf32>,
    %134 = vector.extract_strided_slice %123 {offsets = [0, 12], sizes = [16, 178], strides = [1, 1]} : vector<16x256xf32> to vector<16x178xf32>
    %c80_109 = arith.constant 80 : index
    %c0_110 = arith.constant 0 : index
    %135 = vector.load %arg25[%c80_109, %c0_110] : memref<144x768xf32, #tpu.memory_space<vmem>>, vector<16x178xf32>
    tpu.vector_store %arg25[%c80_109, %c0_110], %134 {strides = array<i32>} : memref<144x768xf32, #tpu.memory_space<vmem>>, vector<16x178xf32>,
    %136 = vector.extract_strided_slice %123 {offsets = [0, 20], sizes = [16, 178], strides = [1, 1]} : vector<16x256xf32> to vector<16x178xf32>
    %c96_111 = arith.constant 96 : index
    %c0_112 = arith.constant 0 : index
    %137 = vector.load %arg25[%c96_111, %c0_112] : memref<144x768xf32, #tpu.memory_space<vmem>>, vector<16x178xf32>
    tpu.vector_store %arg25[%c96_111, %c0_112], %136 {strides = array<i32>} : memref<144x768xf32, #tpu.memory_space<vmem>>, vector<16x178xf32>,
    %138 = vector.extract_strided_slice %123 {offsets = [0, 21], sizes = [16, 178], strides = [1, 1]} : vector<16x256xf32> to vector<16x178xf32>
    %c112_113 = arith.constant 112 : index
    %c0_114 = arith.constant 0 : index
    %139 = vector.load %arg25[%c112_113, %c0_114] : memref<144x768xf32, #tpu.memory_space<vmem>>, vector<16x178xf32>
    tpu.vector_store %arg25[%c112_113, %c0_114], %138 {strides = array<i32>} : memref<144x768xf32, #tpu.memory_space<vmem>>, vector<16x178xf32>,
    %140 = vector.extract_strided_slice %123 {offsets = [0, 22], sizes = [16, 178], strides = [1, 1]} : vector<16x256xf32> to vector<16x178xf32>
    %c128_115 = arith.constant 128 : index
    %c0_116 = arith.constant 0 : index
    %141 = vector.load %arg25[%c128_115, %c0_116] : memref<144x768xf32, #tpu.memory_space<vmem>>, vector<16x178xf32>
    tpu.vector_store %arg25[%c128_115, %c0_116], %140 {strides = array<i32>} : memref<144x768xf32, #tpu.memory_space<vmem>>, vector<16x178xf32>,
    %c0_117 = arith.constant 0 : index
    %c0_118 = arith.constant 0 : index
    %142 = vector.load %arg14[%c0_117, %c0_118] : memref<8x144xbf16, #tpu.memory_space<vmem>>, vector<8x144xbf16>
    %c0_119 = arith.constant 0 : index
    %c0_120 = arith.constant 0 : index
    %143 = vector.load %arg25[%c0_119, %c0_120] : memref<144x768xf32, #tpu.memory_space<vmem>>, vector<144x178xf32>
    %144 = arith.truncf %143 : vector<144x178xf32> to vector<144x178xbf16>
    %cst_121 = arith.constant dense<0.000000e+00> : vector<8x178xf32>
    %145 = tpu.matmul %142, %144, %cst_121 {dimension_numbers = #tpu.dot_dimension_numbers<[1], [0], [0], [1], [0, 0, 1, 1], [], []>} : vector<8x144xbf16>, vector<144x178xbf16>, vector<8x178xf32> -> vector<8x178xf32>
    %c0_122 = arith.constant 0 : index
    %c11 = arith.constant 11 : index
    %146 = vector.load %arg27[%c0_122, %c11] : memref<16x256xf32, #tpu.memory_space<vmem>>, vector<8x178xf32>
    tpu.vector_store %arg27[%c0_122, %c11], %145 {strides = array<i32>} : memref<16x256xf32, #tpu.memory_space<vmem>>, vector<8x178xf32>,
    %c0_123 = arith.constant 0 : index
    %c0_124 = arith.constant 0 : index
    %147 = vector.load %arg27[%c0_123, %c0_124] : memref<16x256xf32, #tpu.memory_space<vmem>>, vector<8x256xf32>
    %c0_125 = arith.constant 0 : index
    %c0_126 = arith.constant 0 : index
    %148 = vector.load %arg18[%c0_125, %c0_126] : memref<8x1xf32, #tpu.memory_space<vmem>>, vector<8x1xf32>
    %149 = vector.broadcast %148 : vector<8x1xf32> to vector<8x256xf32>
    %150 = arith.mulf %147, %149 : vector<8x256xf32>
    %c0_127 = arith.constant 0 : index
    %c0_128 = arith.constant 0 : index
    %151 = vector.load %arg19[%c0_127, %c0_128] : memref<8x1xf32, #tpu.memory_space<vmem>>, vector<8x1xf32>
    %152 = vector.broadcast %151 : vector<8x1xf32> to vector<8x256xf32>
    %153 = arith.addf %150, %152 : vector<8x256xf32>
    %cst_129 = arith.constant 0.000000e+00 : f32
    %154 = vector.broadcast %cst_129 : f32 to vector<8x256xf32>
    %155 = arith.maximumf %153, %154 : vector<8x256xf32>
    %156 = vector.broadcast %111 : vector<1x256xf32> to vector<8x256xf32>
    %157 = arith.mulf %155, %156 : vector<8x256xf32>
    %158 = vector.extract_strided_slice %157 {offsets = [0, 0], sizes = [8, 178], strides = [1, 1]} : vector<8x256xf32> to vector<8x178xf32>
    %c0_130 = arith.constant 0 : index
    %c0_131 = arith.constant 0 : index
    %159 = vector.load %arg25[%c0_130, %c0_131] : memref<144x768xf32, #tpu.memory_space<vmem>>, vector<8x178xf32>
    tpu.vector_store %arg25[%c0_130, %c0_131], %158 {strides = array<i32>} : memref<144x768xf32, #tpu.memory_space<vmem>>, vector<8x178xf32>,
    %160 = vector.extract_strided_slice %157 {offsets = [0, 1], sizes = [8, 178], strides = [1, 1]} : vector<8x256xf32> to vector<8x178xf32>
    %c8_132 = arith.constant 8 : index
    %c0_133 = arith.constant 0 : index
    %161 = vector.load %arg25[%c8_132, %c0_133] : memref<144x768xf32, #tpu.memory_space<vmem>>, vector<8x178xf32>
    tpu.vector_store %arg25[%c8_132, %c0_133], %160 {strides = array<i32>} : memref<144x768xf32, #tpu.memory_space<vmem>>, vector<8x178xf32>,
    %162 = vector.extract_strided_slice %157 {offsets = [0, 2], sizes = [8, 178], strides = [1, 1]} : vector<8x256xf32> to vector<8x178xf32>
    %c16_134 = arith.constant 16 : index
    %c0_135 = arith.constant 0 : index
    %163 = vector.load %arg25[%c16_134, %c0_135] : memref<144x768xf32, #tpu.memory_space<vmem>>, vector<8x178xf32>
    tpu.vector_store %arg25[%c16_134, %c0_135], %162 {strides = array<i32>} : memref<144x768xf32, #tpu.memory_space<vmem>>, vector<8x178xf32>,
    %164 = vector.extract_strided_slice %157 {offsets = [0, 10], sizes = [8, 178], strides = [1, 1]} : vector<8x256xf32> to vector<8x178xf32>
    %c24_136 = arith.constant 24 : index
    %c0_137 = arith.constant 0 : index
    %165 = vector.load %arg25[%c24_136, %c0_137] : memref<144x768xf32, #tpu.memory_space<vmem>>, vector<8x178xf32>
    tpu.vector_store %arg25[%c24_136, %c0_137], %164 {strides = array<i32>} : memref<144x768xf32, #tpu.memory_space<vmem>>, vector<8x178xf32>,
    %166 = vector.extract_strided_slice %157 {offsets = [0, 11], sizes = [8, 178], strides = [1, 1]} : vector<8x256xf32> to vector<8x178xf32>
    %c32_138 = arith.constant 32 : index
    %c0_139 = arith.constant 0 : index
    %167 = vector.load %arg25[%c32_138, %c0_139] : memref<144x768xf32, #tpu.memory_space<vmem>>, vector<8x178xf32>
    tpu.vector_store %arg25[%c32_138, %c0_139], %166 {strides = array<i32>} : memref<144x768xf32, #tpu.memory_space<vmem>>, vector<8x178xf32>,
    %168 = vector.extract_strided_slice %157 {offsets = [0, 12], sizes = [8, 178], strides = [1, 1]} : vector<8x256xf32> to vector<8x178xf32>
    %c40_140 = arith.constant 40 : index
    %c0_141 = arith.constant 0 : index
    %169 = vector.load %arg25[%c40_140, %c0_141] : memref<144x768xf32, #tpu.memory_space<vmem>>, vector<8x178xf32>
    tpu.vector_store %arg25[%c40_140, %c0_141], %168 {strides = array<i32>} : memref<144x768xf32, #tpu.memory_space<vmem>>, vector<8x178xf32>,
    %170 = vector.extract_strided_slice %157 {offsets = [0, 20], sizes = [8, 178], strides = [1, 1]} : vector<8x256xf32> to vector<8x178xf32>
    %c48_142 = arith.constant 48 : index
    %c0_143 = arith.constant 0 : index
    %171 = vector.load %arg25[%c48_142, %c0_143] : memref<144x768xf32, #tpu.memory_space<vmem>>, vector<8x178xf32>
    tpu.vector_store %arg25[%c48_142, %c0_143], %170 {strides = array<i32>} : memref<144x768xf32, #tpu.memory_space<vmem>>, vector<8x178xf32>,
    %172 = vector.extract_strided_slice %157 {offsets = [0, 21], sizes = [8, 178], strides = [1, 1]} : vector<8x256xf32> to vector<8x178xf32>
    %c56_144 = arith.constant 56 : index
    %c0_145 = arith.constant 0 : index
    %173 = vector.load %arg25[%c56_144, %c0_145] : memref<144x768xf32, #tpu.memory_space<vmem>>, vector<8x178xf32>
    tpu.vector_store %arg25[%c56_144, %c0_145], %172 {strides = array<i32>} : memref<144x768xf32, #tpu.memory_space<vmem>>, vector<8x178xf32>,
    %174 = vector.extract_strided_slice %157 {offsets = [0, 22], sizes = [8, 178], strides = [1, 1]} : vector<8x256xf32> to vector<8x178xf32>
    %c64_146 = arith.constant 64 : index
    %c0_147 = arith.constant 0 : index
    %175 = vector.load %arg25[%c64_146, %c0_147] : memref<144x768xf32, #tpu.memory_space<vmem>>, vector<8x178xf32>
    tpu.vector_store %arg25[%c64_146, %c0_147], %174 {strides = array<i32>} : memref<144x768xf32, #tpu.memory_space<vmem>>, vector<8x178xf32>,
    %c0_148 = arith.constant 0 : index
    %c0_149 = arith.constant 0 : index
    %176 = vector.load %arg17[%c0_148, %c0_149] : memref<4x72xbf16, #tpu.memory_space<vmem>>, vector<4x72xbf16>
    %c0_150 = arith.constant 0 : index
    %c0_151 = arith.constant 0 : index
    %177 = vector.load %arg25[%c0_150, %c0_151] : memref<144x768xf32, #tpu.memory_space<vmem>>, vector<72x178xf32>
    %178 = arith.truncf %177 : vector<72x178xf32> to vector<72x178xbf16>
    %cst_152 = arith.constant dense<0.000000e+00> : vector<4x178xf32>
    %179 = tpu.matmul %176, %178, %cst_152 {dimension_numbers = #tpu.dot_dimension_numbers<[1], [0], [0], [1], [0, 0, 1, 1], [], []>} : vector<4x72xbf16>, vector<72x178xbf16>, vector<4x178xf32> -> vector<4x178xf32>
    %c8_153 = arith.constant 8 : index
    %c11_154 = arith.constant 11 : index
    %180 = vector.load %arg27[%c8_153, %c11_154] : memref<16x256xf32, #tpu.memory_space<vmem>>, vector<4x178xf32>
    tpu.vector_store %arg27[%c8_153, %c11_154], %179 {strides = array<i32>} : memref<16x256xf32, #tpu.memory_space<vmem>>, vector<4x178xf32>,
    %c8_155 = arith.constant 8 : index
    %c0_156 = arith.constant 0 : index
    %181 = vector.load %arg27[%c8_155, %c0_156] : memref<16x256xf32, #tpu.memory_space<vmem>>, vector<4x256xf32>
    %c0_157 = arith.constant 0 : index
    %c0_158 = arith.constant 0 : index
    %182 = vector.load %arg21[%c0_157, %c0_158] : memref<4x1xf32, #tpu.memory_space<vmem>>, vector<4x1xf32>
    %183 = vector.broadcast %182 : vector<4x1xf32> to vector<4x256xf32>
    %184 = arith.mulf %181, %183 : vector<4x256xf32>
    %c0_159 = arith.constant 0 : index
    %c0_160 = arith.constant 0 : index
    %185 = vector.load %arg22[%c0_159, %c0_160] : memref<4x1xf32, #tpu.memory_space<vmem>>, vector<4x1xf32>
    %186 = vector.broadcast %185 : vector<4x1xf32> to vector<4x256xf32>
    %187 = arith.addf %184, %186 : vector<4x256xf32>
    %cst_161 = arith.constant 0.000000e+00 : f32
    %188 = vector.broadcast %cst_161 : f32 to vector<4x256xf32>
    %189 = arith.maximumf %187, %188 : vector<4x256xf32>
    %190 = vector.broadcast %111 : vector<1x256xf32> to vector<4x256xf32>
    %191 = arith.mulf %189, %190 : vector<4x256xf32>
    %192 = vector.extract_strided_slice %191 {offsets = [0, 0], sizes = [4, 178], strides = [1, 1]} : vector<4x256xf32> to vector<4x178xf32>
    %c0_162 = arith.constant 0 : index
    %c0_163 = arith.constant 0 : index
    %193 = vector.load %arg25[%c0_162, %c0_163] : memref<144x768xf32, #tpu.memory_space<vmem>>, vector<4x178xf32>
    tpu.vector_store %arg25[%c0_162, %c0_163], %192 {strides = array<i32>} : memref<144x768xf32, #tpu.memory_space<vmem>>, vector<4x178xf32>,
    %194 = vector.extract_strided_slice %191 {offsets = [0, 1], sizes = [4, 178], strides = [1, 1]} : vector<4x256xf32> to vector<4x178xf32>
    %c4_164 = arith.constant 4 : index
    %c0_165 = arith.constant 0 : index
    %195 = vector.load %arg25[%c4_164, %c0_165] : memref<144x768xf32, #tpu.memory_space<vmem>>, vector<4x178xf32>
    tpu.vector_store %arg25[%c4_164, %c0_165], %194 {strides = array<i32>} : memref<144x768xf32, #tpu.memory_space<vmem>>, vector<4x178xf32>,
    %196 = vector.extract_strided_slice %191 {offsets = [0, 2], sizes = [4, 178], strides = [1, 1]} : vector<4x256xf32> to vector<4x178xf32>
    %c8_166 = arith.constant 8 : index
    %c0_167 = arith.constant 0 : index
    %197 = vector.load %arg25[%c8_166, %c0_167] : memref<144x768xf32, #tpu.memory_space<vmem>>, vector<4x178xf32>
    tpu.vector_store %arg25[%c8_166, %c0_167], %196 {strides = array<i32>} : memref<144x768xf32, #tpu.memory_space<vmem>>, vector<4x178xf32>,
    %198 = vector.extract_strided_slice %191 {offsets = [0, 10], sizes = [4, 178], strides = [1, 1]} : vector<4x256xf32> to vector<4x178xf32>
    %c12_168 = arith.constant 12 : index
    %c0_169 = arith.constant 0 : index
    %199 = vector.load %arg25[%c12_168, %c0_169] : memref<144x768xf32, #tpu.memory_space<vmem>>, vector<4x178xf32>
    tpu.vector_store %arg25[%c12_168, %c0_169], %198 {strides = array<i32>} : memref<144x768xf32, #tpu.memory_space<vmem>>, vector<4x178xf32>,
    %200 = vector.extract_strided_slice %191 {offsets = [0, 11], sizes = [4, 178], strides = [1, 1]} : vector<4x256xf32> to vector<4x178xf32>
    %c16_170 = arith.constant 16 : index
    %c0_171 = arith.constant 0 : index
    %201 = vector.load %arg25[%c16_170, %c0_171] : memref<144x768xf32, #tpu.memory_space<vmem>>, vector<4x178xf32>
    tpu.vector_store %arg25[%c16_170, %c0_171], %200 {strides = array<i32>} : memref<144x768xf32, #tpu.memory_space<vmem>>, vector<4x178xf32>,
    %202 = vector.extract_strided_slice %191 {offsets = [0, 12], sizes = [4, 178], strides = [1, 1]} : vector<4x256xf32> to vector<4x178xf32>
    %c20_172 = arith.constant 20 : index
    %c0_173 = arith.constant 0 : index
    %203 = vector.load %arg25[%c20_172, %c0_173] : memref<144x768xf32, #tpu.memory_space<vmem>>, vector<4x178xf32>
    tpu.vector_store %arg25[%c20_172, %c0_173], %202 {strides = array<i32>} : memref<144x768xf32, #tpu.memory_space<vmem>>, vector<4x178xf32>,
    %204 = vector.extract_strided_slice %191 {offsets = [0, 20], sizes = [4, 178], strides = [1, 1]} : vector<4x256xf32> to vector<4x178xf32>
    %c24_174 = arith.constant 24 : index
    %c0_175 = arith.constant 0 : index
    %205 = vector.load %arg25[%c24_174, %c0_175] : memref<144x768xf32, #tpu.memory_space<vmem>>, vector<4x178xf32>
    tpu.vector_store %arg25[%c24_174, %c0_175], %204 {strides = array<i32>} : memref<144x768xf32, #tpu.memory_space<vmem>>, vector<4x178xf32>,
    %206 = vector.extract_strided_slice %191 {offsets = [0, 21], sizes = [4, 178], strides = [1, 1]} : vector<4x256xf32> to vector<4x178xf32>
    %c28_176 = arith.constant 28 : index
    %c0_177 = arith.constant 0 : index
    %207 = vector.load %arg25[%c28_176, %c0_177] : memref<144x768xf32, #tpu.memory_space<vmem>>, vector<4x178xf32>
    tpu.vector_store %arg25[%c28_176, %c0_177], %206 {strides = array<i32>} : memref<144x768xf32, #tpu.memory_space<vmem>>, vector<4x178xf32>,
    %208 = vector.extract_strided_slice %191 {offsets = [0, 22], sizes = [4, 178], strides = [1, 1]} : vector<4x256xf32> to vector<4x178xf32>
    %c32_178 = arith.constant 32 : index
    %c0_179 = arith.constant 0 : index
    %209 = vector.load %arg25[%c32_178, %c0_179] : memref<144x768xf32, #tpu.memory_space<vmem>>, vector<4x178xf32>
    tpu.vector_store %arg25[%c32_178, %c0_179], %208 {strides = array<i32>} : memref<144x768xf32, #tpu.memory_space<vmem>>, vector<4x178xf32>,
    %c0_180 = arith.constant 0 : index
    %c0_181 = arith.constant 0 : index
    %210 = vector.load %arg20[%c0_180, %c0_181] : memref<4x36xbf16, #tpu.memory_space<vmem>>, vector<4x36xbf16>
    %c0_182 = arith.constant 0 : index
    %c0_183 = arith.constant 0 : index
    %211 = vector.load %arg25[%c0_182, %c0_183] : memref<144x768xf32, #tpu.memory_space<vmem>>, vector<36x178xf32>
    %212 = arith.truncf %211 : vector<36x178xf32> to vector<36x178xbf16>
    %cst_184 = arith.constant dense<0.000000e+00> : vector<4x178xf32>
    %213 = tpu.matmul %210, %212, %cst_184 {dimension_numbers = #tpu.dot_dimension_numbers<[1], [0], [0], [1], [0, 0, 1, 1], [], []>} : vector<4x36xbf16>, vector<36x178xbf16>, vector<4x178xf32> -> vector<4x178xf32>
    %c12_185 = arith.constant 12 : index
    %c11_186 = arith.constant 11 : index
    %214 = vector.load %arg27[%c12_185, %c11_186] : memref<16x256xf32, #tpu.memory_space<vmem>>, vector<4x178xf32>
    tpu.vector_store %arg27[%c12_185, %c11_186], %213 {strides = array<i32>} : memref<16x256xf32, #tpu.memory_space<vmem>>, vector<4x178xf32>,
    %c0_187 = arith.constant 0 : index
    %c0_188 = arith.constant 0 : index
    %215 = vector.load %arg27[%c0_187, %c0_188] : memref<16x256xf32, #tpu.memory_space<vmem>>, vector<16x256xf32>
    %216 = arith.addf %215, %110 : vector<16x256xf32>
    %c0_189 = arith.constant 0 : index
    %c0_190 = arith.constant 0 : index
    %217 = vector.load %arg24[%c0_189, %c0_190] : memref<16x256xf32, #tpu.memory_space<vmem>>, vector<16x256xf32>
    tpu.vector_store %arg24[%c0_189, %c0_190], %216 {strides = array<i32>} : memref<16x256xf32, #tpu.memory_space<vmem>>, vector<16x256xf32>,
    return
  }
  func.func @transform_0(%arg0: i32) -> (i32, i32) {
    %c0_i32 = arith.constant 0 : i32
    %c0_i32_0 = arith.constant 0 : i32
    %c0_i32_1 = arith.constant 0 : i32
    return %c0_i32, %c0_i32_0 : i32, i32
  }
  func.func @transform_1(%arg0: i32) -> (i32, i32) {
    %c0_i32 = arith.constant 0 : i32
    %c0_i32_0 = arith.constant 0 : i32
    %c0_i32_1 = arith.constant 0 : i32
    return %c0_i32, %c0_i32_0 : i32, i32
  }
  func.func @transform_2(%arg0: i32) -> (i32, i32) {
    %c0_i32 = arith.constant 0 : i32
    %c0_i32_0 = arith.constant 0 : i32
    %c0_i32_1 = arith.constant 0 : i32
    return %c0_i32, %c0_i32_0 : i32, i32
  }
  func.func @transform_3(%arg0: i32) -> (i32, i32) {
    %c0_i32 = arith.constant 0 : i32
    %c0_i32_0 = arith.constant 0 : i32
    %c0_i32_1 = arith.constant 0 : i32
    return %c0_i32, %c0_i32_0 : i32, i32
  }
  func.func @transform_4(%arg0: i32) -> (i32, i32) {
    %c0_i32 = arith.constant 0 : i32
    %c0_i32_0 = arith.constant 0 : i32
    %c0_i32_1 = arith.constant 0 : i32
    return %c0_i32, %c0_i32_0 : i32, i32
  }
  func.func @transform_5(%arg0: i32) -> (i32, i32) {
    %c0_i32 = arith.constant 0 : i32
    %c0_i32_0 = arith.constant 0 : i32
    %c0_i32_1 = arith.constant 0 : i32
    return %c0_i32, %c0_i32_0 : i32, i32
  }
  func.func @transform_6(%arg0: i32) -> (i32, i32) {
    %c0_i32 = arith.constant 0 : i32
    %c0_i32_0 = arith.constant 0 : i32
    %c0_i32_1 = arith.constant 0 : i32
    return %c0_i32, %c0_i32_0 : i32, i32
  }
  func.func @transform_7(%arg0: i32) -> (i32, i32) {
    %c0_i32 = arith.constant 0 : i32
    %c0_i32_0 = arith.constant 0 : i32
    %c0_i32_1 = arith.constant 0 : i32
    return %c0_i32, %c0_i32_0 : i32, i32
  }
  func.func @transform_8(%arg0: i32) -> (i32, i32) {
    %c0_i32 = arith.constant 0 : i32
    %c0_i32_0 = arith.constant 0 : i32
    %c0_i32_1 = arith.constant 0 : i32
    return %c0_i32, %c0_i32_0 : i32, i32
  }
  func.func @transform_9(%arg0: i32) -> (i32, i32) {
    %c0_i32 = arith.constant 0 : i32
    %c0_i32_0 = arith.constant 0 : i32
    %c0_i32_1 = arith.constant 0 : i32
    return %c0_i32, %c0_i32_0 : i32, i32
  }
  func.func @transform_10(%arg0: i32) -> (i32, i32) {
    %c0_i32 = arith.constant 0 : i32
    %c0_i32_0 = arith.constant 0 : i32
    %c0_i32_1 = arith.constant 0 : i32
    return %c0_i32, %c0_i32_0 : i32, i32
  }
  func.func @transform_11(%arg0: i32) -> (i32, i32) {
    %c0_i32 = arith.constant 0 : i32
    %c0_i32_0 = arith.constant 0 : i32
    %c0_i32_1 = arith.constant 0 : i32
    return %c0_i32, %c0_i32_0 : i32, i32
  }
  func.func @transform_12(%arg0: i32) -> (i32, i32) {
    %c0_i32 = arith.constant 0 : i32
    %c0_i32_0 = arith.constant 0 : i32
    %c0_i32_1 = arith.constant 0 : i32
    return %c0_i32, %c0_i32_0 : i32, i32
  }
  func.func @transform_13(%arg0: i32) -> (i32, i32) {
    %c0_i32 = arith.constant 0 : i32
    %c0_i32_0 = arith.constant 0 : i32
    %c0_i32_1 = arith.constant 0 : i32
    return %c0_i32, %c0_i32_0 : i32, i32
  }
  func.func @transform_14(%arg0: i32) -> (i32, i32) {
    %c0_i32 = arith.constant 0 : i32
    %c0_i32_0 = arith.constant 0 : i32
    %c0_i32_1 = arith.constant 0 : i32
    return %c0_i32, %c0_i32_0 : i32, i32
  }
  func.func @transform_15(%arg0: i32) -> (i32, i32) {
    %c0_i32 = arith.constant 0 : i32
    %c0_i32_0 = arith.constant 0 : i32
    %c0_i32_1 = arith.constant 0 : i32
    return %c0_i32, %c0_i32_0 : i32, i32
  }
  func.func @transform_16(%arg0: i32) -> (i32, i32) {
    %c0_i32 = arith.constant 0 : i32
    %c0_i32_0 = arith.constant 0 : i32
    %c0_i32_1 = arith.constant 0 : i32
    return %c0_i32, %c0_i32_0 : i32, i32
  }
  func.func @transform_17(%arg0: i32) -> (i32, i32) {
    %c0_i32 = arith.constant 0 : i32
    %c0_i32_0 = arith.constant 0 : i32
    %c0_i32_1 = arith.constant 0 : i32
    return %c0_i32, %c0_i32_0 : i32, i32
  }
  func.func @transform_18(%arg0: i32) -> (i32, i32) {
    %c0_i32 = arith.constant 0 : i32
    %c0_i32_0 = arith.constant 0 : i32
    %c0_i32_1 = arith.constant 0 : i32
    return %c0_i32, %c0_i32_0 : i32, i32
  }
  func.func @transform_19(%arg0: i32) -> (i32, i32) {
    %c0_i32 = arith.constant 0 : i32
    %c0_i32_0 = arith.constant 0 : i32
    %c0_i32_1 = arith.constant 0 : i32
    return %c0_i32, %c0_i32_0 : i32, i32
  }
  func.func @transform_20(%arg0: i32) -> (i32, i32) {
    %c0_i32 = arith.constant 0 : i32
    %c0_i32_0 = arith.constant 0 : i32
    %c0_i32_1 = arith.constant 0 : i32
    return %c0_i32, %c0_i32_0 : i32, i32
  }
  func.func @transform_21(%arg0: i32) -> (i32, i32) {
    %c0_i32 = arith.constant 0 : i32
    %c0_i32_0 = arith.constant 0 : i32
    %c0_i32_1 = arith.constant 0 : i32
    return %c0_i32, %c0_i32_0 : i32, i32
  }
  func.func @transform_22(%arg0: i32) -> (i32, i32) {
    %c0_i32 = arith.constant 0 : i32
    %c0_i32_0 = arith.constant 0 : i32
    %c0_i32_1 = arith.constant 0 : i32
    return %c0_i32, %c0_i32_0 : i32, i32
  }
  func.func @transform_23(%arg0: i32) -> (i32, i32) {
    %c0_i32 = arith.constant 0 : i32
    %c0_i32_0 = arith.constant 0 : i32
    %c0_i32_1 = arith.constant 0 : i32
    return %c0_i32, %c0_i32_0 : i32, i32
  }
}

module attributes {stable_mosaic.version = 11 : i64} {
  func.func @_head_kernel(%arg0: i32, %arg1: memref<16x256xf32, #tpu.memory_space<vmem>>, %arg2: memref<1x256xf32, #tpu.memory_space<vmem>>, %arg3: memref<1x128xf32, #tpu.memory_space<vmem>>, %arg4: memref<256x128xbf16, #tpu.memory_space<vmem>>, %arg5: memref<8x144xbf16, #tpu.memory_space<vmem>>, %arg6: memref<16x1xf32, #tpu.memory_space<vmem>>, %arg7: memref<16x1xf32, #tpu.memory_space<vmem>>, %arg8: memref<4x72xbf16, #tpu.memory_space<vmem>>, %arg9: memref<8x1xf32, #tpu.memory_space<vmem>>, %arg10: memref<8x1xf32, #tpu.memory_space<vmem>>, %arg11: memref<4x36xbf16, #tpu.memory_space<vmem>>, %arg12: memref<4x1xf32, #tpu.memory_space<vmem>>, %arg13: memref<4x1xf32, #tpu.memory_space<vmem>>, %arg14: memref<8x144xbf16, #tpu.memory_space<vmem>>, %arg15: memref<16x1xf32, #tpu.memory_space<vmem>>, %arg16: memref<16x1xf32, #tpu.memory_space<vmem>>, %arg17: memref<4x72xbf16, #tpu.memory_space<vmem>>, %arg18: memref<8x1xf32, #tpu.memory_space<vmem>>, %arg19: memref<8x1xf32, #tpu.memory_space<vmem>>, %arg20: memref<4x36xbf16, #tpu.memory_space<vmem>>, %arg21: memref<4x1xf32, #tpu.memory_space<vmem>>, %arg22: memref<4x1xf32, #tpu.memory_space<vmem>>, %arg23: memref<16x256xf32, #tpu.memory_space<vmem>>, %arg24: memref<16x128xf32, #tpu.memory_space<vmem>>, %arg25: memref<144x256xf32, #tpu.memory_space<vmem>>, %arg26: memref<16x256xf32, #tpu.memory_space<vmem>>, %arg27: memref<16x128xf32, #tpu.memory_space<vmem>>) attributes {dimension_semantics = [#tpu.dimension_semantics<arbitrary>], iteration_bounds = array<i64: 1>, scalar_prefetch = 0 : i64, scratch_operands = 3 : i64, tpu.core_type = #tpu.core_type<tc>, window_params = [{pipeline_mode = #tpu.pipeline_mode<synchronous>, transform_indices = @transform_0, window_bounds = array<i64: 16, 256>}, {pipeline_mode = #tpu.pipeline_mode<synchronous>, transform_indices = @transform_1, window_bounds = array<i64: 1, 256>}, {pipeline_mode = #tpu.pipeline_mode<synchronous>, transform_indices = @transform_2, window_bounds = array<i64: 1, 128>}, {pipeline_mode = #tpu.pipeline_mode<synchronous>, transform_indices = @transform_3, window_bounds = array<i64: 256, 128>}, {pipeline_mode = #tpu.pipeline_mode<synchronous>, transform_indices = @transform_4, window_bounds = array<i64: 8, 144>}, {pipeline_mode = #tpu.pipeline_mode<synchronous>, transform_indices = @transform_5, window_bounds = array<i64: 16, 1>}, {pipeline_mode = #tpu.pipeline_mode<synchronous>, transform_indices = @transform_6, window_bounds = array<i64: 16, 1>}, {pipeline_mode = #tpu.pipeline_mode<synchronous>, transform_indices = @transform_7, window_bounds = array<i64: 4, 72>}, {pipeline_mode = #tpu.pipeline_mode<synchronous>, transform_indices = @transform_8, window_bounds = array<i64: 8, 1>}, {pipeline_mode = #tpu.pipeline_mode<synchronous>, transform_indices = @transform_9, window_bounds = array<i64: 8, 1>}, {pipeline_mode = #tpu.pipeline_mode<synchronous>, transform_indices = @transform_10, window_bounds = array<i64: 4, 36>}, {pipeline_mode = #tpu.pipeline_mode<synchronous>, transform_indices = @transform_11, window_bounds = array<i64: 4, 1>}, {pipeline_mode = #tpu.pipeline_mode<synchronous>, transform_indices = @transform_12, window_bounds = array<i64: 4, 1>}, {pipeline_mode = #tpu.pipeline_mode<synchronous>, transform_indices = @transform_13, window_bounds = array<i64: 8, 144>}, {pipeline_mode = #tpu.pipeline_mode<synchronous>, transform_indices = @transform_14, window_bounds = array<i64: 16, 1>}, {pipeline_mode = #tpu.pipeline_mode<synchronous>, transform_indices = @transform_15, window_bounds = array<i64: 16, 1>}, {pipeline_mode = #tpu.pipeline_mode<synchronous>, transform_indices = @transform_16, window_bounds = array<i64: 4, 72>}, {pipeline_mode = #tpu.pipeline_mode<synchronous>, transform_indices = @transform_17, window_bounds = array<i64: 8, 1>}, {pipeline_mode = #tpu.pipeline_mode<synchronous>, transform_indices = @transform_18, window_bounds = array<i64: 8, 1>}, {pipeline_mode = #tpu.pipeline_mode<synchronous>, transform_indices = @transform_19, window_bounds = array<i64: 4, 36>}, {pipeline_mode = #tpu.pipeline_mode<synchronous>, transform_indices = @transform_20, window_bounds = array<i64: 4, 1>}, {pipeline_mode = #tpu.pipeline_mode<synchronous>, transform_indices = @transform_21, window_bounds = array<i64: 4, 1>}, {pipeline_mode = #tpu.pipeline_mode<synchronous>, transform_indices = @transform_22, window_bounds = array<i64: 16, 256>}, {pipeline_mode = #tpu.pipeline_mode<synchronous>, transform_indices = @transform_23, window_bounds = array<i64: 16, 128>}]} {
    %c0 = arith.constant 0 : index
    %c0_0 = arith.constant 0 : index
    %0 = vector.load %arg1[%c0, %c0_0] : memref<16x256xf32, #tpu.memory_space<vmem>>, vector<16x256xf32>
    %c0_1 = arith.constant 0 : index
    %c0_2 = arith.constant 0 : index
    %1 = vector.load %arg2[%c0_1, %c0_2] : memref<1x256xf32, #tpu.memory_space<vmem>>, vector<1x256xf32>
    %cst = arith.constant 0.000000e+00 : f32
    %2 = vector.broadcast %cst : f32 to vector<16x256xf32>
    %c0_3 = arith.constant 0 : index
    %c0_4 = arith.constant 0 : index
    %3 = vector.load %arg26[%c0_3, %c0_4] : memref<16x256xf32, #tpu.memory_space<vmem>>, vector<16x256xf32>
    tpu.vector_store %arg26[%c0_3, %c0_4], %2 {strides = array<i32>} : memref<16x256xf32, #tpu.memory_space<vmem>>, vector<16x256xf32>,
    %c0_5 = arith.constant 0 : index
    %c0_6 = arith.constant 0 : index
    %4 = vector.load %arg6[%c0_5, %c0_6] : memref<16x1xf32, #tpu.memory_space<vmem>>, vector<16x1xf32>
    %5 = vector.broadcast %4 : vector<16x1xf32> to vector<16x256xf32>
    %6 = arith.mulf %0, %5 : vector<16x256xf32>
    %c0_7 = arith.constant 0 : index
    %c0_8 = arith.constant 0 : index
    %7 = vector.load %arg7[%c0_7, %c0_8] : memref<16x1xf32, #tpu.memory_space<vmem>>, vector<16x1xf32>
    %8 = vector.broadcast %7 : vector<16x1xf32> to vector<16x256xf32>
    %9 = arith.addf %6, %8 : vector<16x256xf32>
    %cst_9 = arith.constant 0.000000e+00 : f32
    %10 = vector.broadcast %cst_9 : f32 to vector<16x256xf32>
    %11 = arith.maximumf %9, %10 : vector<16x256xf32>
    %12 = vector.broadcast %1 : vector<1x256xf32> to vector<16x256xf32>
    %13 = arith.mulf %11, %12 : vector<16x256xf32>
    %14 = vector.extract_strided_slice %13 {offsets = [0, 0], sizes = [16, 178], strides = [1, 1]} : vector<16x256xf32> to vector<16x178xf32>
    %c0_10 = arith.constant 0 : index
    %c0_11 = arith.constant 0 : index
    %15 = vector.load %arg25[%c0_10, %c0_11] : memref<144x256xf32, #tpu.memory_space<vmem>>, vector<16x178xf32>
    tpu.vector_store %arg25[%c0_10, %c0_11], %14 {strides = array<i32>} : memref<144x256xf32, #tpu.memory_space<vmem>>, vector<16x178xf32>,
    %16 = vector.extract_strided_slice %13 {offsets = [0, 1], sizes = [16, 178], strides = [1, 1]} : vector<16x256xf32> to vector<16x178xf32>
    %c16 = arith.constant 16 : index
    %c0_12 = arith.constant 0 : index
    %17 = vector.load %arg25[%c16, %c0_12] : memref<144x256xf32, #tpu.memory_space<vmem>>, vector<16x178xf32>
    tpu.vector_store %arg25[%c16, %c0_12], %16 {strides = array<i32>} : memref<144x256xf32, #tpu.memory_space<vmem>>, vector<16x178xf32>,
    %18 = vector.extract_strided_slice %13 {offsets = [0, 2], sizes = [16, 178], strides = [1, 1]} : vector<16x256xf32> to vector<16x178xf32>
    %c32 = arith.constant 32 : index
    %c0_13 = arith.constant 0 : index
    %19 = vector.load %arg25[%c32, %c0_13] : memref<144x256xf32, #tpu.memory_space<vmem>>, vector<16x178xf32>
    tpu.vector_store %arg25[%c32, %c0_13], %18 {strides = array<i32>} : memref<144x256xf32, #tpu.memory_space<vmem>>, vector<16x178xf32>,
    %20 = vector.extract_strided_slice %13 {offsets = [0, 10], sizes = [16, 178], strides = [1, 1]} : vector<16x256xf32> to vector<16x178xf32>
    %c48 = arith.constant 48 : index
    %c0_14 = arith.constant 0 : index
    %21 = vector.load %arg25[%c48, %c0_14] : memref<144x256xf32, #tpu.memory_space<vmem>>, vector<16x178xf32>
    tpu.vector_store %arg25[%c48, %c0_14], %20 {strides = array<i32>} : memref<144x256xf32, #tpu.memory_space<vmem>>, vector<16x178xf32>,
    %22 = vector.extract_strided_slice %13 {offsets = [0, 11], sizes = [16, 178], strides = [1, 1]} : vector<16x256xf32> to vector<16x178xf32>
    %c64 = arith.constant 64 : index
    %c0_15 = arith.constant 0 : index
    %23 = vector.load %arg25[%c64, %c0_15] : memref<144x256xf32, #tpu.memory_space<vmem>>, vector<16x178xf32>
    tpu.vector_store %arg25[%c64, %c0_15], %22 {strides = array<i32>} : memref<144x256xf32, #tpu.memory_space<vmem>>, vector<16x178xf32>,
    %24 = vector.extract_strided_slice %13 {offsets = [0, 12], sizes = [16, 178], strides = [1, 1]} : vector<16x256xf32> to vector<16x178xf32>
    %c80 = arith.constant 80 : index
    %c0_16 = arith.constant 0 : index
    %25 = vector.load %arg25[%c80, %c0_16] : memref<144x256xf32, #tpu.memory_space<vmem>>, vector<16x178xf32>
    tpu.vector_store %arg25[%c80, %c0_16], %24 {strides = array<i32>} : memref<144x256xf32, #tpu.memory_space<vmem>>, vector<16x178xf32>,
    %26 = vector.extract_strided_slice %13 {offsets = [0, 20], sizes = [16, 178], strides = [1, 1]} : vector<16x256xf32> to vector<16x178xf32>
    %c96 = arith.constant 96 : index
    %c0_17 = arith.constant 0 : index
    %27 = vector.load %arg25[%c96, %c0_17] : memref<144x256xf32, #tpu.memory_space<vmem>>, vector<16x178xf32>
    tpu.vector_store %arg25[%c96, %c0_17], %26 {strides = array<i32>} : memref<144x256xf32, #tpu.memory_space<vmem>>, vector<16x178xf32>,
    %28 = vector.extract_strided_slice %13 {offsets = [0, 21], sizes = [16, 178], strides = [1, 1]} : vector<16x256xf32> to vector<16x178xf32>
    %c112 = arith.constant 112 : index
    %c0_18 = arith.constant 0 : index
    %29 = vector.load %arg25[%c112, %c0_18] : memref<144x256xf32, #tpu.memory_space<vmem>>, vector<16x178xf32>
    tpu.vector_store %arg25[%c112, %c0_18], %28 {strides = array<i32>} : memref<144x256xf32, #tpu.memory_space<vmem>>, vector<16x178xf32>,
    %30 = vector.extract_strided_slice %13 {offsets = [0, 22], sizes = [16, 178], strides = [1, 1]} : vector<16x256xf32> to vector<16x178xf32>
    %c128 = arith.constant 128 : index
    %c0_19 = arith.constant 0 : index
    %31 = vector.load %arg25[%c128, %c0_19] : memref<144x256xf32, #tpu.memory_space<vmem>>, vector<16x178xf32>
    tpu.vector_store %arg25[%c128, %c0_19], %30 {strides = array<i32>} : memref<144x256xf32, #tpu.memory_space<vmem>>, vector<16x178xf32>,
    %c0_20 = arith.constant 0 : index
    %c0_21 = arith.constant 0 : index
    %32 = vector.load %arg5[%c0_20, %c0_21] : memref<8x144xbf16, #tpu.memory_space<vmem>>, vector<8x144xbf16>
    %c0_22 = arith.constant 0 : index
    %c0_23 = arith.constant 0 : index
    %33 = vector.load %arg25[%c0_22, %c0_23] : memref<144x256xf32, #tpu.memory_space<vmem>>, vector<144x178xf32>
    %34 = arith.truncf %33 : vector<144x178xf32> to vector<144x178xbf16>
    %cst_24 = arith.constant dense<0.000000e+00> : vector<8x178xf32>
    %35 = tpu.matmul %32, %34, %cst_24 {dimension_numbers = #tpu.dot_dimension_numbers<[1], [0], [0], [1], [0, 0, 1, 1], [], []>} : vector<8x144xbf16>, vector<144x178xbf16>, vector<8x178xf32> -> vector<8x178xf32>
    %c0_25 = arith.constant 0 : index
    %c11 = arith.constant 11 : index
    %36 = vector.load %arg26[%c0_25, %c11] : memref<16x256xf32, #tpu.memory_space<vmem>>, vector<8x178xf32>
    tpu.vector_store %arg26[%c0_25, %c11], %35 {strides = array<i32>} : memref<16x256xf32, #tpu.memory_space<vmem>>, vector<8x178xf32>,
    %c0_26 = arith.constant 0 : index
    %c0_27 = arith.constant 0 : index
    %37 = vector.load %arg26[%c0_26, %c0_27] : memref<16x256xf32, #tpu.memory_space<vmem>>, vector<8x256xf32>
    %c0_28 = arith.constant 0 : index
    %c0_29 = arith.constant 0 : index
    %38 = vector.load %arg9[%c0_28, %c0_29] : memref<8x1xf32, #tpu.memory_space<vmem>>, vector<8x1xf32>
    %39 = vector.broadcast %38 : vector<8x1xf32> to vector<8x256xf32>
    %40 = arith.mulf %37, %39 : vector<8x256xf32>
    %c0_30 = arith.constant 0 : index
    %c0_31 = arith.constant 0 : index
    %41 = vector.load %arg10[%c0_30, %c0_31] : memref<8x1xf32, #tpu.memory_space<vmem>>, vector<8x1xf32>
    %42 = vector.broadcast %41 : vector<8x1xf32> to vector<8x256xf32>
    %43 = arith.addf %40, %42 : vector<8x256xf32>
    %cst_32 = arith.constant 0.000000e+00 : f32
    %44 = vector.broadcast %cst_32 : f32 to vector<8x256xf32>
    %45 = arith.maximumf %43, %44 : vector<8x256xf32>
    %46 = vector.broadcast %1 : vector<1x256xf32> to vector<8x256xf32>
    %47 = arith.mulf %45, %46 : vector<8x256xf32>
    %48 = vector.extract_strided_slice %47 {offsets = [0, 0], sizes = [8, 178], strides = [1, 1]} : vector<8x256xf32> to vector<8x178xf32>
    %c0_33 = arith.constant 0 : index
    %c0_34 = arith.constant 0 : index
    %49 = vector.load %arg25[%c0_33, %c0_34] : memref<144x256xf32, #tpu.memory_space<vmem>>, vector<8x178xf32>
    tpu.vector_store %arg25[%c0_33, %c0_34], %48 {strides = array<i32>} : memref<144x256xf32, #tpu.memory_space<vmem>>, vector<8x178xf32>,
    %50 = vector.extract_strided_slice %47 {offsets = [0, 1], sizes = [8, 178], strides = [1, 1]} : vector<8x256xf32> to vector<8x178xf32>
    %c8 = arith.constant 8 : index
    %c0_35 = arith.constant 0 : index
    %51 = vector.load %arg25[%c8, %c0_35] : memref<144x256xf32, #tpu.memory_space<vmem>>, vector<8x178xf32>
    tpu.vector_store %arg25[%c8, %c0_35], %50 {strides = array<i32>} : memref<144x256xf32, #tpu.memory_space<vmem>>, vector<8x178xf32>,
    %52 = vector.extract_strided_slice %47 {offsets = [0, 2], sizes = [8, 178], strides = [1, 1]} : vector<8x256xf32> to vector<8x178xf32>
    %c16_36 = arith.constant 16 : index
    %c0_37 = arith.constant 0 : index
    %53 = vector.load %arg25[%c16_36, %c0_37] : memref<144x256xf32, #tpu.memory_space<vmem>>, vector<8x178xf32>
    tpu.vector_store %arg25[%c16_36, %c0_37], %52 {strides = array<i32>} : memref<144x256xf32, #tpu.memory_space<vmem>>, vector<8x178xf32>,
    %54 = vector.extract_strided_slice %47 {offsets = [0, 10], sizes = [8, 178], strides = [1, 1]} : vector<8x256xf32> to vector<8x178xf32>
    %c24 = arith.constant 24 : index
    %c0_38 = arith.constant 0 : index
    %55 = vector.load %arg25[%c24, %c0_38] : memref<144x256xf32, #tpu.memory_space<vmem>>, vector<8x178xf32>
    tpu.vector_store %arg25[%c24, %c0_38], %54 {strides = array<i32>} : memref<144x256xf32, #tpu.memory_space<vmem>>, vector<8x178xf32>,
    %56 = vector.extract_strided_slice %47 {offsets = [0, 11], sizes = [8, 178], strides = [1, 1]} : vector<8x256xf32> to vector<8x178xf32>
    %c32_39 = arith.constant 32 : index
    %c0_40 = arith.constant 0 : index
    %57 = vector.load %arg25[%c32_39, %c0_40] : memref<144x256xf32, #tpu.memory_space<vmem>>, vector<8x178xf32>
    tpu.vector_store %arg25[%c32_39, %c0_40], %56 {strides = array<i32>} : memref<144x256xf32, #tpu.memory_space<vmem>>, vector<8x178xf32>,
    %58 = vector.extract_strided_slice %47 {offsets = [0, 12], sizes = [8, 178], strides = [1, 1]} : vector<8x256xf32> to vector<8x178xf32>
    %c40 = arith.constant 40 : index
    %c0_41 = arith.constant 0 : index
    %59 = vector.load %arg25[%c40, %c0_41] : memref<144x256xf32, #tpu.memory_space<vmem>>, vector<8x178xf32>
    tpu.vector_store %arg25[%c40, %c0_41], %58 {strides = array<i32>} : memref<144x256xf32, #tpu.memory_space<vmem>>, vector<8x178xf32>,
    %60 = vector.extract_strided_slice %47 {offsets = [0, 20], sizes = [8, 178], strides = [1, 1]} : vector<8x256xf32> to vector<8x178xf32>
    %c48_42 = arith.constant 48 : index
    %c0_43 = arith.constant 0 : index
    %61 = vector.load %arg25[%c48_42, %c0_43] : memref<144x256xf32, #tpu.memory_space<vmem>>, vector<8x178xf32>
    tpu.vector_store %arg25[%c48_42, %c0_43], %60 {strides = array<i32>} : memref<144x256xf32, #tpu.memory_space<vmem>>, vector<8x178xf32>,
    %62 = vector.extract_strided_slice %47 {offsets = [0, 21], sizes = [8, 178], strides = [1, 1]} : vector<8x256xf32> to vector<8x178xf32>
    %c56 = arith.constant 56 : index
    %c0_44 = arith.constant 0 : index
    %63 = vector.load %arg25[%c56, %c0_44] : memref<144x256xf32, #tpu.memory_space<vmem>>, vector<8x178xf32>
    tpu.vector_store %arg25[%c56, %c0_44], %62 {strides = array<i32>} : memref<144x256xf32, #tpu.memory_space<vmem>>, vector<8x178xf32>,
    %64 = vector.extract_strided_slice %47 {offsets = [0, 22], sizes = [8, 178], strides = [1, 1]} : vector<8x256xf32> to vector<8x178xf32>
    %c64_45 = arith.constant 64 : index
    %c0_46 = arith.constant 0 : index
    %65 = vector.load %arg25[%c64_45, %c0_46] : memref<144x256xf32, #tpu.memory_space<vmem>>, vector<8x178xf32>
    tpu.vector_store %arg25[%c64_45, %c0_46], %64 {strides = array<i32>} : memref<144x256xf32, #tpu.memory_space<vmem>>, vector<8x178xf32>,
    %c0_47 = arith.constant 0 : index
    %c0_48 = arith.constant 0 : index
    %66 = vector.load %arg8[%c0_47, %c0_48] : memref<4x72xbf16, #tpu.memory_space<vmem>>, vector<4x72xbf16>
    %c0_49 = arith.constant 0 : index
    %c0_50 = arith.constant 0 : index
    %67 = vector.load %arg25[%c0_49, %c0_50] : memref<144x256xf32, #tpu.memory_space<vmem>>, vector<72x178xf32>
    %68 = arith.truncf %67 : vector<72x178xf32> to vector<72x178xbf16>
    %cst_51 = arith.constant dense<0.000000e+00> : vector<4x178xf32>
    %69 = tpu.matmul %66, %68, %cst_51 {dimension_numbers = #tpu.dot_dimension_numbers<[1], [0], [0], [1], [0, 0, 1, 1], [], []>} : vector<4x72xbf16>, vector<72x178xbf16>, vector<4x178xf32> -> vector<4x178xf32>
    %c8_52 = arith.constant 8 : index
    %c11_53 = arith.constant 11 : index
    %70 = vector.load %arg26[%c8_52, %c11_53] : memref<16x256xf32, #tpu.memory_space<vmem>>, vector<4x178xf32>
    tpu.vector_store %arg26[%c8_52, %c11_53], %69 {strides = array<i32>} : memref<16x256xf32, #tpu.memory_space<vmem>>, vector<4x178xf32>,
    %c8_54 = arith.constant 8 : index
    %c0_55 = arith.constant 0 : index
    %71 = vector.load %arg26[%c8_54, %c0_55] : memref<16x256xf32, #tpu.memory_space<vmem>>, vector<4x256xf32>
    %c0_56 = arith.constant 0 : index
    %c0_57 = arith.constant 0 : index
    %72 = vector.load %arg12[%c0_56, %c0_57] : memref<4x1xf32, #tpu.memory_space<vmem>>, vector<4x1xf32>
    %73 = vector.broadcast %72 : vector<4x1xf32> to vector<4x256xf32>
    %74 = arith.mulf %71, %73 : vector<4x256xf32>
    %c0_58 = arith.constant 0 : index
    %c0_59 = arith.constant 0 : index
    %75 = vector.load %arg13[%c0_58, %c0_59] : memref<4x1xf32, #tpu.memory_space<vmem>>, vector<4x1xf32>
    %76 = vector.broadcast %75 : vector<4x1xf32> to vector<4x256xf32>
    %77 = arith.addf %74, %76 : vector<4x256xf32>
    %cst_60 = arith.constant 0.000000e+00 : f32
    %78 = vector.broadcast %cst_60 : f32 to vector<4x256xf32>
    %79 = arith.maximumf %77, %78 : vector<4x256xf32>
    %80 = vector.broadcast %1 : vector<1x256xf32> to vector<4x256xf32>
    %81 = arith.mulf %79, %80 : vector<4x256xf32>
    %82 = vector.extract_strided_slice %81 {offsets = [0, 0], sizes = [4, 178], strides = [1, 1]} : vector<4x256xf32> to vector<4x178xf32>
    %c0_61 = arith.constant 0 : index
    %c0_62 = arith.constant 0 : index
    %83 = vector.load %arg25[%c0_61, %c0_62] : memref<144x256xf32, #tpu.memory_space<vmem>>, vector<4x178xf32>
    tpu.vector_store %arg25[%c0_61, %c0_62], %82 {strides = array<i32>} : memref<144x256xf32, #tpu.memory_space<vmem>>, vector<4x178xf32>,
    %84 = vector.extract_strided_slice %81 {offsets = [0, 1], sizes = [4, 178], strides = [1, 1]} : vector<4x256xf32> to vector<4x178xf32>
    %c4 = arith.constant 4 : index
    %c0_63 = arith.constant 0 : index
    %85 = vector.load %arg25[%c4, %c0_63] : memref<144x256xf32, #tpu.memory_space<vmem>>, vector<4x178xf32>
    tpu.vector_store %arg25[%c4, %c0_63], %84 {strides = array<i32>} : memref<144x256xf32, #tpu.memory_space<vmem>>, vector<4x178xf32>,
    %86 = vector.extract_strided_slice %81 {offsets = [0, 2], sizes = [4, 178], strides = [1, 1]} : vector<4x256xf32> to vector<4x178xf32>
    %c8_64 = arith.constant 8 : index
    %c0_65 = arith.constant 0 : index
    %87 = vector.load %arg25[%c8_64, %c0_65] : memref<144x256xf32, #tpu.memory_space<vmem>>, vector<4x178xf32>
    tpu.vector_store %arg25[%c8_64, %c0_65], %86 {strides = array<i32>} : memref<144x256xf32, #tpu.memory_space<vmem>>, vector<4x178xf32>,
    %88 = vector.extract_strided_slice %81 {offsets = [0, 10], sizes = [4, 178], strides = [1, 1]} : vector<4x256xf32> to vector<4x178xf32>
    %c12 = arith.constant 12 : index
    %c0_66 = arith.constant 0 : index
    %89 = vector.load %arg25[%c12, %c0_66] : memref<144x256xf32, #tpu.memory_space<vmem>>, vector<4x178xf32>
    tpu.vector_store %arg25[%c12, %c0_66], %88 {strides = array<i32>} : memref<144x256xf32, #tpu.memory_space<vmem>>, vector<4x178xf32>,
    %90 = vector.extract_strided_slice %81 {offsets = [0, 11], sizes = [4, 178], strides = [1, 1]} : vector<4x256xf32> to vector<4x178xf32>
    %c16_67 = arith.constant 16 : index
    %c0_68 = arith.constant 0 : index
    %91 = vector.load %arg25[%c16_67, %c0_68] : memref<144x256xf32, #tpu.memory_space<vmem>>, vector<4x178xf32>
    tpu.vector_store %arg25[%c16_67, %c0_68], %90 {strides = array<i32>} : memref<144x256xf32, #tpu.memory_space<vmem>>, vector<4x178xf32>,
    %92 = vector.extract_strided_slice %81 {offsets = [0, 12], sizes = [4, 178], strides = [1, 1]} : vector<4x256xf32> to vector<4x178xf32>
    %c20 = arith.constant 20 : index
    %c0_69 = arith.constant 0 : index
    %93 = vector.load %arg25[%c20, %c0_69] : memref<144x256xf32, #tpu.memory_space<vmem>>, vector<4x178xf32>
    tpu.vector_store %arg25[%c20, %c0_69], %92 {strides = array<i32>} : memref<144x256xf32, #tpu.memory_space<vmem>>, vector<4x178xf32>,
    %94 = vector.extract_strided_slice %81 {offsets = [0, 20], sizes = [4, 178], strides = [1, 1]} : vector<4x256xf32> to vector<4x178xf32>
    %c24_70 = arith.constant 24 : index
    %c0_71 = arith.constant 0 : index
    %95 = vector.load %arg25[%c24_70, %c0_71] : memref<144x256xf32, #tpu.memory_space<vmem>>, vector<4x178xf32>
    tpu.vector_store %arg25[%c24_70, %c0_71], %94 {strides = array<i32>} : memref<144x256xf32, #tpu.memory_space<vmem>>, vector<4x178xf32>,
    %96 = vector.extract_strided_slice %81 {offsets = [0, 21], sizes = [4, 178], strides = [1, 1]} : vector<4x256xf32> to vector<4x178xf32>
    %c28 = arith.constant 28 : index
    %c0_72 = arith.constant 0 : index
    %97 = vector.load %arg25[%c28, %c0_72] : memref<144x256xf32, #tpu.memory_space<vmem>>, vector<4x178xf32>
    tpu.vector_store %arg25[%c28, %c0_72], %96 {strides = array<i32>} : memref<144x256xf32, #tpu.memory_space<vmem>>, vector<4x178xf32>,
    %98 = vector.extract_strided_slice %81 {offsets = [0, 22], sizes = [4, 178], strides = [1, 1]} : vector<4x256xf32> to vector<4x178xf32>
    %c32_73 = arith.constant 32 : index
    %c0_74 = arith.constant 0 : index
    %99 = vector.load %arg25[%c32_73, %c0_74] : memref<144x256xf32, #tpu.memory_space<vmem>>, vector<4x178xf32>
    tpu.vector_store %arg25[%c32_73, %c0_74], %98 {strides = array<i32>} : memref<144x256xf32, #tpu.memory_space<vmem>>, vector<4x178xf32>,
    %c0_75 = arith.constant 0 : index
    %c0_76 = arith.constant 0 : index
    %100 = vector.load %arg11[%c0_75, %c0_76] : memref<4x36xbf16, #tpu.memory_space<vmem>>, vector<4x36xbf16>
    %c0_77 = arith.constant 0 : index
    %c0_78 = arith.constant 0 : index
    %101 = vector.load %arg25[%c0_77, %c0_78] : memref<144x256xf32, #tpu.memory_space<vmem>>, vector<36x178xf32>
    %102 = arith.truncf %101 : vector<36x178xf32> to vector<36x178xbf16>
    %cst_79 = arith.constant dense<0.000000e+00> : vector<4x178xf32>
    %103 = tpu.matmul %100, %102, %cst_79 {dimension_numbers = #tpu.dot_dimension_numbers<[1], [0], [0], [1], [0, 0, 1, 1], [], []>} : vector<4x36xbf16>, vector<36x178xbf16>, vector<4x178xf32> -> vector<4x178xf32>
    %c12_80 = arith.constant 12 : index
    %c11_81 = arith.constant 11 : index
    %104 = vector.load %arg26[%c12_80, %c11_81] : memref<16x256xf32, #tpu.memory_space<vmem>>, vector<4x178xf32>
    tpu.vector_store %arg26[%c12_80, %c11_81], %103 {strides = array<i32>} : memref<16x256xf32, #tpu.memory_space<vmem>>, vector<4x178xf32>,
    %c0_82 = arith.constant 0 : index
    %c0_83 = arith.constant 0 : index
    %105 = vector.load %arg26[%c0_82, %c0_83] : memref<16x256xf32, #tpu.memory_space<vmem>>, vector<16x256xf32>
    %106 = arith.addf %105, %0 : vector<16x256xf32>
    %c0_84 = arith.constant 0 : index
    %c0_85 = arith.constant 0 : index
    %107 = vector.load %arg23[%c0_84, %c0_85] : memref<16x256xf32, #tpu.memory_space<vmem>>, vector<16x256xf32>
    tpu.vector_store %arg23[%c0_84, %c0_85], %106 {strides = array<i32>} : memref<16x256xf32, #tpu.memory_space<vmem>>, vector<16x256xf32>,
    %108 = arith.truncf %0 : vector<16x256xf32> to vector<16x256xbf16>
    %c0_86 = arith.constant 0 : index
    %c0_87 = arith.constant 0 : index
    %109 = vector.load %arg4[%c0_86, %c0_87] : memref<256x128xbf16, #tpu.memory_space<vmem>>, vector<256x128xbf16>
    %cst_88 = arith.constant dense<0.000000e+00> : vector<16x128xf32>
    %110 = tpu.matmul %108, %109, %cst_88 {dimension_numbers = #tpu.dot_dimension_numbers<[1], [0], [0], [1], [0, 0, 1, 1], [], []>} : vector<16x256xbf16>, vector<256x128xbf16>, vector<16x128xf32> -> vector<16x128xf32>
    %c0_89 = arith.constant 0 : index
    %c0_90 = arith.constant 0 : index
    %111 = vector.load %arg3[%c0_89, %c0_90] : memref<1x128xf32, #tpu.memory_space<vmem>>, vector<1x128xf32>
    %cst_91 = arith.constant 0.000000e+00 : f32
    %112 = vector.broadcast %cst_91 : f32 to vector<16x128xf32>
    %c0_92 = arith.constant 0 : index
    %c0_93 = arith.constant 0 : index
    %113 = vector.load %arg27[%c0_92, %c0_93] : memref<16x128xf32, #tpu.memory_space<vmem>>, vector<16x128xf32>
    tpu.vector_store %arg27[%c0_92, %c0_93], %112 {strides = array<i32>} : memref<16x128xf32, #tpu.memory_space<vmem>>, vector<16x128xf32>,
    %c0_94 = arith.constant 0 : index
    %c0_95 = arith.constant 0 : index
    %114 = vector.load %arg15[%c0_94, %c0_95] : memref<16x1xf32, #tpu.memory_space<vmem>>, vector<16x1xf32>
    %115 = vector.broadcast %114 : vector<16x1xf32> to vector<16x128xf32>
    %116 = arith.mulf %110, %115 : vector<16x128xf32>
    %c0_96 = arith.constant 0 : index
    %c0_97 = arith.constant 0 : index
    %117 = vector.load %arg16[%c0_96, %c0_97] : memref<16x1xf32, #tpu.memory_space<vmem>>, vector<16x1xf32>
    %118 = vector.broadcast %117 : vector<16x1xf32> to vector<16x128xf32>
    %119 = arith.addf %116, %118 : vector<16x128xf32>
    %cst_98 = arith.constant 0.000000e+00 : f32
    %120 = vector.broadcast %cst_98 : f32 to vector<16x128xf32>
    %121 = arith.maximumf %119, %120 : vector<16x128xf32>
    %122 = vector.broadcast %111 : vector<1x128xf32> to vector<16x128xf32>
    %123 = arith.mulf %121, %122 : vector<16x128xf32>
    %124 = vector.extract_strided_slice %123 {offsets = [0, 0], sizes = [16, 58], strides = [1, 1]} : vector<16x128xf32> to vector<16x58xf32>
    %c0_99 = arith.constant 0 : index
    %c0_100 = arith.constant 0 : index
    %125 = vector.load %arg25[%c0_99, %c0_100] : memref<144x256xf32, #tpu.memory_space<vmem>>, vector<16x58xf32>
    tpu.vector_store %arg25[%c0_99, %c0_100], %124 {strides = array<i32>} : memref<144x256xf32, #tpu.memory_space<vmem>>, vector<16x58xf32>,
    %126 = vector.extract_strided_slice %123 {offsets = [0, 1], sizes = [16, 58], strides = [1, 1]} : vector<16x128xf32> to vector<16x58xf32>
    %c16_101 = arith.constant 16 : index
    %c0_102 = arith.constant 0 : index
    %127 = vector.load %arg25[%c16_101, %c0_102] : memref<144x256xf32, #tpu.memory_space<vmem>>, vector<16x58xf32>
    tpu.vector_store %arg25[%c16_101, %c0_102], %126 {strides = array<i32>} : memref<144x256xf32, #tpu.memory_space<vmem>>, vector<16x58xf32>,
    %128 = vector.extract_strided_slice %123 {offsets = [0, 2], sizes = [16, 58], strides = [1, 1]} : vector<16x128xf32> to vector<16x58xf32>
    %c32_103 = arith.constant 32 : index
    %c0_104 = arith.constant 0 : index
    %129 = vector.load %arg25[%c32_103, %c0_104] : memref<144x256xf32, #tpu.memory_space<vmem>>, vector<16x58xf32>
    tpu.vector_store %arg25[%c32_103, %c0_104], %128 {strides = array<i32>} : memref<144x256xf32, #tpu.memory_space<vmem>>, vector<16x58xf32>,
    %130 = vector.extract_strided_slice %123 {offsets = [0, 6], sizes = [16, 58], strides = [1, 1]} : vector<16x128xf32> to vector<16x58xf32>
    %c48_105 = arith.constant 48 : index
    %c0_106 = arith.constant 0 : index
    %131 = vector.load %arg25[%c48_105, %c0_106] : memref<144x256xf32, #tpu.memory_space<vmem>>, vector<16x58xf32>
    tpu.vector_store %arg25[%c48_105, %c0_106], %130 {strides = array<i32>} : memref<144x256xf32, #tpu.memory_space<vmem>>, vector<16x58xf32>,
    %132 = vector.extract_strided_slice %123 {offsets = [0, 7], sizes = [16, 58], strides = [1, 1]} : vector<16x128xf32> to vector<16x58xf32>
    %c64_107 = arith.constant 64 : index
    %c0_108 = arith.constant 0 : index
    %133 = vector.load %arg25[%c64_107, %c0_108] : memref<144x256xf32, #tpu.memory_space<vmem>>, vector<16x58xf32>
    tpu.vector_store %arg25[%c64_107, %c0_108], %132 {strides = array<i32>} : memref<144x256xf32, #tpu.memory_space<vmem>>, vector<16x58xf32>,
    %134 = vector.extract_strided_slice %123 {offsets = [0, 8], sizes = [16, 58], strides = [1, 1]} : vector<16x128xf32> to vector<16x58xf32>
    %c80_109 = arith.constant 80 : index
    %c0_110 = arith.constant 0 : index
    %135 = vector.load %arg25[%c80_109, %c0_110] : memref<144x256xf32, #tpu.memory_space<vmem>>, vector<16x58xf32>
    tpu.vector_store %arg25[%c80_109, %c0_110], %134 {strides = array<i32>} : memref<144x256xf32, #tpu.memory_space<vmem>>, vector<16x58xf32>,
    %136 = vector.extract_strided_slice %123 {offsets = [0, 12], sizes = [16, 58], strides = [1, 1]} : vector<16x128xf32> to vector<16x58xf32>
    %c96_111 = arith.constant 96 : index
    %c0_112 = arith.constant 0 : index
    %137 = vector.load %arg25[%c96_111, %c0_112] : memref<144x256xf32, #tpu.memory_space<vmem>>, vector<16x58xf32>
    tpu.vector_store %arg25[%c96_111, %c0_112], %136 {strides = array<i32>} : memref<144x256xf32, #tpu.memory_space<vmem>>, vector<16x58xf32>,
    %138 = vector.extract_strided_slice %123 {offsets = [0, 13], sizes = [16, 58], strides = [1, 1]} : vector<16x128xf32> to vector<16x58xf32>
    %c112_113 = arith.constant 112 : index
    %c0_114 = arith.constant 0 : index
    %139 = vector.load %arg25[%c112_113, %c0_114] : memref<144x256xf32, #tpu.memory_space<vmem>>, vector<16x58xf32>
    tpu.vector_store %arg25[%c112_113, %c0_114], %138 {strides = array<i32>} : memref<144x256xf32, #tpu.memory_space<vmem>>, vector<16x58xf32>,
    %140 = vector.extract_strided_slice %123 {offsets = [0, 14], sizes = [16, 58], strides = [1, 1]} : vector<16x128xf32> to vector<16x58xf32>
    %c128_115 = arith.constant 128 : index
    %c0_116 = arith.constant 0 : index
    %141 = vector.load %arg25[%c128_115, %c0_116] : memref<144x256xf32, #tpu.memory_space<vmem>>, vector<16x58xf32>
    tpu.vector_store %arg25[%c128_115, %c0_116], %140 {strides = array<i32>} : memref<144x256xf32, #tpu.memory_space<vmem>>, vector<16x58xf32>,
    %c0_117 = arith.constant 0 : index
    %c0_118 = arith.constant 0 : index
    %142 = vector.load %arg14[%c0_117, %c0_118] : memref<8x144xbf16, #tpu.memory_space<vmem>>, vector<8x144xbf16>
    %c0_119 = arith.constant 0 : index
    %c0_120 = arith.constant 0 : index
    %143 = vector.load %arg25[%c0_119, %c0_120] : memref<144x256xf32, #tpu.memory_space<vmem>>, vector<144x58xf32>
    %144 = arith.truncf %143 : vector<144x58xf32> to vector<144x58xbf16>
    %cst_121 = arith.constant dense<0.000000e+00> : vector<8x58xf32>
    %145 = tpu.matmul %142, %144, %cst_121 {dimension_numbers = #tpu.dot_dimension_numbers<[1], [0], [0], [1], [0, 0, 1, 1], [], []>} : vector<8x144xbf16>, vector<144x58xbf16>, vector<8x58xf32> -> vector<8x58xf32>
    %c0_122 = arith.constant 0 : index
    %c7 = arith.constant 7 : index
    %146 = vector.load %arg27[%c0_122, %c7] : memref<16x128xf32, #tpu.memory_space<vmem>>, vector<8x58xf32>
    tpu.vector_store %arg27[%c0_122, %c7], %145 {strides = array<i32>} : memref<16x128xf32, #tpu.memory_space<vmem>>, vector<8x58xf32>,
    %c0_123 = arith.constant 0 : index
    %c0_124 = arith.constant 0 : index
    %147 = vector.load %arg27[%c0_123, %c0_124] : memref<16x128xf32, #tpu.memory_space<vmem>>, vector<8x128xf32>
    %c0_125 = arith.constant 0 : index
    %c0_126 = arith.constant 0 : index
    %148 = vector.load %arg18[%c0_125, %c0_126] : memref<8x1xf32, #tpu.memory_space<vmem>>, vector<8x1xf32>
    %149 = vector.broadcast %148 : vector<8x1xf32> to vector<8x128xf32>
    %150 = arith.mulf %147, %149 : vector<8x128xf32>
    %c0_127 = arith.constant 0 : index
    %c0_128 = arith.constant 0 : index
    %151 = vector.load %arg19[%c0_127, %c0_128] : memref<8x1xf32, #tpu.memory_space<vmem>>, vector<8x1xf32>
    %152 = vector.broadcast %151 : vector<8x1xf32> to vector<8x128xf32>
    %153 = arith.addf %150, %152 : vector<8x128xf32>
    %cst_129 = arith.constant 0.000000e+00 : f32
    %154 = vector.broadcast %cst_129 : f32 to vector<8x128xf32>
    %155 = arith.maximumf %153, %154 : vector<8x128xf32>
    %156 = vector.broadcast %111 : vector<1x128xf32> to vector<8x128xf32>
    %157 = arith.mulf %155, %156 : vector<8x128xf32>
    %158 = vector.extract_strided_slice %157 {offsets = [0, 0], sizes = [8, 58], strides = [1, 1]} : vector<8x128xf32> to vector<8x58xf32>
    %c0_130 = arith.constant 0 : index
    %c0_131 = arith.constant 0 : index
    %159 = vector.load %arg25[%c0_130, %c0_131] : memref<144x256xf32, #tpu.memory_space<vmem>>, vector<8x58xf32>
    tpu.vector_store %arg25[%c0_130, %c0_131], %158 {strides = array<i32>} : memref<144x256xf32, #tpu.memory_space<vmem>>, vector<8x58xf32>,
    %160 = vector.extract_strided_slice %157 {offsets = [0, 1], sizes = [8, 58], strides = [1, 1]} : vector<8x128xf32> to vector<8x58xf32>
    %c8_132 = arith.constant 8 : index
    %c0_133 = arith.constant 0 : index
    %161 = vector.load %arg25[%c8_132, %c0_133] : memref<144x256xf32, #tpu.memory_space<vmem>>, vector<8x58xf32>
    tpu.vector_store %arg25[%c8_132, %c0_133], %160 {strides = array<i32>} : memref<144x256xf32, #tpu.memory_space<vmem>>, vector<8x58xf32>,
    %162 = vector.extract_strided_slice %157 {offsets = [0, 2], sizes = [8, 58], strides = [1, 1]} : vector<8x128xf32> to vector<8x58xf32>
    %c16_134 = arith.constant 16 : index
    %c0_135 = arith.constant 0 : index
    %163 = vector.load %arg25[%c16_134, %c0_135] : memref<144x256xf32, #tpu.memory_space<vmem>>, vector<8x58xf32>
    tpu.vector_store %arg25[%c16_134, %c0_135], %162 {strides = array<i32>} : memref<144x256xf32, #tpu.memory_space<vmem>>, vector<8x58xf32>,
    %164 = vector.extract_strided_slice %157 {offsets = [0, 6], sizes = [8, 58], strides = [1, 1]} : vector<8x128xf32> to vector<8x58xf32>
    %c24_136 = arith.constant 24 : index
    %c0_137 = arith.constant 0 : index
    %165 = vector.load %arg25[%c24_136, %c0_137] : memref<144x256xf32, #tpu.memory_space<vmem>>, vector<8x58xf32>
    tpu.vector_store %arg25[%c24_136, %c0_137], %164 {strides = array<i32>} : memref<144x256xf32, #tpu.memory_space<vmem>>, vector<8x58xf32>,
    %166 = vector.extract_strided_slice %157 {offsets = [0, 7], sizes = [8, 58], strides = [1, 1]} : vector<8x128xf32> to vector<8x58xf32>
    %c32_138 = arith.constant 32 : index
    %c0_139 = arith.constant 0 : index
    %167 = vector.load %arg25[%c32_138, %c0_139] : memref<144x256xf32, #tpu.memory_space<vmem>>, vector<8x58xf32>
    tpu.vector_store %arg25[%c32_138, %c0_139], %166 {strides = array<i32>} : memref<144x256xf32, #tpu.memory_space<vmem>>, vector<8x58xf32>,
    %168 = vector.extract_strided_slice %157 {offsets = [0, 8], sizes = [8, 58], strides = [1, 1]} : vector<8x128xf32> to vector<8x58xf32>
    %c40_140 = arith.constant 40 : index
    %c0_141 = arith.constant 0 : index
    %169 = vector.load %arg25[%c40_140, %c0_141] : memref<144x256xf32, #tpu.memory_space<vmem>>, vector<8x58xf32>
    tpu.vector_store %arg25[%c40_140, %c0_141], %168 {strides = array<i32>} : memref<144x256xf32, #tpu.memory_space<vmem>>, vector<8x58xf32>,
    %170 = vector.extract_strided_slice %157 {offsets = [0, 12], sizes = [8, 58], strides = [1, 1]} : vector<8x128xf32> to vector<8x58xf32>
    %c48_142 = arith.constant 48 : index
    %c0_143 = arith.constant 0 : index
    %171 = vector.load %arg25[%c48_142, %c0_143] : memref<144x256xf32, #tpu.memory_space<vmem>>, vector<8x58xf32>
    tpu.vector_store %arg25[%c48_142, %c0_143], %170 {strides = array<i32>} : memref<144x256xf32, #tpu.memory_space<vmem>>, vector<8x58xf32>,
    %172 = vector.extract_strided_slice %157 {offsets = [0, 13], sizes = [8, 58], strides = [1, 1]} : vector<8x128xf32> to vector<8x58xf32>
    %c56_144 = arith.constant 56 : index
    %c0_145 = arith.constant 0 : index
    %173 = vector.load %arg25[%c56_144, %c0_145] : memref<144x256xf32, #tpu.memory_space<vmem>>, vector<8x58xf32>
    tpu.vector_store %arg25[%c56_144, %c0_145], %172 {strides = array<i32>} : memref<144x256xf32, #tpu.memory_space<vmem>>, vector<8x58xf32>,
    %174 = vector.extract_strided_slice %157 {offsets = [0, 14], sizes = [8, 58], strides = [1, 1]} : vector<8x128xf32> to vector<8x58xf32>
    %c64_146 = arith.constant 64 : index
    %c0_147 = arith.constant 0 : index
    %175 = vector.load %arg25[%c64_146, %c0_147] : memref<144x256xf32, #tpu.memory_space<vmem>>, vector<8x58xf32>
    tpu.vector_store %arg25[%c64_146, %c0_147], %174 {strides = array<i32>} : memref<144x256xf32, #tpu.memory_space<vmem>>, vector<8x58xf32>,
    %c0_148 = arith.constant 0 : index
    %c0_149 = arith.constant 0 : index
    %176 = vector.load %arg17[%c0_148, %c0_149] : memref<4x72xbf16, #tpu.memory_space<vmem>>, vector<4x72xbf16>
    %c0_150 = arith.constant 0 : index
    %c0_151 = arith.constant 0 : index
    %177 = vector.load %arg25[%c0_150, %c0_151] : memref<144x256xf32, #tpu.memory_space<vmem>>, vector<72x58xf32>
    %178 = arith.truncf %177 : vector<72x58xf32> to vector<72x58xbf16>
    %cst_152 = arith.constant dense<0.000000e+00> : vector<4x58xf32>
    %179 = tpu.matmul %176, %178, %cst_152 {dimension_numbers = #tpu.dot_dimension_numbers<[1], [0], [0], [1], [0, 0, 1, 1], [], []>} : vector<4x72xbf16>, vector<72x58xbf16>, vector<4x58xf32> -> vector<4x58xf32>
    %c8_153 = arith.constant 8 : index
    %c7_154 = arith.constant 7 : index
    %180 = vector.load %arg27[%c8_153, %c7_154] : memref<16x128xf32, #tpu.memory_space<vmem>>, vector<4x58xf32>
    tpu.vector_store %arg27[%c8_153, %c7_154], %179 {strides = array<i32>} : memref<16x128xf32, #tpu.memory_space<vmem>>, vector<4x58xf32>,
    %c8_155 = arith.constant 8 : index
    %c0_156 = arith.constant 0 : index
    %181 = vector.load %arg27[%c8_155, %c0_156] : memref<16x128xf32, #tpu.memory_space<vmem>>, vector<4x128xf32>
    %c0_157 = arith.constant 0 : index
    %c0_158 = arith.constant 0 : index
    %182 = vector.load %arg21[%c0_157, %c0_158] : memref<4x1xf32, #tpu.memory_space<vmem>>, vector<4x1xf32>
    %183 = vector.broadcast %182 : vector<4x1xf32> to vector<4x128xf32>
    %184 = arith.mulf %181, %183 : vector<4x128xf32>
    %c0_159 = arith.constant 0 : index
    %c0_160 = arith.constant 0 : index
    %185 = vector.load %arg22[%c0_159, %c0_160] : memref<4x1xf32, #tpu.memory_space<vmem>>, vector<4x1xf32>
    %186 = vector.broadcast %185 : vector<4x1xf32> to vector<4x128xf32>
    %187 = arith.addf %184, %186 : vector<4x128xf32>
    %cst_161 = arith.constant 0.000000e+00 : f32
    %188 = vector.broadcast %cst_161 : f32 to vector<4x128xf32>
    %189 = arith.maximumf %187, %188 : vector<4x128xf32>
    %190 = vector.broadcast %111 : vector<1x128xf32> to vector<4x128xf32>
    %191 = arith.mulf %189, %190 : vector<4x128xf32>
    %192 = vector.extract_strided_slice %191 {offsets = [0, 0], sizes = [4, 58], strides = [1, 1]} : vector<4x128xf32> to vector<4x58xf32>
    %c0_162 = arith.constant 0 : index
    %c0_163 = arith.constant 0 : index
    %193 = vector.load %arg25[%c0_162, %c0_163] : memref<144x256xf32, #tpu.memory_space<vmem>>, vector<4x58xf32>
    tpu.vector_store %arg25[%c0_162, %c0_163], %192 {strides = array<i32>} : memref<144x256xf32, #tpu.memory_space<vmem>>, vector<4x58xf32>,
    %194 = vector.extract_strided_slice %191 {offsets = [0, 1], sizes = [4, 58], strides = [1, 1]} : vector<4x128xf32> to vector<4x58xf32>
    %c4_164 = arith.constant 4 : index
    %c0_165 = arith.constant 0 : index
    %195 = vector.load %arg25[%c4_164, %c0_165] : memref<144x256xf32, #tpu.memory_space<vmem>>, vector<4x58xf32>
    tpu.vector_store %arg25[%c4_164, %c0_165], %194 {strides = array<i32>} : memref<144x256xf32, #tpu.memory_space<vmem>>, vector<4x58xf32>,
    %196 = vector.extract_strided_slice %191 {offsets = [0, 2], sizes = [4, 58], strides = [1, 1]} : vector<4x128xf32> to vector<4x58xf32>
    %c8_166 = arith.constant 8 : index
    %c0_167 = arith.constant 0 : index
    %197 = vector.load %arg25[%c8_166, %c0_167] : memref<144x256xf32, #tpu.memory_space<vmem>>, vector<4x58xf32>
    tpu.vector_store %arg25[%c8_166, %c0_167], %196 {strides = array<i32>} : memref<144x256xf32, #tpu.memory_space<vmem>>, vector<4x58xf32>,
    %198 = vector.extract_strided_slice %191 {offsets = [0, 6], sizes = [4, 58], strides = [1, 1]} : vector<4x128xf32> to vector<4x58xf32>
    %c12_168 = arith.constant 12 : index
    %c0_169 = arith.constant 0 : index
    %199 = vector.load %arg25[%c12_168, %c0_169] : memref<144x256xf32, #tpu.memory_space<vmem>>, vector<4x58xf32>
    tpu.vector_store %arg25[%c12_168, %c0_169], %198 {strides = array<i32>} : memref<144x256xf32, #tpu.memory_space<vmem>>, vector<4x58xf32>,
    %200 = vector.extract_strided_slice %191 {offsets = [0, 7], sizes = [4, 58], strides = [1, 1]} : vector<4x128xf32> to vector<4x58xf32>
    %c16_170 = arith.constant 16 : index
    %c0_171 = arith.constant 0 : index
    %201 = vector.load %arg25[%c16_170, %c0_171] : memref<144x256xf32, #tpu.memory_space<vmem>>, vector<4x58xf32>
    tpu.vector_store %arg25[%c16_170, %c0_171], %200 {strides = array<i32>} : memref<144x256xf32, #tpu.memory_space<vmem>>, vector<4x58xf32>,
    %202 = vector.extract_strided_slice %191 {offsets = [0, 8], sizes = [4, 58], strides = [1, 1]} : vector<4x128xf32> to vector<4x58xf32>
    %c20_172 = arith.constant 20 : index
    %c0_173 = arith.constant 0 : index
    %203 = vector.load %arg25[%c20_172, %c0_173] : memref<144x256xf32, #tpu.memory_space<vmem>>, vector<4x58xf32>
    tpu.vector_store %arg25[%c20_172, %c0_173], %202 {strides = array<i32>} : memref<144x256xf32, #tpu.memory_space<vmem>>, vector<4x58xf32>,
    %204 = vector.extract_strided_slice %191 {offsets = [0, 12], sizes = [4, 58], strides = [1, 1]} : vector<4x128xf32> to vector<4x58xf32>
    %c24_174 = arith.constant 24 : index
    %c0_175 = arith.constant 0 : index
    %205 = vector.load %arg25[%c24_174, %c0_175] : memref<144x256xf32, #tpu.memory_space<vmem>>, vector<4x58xf32>
    tpu.vector_store %arg25[%c24_174, %c0_175], %204 {strides = array<i32>} : memref<144x256xf32, #tpu.memory_space<vmem>>, vector<4x58xf32>,
    %206 = vector.extract_strided_slice %191 {offsets = [0, 13], sizes = [4, 58], strides = [1, 1]} : vector<4x128xf32> to vector<4x58xf32>
    %c28_176 = arith.constant 28 : index
    %c0_177 = arith.constant 0 : index
    %207 = vector.load %arg25[%c28_176, %c0_177] : memref<144x256xf32, #tpu.memory_space<vmem>>, vector<4x58xf32>
    tpu.vector_store %arg25[%c28_176, %c0_177], %206 {strides = array<i32>} : memref<144x256xf32, #tpu.memory_space<vmem>>, vector<4x58xf32>,
    %208 = vector.extract_strided_slice %191 {offsets = [0, 14], sizes = [4, 58], strides = [1, 1]} : vector<4x128xf32> to vector<4x58xf32>
    %c32_178 = arith.constant 32 : index
    %c0_179 = arith.constant 0 : index
    %209 = vector.load %arg25[%c32_178, %c0_179] : memref<144x256xf32, #tpu.memory_space<vmem>>, vector<4x58xf32>
    tpu.vector_store %arg25[%c32_178, %c0_179], %208 {strides = array<i32>} : memref<144x256xf32, #tpu.memory_space<vmem>>, vector<4x58xf32>,
    %c0_180 = arith.constant 0 : index
    %c0_181 = arith.constant 0 : index
    %210 = vector.load %arg20[%c0_180, %c0_181] : memref<4x36xbf16, #tpu.memory_space<vmem>>, vector<4x36xbf16>
    %c0_182 = arith.constant 0 : index
    %c0_183 = arith.constant 0 : index
    %211 = vector.load %arg25[%c0_182, %c0_183] : memref<144x256xf32, #tpu.memory_space<vmem>>, vector<36x58xf32>
    %212 = arith.truncf %211 : vector<36x58xf32> to vector<36x58xbf16>
    %cst_184 = arith.constant dense<0.000000e+00> : vector<4x58xf32>
    %213 = tpu.matmul %210, %212, %cst_184 {dimension_numbers = #tpu.dot_dimension_numbers<[1], [0], [0], [1], [0, 0, 1, 1], [], []>} : vector<4x36xbf16>, vector<36x58xbf16>, vector<4x58xf32> -> vector<4x58xf32>
    %c12_185 = arith.constant 12 : index
    %c7_186 = arith.constant 7 : index
    %214 = vector.load %arg27[%c12_185, %c7_186] : memref<16x128xf32, #tpu.memory_space<vmem>>, vector<4x58xf32>
    tpu.vector_store %arg27[%c12_185, %c7_186], %213 {strides = array<i32>} : memref<16x128xf32, #tpu.memory_space<vmem>>, vector<4x58xf32>,
    %c0_187 = arith.constant 0 : index
    %c0_188 = arith.constant 0 : index
    %215 = vector.load %arg27[%c0_187, %c0_188] : memref<16x128xf32, #tpu.memory_space<vmem>>, vector<16x128xf32>
    %216 = arith.addf %215, %110 : vector<16x128xf32>
    %c0_189 = arith.constant 0 : index
    %c0_190 = arith.constant 0 : index
    %217 = vector.load %arg24[%c0_189, %c0_190] : memref<16x128xf32, #tpu.memory_space<vmem>>, vector<16x128xf32>
    tpu.vector_store %arg24[%c0_189, %c0_190], %216 {strides = array<i32>} : memref<16x128xf32, #tpu.memory_space<vmem>>, vector<16x128xf32>,
    return
  }
  func.func @transform_0(%arg0: i32) -> (i32, i32) {
    %c0_i32 = arith.constant 0 : i32
    %c0_i32_0 = arith.constant 0 : i32
    %c0_i32_1 = arith.constant 0 : i32
    return %c0_i32, %c0_i32_0 : i32, i32
  }
  func.func @transform_1(%arg0: i32) -> (i32, i32) {
    %c0_i32 = arith.constant 0 : i32
    %c0_i32_0 = arith.constant 0 : i32
    %c0_i32_1 = arith.constant 0 : i32
    return %c0_i32, %c0_i32_0 : i32, i32
  }
  func.func @transform_2(%arg0: i32) -> (i32, i32) {
    %c0_i32 = arith.constant 0 : i32
    %c0_i32_0 = arith.constant 0 : i32
    %c0_i32_1 = arith.constant 0 : i32
    return %c0_i32, %c0_i32_0 : i32, i32
  }
  func.func @transform_3(%arg0: i32) -> (i32, i32) {
    %c0_i32 = arith.constant 0 : i32
    %c0_i32_0 = arith.constant 0 : i32
    %c0_i32_1 = arith.constant 0 : i32
    return %c0_i32, %c0_i32_0 : i32, i32
  }
  func.func @transform_4(%arg0: i32) -> (i32, i32) {
    %c0_i32 = arith.constant 0 : i32
    %c0_i32_0 = arith.constant 0 : i32
    %c0_i32_1 = arith.constant 0 : i32
    return %c0_i32, %c0_i32_0 : i32, i32
  }
  func.func @transform_5(%arg0: i32) -> (i32, i32) {
    %c0_i32 = arith.constant 0 : i32
    %c0_i32_0 = arith.constant 0 : i32
    %c0_i32_1 = arith.constant 0 : i32
    return %c0_i32, %c0_i32_0 : i32, i32
  }
  func.func @transform_6(%arg0: i32) -> (i32, i32) {
    %c0_i32 = arith.constant 0 : i32
    %c0_i32_0 = arith.constant 0 : i32
    %c0_i32_1 = arith.constant 0 : i32
    return %c0_i32, %c0_i32_0 : i32, i32
  }
  func.func @transform_7(%arg0: i32) -> (i32, i32) {
    %c0_i32 = arith.constant 0 : i32
    %c0_i32_0 = arith.constant 0 : i32
    %c0_i32_1 = arith.constant 0 : i32
    return %c0_i32, %c0_i32_0 : i32, i32
  }
  func.func @transform_8(%arg0: i32) -> (i32, i32) {
    %c0_i32 = arith.constant 0 : i32
    %c0_i32_0 = arith.constant 0 : i32
    %c0_i32_1 = arith.constant 0 : i32
    return %c0_i32, %c0_i32_0 : i32, i32
  }
  func.func @transform_9(%arg0: i32) -> (i32, i32) {
    %c0_i32 = arith.constant 0 : i32
    %c0_i32_0 = arith.constant 0 : i32
    %c0_i32_1 = arith.constant 0 : i32
    return %c0_i32, %c0_i32_0 : i32, i32
  }
  func.func @transform_10(%arg0: i32) -> (i32, i32) {
    %c0_i32 = arith.constant 0 : i32
    %c0_i32_0 = arith.constant 0 : i32
    %c0_i32_1 = arith.constant 0 : i32
    return %c0_i32, %c0_i32_0 : i32, i32
  }
  func.func @transform_11(%arg0: i32) -> (i32, i32) {
    %c0_i32 = arith.constant 0 : i32
    %c0_i32_0 = arith.constant 0 : i32
    %c0_i32_1 = arith.constant 0 : i32
    return %c0_i32, %c0_i32_0 : i32, i32
  }
  func.func @transform_12(%arg0: i32) -> (i32, i32) {
    %c0_i32 = arith.constant 0 : i32
    %c0_i32_0 = arith.constant 0 : i32
    %c0_i32_1 = arith.constant 0 : i32
    return %c0_i32, %c0_i32_0 : i32, i32
  }
  func.func @transform_13(%arg0: i32) -> (i32, i32) {
    %c0_i32 = arith.constant 0 : i32
    %c0_i32_0 = arith.constant 0 : i32
    %c0_i32_1 = arith.constant 0 : i32
    return %c0_i32, %c0_i32_0 : i32, i32
  }
  func.func @transform_14(%arg0: i32) -> (i32, i32) {
    %c0_i32 = arith.constant 0 : i32
    %c0_i32_0 = arith.constant 0 : i32
    %c0_i32_1 = arith.constant 0 : i32
    return %c0_i32, %c0_i32_0 : i32, i32
  }
  func.func @transform_15(%arg0: i32) -> (i32, i32) {
    %c0_i32 = arith.constant 0 : i32
    %c0_i32_0 = arith.constant 0 : i32
    %c0_i32_1 = arith.constant 0 : i32
    return %c0_i32, %c0_i32_0 : i32, i32
  }
  func.func @transform_16(%arg0: i32) -> (i32, i32) {
    %c0_i32 = arith.constant 0 : i32
    %c0_i32_0 = arith.constant 0 : i32
    %c0_i32_1 = arith.constant 0 : i32
    return %c0_i32, %c0_i32_0 : i32, i32
  }
  func.func @transform_17(%arg0: i32) -> (i32, i32) {
    %c0_i32 = arith.constant 0 : i32
    %c0_i32_0 = arith.constant 0 : i32
    %c0_i32_1 = arith.constant 0 : i32
    return %c0_i32, %c0_i32_0 : i32, i32
  }
  func.func @transform_18(%arg0: i32) -> (i32, i32) {
    %c0_i32 = arith.constant 0 : i32
    %c0_i32_0 = arith.constant 0 : i32
    %c0_i32_1 = arith.constant 0 : i32
    return %c0_i32, %c0_i32_0 : i32, i32
  }
  func.func @transform_19(%arg0: i32) -> (i32, i32) {
    %c0_i32 = arith.constant 0 : i32
    %c0_i32_0 = arith.constant 0 : i32
    %c0_i32_1 = arith.constant 0 : i32
    return %c0_i32, %c0_i32_0 : i32, i32
  }
  func.func @transform_20(%arg0: i32) -> (i32, i32) {
    %c0_i32 = arith.constant 0 : i32
    %c0_i32_0 = arith.constant 0 : i32
    %c0_i32_1 = arith.constant 0 : i32
    return %c0_i32, %c0_i32_0 : i32, i32
  }
  func.func @transform_21(%arg0: i32) -> (i32, i32) {
    %c0_i32 = arith.constant 0 : i32
    %c0_i32_0 = arith.constant 0 : i32
    %c0_i32_1 = arith.constant 0 : i32
    return %c0_i32, %c0_i32_0 : i32, i32
  }
  func.func @transform_22(%arg0: i32) -> (i32, i32) {
    %c0_i32 = arith.constant 0 : i32
    %c0_i32_0 = arith.constant 0 : i32
    %c0_i32_1 = arith.constant 0 : i32
    return %c0_i32, %c0_i32_0 : i32, i32
  }
  func.func @transform_23(%arg0: i32) -> (i32, i32) {
    %c0_i32 = arith.constant 0 : i32
    %c0_i32_0 = arith.constant 0 : i32
    %c0_i32_1 = arith.constant 0 : i32
    return %c0_i32, %c0_i32_0 : i32, i32
  }
}

module attributes {stable_mosaic.version = 11 : i64} {
  func.func @_tail_kernel(%arg0: i32, %arg1: memref<16x128xf32, #tpu.memory_space<vmem>>, %arg2: memref<16x256xf32, #tpu.memory_space<vmem>>, %arg3: memref<1x128xf32, #tpu.memory_space<vmem>>, %arg4: memref<128x256xbf16, #tpu.memory_space<vmem>>, %arg5: memref<8x144xbf16, #tpu.memory_space<vmem>>, %arg6: memref<16x1xf32, #tpu.memory_space<vmem>>, %arg7: memref<16x1xf32, #tpu.memory_space<vmem>>, %arg8: memref<4x72xbf16, #tpu.memory_space<vmem>>, %arg9: memref<8x1xf32, #tpu.memory_space<vmem>>, %arg10: memref<8x1xf32, #tpu.memory_space<vmem>>, %arg11: memref<4x36xbf16, #tpu.memory_space<vmem>>, %arg12: memref<4x1xf32, #tpu.memory_space<vmem>>, %arg13: memref<4x1xf32, #tpu.memory_space<vmem>>, %arg14: memref<8x144xbf16, #tpu.memory_space<vmem>>, %arg15: memref<16x1xf32, #tpu.memory_space<vmem>>, %arg16: memref<16x1xf32, #tpu.memory_space<vmem>>, %arg17: memref<4x72xbf16, #tpu.memory_space<vmem>>, %arg18: memref<8x1xf32, #tpu.memory_space<vmem>>, %arg19: memref<8x1xf32, #tpu.memory_space<vmem>>, %arg20: memref<4x36xbf16, #tpu.memory_space<vmem>>, %arg21: memref<4x1xf32, #tpu.memory_space<vmem>>, %arg22: memref<4x1xf32, #tpu.memory_space<vmem>>, %arg23: memref<16x256xf32, #tpu.memory_space<vmem>>, %arg24: memref<144x128xf32, #tpu.memory_space<vmem>>, %arg25: memref<16x128xf32, #tpu.memory_space<vmem>>, %arg26: memref<16x128xf32, #tpu.memory_space<vmem>>) attributes {dimension_semantics = [#tpu.dimension_semantics<arbitrary>], iteration_bounds = array<i64: 1>, scalar_prefetch = 0 : i64, scratch_operands = 3 : i64, tpu.core_type = #tpu.core_type<tc>, window_params = [{pipeline_mode = #tpu.pipeline_mode<synchronous>, transform_indices = @transform_0, window_bounds = array<i64: 16, 128>}, {pipeline_mode = #tpu.pipeline_mode<synchronous>, transform_indices = @transform_1, window_bounds = array<i64: 16, 256>}, {pipeline_mode = #tpu.pipeline_mode<synchronous>, transform_indices = @transform_2, window_bounds = array<i64: 1, 128>}, {pipeline_mode = #tpu.pipeline_mode<synchronous>, transform_indices = @transform_3, window_bounds = array<i64: 128, 256>}, {pipeline_mode = #tpu.pipeline_mode<synchronous>, transform_indices = @transform_4, window_bounds = array<i64: 8, 144>}, {pipeline_mode = #tpu.pipeline_mode<synchronous>, transform_indices = @transform_5, window_bounds = array<i64: 16, 1>}, {pipeline_mode = #tpu.pipeline_mode<synchronous>, transform_indices = @transform_6, window_bounds = array<i64: 16, 1>}, {pipeline_mode = #tpu.pipeline_mode<synchronous>, transform_indices = @transform_7, window_bounds = array<i64: 4, 72>}, {pipeline_mode = #tpu.pipeline_mode<synchronous>, transform_indices = @transform_8, window_bounds = array<i64: 8, 1>}, {pipeline_mode = #tpu.pipeline_mode<synchronous>, transform_indices = @transform_9, window_bounds = array<i64: 8, 1>}, {pipeline_mode = #tpu.pipeline_mode<synchronous>, transform_indices = @transform_10, window_bounds = array<i64: 4, 36>}, {pipeline_mode = #tpu.pipeline_mode<synchronous>, transform_indices = @transform_11, window_bounds = array<i64: 4, 1>}, {pipeline_mode = #tpu.pipeline_mode<synchronous>, transform_indices = @transform_12, window_bounds = array<i64: 4, 1>}, {pipeline_mode = #tpu.pipeline_mode<synchronous>, transform_indices = @transform_13, window_bounds = array<i64: 8, 144>}, {pipeline_mode = #tpu.pipeline_mode<synchronous>, transform_indices = @transform_14, window_bounds = array<i64: 16, 1>}, {pipeline_mode = #tpu.pipeline_mode<synchronous>, transform_indices = @transform_15, window_bounds = array<i64: 16, 1>}, {pipeline_mode = #tpu.pipeline_mode<synchronous>, transform_indices = @transform_16, window_bounds = array<i64: 4, 72>}, {pipeline_mode = #tpu.pipeline_mode<synchronous>, transform_indices = @transform_17, window_bounds = array<i64: 8, 1>}, {pipeline_mode = #tpu.pipeline_mode<synchronous>, transform_indices = @transform_18, window_bounds = array<i64: 8, 1>}, {pipeline_mode = #tpu.pipeline_mode<synchronous>, transform_indices = @transform_19, window_bounds = array<i64: 4, 36>}, {pipeline_mode = #tpu.pipeline_mode<synchronous>, transform_indices = @transform_20, window_bounds = array<i64: 4, 1>}, {pipeline_mode = #tpu.pipeline_mode<synchronous>, transform_indices = @transform_21, window_bounds = array<i64: 4, 1>}, {pipeline_mode = #tpu.pipeline_mode<synchronous>, transform_indices = @transform_22, window_bounds = array<i64: 16, 256>}]} {
    %c0 = arith.constant 0 : index
    %c0_0 = arith.constant 0 : index
    %0 = vector.load %arg3[%c0, %c0_0] : memref<1x128xf32, #tpu.memory_space<vmem>>, vector<1x128xf32>
    %c0_1 = arith.constant 0 : index
    %c0_2 = arith.constant 0 : index
    %1 = vector.load %arg1[%c0_1, %c0_2] : memref<16x128xf32, #tpu.memory_space<vmem>>, vector<16x128xf32>
    %cst = arith.constant 0.000000e+00 : f32
    %2 = vector.broadcast %cst : f32 to vector<16x128xf32>
    %c0_3 = arith.constant 0 : index
    %c0_4 = arith.constant 0 : index
    %3 = vector.load %arg25[%c0_3, %c0_4] : memref<16x128xf32, #tpu.memory_space<vmem>>, vector<16x128xf32>
    tpu.vector_store %arg25[%c0_3, %c0_4], %2 {strides = array<i32>} : memref<16x128xf32, #tpu.memory_space<vmem>>, vector<16x128xf32>,
    %c0_5 = arith.constant 0 : index
    %c0_6 = arith.constant 0 : index
    %4 = vector.load %arg6[%c0_5, %c0_6] : memref<16x1xf32, #tpu.memory_space<vmem>>, vector<16x1xf32>
    %5 = vector.broadcast %4 : vector<16x1xf32> to vector<16x128xf32>
    %6 = arith.mulf %1, %5 : vector<16x128xf32>
    %c0_7 = arith.constant 0 : index
    %c0_8 = arith.constant 0 : index
    %7 = vector.load %arg7[%c0_7, %c0_8] : memref<16x1xf32, #tpu.memory_space<vmem>>, vector<16x1xf32>
    %8 = vector.broadcast %7 : vector<16x1xf32> to vector<16x128xf32>
    %9 = arith.addf %6, %8 : vector<16x128xf32>
    %cst_9 = arith.constant 0.000000e+00 : f32
    %10 = vector.broadcast %cst_9 : f32 to vector<16x128xf32>
    %11 = arith.maximumf %9, %10 : vector<16x128xf32>
    %12 = vector.broadcast %0 : vector<1x128xf32> to vector<16x128xf32>
    %13 = arith.mulf %11, %12 : vector<16x128xf32>
    %14 = vector.extract_strided_slice %13 {offsets = [0, 0], sizes = [16, 58], strides = [1, 1]} : vector<16x128xf32> to vector<16x58xf32>
    %c0_10 = arith.constant 0 : index
    %c0_11 = arith.constant 0 : index
    %15 = vector.load %arg24[%c0_10, %c0_11] : memref<144x128xf32, #tpu.memory_space<vmem>>, vector<16x58xf32>
    tpu.vector_store %arg24[%c0_10, %c0_11], %14 {strides = array<i32>} : memref<144x128xf32, #tpu.memory_space<vmem>>, vector<16x58xf32>,
    %16 = vector.extract_strided_slice %13 {offsets = [0, 1], sizes = [16, 58], strides = [1, 1]} : vector<16x128xf32> to vector<16x58xf32>
    %c16 = arith.constant 16 : index
    %c0_12 = arith.constant 0 : index
    %17 = vector.load %arg24[%c16, %c0_12] : memref<144x128xf32, #tpu.memory_space<vmem>>, vector<16x58xf32>
    tpu.vector_store %arg24[%c16, %c0_12], %16 {strides = array<i32>} : memref<144x128xf32, #tpu.memory_space<vmem>>, vector<16x58xf32>,
    %18 = vector.extract_strided_slice %13 {offsets = [0, 2], sizes = [16, 58], strides = [1, 1]} : vector<16x128xf32> to vector<16x58xf32>
    %c32 = arith.constant 32 : index
    %c0_13 = arith.constant 0 : index
    %19 = vector.load %arg24[%c32, %c0_13] : memref<144x128xf32, #tpu.memory_space<vmem>>, vector<16x58xf32>
    tpu.vector_store %arg24[%c32, %c0_13], %18 {strides = array<i32>} : memref<144x128xf32, #tpu.memory_space<vmem>>, vector<16x58xf32>,
    %20 = vector.extract_strided_slice %13 {offsets = [0, 6], sizes = [16, 58], strides = [1, 1]} : vector<16x128xf32> to vector<16x58xf32>
    %c48 = arith.constant 48 : index
    %c0_14 = arith.constant 0 : index
    %21 = vector.load %arg24[%c48, %c0_14] : memref<144x128xf32, #tpu.memory_space<vmem>>, vector<16x58xf32>
    tpu.vector_store %arg24[%c48, %c0_14], %20 {strides = array<i32>} : memref<144x128xf32, #tpu.memory_space<vmem>>, vector<16x58xf32>,
    %22 = vector.extract_strided_slice %13 {offsets = [0, 7], sizes = [16, 58], strides = [1, 1]} : vector<16x128xf32> to vector<16x58xf32>
    %c64 = arith.constant 64 : index
    %c0_15 = arith.constant 0 : index
    %23 = vector.load %arg24[%c64, %c0_15] : memref<144x128xf32, #tpu.memory_space<vmem>>, vector<16x58xf32>
    tpu.vector_store %arg24[%c64, %c0_15], %22 {strides = array<i32>} : memref<144x128xf32, #tpu.memory_space<vmem>>, vector<16x58xf32>,
    %24 = vector.extract_strided_slice %13 {offsets = [0, 8], sizes = [16, 58], strides = [1, 1]} : vector<16x128xf32> to vector<16x58xf32>
    %c80 = arith.constant 80 : index
    %c0_16 = arith.constant 0 : index
    %25 = vector.load %arg24[%c80, %c0_16] : memref<144x128xf32, #tpu.memory_space<vmem>>, vector<16x58xf32>
    tpu.vector_store %arg24[%c80, %c0_16], %24 {strides = array<i32>} : memref<144x128xf32, #tpu.memory_space<vmem>>, vector<16x58xf32>,
    %26 = vector.extract_strided_slice %13 {offsets = [0, 12], sizes = [16, 58], strides = [1, 1]} : vector<16x128xf32> to vector<16x58xf32>
    %c96 = arith.constant 96 : index
    %c0_17 = arith.constant 0 : index
    %27 = vector.load %arg24[%c96, %c0_17] : memref<144x128xf32, #tpu.memory_space<vmem>>, vector<16x58xf32>
    tpu.vector_store %arg24[%c96, %c0_17], %26 {strides = array<i32>} : memref<144x128xf32, #tpu.memory_space<vmem>>, vector<16x58xf32>,
    %28 = vector.extract_strided_slice %13 {offsets = [0, 13], sizes = [16, 58], strides = [1, 1]} : vector<16x128xf32> to vector<16x58xf32>
    %c112 = arith.constant 112 : index
    %c0_18 = arith.constant 0 : index
    %29 = vector.load %arg24[%c112, %c0_18] : memref<144x128xf32, #tpu.memory_space<vmem>>, vector<16x58xf32>
    tpu.vector_store %arg24[%c112, %c0_18], %28 {strides = array<i32>} : memref<144x128xf32, #tpu.memory_space<vmem>>, vector<16x58xf32>,
    %30 = vector.extract_strided_slice %13 {offsets = [0, 14], sizes = [16, 58], strides = [1, 1]} : vector<16x128xf32> to vector<16x58xf32>
    %c128 = arith.constant 128 : index
    %c0_19 = arith.constant 0 : index
    %31 = vector.load %arg24[%c128, %c0_19] : memref<144x128xf32, #tpu.memory_space<vmem>>, vector<16x58xf32>
    tpu.vector_store %arg24[%c128, %c0_19], %30 {strides = array<i32>} : memref<144x128xf32, #tpu.memory_space<vmem>>, vector<16x58xf32>,
    %c0_20 = arith.constant 0 : index
    %c0_21 = arith.constant 0 : index
    %32 = vector.load %arg5[%c0_20, %c0_21] : memref<8x144xbf16, #tpu.memory_space<vmem>>, vector<8x144xbf16>
    %c0_22 = arith.constant 0 : index
    %c0_23 = arith.constant 0 : index
    %33 = vector.load %arg24[%c0_22, %c0_23] : memref<144x128xf32, #tpu.memory_space<vmem>>, vector<144x58xf32>
    %34 = arith.truncf %33 : vector<144x58xf32> to vector<144x58xbf16>
    %cst_24 = arith.constant dense<0.000000e+00> : vector<8x58xf32>
    %35 = tpu.matmul %32, %34, %cst_24 {dimension_numbers = #tpu.dot_dimension_numbers<[1], [0], [0], [1], [0, 0, 1, 1], [], []>} : vector<8x144xbf16>, vector<144x58xbf16>, vector<8x58xf32> -> vector<8x58xf32>
    %c0_25 = arith.constant 0 : index
    %c7 = arith.constant 7 : index
    %36 = vector.load %arg25[%c0_25, %c7] : memref<16x128xf32, #tpu.memory_space<vmem>>, vector<8x58xf32>
    tpu.vector_store %arg25[%c0_25, %c7], %35 {strides = array<i32>} : memref<16x128xf32, #tpu.memory_space<vmem>>, vector<8x58xf32>,
    %c0_26 = arith.constant 0 : index
    %c0_27 = arith.constant 0 : index
    %37 = vector.load %arg25[%c0_26, %c0_27] : memref<16x128xf32, #tpu.memory_space<vmem>>, vector<8x128xf32>
    %c0_28 = arith.constant 0 : index
    %c0_29 = arith.constant 0 : index
    %38 = vector.load %arg9[%c0_28, %c0_29] : memref<8x1xf32, #tpu.memory_space<vmem>>, vector<8x1xf32>
    %39 = vector.broadcast %38 : vector<8x1xf32> to vector<8x128xf32>
    %40 = arith.mulf %37, %39 : vector<8x128xf32>
    %c0_30 = arith.constant 0 : index
    %c0_31 = arith.constant 0 : index
    %41 = vector.load %arg10[%c0_30, %c0_31] : memref<8x1xf32, #tpu.memory_space<vmem>>, vector<8x1xf32>
    %42 = vector.broadcast %41 : vector<8x1xf32> to vector<8x128xf32>
    %43 = arith.addf %40, %42 : vector<8x128xf32>
    %cst_32 = arith.constant 0.000000e+00 : f32
    %44 = vector.broadcast %cst_32 : f32 to vector<8x128xf32>
    %45 = arith.maximumf %43, %44 : vector<8x128xf32>
    %46 = vector.broadcast %0 : vector<1x128xf32> to vector<8x128xf32>
    %47 = arith.mulf %45, %46 : vector<8x128xf32>
    %48 = vector.extract_strided_slice %47 {offsets = [0, 0], sizes = [8, 58], strides = [1, 1]} : vector<8x128xf32> to vector<8x58xf32>
    %c0_33 = arith.constant 0 : index
    %c0_34 = arith.constant 0 : index
    %49 = vector.load %arg24[%c0_33, %c0_34] : memref<144x128xf32, #tpu.memory_space<vmem>>, vector<8x58xf32>
    tpu.vector_store %arg24[%c0_33, %c0_34], %48 {strides = array<i32>} : memref<144x128xf32, #tpu.memory_space<vmem>>, vector<8x58xf32>,
    %50 = vector.extract_strided_slice %47 {offsets = [0, 1], sizes = [8, 58], strides = [1, 1]} : vector<8x128xf32> to vector<8x58xf32>
    %c8 = arith.constant 8 : index
    %c0_35 = arith.constant 0 : index
    %51 = vector.load %arg24[%c8, %c0_35] : memref<144x128xf32, #tpu.memory_space<vmem>>, vector<8x58xf32>
    tpu.vector_store %arg24[%c8, %c0_35], %50 {strides = array<i32>} : memref<144x128xf32, #tpu.memory_space<vmem>>, vector<8x58xf32>,
    %52 = vector.extract_strided_slice %47 {offsets = [0, 2], sizes = [8, 58], strides = [1, 1]} : vector<8x128xf32> to vector<8x58xf32>
    %c16_36 = arith.constant 16 : index
    %c0_37 = arith.constant 0 : index
    %53 = vector.load %arg24[%c16_36, %c0_37] : memref<144x128xf32, #tpu.memory_space<vmem>>, vector<8x58xf32>
    tpu.vector_store %arg24[%c16_36, %c0_37], %52 {strides = array<i32>} : memref<144x128xf32, #tpu.memory_space<vmem>>, vector<8x58xf32>,
    %54 = vector.extract_strided_slice %47 {offsets = [0, 6], sizes = [8, 58], strides = [1, 1]} : vector<8x128xf32> to vector<8x58xf32>
    %c24 = arith.constant 24 : index
    %c0_38 = arith.constant 0 : index
    %55 = vector.load %arg24[%c24, %c0_38] : memref<144x128xf32, #tpu.memory_space<vmem>>, vector<8x58xf32>
    tpu.vector_store %arg24[%c24, %c0_38], %54 {strides = array<i32>} : memref<144x128xf32, #tpu.memory_space<vmem>>, vector<8x58xf32>,
    %56 = vector.extract_strided_slice %47 {offsets = [0, 7], sizes = [8, 58], strides = [1, 1]} : vector<8x128xf32> to vector<8x58xf32>
    %c32_39 = arith.constant 32 : index
    %c0_40 = arith.constant 0 : index
    %57 = vector.load %arg24[%c32_39, %c0_40] : memref<144x128xf32, #tpu.memory_space<vmem>>, vector<8x58xf32>
    tpu.vector_store %arg24[%c32_39, %c0_40], %56 {strides = array<i32>} : memref<144x128xf32, #tpu.memory_space<vmem>>, vector<8x58xf32>,
    %58 = vector.extract_strided_slice %47 {offsets = [0, 8], sizes = [8, 58], strides = [1, 1]} : vector<8x128xf32> to vector<8x58xf32>
    %c40 = arith.constant 40 : index
    %c0_41 = arith.constant 0 : index
    %59 = vector.load %arg24[%c40, %c0_41] : memref<144x128xf32, #tpu.memory_space<vmem>>, vector<8x58xf32>
    tpu.vector_store %arg24[%c40, %c0_41], %58 {strides = array<i32>} : memref<144x128xf32, #tpu.memory_space<vmem>>, vector<8x58xf32>,
    %60 = vector.extract_strided_slice %47 {offsets = [0, 12], sizes = [8, 58], strides = [1, 1]} : vector<8x128xf32> to vector<8x58xf32>
    %c48_42 = arith.constant 48 : index
    %c0_43 = arith.constant 0 : index
    %61 = vector.load %arg24[%c48_42, %c0_43] : memref<144x128xf32, #tpu.memory_space<vmem>>, vector<8x58xf32>
    tpu.vector_store %arg24[%c48_42, %c0_43], %60 {strides = array<i32>} : memref<144x128xf32, #tpu.memory_space<vmem>>, vector<8x58xf32>,
    %62 = vector.extract_strided_slice %47 {offsets = [0, 13], sizes = [8, 58], strides = [1, 1]} : vector<8x128xf32> to vector<8x58xf32>
    %c56 = arith.constant 56 : index
    %c0_44 = arith.constant 0 : index
    %63 = vector.load %arg24[%c56, %c0_44] : memref<144x128xf32, #tpu.memory_space<vmem>>, vector<8x58xf32>
    tpu.vector_store %arg24[%c56, %c0_44], %62 {strides = array<i32>} : memref<144x128xf32, #tpu.memory_space<vmem>>, vector<8x58xf32>,
    %64 = vector.extract_strided_slice %47 {offsets = [0, 14], sizes = [8, 58], strides = [1, 1]} : vector<8x128xf32> to vector<8x58xf32>
    %c64_45 = arith.constant 64 : index
    %c0_46 = arith.constant 0 : index
    %65 = vector.load %arg24[%c64_45, %c0_46] : memref<144x128xf32, #tpu.memory_space<vmem>>, vector<8x58xf32>
    tpu.vector_store %arg24[%c64_45, %c0_46], %64 {strides = array<i32>} : memref<144x128xf32, #tpu.memory_space<vmem>>, vector<8x58xf32>,
    %c0_47 = arith.constant 0 : index
    %c0_48 = arith.constant 0 : index
    %66 = vector.load %arg8[%c0_47, %c0_48] : memref<4x72xbf16, #tpu.memory_space<vmem>>, vector<4x72xbf16>
    %c0_49 = arith.constant 0 : index
    %c0_50 = arith.constant 0 : index
    %67 = vector.load %arg24[%c0_49, %c0_50] : memref<144x128xf32, #tpu.memory_space<vmem>>, vector<72x58xf32>
    %68 = arith.truncf %67 : vector<72x58xf32> to vector<72x58xbf16>
    %cst_51 = arith.constant dense<0.000000e+00> : vector<4x58xf32>
    %69 = tpu.matmul %66, %68, %cst_51 {dimension_numbers = #tpu.dot_dimension_numbers<[1], [0], [0], [1], [0, 0, 1, 1], [], []>} : vector<4x72xbf16>, vector<72x58xbf16>, vector<4x58xf32> -> vector<4x58xf32>
    %c8_52 = arith.constant 8 : index
    %c7_53 = arith.constant 7 : index
    %70 = vector.load %arg25[%c8_52, %c7_53] : memref<16x128xf32, #tpu.memory_space<vmem>>, vector<4x58xf32>
    tpu.vector_store %arg25[%c8_52, %c7_53], %69 {strides = array<i32>} : memref<16x128xf32, #tpu.memory_space<vmem>>, vector<4x58xf32>,
    %c8_54 = arith.constant 8 : index
    %c0_55 = arith.constant 0 : index
    %71 = vector.load %arg25[%c8_54, %c0_55] : memref<16x128xf32, #tpu.memory_space<vmem>>, vector<4x128xf32>
    %c0_56 = arith.constant 0 : index
    %c0_57 = arith.constant 0 : index
    %72 = vector.load %arg12[%c0_56, %c0_57] : memref<4x1xf32, #tpu.memory_space<vmem>>, vector<4x1xf32>
    %73 = vector.broadcast %72 : vector<4x1xf32> to vector<4x128xf32>
    %74 = arith.mulf %71, %73 : vector<4x128xf32>
    %c0_58 = arith.constant 0 : index
    %c0_59 = arith.constant 0 : index
    %75 = vector.load %arg13[%c0_58, %c0_59] : memref<4x1xf32, #tpu.memory_space<vmem>>, vector<4x1xf32>
    %76 = vector.broadcast %75 : vector<4x1xf32> to vector<4x128xf32>
    %77 = arith.addf %74, %76 : vector<4x128xf32>
    %cst_60 = arith.constant 0.000000e+00 : f32
    %78 = vector.broadcast %cst_60 : f32 to vector<4x128xf32>
    %79 = arith.maximumf %77, %78 : vector<4x128xf32>
    %80 = vector.broadcast %0 : vector<1x128xf32> to vector<4x128xf32>
    %81 = arith.mulf %79, %80 : vector<4x128xf32>
    %82 = vector.extract_strided_slice %81 {offsets = [0, 0], sizes = [4, 58], strides = [1, 1]} : vector<4x128xf32> to vector<4x58xf32>
    %c0_61 = arith.constant 0 : index
    %c0_62 = arith.constant 0 : index
    %83 = vector.load %arg24[%c0_61, %c0_62] : memref<144x128xf32, #tpu.memory_space<vmem>>, vector<4x58xf32>
    tpu.vector_store %arg24[%c0_61, %c0_62], %82 {strides = array<i32>} : memref<144x128xf32, #tpu.memory_space<vmem>>, vector<4x58xf32>,
    %84 = vector.extract_strided_slice %81 {offsets = [0, 1], sizes = [4, 58], strides = [1, 1]} : vector<4x128xf32> to vector<4x58xf32>
    %c4 = arith.constant 4 : index
    %c0_63 = arith.constant 0 : index
    %85 = vector.load %arg24[%c4, %c0_63] : memref<144x128xf32, #tpu.memory_space<vmem>>, vector<4x58xf32>
    tpu.vector_store %arg24[%c4, %c0_63], %84 {strides = array<i32>} : memref<144x128xf32, #tpu.memory_space<vmem>>, vector<4x58xf32>,
    %86 = vector.extract_strided_slice %81 {offsets = [0, 2], sizes = [4, 58], strides = [1, 1]} : vector<4x128xf32> to vector<4x58xf32>
    %c8_64 = arith.constant 8 : index
    %c0_65 = arith.constant 0 : index
    %87 = vector.load %arg24[%c8_64, %c0_65] : memref<144x128xf32, #tpu.memory_space<vmem>>, vector<4x58xf32>
    tpu.vector_store %arg24[%c8_64, %c0_65], %86 {strides = array<i32>} : memref<144x128xf32, #tpu.memory_space<vmem>>, vector<4x58xf32>,
    %88 = vector.extract_strided_slice %81 {offsets = [0, 6], sizes = [4, 58], strides = [1, 1]} : vector<4x128xf32> to vector<4x58xf32>
    %c12 = arith.constant 12 : index
    %c0_66 = arith.constant 0 : index
    %89 = vector.load %arg24[%c12, %c0_66] : memref<144x128xf32, #tpu.memory_space<vmem>>, vector<4x58xf32>
    tpu.vector_store %arg24[%c12, %c0_66], %88 {strides = array<i32>} : memref<144x128xf32, #tpu.memory_space<vmem>>, vector<4x58xf32>,
    %90 = vector.extract_strided_slice %81 {offsets = [0, 7], sizes = [4, 58], strides = [1, 1]} : vector<4x128xf32> to vector<4x58xf32>
    %c16_67 = arith.constant 16 : index
    %c0_68 = arith.constant 0 : index
    %91 = vector.load %arg24[%c16_67, %c0_68] : memref<144x128xf32, #tpu.memory_space<vmem>>, vector<4x58xf32>
    tpu.vector_store %arg24[%c16_67, %c0_68], %90 {strides = array<i32>} : memref<144x128xf32, #tpu.memory_space<vmem>>, vector<4x58xf32>,
    %92 = vector.extract_strided_slice %81 {offsets = [0, 8], sizes = [4, 58], strides = [1, 1]} : vector<4x128xf32> to vector<4x58xf32>
    %c20 = arith.constant 20 : index
    %c0_69 = arith.constant 0 : index
    %93 = vector.load %arg24[%c20, %c0_69] : memref<144x128xf32, #tpu.memory_space<vmem>>, vector<4x58xf32>
    tpu.vector_store %arg24[%c20, %c0_69], %92 {strides = array<i32>} : memref<144x128xf32, #tpu.memory_space<vmem>>, vector<4x58xf32>,
    %94 = vector.extract_strided_slice %81 {offsets = [0, 12], sizes = [4, 58], strides = [1, 1]} : vector<4x128xf32> to vector<4x58xf32>
    %c24_70 = arith.constant 24 : index
    %c0_71 = arith.constant 0 : index
    %95 = vector.load %arg24[%c24_70, %c0_71] : memref<144x128xf32, #tpu.memory_space<vmem>>, vector<4x58xf32>
    tpu.vector_store %arg24[%c24_70, %c0_71], %94 {strides = array<i32>} : memref<144x128xf32, #tpu.memory_space<vmem>>, vector<4x58xf32>,
    %96 = vector.extract_strided_slice %81 {offsets = [0, 13], sizes = [4, 58], strides = [1, 1]} : vector<4x128xf32> to vector<4x58xf32>
    %c28 = arith.constant 28 : index
    %c0_72 = arith.constant 0 : index
    %97 = vector.load %arg24[%c28, %c0_72] : memref<144x128xf32, #tpu.memory_space<vmem>>, vector<4x58xf32>
    tpu.vector_store %arg24[%c28, %c0_72], %96 {strides = array<i32>} : memref<144x128xf32, #tpu.memory_space<vmem>>, vector<4x58xf32>,
    %98 = vector.extract_strided_slice %81 {offsets = [0, 14], sizes = [4, 58], strides = [1, 1]} : vector<4x128xf32> to vector<4x58xf32>
    %c32_73 = arith.constant 32 : index
    %c0_74 = arith.constant 0 : index
    %99 = vector.load %arg24[%c32_73, %c0_74] : memref<144x128xf32, #tpu.memory_space<vmem>>, vector<4x58xf32>
    tpu.vector_store %arg24[%c32_73, %c0_74], %98 {strides = array<i32>} : memref<144x128xf32, #tpu.memory_space<vmem>>, vector<4x58xf32>,
    %c0_75 = arith.constant 0 : index
    %c0_76 = arith.constant 0 : index
    %100 = vector.load %arg11[%c0_75, %c0_76] : memref<4x36xbf16, #tpu.memory_space<vmem>>, vector<4x36xbf16>
    %c0_77 = arith.constant 0 : index
    %c0_78 = arith.constant 0 : index
    %101 = vector.load %arg24[%c0_77, %c0_78] : memref<144x128xf32, #tpu.memory_space<vmem>>, vector<36x58xf32>
    %102 = arith.truncf %101 : vector<36x58xf32> to vector<36x58xbf16>
    %cst_79 = arith.constant dense<0.000000e+00> : vector<4x58xf32>
    %103 = tpu.matmul %100, %102, %cst_79 {dimension_numbers = #tpu.dot_dimension_numbers<[1], [0], [0], [1], [0, 0, 1, 1], [], []>} : vector<4x36xbf16>, vector<36x58xbf16>, vector<4x58xf32> -> vector<4x58xf32>
    %c12_80 = arith.constant 12 : index
    %c7_81 = arith.constant 7 : index
    %104 = vector.load %arg25[%c12_80, %c7_81] : memref<16x128xf32, #tpu.memory_space<vmem>>, vector<4x58xf32>
    tpu.vector_store %arg25[%c12_80, %c7_81], %103 {strides = array<i32>} : memref<16x128xf32, #tpu.memory_space<vmem>>, vector<4x58xf32>,
    %c0_82 = arith.constant 0 : index
    %c0_83 = arith.constant 0 : index
    %105 = vector.load %arg25[%c0_82, %c0_83] : memref<16x128xf32, #tpu.memory_space<vmem>>, vector<16x128xf32>
    %106 = arith.addf %105, %1 : vector<16x128xf32>
    %cst_84 = arith.constant 0.000000e+00 : f32
    %107 = vector.broadcast %cst_84 : f32 to vector<16x128xf32>
    %c0_85 = arith.constant 0 : index
    %c0_86 = arith.constant 0 : index
    %108 = vector.load %arg26[%c0_85, %c0_86] : memref<16x128xf32, #tpu.memory_space<vmem>>, vector<16x128xf32>
    tpu.vector_store %arg26[%c0_85, %c0_86], %107 {strides = array<i32>} : memref<16x128xf32, #tpu.memory_space<vmem>>, vector<16x128xf32>,
    %c0_87 = arith.constant 0 : index
    %c0_88 = arith.constant 0 : index
    %109 = vector.load %arg15[%c0_87, %c0_88] : memref<16x1xf32, #tpu.memory_space<vmem>>, vector<16x1xf32>
    %110 = vector.broadcast %109 : vector<16x1xf32> to vector<16x128xf32>
    %111 = arith.mulf %106, %110 : vector<16x128xf32>
    %c0_89 = arith.constant 0 : index
    %c0_90 = arith.constant 0 : index
    %112 = vector.load %arg16[%c0_89, %c0_90] : memref<16x1xf32, #tpu.memory_space<vmem>>, vector<16x1xf32>
    %113 = vector.broadcast %112 : vector<16x1xf32> to vector<16x128xf32>
    %114 = arith.addf %111, %113 : vector<16x128xf32>
    %cst_91 = arith.constant 0.000000e+00 : f32
    %115 = vector.broadcast %cst_91 : f32 to vector<16x128xf32>
    %116 = arith.maximumf %114, %115 : vector<16x128xf32>
    %117 = vector.broadcast %0 : vector<1x128xf32> to vector<16x128xf32>
    %118 = arith.mulf %116, %117 : vector<16x128xf32>
    %119 = vector.extract_strided_slice %118 {offsets = [0, 0], sizes = [16, 58], strides = [1, 1]} : vector<16x128xf32> to vector<16x58xf32>
    %c0_92 = arith.constant 0 : index
    %c0_93 = arith.constant 0 : index
    %120 = vector.load %arg24[%c0_92, %c0_93] : memref<144x128xf32, #tpu.memory_space<vmem>>, vector<16x58xf32>
    tpu.vector_store %arg24[%c0_92, %c0_93], %119 {strides = array<i32>} : memref<144x128xf32, #tpu.memory_space<vmem>>, vector<16x58xf32>,
    %121 = vector.extract_strided_slice %118 {offsets = [0, 1], sizes = [16, 58], strides = [1, 1]} : vector<16x128xf32> to vector<16x58xf32>
    %c16_94 = arith.constant 16 : index
    %c0_95 = arith.constant 0 : index
    %122 = vector.load %arg24[%c16_94, %c0_95] : memref<144x128xf32, #tpu.memory_space<vmem>>, vector<16x58xf32>
    tpu.vector_store %arg24[%c16_94, %c0_95], %121 {strides = array<i32>} : memref<144x128xf32, #tpu.memory_space<vmem>>, vector<16x58xf32>,
    %123 = vector.extract_strided_slice %118 {offsets = [0, 2], sizes = [16, 58], strides = [1, 1]} : vector<16x128xf32> to vector<16x58xf32>
    %c32_96 = arith.constant 32 : index
    %c0_97 = arith.constant 0 : index
    %124 = vector.load %arg24[%c32_96, %c0_97] : memref<144x128xf32, #tpu.memory_space<vmem>>, vector<16x58xf32>
    tpu.vector_store %arg24[%c32_96, %c0_97], %123 {strides = array<i32>} : memref<144x128xf32, #tpu.memory_space<vmem>>, vector<16x58xf32>,
    %125 = vector.extract_strided_slice %118 {offsets = [0, 6], sizes = [16, 58], strides = [1, 1]} : vector<16x128xf32> to vector<16x58xf32>
    %c48_98 = arith.constant 48 : index
    %c0_99 = arith.constant 0 : index
    %126 = vector.load %arg24[%c48_98, %c0_99] : memref<144x128xf32, #tpu.memory_space<vmem>>, vector<16x58xf32>
    tpu.vector_store %arg24[%c48_98, %c0_99], %125 {strides = array<i32>} : memref<144x128xf32, #tpu.memory_space<vmem>>, vector<16x58xf32>,
    %127 = vector.extract_strided_slice %118 {offsets = [0, 7], sizes = [16, 58], strides = [1, 1]} : vector<16x128xf32> to vector<16x58xf32>
    %c64_100 = arith.constant 64 : index
    %c0_101 = arith.constant 0 : index
    %128 = vector.load %arg24[%c64_100, %c0_101] : memref<144x128xf32, #tpu.memory_space<vmem>>, vector<16x58xf32>
    tpu.vector_store %arg24[%c64_100, %c0_101], %127 {strides = array<i32>} : memref<144x128xf32, #tpu.memory_space<vmem>>, vector<16x58xf32>,
    %129 = vector.extract_strided_slice %118 {offsets = [0, 8], sizes = [16, 58], strides = [1, 1]} : vector<16x128xf32> to vector<16x58xf32>
    %c80_102 = arith.constant 80 : index
    %c0_103 = arith.constant 0 : index
    %130 = vector.load %arg24[%c80_102, %c0_103] : memref<144x128xf32, #tpu.memory_space<vmem>>, vector<16x58xf32>
    tpu.vector_store %arg24[%c80_102, %c0_103], %129 {strides = array<i32>} : memref<144x128xf32, #tpu.memory_space<vmem>>, vector<16x58xf32>,
    %131 = vector.extract_strided_slice %118 {offsets = [0, 12], sizes = [16, 58], strides = [1, 1]} : vector<16x128xf32> to vector<16x58xf32>
    %c96_104 = arith.constant 96 : index
    %c0_105 = arith.constant 0 : index
    %132 = vector.load %arg24[%c96_104, %c0_105] : memref<144x128xf32, #tpu.memory_space<vmem>>, vector<16x58xf32>
    tpu.vector_store %arg24[%c96_104, %c0_105], %131 {strides = array<i32>} : memref<144x128xf32, #tpu.memory_space<vmem>>, vector<16x58xf32>,
    %133 = vector.extract_strided_slice %118 {offsets = [0, 13], sizes = [16, 58], strides = [1, 1]} : vector<16x128xf32> to vector<16x58xf32>
    %c112_106 = arith.constant 112 : index
    %c0_107 = arith.constant 0 : index
    %134 = vector.load %arg24[%c112_106, %c0_107] : memref<144x128xf32, #tpu.memory_space<vmem>>, vector<16x58xf32>
    tpu.vector_store %arg24[%c112_106, %c0_107], %133 {strides = array<i32>} : memref<144x128xf32, #tpu.memory_space<vmem>>, vector<16x58xf32>,
    %135 = vector.extract_strided_slice %118 {offsets = [0, 14], sizes = [16, 58], strides = [1, 1]} : vector<16x128xf32> to vector<16x58xf32>
    %c128_108 = arith.constant 128 : index
    %c0_109 = arith.constant 0 : index
    %136 = vector.load %arg24[%c128_108, %c0_109] : memref<144x128xf32, #tpu.memory_space<vmem>>, vector<16x58xf32>
    tpu.vector_store %arg24[%c128_108, %c0_109], %135 {strides = array<i32>} : memref<144x128xf32, #tpu.memory_space<vmem>>, vector<16x58xf32>,
    %c0_110 = arith.constant 0 : index
    %c0_111 = arith.constant 0 : index
    %137 = vector.load %arg14[%c0_110, %c0_111] : memref<8x144xbf16, #tpu.memory_space<vmem>>, vector<8x144xbf16>
    %c0_112 = arith.constant 0 : index
    %c0_113 = arith.constant 0 : index
    %138 = vector.load %arg24[%c0_112, %c0_113] : memref<144x128xf32, #tpu.memory_space<vmem>>, vector<144x58xf32>
    %139 = arith.truncf %138 : vector<144x58xf32> to vector<144x58xbf16>
    %cst_114 = arith.constant dense<0.000000e+00> : vector<8x58xf32>
    %140 = tpu.matmul %137, %139, %cst_114 {dimension_numbers = #tpu.dot_dimension_numbers<[1], [0], [0], [1], [0, 0, 1, 1], [], []>} : vector<8x144xbf16>, vector<144x58xbf16>, vector<8x58xf32> -> vector<8x58xf32>
    %c0_115 = arith.constant 0 : index
    %c7_116 = arith.constant 7 : index
    %141 = vector.load %arg26[%c0_115, %c7_116] : memref<16x128xf32, #tpu.memory_space<vmem>>, vector<8x58xf32>
    tpu.vector_store %arg26[%c0_115, %c7_116], %140 {strides = array<i32>} : memref<16x128xf32, #tpu.memory_space<vmem>>, vector<8x58xf32>,
    %c0_117 = arith.constant 0 : index
    %c0_118 = arith.constant 0 : index
    %142 = vector.load %arg26[%c0_117, %c0_118] : memref<16x128xf32, #tpu.memory_space<vmem>>, vector<8x128xf32>
    %c0_119 = arith.constant 0 : index
    %c0_120 = arith.constant 0 : index
    %143 = vector.load %arg18[%c0_119, %c0_120] : memref<8x1xf32, #tpu.memory_space<vmem>>, vector<8x1xf32>
    %144 = vector.broadcast %143 : vector<8x1xf32> to vector<8x128xf32>
    %145 = arith.mulf %142, %144 : vector<8x128xf32>
    %c0_121 = arith.constant 0 : index
    %c0_122 = arith.constant 0 : index
    %146 = vector.load %arg19[%c0_121, %c0_122] : memref<8x1xf32, #tpu.memory_space<vmem>>, vector<8x1xf32>
    %147 = vector.broadcast %146 : vector<8x1xf32> to vector<8x128xf32>
    %148 = arith.addf %145, %147 : vector<8x128xf32>
    %cst_123 = arith.constant 0.000000e+00 : f32
    %149 = vector.broadcast %cst_123 : f32 to vector<8x128xf32>
    %150 = arith.maximumf %148, %149 : vector<8x128xf32>
    %151 = vector.broadcast %0 : vector<1x128xf32> to vector<8x128xf32>
    %152 = arith.mulf %150, %151 : vector<8x128xf32>
    %153 = vector.extract_strided_slice %152 {offsets = [0, 0], sizes = [8, 58], strides = [1, 1]} : vector<8x128xf32> to vector<8x58xf32>
    %c0_124 = arith.constant 0 : index
    %c0_125 = arith.constant 0 : index
    %154 = vector.load %arg24[%c0_124, %c0_125] : memref<144x128xf32, #tpu.memory_space<vmem>>, vector<8x58xf32>
    tpu.vector_store %arg24[%c0_124, %c0_125], %153 {strides = array<i32>} : memref<144x128xf32, #tpu.memory_space<vmem>>, vector<8x58xf32>,
    %155 = vector.extract_strided_slice %152 {offsets = [0, 1], sizes = [8, 58], strides = [1, 1]} : vector<8x128xf32> to vector<8x58xf32>
    %c8_126 = arith.constant 8 : index
    %c0_127 = arith.constant 0 : index
    %156 = vector.load %arg24[%c8_126, %c0_127] : memref<144x128xf32, #tpu.memory_space<vmem>>, vector<8x58xf32>
    tpu.vector_store %arg24[%c8_126, %c0_127], %155 {strides = array<i32>} : memref<144x128xf32, #tpu.memory_space<vmem>>, vector<8x58xf32>,
    %157 = vector.extract_strided_slice %152 {offsets = [0, 2], sizes = [8, 58], strides = [1, 1]} : vector<8x128xf32> to vector<8x58xf32>
    %c16_128 = arith.constant 16 : index
    %c0_129 = arith.constant 0 : index
    %158 = vector.load %arg24[%c16_128, %c0_129] : memref<144x128xf32, #tpu.memory_space<vmem>>, vector<8x58xf32>
    tpu.vector_store %arg24[%c16_128, %c0_129], %157 {strides = array<i32>} : memref<144x128xf32, #tpu.memory_space<vmem>>, vector<8x58xf32>,
    %159 = vector.extract_strided_slice %152 {offsets = [0, 6], sizes = [8, 58], strides = [1, 1]} : vector<8x128xf32> to vector<8x58xf32>
    %c24_130 = arith.constant 24 : index
    %c0_131 = arith.constant 0 : index
    %160 = vector.load %arg24[%c24_130, %c0_131] : memref<144x128xf32, #tpu.memory_space<vmem>>, vector<8x58xf32>
    tpu.vector_store %arg24[%c24_130, %c0_131], %159 {strides = array<i32>} : memref<144x128xf32, #tpu.memory_space<vmem>>, vector<8x58xf32>,
    %161 = vector.extract_strided_slice %152 {offsets = [0, 7], sizes = [8, 58], strides = [1, 1]} : vector<8x128xf32> to vector<8x58xf32>
    %c32_132 = arith.constant 32 : index
    %c0_133 = arith.constant 0 : index
    %162 = vector.load %arg24[%c32_132, %c0_133] : memref<144x128xf32, #tpu.memory_space<vmem>>, vector<8x58xf32>
    tpu.vector_store %arg24[%c32_132, %c0_133], %161 {strides = array<i32>} : memref<144x128xf32, #tpu.memory_space<vmem>>, vector<8x58xf32>,
    %163 = vector.extract_strided_slice %152 {offsets = [0, 8], sizes = [8, 58], strides = [1, 1]} : vector<8x128xf32> to vector<8x58xf32>
    %c40_134 = arith.constant 40 : index
    %c0_135 = arith.constant 0 : index
    %164 = vector.load %arg24[%c40_134, %c0_135] : memref<144x128xf32, #tpu.memory_space<vmem>>, vector<8x58xf32>
    tpu.vector_store %arg24[%c40_134, %c0_135], %163 {strides = array<i32>} : memref<144x128xf32, #tpu.memory_space<vmem>>, vector<8x58xf32>,
    %165 = vector.extract_strided_slice %152 {offsets = [0, 12], sizes = [8, 58], strides = [1, 1]} : vector<8x128xf32> to vector<8x58xf32>
    %c48_136 = arith.constant 48 : index
    %c0_137 = arith.constant 0 : index
    %166 = vector.load %arg24[%c48_136, %c0_137] : memref<144x128xf32, #tpu.memory_space<vmem>>, vector<8x58xf32>
    tpu.vector_store %arg24[%c48_136, %c0_137], %165 {strides = array<i32>} : memref<144x128xf32, #tpu.memory_space<vmem>>, vector<8x58xf32>,
    %167 = vector.extract_strided_slice %152 {offsets = [0, 13], sizes = [8, 58], strides = [1, 1]} : vector<8x128xf32> to vector<8x58xf32>
    %c56_138 = arith.constant 56 : index
    %c0_139 = arith.constant 0 : index
    %168 = vector.load %arg24[%c56_138, %c0_139] : memref<144x128xf32, #tpu.memory_space<vmem>>, vector<8x58xf32>
    tpu.vector_store %arg24[%c56_138, %c0_139], %167 {strides = array<i32>} : memref<144x128xf32, #tpu.memory_space<vmem>>, vector<8x58xf32>,
    %169 = vector.extract_strided_slice %152 {offsets = [0, 14], sizes = [8, 58], strides = [1, 1]} : vector<8x128xf32> to vector<8x58xf32>
    %c64_140 = arith.constant 64 : index
    %c0_141 = arith.constant 0 : index
    %170 = vector.load %arg24[%c64_140, %c0_141] : memref<144x128xf32, #tpu.memory_space<vmem>>, vector<8x58xf32>
    tpu.vector_store %arg24[%c64_140, %c0_141], %169 {strides = array<i32>} : memref<144x128xf32, #tpu.memory_space<vmem>>, vector<8x58xf32>,
    %c0_142 = arith.constant 0 : index
    %c0_143 = arith.constant 0 : index
    %171 = vector.load %arg17[%c0_142, %c0_143] : memref<4x72xbf16, #tpu.memory_space<vmem>>, vector<4x72xbf16>
    %c0_144 = arith.constant 0 : index
    %c0_145 = arith.constant 0 : index
    %172 = vector.load %arg24[%c0_144, %c0_145] : memref<144x128xf32, #tpu.memory_space<vmem>>, vector<72x58xf32>
    %173 = arith.truncf %172 : vector<72x58xf32> to vector<72x58xbf16>
    %cst_146 = arith.constant dense<0.000000e+00> : vector<4x58xf32>
    %174 = tpu.matmul %171, %173, %cst_146 {dimension_numbers = #tpu.dot_dimension_numbers<[1], [0], [0], [1], [0, 0, 1, 1], [], []>} : vector<4x72xbf16>, vector<72x58xbf16>, vector<4x58xf32> -> vector<4x58xf32>
    %c8_147 = arith.constant 8 : index
    %c7_148 = arith.constant 7 : index
    %175 = vector.load %arg26[%c8_147, %c7_148] : memref<16x128xf32, #tpu.memory_space<vmem>>, vector<4x58xf32>
    tpu.vector_store %arg26[%c8_147, %c7_148], %174 {strides = array<i32>} : memref<16x128xf32, #tpu.memory_space<vmem>>, vector<4x58xf32>,
    %c8_149 = arith.constant 8 : index
    %c0_150 = arith.constant 0 : index
    %176 = vector.load %arg26[%c8_149, %c0_150] : memref<16x128xf32, #tpu.memory_space<vmem>>, vector<4x128xf32>
    %c0_151 = arith.constant 0 : index
    %c0_152 = arith.constant 0 : index
    %177 = vector.load %arg21[%c0_151, %c0_152] : memref<4x1xf32, #tpu.memory_space<vmem>>, vector<4x1xf32>
    %178 = vector.broadcast %177 : vector<4x1xf32> to vector<4x128xf32>
    %179 = arith.mulf %176, %178 : vector<4x128xf32>
    %c0_153 = arith.constant 0 : index
    %c0_154 = arith.constant 0 : index
    %180 = vector.load %arg22[%c0_153, %c0_154] : memref<4x1xf32, #tpu.memory_space<vmem>>, vector<4x1xf32>
    %181 = vector.broadcast %180 : vector<4x1xf32> to vector<4x128xf32>
    %182 = arith.addf %179, %181 : vector<4x128xf32>
    %cst_155 = arith.constant 0.000000e+00 : f32
    %183 = vector.broadcast %cst_155 : f32 to vector<4x128xf32>
    %184 = arith.maximumf %182, %183 : vector<4x128xf32>
    %185 = vector.broadcast %0 : vector<1x128xf32> to vector<4x128xf32>
    %186 = arith.mulf %184, %185 : vector<4x128xf32>
    %187 = vector.extract_strided_slice %186 {offsets = [0, 0], sizes = [4, 58], strides = [1, 1]} : vector<4x128xf32> to vector<4x58xf32>
    %c0_156 = arith.constant 0 : index
    %c0_157 = arith.constant 0 : index
    %188 = vector.load %arg24[%c0_156, %c0_157] : memref<144x128xf32, #tpu.memory_space<vmem>>, vector<4x58xf32>
    tpu.vector_store %arg24[%c0_156, %c0_157], %187 {strides = array<i32>} : memref<144x128xf32, #tpu.memory_space<vmem>>, vector<4x58xf32>,
    %189 = vector.extract_strided_slice %186 {offsets = [0, 1], sizes = [4, 58], strides = [1, 1]} : vector<4x128xf32> to vector<4x58xf32>
    %c4_158 = arith.constant 4 : index
    %c0_159 = arith.constant 0 : index
    %190 = vector.load %arg24[%c4_158, %c0_159] : memref<144x128xf32, #tpu.memory_space<vmem>>, vector<4x58xf32>
    tpu.vector_store %arg24[%c4_158, %c0_159], %189 {strides = array<i32>} : memref<144x128xf32, #tpu.memory_space<vmem>>, vector<4x58xf32>,
    %191 = vector.extract_strided_slice %186 {offsets = [0, 2], sizes = [4, 58], strides = [1, 1]} : vector<4x128xf32> to vector<4x58xf32>
    %c8_160 = arith.constant 8 : index
    %c0_161 = arith.constant 0 : index
    %192 = vector.load %arg24[%c8_160, %c0_161] : memref<144x128xf32, #tpu.memory_space<vmem>>, vector<4x58xf32>
    tpu.vector_store %arg24[%c8_160, %c0_161], %191 {strides = array<i32>} : memref<144x128xf32, #tpu.memory_space<vmem>>, vector<4x58xf32>,
    %193 = vector.extract_strided_slice %186 {offsets = [0, 6], sizes = [4, 58], strides = [1, 1]} : vector<4x128xf32> to vector<4x58xf32>
    %c12_162 = arith.constant 12 : index
    %c0_163 = arith.constant 0 : index
    %194 = vector.load %arg24[%c12_162, %c0_163] : memref<144x128xf32, #tpu.memory_space<vmem>>, vector<4x58xf32>
    tpu.vector_store %arg24[%c12_162, %c0_163], %193 {strides = array<i32>} : memref<144x128xf32, #tpu.memory_space<vmem>>, vector<4x58xf32>,
    %195 = vector.extract_strided_slice %186 {offsets = [0, 7], sizes = [4, 58], strides = [1, 1]} : vector<4x128xf32> to vector<4x58xf32>
    %c16_164 = arith.constant 16 : index
    %c0_165 = arith.constant 0 : index
    %196 = vector.load %arg24[%c16_164, %c0_165] : memref<144x128xf32, #tpu.memory_space<vmem>>, vector<4x58xf32>
    tpu.vector_store %arg24[%c16_164, %c0_165], %195 {strides = array<i32>} : memref<144x128xf32, #tpu.memory_space<vmem>>, vector<4x58xf32>,
    %197 = vector.extract_strided_slice %186 {offsets = [0, 8], sizes = [4, 58], strides = [1, 1]} : vector<4x128xf32> to vector<4x58xf32>
    %c20_166 = arith.constant 20 : index
    %c0_167 = arith.constant 0 : index
    %198 = vector.load %arg24[%c20_166, %c0_167] : memref<144x128xf32, #tpu.memory_space<vmem>>, vector<4x58xf32>
    tpu.vector_store %arg24[%c20_166, %c0_167], %197 {strides = array<i32>} : memref<144x128xf32, #tpu.memory_space<vmem>>, vector<4x58xf32>,
    %199 = vector.extract_strided_slice %186 {offsets = [0, 12], sizes = [4, 58], strides = [1, 1]} : vector<4x128xf32> to vector<4x58xf32>
    %c24_168 = arith.constant 24 : index
    %c0_169 = arith.constant 0 : index
    %200 = vector.load %arg24[%c24_168, %c0_169] : memref<144x128xf32, #tpu.memory_space<vmem>>, vector<4x58xf32>
    tpu.vector_store %arg24[%c24_168, %c0_169], %199 {strides = array<i32>} : memref<144x128xf32, #tpu.memory_space<vmem>>, vector<4x58xf32>,
    %201 = vector.extract_strided_slice %186 {offsets = [0, 13], sizes = [4, 58], strides = [1, 1]} : vector<4x128xf32> to vector<4x58xf32>
    %c28_170 = arith.constant 28 : index
    %c0_171 = arith.constant 0 : index
    %202 = vector.load %arg24[%c28_170, %c0_171] : memref<144x128xf32, #tpu.memory_space<vmem>>, vector<4x58xf32>
    tpu.vector_store %arg24[%c28_170, %c0_171], %201 {strides = array<i32>} : memref<144x128xf32, #tpu.memory_space<vmem>>, vector<4x58xf32>,
    %203 = vector.extract_strided_slice %186 {offsets = [0, 14], sizes = [4, 58], strides = [1, 1]} : vector<4x128xf32> to vector<4x58xf32>
    %c32_172 = arith.constant 32 : index
    %c0_173 = arith.constant 0 : index
    %204 = vector.load %arg24[%c32_172, %c0_173] : memref<144x128xf32, #tpu.memory_space<vmem>>, vector<4x58xf32>
    tpu.vector_store %arg24[%c32_172, %c0_173], %203 {strides = array<i32>} : memref<144x128xf32, #tpu.memory_space<vmem>>, vector<4x58xf32>,
    %c0_174 = arith.constant 0 : index
    %c0_175 = arith.constant 0 : index
    %205 = vector.load %arg20[%c0_174, %c0_175] : memref<4x36xbf16, #tpu.memory_space<vmem>>, vector<4x36xbf16>
    %c0_176 = arith.constant 0 : index
    %c0_177 = arith.constant 0 : index
    %206 = vector.load %arg24[%c0_176, %c0_177] : memref<144x128xf32, #tpu.memory_space<vmem>>, vector<36x58xf32>
    %207 = arith.truncf %206 : vector<36x58xf32> to vector<36x58xbf16>
    %cst_178 = arith.constant dense<0.000000e+00> : vector<4x58xf32>
    %208 = tpu.matmul %205, %207, %cst_178 {dimension_numbers = #tpu.dot_dimension_numbers<[1], [0], [0], [1], [0, 0, 1, 1], [], []>} : vector<4x36xbf16>, vector<36x58xbf16>, vector<4x58xf32> -> vector<4x58xf32>
    %c12_179 = arith.constant 12 : index
    %c7_180 = arith.constant 7 : index
    %209 = vector.load %arg26[%c12_179, %c7_180] : memref<16x128xf32, #tpu.memory_space<vmem>>, vector<4x58xf32>
    tpu.vector_store %arg26[%c12_179, %c7_180], %208 {strides = array<i32>} : memref<16x128xf32, #tpu.memory_space<vmem>>, vector<4x58xf32>,
    %c0_181 = arith.constant 0 : index
    %c0_182 = arith.constant 0 : index
    %210 = vector.load %arg26[%c0_181, %c0_182] : memref<16x128xf32, #tpu.memory_space<vmem>>, vector<16x128xf32>
    %211 = arith.addf %210, %106 : vector<16x128xf32>
    %c0_183 = arith.constant 0 : index
    %c0_184 = arith.constant 0 : index
    %212 = vector.load %arg2[%c0_183, %c0_184] : memref<16x256xf32, #tpu.memory_space<vmem>>, vector<16x256xf32>
    %213 = arith.truncf %211 : vector<16x128xf32> to vector<16x128xbf16>
    %c0_185 = arith.constant 0 : index
    %c0_186 = arith.constant 0 : index
    %214 = vector.load %arg4[%c0_185, %c0_186] : memref<128x256xbf16, #tpu.memory_space<vmem>>, vector<128x256xbf16>
    %cst_187 = arith.constant dense<0.000000e+00> : vector<16x256xf32>
    %215 = tpu.matmul %213, %214, %cst_187 {dimension_numbers = #tpu.dot_dimension_numbers<[1], [0], [0], [1], [0, 0, 1, 1], [], []>} : vector<16x128xbf16>, vector<128x256xbf16>, vector<16x256xf32> -> vector<16x256xf32>
    %216 = arith.addf %212, %215 : vector<16x256xf32>
    %c0_188 = arith.constant 0 : index
    %c0_189 = arith.constant 0 : index
    %217 = vector.load %arg23[%c0_188, %c0_189] : memref<16x256xf32, #tpu.memory_space<vmem>>, vector<16x256xf32>
    tpu.vector_store %arg23[%c0_188, %c0_189], %216 {strides = array<i32>} : memref<16x256xf32, #tpu.memory_space<vmem>>, vector<16x256xf32>,
    return
  }
  func.func @transform_0(%arg0: i32) -> (i32, i32) {
    %c0_i32 = arith.constant 0 : i32
    %c0_i32_0 = arith.constant 0 : i32
    %c0_i32_1 = arith.constant 0 : i32
    return %c0_i32, %c0_i32_0 : i32, i32
  }
  func.func @transform_1(%arg0: i32) -> (i32, i32) {
    %c0_i32 = arith.constant 0 : i32
    %c0_i32_0 = arith.constant 0 : i32
    %c0_i32_1 = arith.constant 0 : i32
    return %c0_i32, %c0_i32_0 : i32, i32
  }
  func.func @transform_2(%arg0: i32) -> (i32, i32) {
    %c0_i32 = arith.constant 0 : i32
    %c0_i32_0 = arith.constant 0 : i32
    %c0_i32_1 = arith.constant 0 : i32
    return %c0_i32, %c0_i32_0 : i32, i32
  }
  func.func @transform_3(%arg0: i32) -> (i32, i32) {
    %c0_i32 = arith.constant 0 : i32
    %c0_i32_0 = arith.constant 0 : i32
    %c0_i32_1 = arith.constant 0 : i32
    return %c0_i32, %c0_i32_0 : i32, i32
  }
  func.func @transform_4(%arg0: i32) -> (i32, i32) {
    %c0_i32 = arith.constant 0 : i32
    %c0_i32_0 = arith.constant 0 : i32
    %c0_i32_1 = arith.constant 0 : i32
    return %c0_i32, %c0_i32_0 : i32, i32
  }
  func.func @transform_5(%arg0: i32) -> (i32, i32) {
    %c0_i32 = arith.constant 0 : i32
    %c0_i32_0 = arith.constant 0 : i32
    %c0_i32_1 = arith.constant 0 : i32
    return %c0_i32, %c0_i32_0 : i32, i32
  }
  func.func @transform_6(%arg0: i32) -> (i32, i32) {
    %c0_i32 = arith.constant 0 : i32
    %c0_i32_0 = arith.constant 0 : i32
    %c0_i32_1 = arith.constant 0 : i32
    return %c0_i32, %c0_i32_0 : i32, i32
  }
  func.func @transform_7(%arg0: i32) -> (i32, i32) {
    %c0_i32 = arith.constant 0 : i32
    %c0_i32_0 = arith.constant 0 : i32
    %c0_i32_1 = arith.constant 0 : i32
    return %c0_i32, %c0_i32_0 : i32, i32
  }
  func.func @transform_8(%arg0: i32) -> (i32, i32) {
    %c0_i32 = arith.constant 0 : i32
    %c0_i32_0 = arith.constant 0 : i32
    %c0_i32_1 = arith.constant 0 : i32
    return %c0_i32, %c0_i32_0 : i32, i32
  }
  func.func @transform_9(%arg0: i32) -> (i32, i32) {
    %c0_i32 = arith.constant 0 : i32
    %c0_i32_0 = arith.constant 0 : i32
    %c0_i32_1 = arith.constant 0 : i32
    return %c0_i32, %c0_i32_0 : i32, i32
  }
  func.func @transform_10(%arg0: i32) -> (i32, i32) {
    %c0_i32 = arith.constant 0 : i32
    %c0_i32_0 = arith.constant 0 : i32
    %c0_i32_1 = arith.constant 0 : i32
    return %c0_i32, %c0_i32_0 : i32, i32
  }
  func.func @transform_11(%arg0: i32) -> (i32, i32) {
    %c0_i32 = arith.constant 0 : i32
    %c0_i32_0 = arith.constant 0 : i32
    %c0_i32_1 = arith.constant 0 : i32
    return %c0_i32, %c0_i32_0 : i32, i32
  }
  func.func @transform_12(%arg0: i32) -> (i32, i32) {
    %c0_i32 = arith.constant 0 : i32
    %c0_i32_0 = arith.constant 0 : i32
    %c0_i32_1 = arith.constant 0 : i32
    return %c0_i32, %c0_i32_0 : i32, i32
  }
  func.func @transform_13(%arg0: i32) -> (i32, i32) {
    %c0_i32 = arith.constant 0 : i32
    %c0_i32_0 = arith.constant 0 : i32
    %c0_i32_1 = arith.constant 0 : i32
    return %c0_i32, %c0_i32_0 : i32, i32
  }
  func.func @transform_14(%arg0: i32) -> (i32, i32) {
    %c0_i32 = arith.constant 0 : i32
    %c0_i32_0 = arith.constant 0 : i32
    %c0_i32_1 = arith.constant 0 : i32
    return %c0_i32, %c0_i32_0 : i32, i32
  }
  func.func @transform_15(%arg0: i32) -> (i32, i32) {
    %c0_i32 = arith.constant 0 : i32
    %c0_i32_0 = arith.constant 0 : i32
    %c0_i32_1 = arith.constant 0 : i32
    return %c0_i32, %c0_i32_0 : i32, i32
  }
  func.func @transform_16(%arg0: i32) -> (i32, i32) {
    %c0_i32 = arith.constant 0 : i32
    %c0_i32_0 = arith.constant 0 : i32
    %c0_i32_1 = arith.constant 0 : i32
    return %c0_i32, %c0_i32_0 : i32, i32
  }
  func.func @transform_17(%arg0: i32) -> (i32, i32) {
    %c0_i32 = arith.constant 0 : i32
    %c0_i32_0 = arith.constant 0 : i32
    %c0_i32_1 = arith.constant 0 : i32
    return %c0_i32, %c0_i32_0 : i32, i32
  }
  func.func @transform_18(%arg0: i32) -> (i32, i32) {
    %c0_i32 = arith.constant 0 : i32
    %c0_i32_0 = arith.constant 0 : i32
    %c0_i32_1 = arith.constant 0 : i32
    return %c0_i32, %c0_i32_0 : i32, i32
  }
  func.func @transform_19(%arg0: i32) -> (i32, i32) {
    %c0_i32 = arith.constant 0 : i32
    %c0_i32_0 = arith.constant 0 : i32
    %c0_i32_1 = arith.constant 0 : i32
    return %c0_i32, %c0_i32_0 : i32, i32
  }
  func.func @transform_20(%arg0: i32) -> (i32, i32) {
    %c0_i32 = arith.constant 0 : i32
    %c0_i32_0 = arith.constant 0 : i32
    %c0_i32_1 = arith.constant 0 : i32
    return %c0_i32, %c0_i32_0 : i32, i32
  }
  func.func @transform_21(%arg0: i32) -> (i32, i32) {
    %c0_i32 = arith.constant 0 : i32
    %c0_i32_0 = arith.constant 0 : i32
    %c0_i32_1 = arith.constant 0 : i32
    return %c0_i32, %c0_i32_0 : i32, i32
  }
  func.func @transform_22(%arg0: i32) -> (i32, i32) {
    %c0_i32 = arith.constant 0 : i32
    %c0_i32_0 = arith.constant 0 : i32
    %c0_i32_1 = arith.constant 0 : i32
    return %c0_i32, %c0_i32_0 : i32, i32
  }
}

module attributes {stable_mosaic.version = 11 : i64} {
  func.func @_tail_kernel(%arg0: i32, %arg1: memref<16x256xf32, #tpu.memory_space<vmem>>, %arg2: memref<16x768xf32, #tpu.memory_space<vmem>>, %arg3: memref<1x256xf32, #tpu.memory_space<vmem>>, %arg4: memref<256x768xbf16, #tpu.memory_space<vmem>>, %arg5: memref<8x144xbf16, #tpu.memory_space<vmem>>, %arg6: memref<16x1xf32, #tpu.memory_space<vmem>>, %arg7: memref<16x1xf32, #tpu.memory_space<vmem>>, %arg8: memref<4x72xbf16, #tpu.memory_space<vmem>>, %arg9: memref<8x1xf32, #tpu.memory_space<vmem>>, %arg10: memref<8x1xf32, #tpu.memory_space<vmem>>, %arg11: memref<4x36xbf16, #tpu.memory_space<vmem>>, %arg12: memref<4x1xf32, #tpu.memory_space<vmem>>, %arg13: memref<4x1xf32, #tpu.memory_space<vmem>>, %arg14: memref<16x768xf32, #tpu.memory_space<vmem>>, %arg15: memref<144x256xf32, #tpu.memory_space<vmem>>, %arg16: memref<16x256xf32, #tpu.memory_space<vmem>>) attributes {dimension_semantics = [#tpu.dimension_semantics<arbitrary>], iteration_bounds = array<i64: 1>, scalar_prefetch = 0 : i64, scratch_operands = 2 : i64, tpu.core_type = #tpu.core_type<tc>, window_params = [{pipeline_mode = #tpu.pipeline_mode<synchronous>, transform_indices = @transform_0, window_bounds = array<i64: 16, 256>}, {pipeline_mode = #tpu.pipeline_mode<synchronous>, transform_indices = @transform_1, window_bounds = array<i64: 16, 768>}, {pipeline_mode = #tpu.pipeline_mode<synchronous>, transform_indices = @transform_2, window_bounds = array<i64: 1, 256>}, {pipeline_mode = #tpu.pipeline_mode<synchronous>, transform_indices = @transform_3, window_bounds = array<i64: 256, 768>}, {pipeline_mode = #tpu.pipeline_mode<synchronous>, transform_indices = @transform_4, window_bounds = array<i64: 8, 144>}, {pipeline_mode = #tpu.pipeline_mode<synchronous>, transform_indices = @transform_5, window_bounds = array<i64: 16, 1>}, {pipeline_mode = #tpu.pipeline_mode<synchronous>, transform_indices = @transform_6, window_bounds = array<i64: 16, 1>}, {pipeline_mode = #tpu.pipeline_mode<synchronous>, transform_indices = @transform_7, window_bounds = array<i64: 4, 72>}, {pipeline_mode = #tpu.pipeline_mode<synchronous>, transform_indices = @transform_8, window_bounds = array<i64: 8, 1>}, {pipeline_mode = #tpu.pipeline_mode<synchronous>, transform_indices = @transform_9, window_bounds = array<i64: 8, 1>}, {pipeline_mode = #tpu.pipeline_mode<synchronous>, transform_indices = @transform_10, window_bounds = array<i64: 4, 36>}, {pipeline_mode = #tpu.pipeline_mode<synchronous>, transform_indices = @transform_11, window_bounds = array<i64: 4, 1>}, {pipeline_mode = #tpu.pipeline_mode<synchronous>, transform_indices = @transform_12, window_bounds = array<i64: 4, 1>}, {pipeline_mode = #tpu.pipeline_mode<synchronous>, transform_indices = @transform_13, window_bounds = array<i64: 16, 768>}]} {
    %c0 = arith.constant 0 : index
    %c0_0 = arith.constant 0 : index
    %0 = vector.load %arg3[%c0, %c0_0] : memref<1x256xf32, #tpu.memory_space<vmem>>, vector<1x256xf32>
    %c0_1 = arith.constant 0 : index
    %c0_2 = arith.constant 0 : index
    %1 = vector.load %arg1[%c0_1, %c0_2] : memref<16x256xf32, #tpu.memory_space<vmem>>, vector<16x256xf32>
    %cst = arith.constant 0.000000e+00 : f32
    %2 = vector.broadcast %cst : f32 to vector<16x256xf32>
    %c0_3 = arith.constant 0 : index
    %c0_4 = arith.constant 0 : index
    %3 = vector.load %arg16[%c0_3, %c0_4] : memref<16x256xf32, #tpu.memory_space<vmem>>, vector<16x256xf32>
    tpu.vector_store %arg16[%c0_3, %c0_4], %2 {strides = array<i32>} : memref<16x256xf32, #tpu.memory_space<vmem>>, vector<16x256xf32>,
    %c0_5 = arith.constant 0 : index
    %c0_6 = arith.constant 0 : index
    %4 = vector.load %arg6[%c0_5, %c0_6] : memref<16x1xf32, #tpu.memory_space<vmem>>, vector<16x1xf32>
    %5 = vector.broadcast %4 : vector<16x1xf32> to vector<16x256xf32>
    %6 = arith.mulf %1, %5 : vector<16x256xf32>
    %c0_7 = arith.constant 0 : index
    %c0_8 = arith.constant 0 : index
    %7 = vector.load %arg7[%c0_7, %c0_8] : memref<16x1xf32, #tpu.memory_space<vmem>>, vector<16x1xf32>
    %8 = vector.broadcast %7 : vector<16x1xf32> to vector<16x256xf32>
    %9 = arith.addf %6, %8 : vector<16x256xf32>
    %cst_9 = arith.constant 0.000000e+00 : f32
    %10 = vector.broadcast %cst_9 : f32 to vector<16x256xf32>
    %11 = arith.maximumf %9, %10 : vector<16x256xf32>
    %12 = vector.broadcast %0 : vector<1x256xf32> to vector<16x256xf32>
    %13 = arith.mulf %11, %12 : vector<16x256xf32>
    %14 = vector.extract_strided_slice %13 {offsets = [0, 0], sizes = [16, 178], strides = [1, 1]} : vector<16x256xf32> to vector<16x178xf32>
    %c0_10 = arith.constant 0 : index
    %c0_11 = arith.constant 0 : index
    %15 = vector.load %arg15[%c0_10, %c0_11] : memref<144x256xf32, #tpu.memory_space<vmem>>, vector<16x178xf32>
    tpu.vector_store %arg15[%c0_10, %c0_11], %14 {strides = array<i32>} : memref<144x256xf32, #tpu.memory_space<vmem>>, vector<16x178xf32>,
    %16 = vector.extract_strided_slice %13 {offsets = [0, 1], sizes = [16, 178], strides = [1, 1]} : vector<16x256xf32> to vector<16x178xf32>
    %c16 = arith.constant 16 : index
    %c0_12 = arith.constant 0 : index
    %17 = vector.load %arg15[%c16, %c0_12] : memref<144x256xf32, #tpu.memory_space<vmem>>, vector<16x178xf32>
    tpu.vector_store %arg15[%c16, %c0_12], %16 {strides = array<i32>} : memref<144x256xf32, #tpu.memory_space<vmem>>, vector<16x178xf32>,
    %18 = vector.extract_strided_slice %13 {offsets = [0, 2], sizes = [16, 178], strides = [1, 1]} : vector<16x256xf32> to vector<16x178xf32>
    %c32 = arith.constant 32 : index
    %c0_13 = arith.constant 0 : index
    %19 = vector.load %arg15[%c32, %c0_13] : memref<144x256xf32, #tpu.memory_space<vmem>>, vector<16x178xf32>
    tpu.vector_store %arg15[%c32, %c0_13], %18 {strides = array<i32>} : memref<144x256xf32, #tpu.memory_space<vmem>>, vector<16x178xf32>,
    %20 = vector.extract_strided_slice %13 {offsets = [0, 10], sizes = [16, 178], strides = [1, 1]} : vector<16x256xf32> to vector<16x178xf32>
    %c48 = arith.constant 48 : index
    %c0_14 = arith.constant 0 : index
    %21 = vector.load %arg15[%c48, %c0_14] : memref<144x256xf32, #tpu.memory_space<vmem>>, vector<16x178xf32>
    tpu.vector_store %arg15[%c48, %c0_14], %20 {strides = array<i32>} : memref<144x256xf32, #tpu.memory_space<vmem>>, vector<16x178xf32>,
    %22 = vector.extract_strided_slice %13 {offsets = [0, 11], sizes = [16, 178], strides = [1, 1]} : vector<16x256xf32> to vector<16x178xf32>
    %c64 = arith.constant 64 : index
    %c0_15 = arith.constant 0 : index
    %23 = vector.load %arg15[%c64, %c0_15] : memref<144x256xf32, #tpu.memory_space<vmem>>, vector<16x178xf32>
    tpu.vector_store %arg15[%c64, %c0_15], %22 {strides = array<i32>} : memref<144x256xf32, #tpu.memory_space<vmem>>, vector<16x178xf32>,
    %24 = vector.extract_strided_slice %13 {offsets = [0, 12], sizes = [16, 178], strides = [1, 1]} : vector<16x256xf32> to vector<16x178xf32>
    %c80 = arith.constant 80 : index
    %c0_16 = arith.constant 0 : index
    %25 = vector.load %arg15[%c80, %c0_16] : memref<144x256xf32, #tpu.memory_space<vmem>>, vector<16x178xf32>
    tpu.vector_store %arg15[%c80, %c0_16], %24 {strides = array<i32>} : memref<144x256xf32, #tpu.memory_space<vmem>>, vector<16x178xf32>,
    %26 = vector.extract_strided_slice %13 {offsets = [0, 20], sizes = [16, 178], strides = [1, 1]} : vector<16x256xf32> to vector<16x178xf32>
    %c96 = arith.constant 96 : index
    %c0_17 = arith.constant 0 : index
    %27 = vector.load %arg15[%c96, %c0_17] : memref<144x256xf32, #tpu.memory_space<vmem>>, vector<16x178xf32>
    tpu.vector_store %arg15[%c96, %c0_17], %26 {strides = array<i32>} : memref<144x256xf32, #tpu.memory_space<vmem>>, vector<16x178xf32>,
    %28 = vector.extract_strided_slice %13 {offsets = [0, 21], sizes = [16, 178], strides = [1, 1]} : vector<16x256xf32> to vector<16x178xf32>
    %c112 = arith.constant 112 : index
    %c0_18 = arith.constant 0 : index
    %29 = vector.load %arg15[%c112, %c0_18] : memref<144x256xf32, #tpu.memory_space<vmem>>, vector<16x178xf32>
    tpu.vector_store %arg15[%c112, %c0_18], %28 {strides = array<i32>} : memref<144x256xf32, #tpu.memory_space<vmem>>, vector<16x178xf32>,
    %30 = vector.extract_strided_slice %13 {offsets = [0, 22], sizes = [16, 178], strides = [1, 1]} : vector<16x256xf32> to vector<16x178xf32>
    %c128 = arith.constant 128 : index
    %c0_19 = arith.constant 0 : index
    %31 = vector.load %arg15[%c128, %c0_19] : memref<144x256xf32, #tpu.memory_space<vmem>>, vector<16x178xf32>
    tpu.vector_store %arg15[%c128, %c0_19], %30 {strides = array<i32>} : memref<144x256xf32, #tpu.memory_space<vmem>>, vector<16x178xf32>,
    %c0_20 = arith.constant 0 : index
    %c0_21 = arith.constant 0 : index
    %32 = vector.load %arg5[%c0_20, %c0_21] : memref<8x144xbf16, #tpu.memory_space<vmem>>, vector<8x144xbf16>
    %c0_22 = arith.constant 0 : index
    %c0_23 = arith.constant 0 : index
    %33 = vector.load %arg15[%c0_22, %c0_23] : memref<144x256xf32, #tpu.memory_space<vmem>>, vector<144x178xf32>
    %34 = arith.truncf %33 : vector<144x178xf32> to vector<144x178xbf16>
    %cst_24 = arith.constant dense<0.000000e+00> : vector<8x178xf32>
    %35 = tpu.matmul %32, %34, %cst_24 {dimension_numbers = #tpu.dot_dimension_numbers<[1], [0], [0], [1], [0, 0, 1, 1], [], []>} : vector<8x144xbf16>, vector<144x178xbf16>, vector<8x178xf32> -> vector<8x178xf32>
    %c0_25 = arith.constant 0 : index
    %c11 = arith.constant 11 : index
    %36 = vector.load %arg16[%c0_25, %c11] : memref<16x256xf32, #tpu.memory_space<vmem>>, vector<8x178xf32>
    tpu.vector_store %arg16[%c0_25, %c11], %35 {strides = array<i32>} : memref<16x256xf32, #tpu.memory_space<vmem>>, vector<8x178xf32>,
    %c0_26 = arith.constant 0 : index
    %c0_27 = arith.constant 0 : index
    %37 = vector.load %arg16[%c0_26, %c0_27] : memref<16x256xf32, #tpu.memory_space<vmem>>, vector<8x256xf32>
    %c0_28 = arith.constant 0 : index
    %c0_29 = arith.constant 0 : index
    %38 = vector.load %arg9[%c0_28, %c0_29] : memref<8x1xf32, #tpu.memory_space<vmem>>, vector<8x1xf32>
    %39 = vector.broadcast %38 : vector<8x1xf32> to vector<8x256xf32>
    %40 = arith.mulf %37, %39 : vector<8x256xf32>
    %c0_30 = arith.constant 0 : index
    %c0_31 = arith.constant 0 : index
    %41 = vector.load %arg10[%c0_30, %c0_31] : memref<8x1xf32, #tpu.memory_space<vmem>>, vector<8x1xf32>
    %42 = vector.broadcast %41 : vector<8x1xf32> to vector<8x256xf32>
    %43 = arith.addf %40, %42 : vector<8x256xf32>
    %cst_32 = arith.constant 0.000000e+00 : f32
    %44 = vector.broadcast %cst_32 : f32 to vector<8x256xf32>
    %45 = arith.maximumf %43, %44 : vector<8x256xf32>
    %46 = vector.broadcast %0 : vector<1x256xf32> to vector<8x256xf32>
    %47 = arith.mulf %45, %46 : vector<8x256xf32>
    %48 = vector.extract_strided_slice %47 {offsets = [0, 0], sizes = [8, 178], strides = [1, 1]} : vector<8x256xf32> to vector<8x178xf32>
    %c0_33 = arith.constant 0 : index
    %c0_34 = arith.constant 0 : index
    %49 = vector.load %arg15[%c0_33, %c0_34] : memref<144x256xf32, #tpu.memory_space<vmem>>, vector<8x178xf32>
    tpu.vector_store %arg15[%c0_33, %c0_34], %48 {strides = array<i32>} : memref<144x256xf32, #tpu.memory_space<vmem>>, vector<8x178xf32>,
    %50 = vector.extract_strided_slice %47 {offsets = [0, 1], sizes = [8, 178], strides = [1, 1]} : vector<8x256xf32> to vector<8x178xf32>
    %c8 = arith.constant 8 : index
    %c0_35 = arith.constant 0 : index
    %51 = vector.load %arg15[%c8, %c0_35] : memref<144x256xf32, #tpu.memory_space<vmem>>, vector<8x178xf32>
    tpu.vector_store %arg15[%c8, %c0_35], %50 {strides = array<i32>} : memref<144x256xf32, #tpu.memory_space<vmem>>, vector<8x178xf32>,
    %52 = vector.extract_strided_slice %47 {offsets = [0, 2], sizes = [8, 178], strides = [1, 1]} : vector<8x256xf32> to vector<8x178xf32>
    %c16_36 = arith.constant 16 : index
    %c0_37 = arith.constant 0 : index
    %53 = vector.load %arg15[%c16_36, %c0_37] : memref<144x256xf32, #tpu.memory_space<vmem>>, vector<8x178xf32>
    tpu.vector_store %arg15[%c16_36, %c0_37], %52 {strides = array<i32>} : memref<144x256xf32, #tpu.memory_space<vmem>>, vector<8x178xf32>,
    %54 = vector.extract_strided_slice %47 {offsets = [0, 10], sizes = [8, 178], strides = [1, 1]} : vector<8x256xf32> to vector<8x178xf32>
    %c24 = arith.constant 24 : index
    %c0_38 = arith.constant 0 : index
    %55 = vector.load %arg15[%c24, %c0_38] : memref<144x256xf32, #tpu.memory_space<vmem>>, vector<8x178xf32>
    tpu.vector_store %arg15[%c24, %c0_38], %54 {strides = array<i32>} : memref<144x256xf32, #tpu.memory_space<vmem>>, vector<8x178xf32>,
    %56 = vector.extract_strided_slice %47 {offsets = [0, 11], sizes = [8, 178], strides = [1, 1]} : vector<8x256xf32> to vector<8x178xf32>
    %c32_39 = arith.constant 32 : index
    %c0_40 = arith.constant 0 : index
    %57 = vector.load %arg15[%c32_39, %c0_40] : memref<144x256xf32, #tpu.memory_space<vmem>>, vector<8x178xf32>
    tpu.vector_store %arg15[%c32_39, %c0_40], %56 {strides = array<i32>} : memref<144x256xf32, #tpu.memory_space<vmem>>, vector<8x178xf32>,
    %58 = vector.extract_strided_slice %47 {offsets = [0, 12], sizes = [8, 178], strides = [1, 1]} : vector<8x256xf32> to vector<8x178xf32>
    %c40 = arith.constant 40 : index
    %c0_41 = arith.constant 0 : index
    %59 = vector.load %arg15[%c40, %c0_41] : memref<144x256xf32, #tpu.memory_space<vmem>>, vector<8x178xf32>
    tpu.vector_store %arg15[%c40, %c0_41], %58 {strides = array<i32>} : memref<144x256xf32, #tpu.memory_space<vmem>>, vector<8x178xf32>,
    %60 = vector.extract_strided_slice %47 {offsets = [0, 20], sizes = [8, 178], strides = [1, 1]} : vector<8x256xf32> to vector<8x178xf32>
    %c48_42 = arith.constant 48 : index
    %c0_43 = arith.constant 0 : index
    %61 = vector.load %arg15[%c48_42, %c0_43] : memref<144x256xf32, #tpu.memory_space<vmem>>, vector<8x178xf32>
    tpu.vector_store %arg15[%c48_42, %c0_43], %60 {strides = array<i32>} : memref<144x256xf32, #tpu.memory_space<vmem>>, vector<8x178xf32>,
    %62 = vector.extract_strided_slice %47 {offsets = [0, 21], sizes = [8, 178], strides = [1, 1]} : vector<8x256xf32> to vector<8x178xf32>
    %c56 = arith.constant 56 : index
    %c0_44 = arith.constant 0 : index
    %63 = vector.load %arg15[%c56, %c0_44] : memref<144x256xf32, #tpu.memory_space<vmem>>, vector<8x178xf32>
    tpu.vector_store %arg15[%c56, %c0_44], %62 {strides = array<i32>} : memref<144x256xf32, #tpu.memory_space<vmem>>, vector<8x178xf32>,
    %64 = vector.extract_strided_slice %47 {offsets = [0, 22], sizes = [8, 178], strides = [1, 1]} : vector<8x256xf32> to vector<8x178xf32>
    %c64_45 = arith.constant 64 : index
    %c0_46 = arith.constant 0 : index
    %65 = vector.load %arg15[%c64_45, %c0_46] : memref<144x256xf32, #tpu.memory_space<vmem>>, vector<8x178xf32>
    tpu.vector_store %arg15[%c64_45, %c0_46], %64 {strides = array<i32>} : memref<144x256xf32, #tpu.memory_space<vmem>>, vector<8x178xf32>,
    %c0_47 = arith.constant 0 : index
    %c0_48 = arith.constant 0 : index
    %66 = vector.load %arg8[%c0_47, %c0_48] : memref<4x72xbf16, #tpu.memory_space<vmem>>, vector<4x72xbf16>
    %c0_49 = arith.constant 0 : index
    %c0_50 = arith.constant 0 : index
    %67 = vector.load %arg15[%c0_49, %c0_50] : memref<144x256xf32, #tpu.memory_space<vmem>>, vector<72x178xf32>
    %68 = arith.truncf %67 : vector<72x178xf32> to vector<72x178xbf16>
    %cst_51 = arith.constant dense<0.000000e+00> : vector<4x178xf32>
    %69 = tpu.matmul %66, %68, %cst_51 {dimension_numbers = #tpu.dot_dimension_numbers<[1], [0], [0], [1], [0, 0, 1, 1], [], []>} : vector<4x72xbf16>, vector<72x178xbf16>, vector<4x178xf32> -> vector<4x178xf32>
    %c8_52 = arith.constant 8 : index
    %c11_53 = arith.constant 11 : index
    %70 = vector.load %arg16[%c8_52, %c11_53] : memref<16x256xf32, #tpu.memory_space<vmem>>, vector<4x178xf32>
    tpu.vector_store %arg16[%c8_52, %c11_53], %69 {strides = array<i32>} : memref<16x256xf32, #tpu.memory_space<vmem>>, vector<4x178xf32>,
    %c8_54 = arith.constant 8 : index
    %c0_55 = arith.constant 0 : index
    %71 = vector.load %arg16[%c8_54, %c0_55] : memref<16x256xf32, #tpu.memory_space<vmem>>, vector<4x256xf32>
    %c0_56 = arith.constant 0 : index
    %c0_57 = arith.constant 0 : index
    %72 = vector.load %arg12[%c0_56, %c0_57] : memref<4x1xf32, #tpu.memory_space<vmem>>, vector<4x1xf32>
    %73 = vector.broadcast %72 : vector<4x1xf32> to vector<4x256xf32>
    %74 = arith.mulf %71, %73 : vector<4x256xf32>
    %c0_58 = arith.constant 0 : index
    %c0_59 = arith.constant 0 : index
    %75 = vector.load %arg13[%c0_58, %c0_59] : memref<4x1xf32, #tpu.memory_space<vmem>>, vector<4x1xf32>
    %76 = vector.broadcast %75 : vector<4x1xf32> to vector<4x256xf32>
    %77 = arith.addf %74, %76 : vector<4x256xf32>
    %cst_60 = arith.constant 0.000000e+00 : f32
    %78 = vector.broadcast %cst_60 : f32 to vector<4x256xf32>
    %79 = arith.maximumf %77, %78 : vector<4x256xf32>
    %80 = vector.broadcast %0 : vector<1x256xf32> to vector<4x256xf32>
    %81 = arith.mulf %79, %80 : vector<4x256xf32>
    %82 = vector.extract_strided_slice %81 {offsets = [0, 0], sizes = [4, 178], strides = [1, 1]} : vector<4x256xf32> to vector<4x178xf32>
    %c0_61 = arith.constant 0 : index
    %c0_62 = arith.constant 0 : index
    %83 = vector.load %arg15[%c0_61, %c0_62] : memref<144x256xf32, #tpu.memory_space<vmem>>, vector<4x178xf32>
    tpu.vector_store %arg15[%c0_61, %c0_62], %82 {strides = array<i32>} : memref<144x256xf32, #tpu.memory_space<vmem>>, vector<4x178xf32>,
    %84 = vector.extract_strided_slice %81 {offsets = [0, 1], sizes = [4, 178], strides = [1, 1]} : vector<4x256xf32> to vector<4x178xf32>
    %c4 = arith.constant 4 : index
    %c0_63 = arith.constant 0 : index
    %85 = vector.load %arg15[%c4, %c0_63] : memref<144x256xf32, #tpu.memory_space<vmem>>, vector<4x178xf32>
    tpu.vector_store %arg15[%c4, %c0_63], %84 {strides = array<i32>} : memref<144x256xf32, #tpu.memory_space<vmem>>, vector<4x178xf32>,
    %86 = vector.extract_strided_slice %81 {offsets = [0, 2], sizes = [4, 178], strides = [1, 1]} : vector<4x256xf32> to vector<4x178xf32>
    %c8_64 = arith.constant 8 : index
    %c0_65 = arith.constant 0 : index
    %87 = vector.load %arg15[%c8_64, %c0_65] : memref<144x256xf32, #tpu.memory_space<vmem>>, vector<4x178xf32>
    tpu.vector_store %arg15[%c8_64, %c0_65], %86 {strides = array<i32>} : memref<144x256xf32, #tpu.memory_space<vmem>>, vector<4x178xf32>,
    %88 = vector.extract_strided_slice %81 {offsets = [0, 10], sizes = [4, 178], strides = [1, 1]} : vector<4x256xf32> to vector<4x178xf32>
    %c12 = arith.constant 12 : index
    %c0_66 = arith.constant 0 : index
    %89 = vector.load %arg15[%c12, %c0_66] : memref<144x256xf32, #tpu.memory_space<vmem>>, vector<4x178xf32>
    tpu.vector_store %arg15[%c12, %c0_66], %88 {strides = array<i32>} : memref<144x256xf32, #tpu.memory_space<vmem>>, vector<4x178xf32>,
    %90 = vector.extract_strided_slice %81 {offsets = [0, 11], sizes = [4, 178], strides = [1, 1]} : vector<4x256xf32> to vector<4x178xf32>
    %c16_67 = arith.constant 16 : index
    %c0_68 = arith.constant 0 : index
    %91 = vector.load %arg15[%c16_67, %c0_68] : memref<144x256xf32, #tpu.memory_space<vmem>>, vector<4x178xf32>
    tpu.vector_store %arg15[%c16_67, %c0_68], %90 {strides = array<i32>} : memref<144x256xf32, #tpu.memory_space<vmem>>, vector<4x178xf32>,
    %92 = vector.extract_strided_slice %81 {offsets = [0, 12], sizes = [4, 178], strides = [1, 1]} : vector<4x256xf32> to vector<4x178xf32>
    %c20 = arith.constant 20 : index
    %c0_69 = arith.constant 0 : index
    %93 = vector.load %arg15[%c20, %c0_69] : memref<144x256xf32, #tpu.memory_space<vmem>>, vector<4x178xf32>
    tpu.vector_store %arg15[%c20, %c0_69], %92 {strides = array<i32>} : memref<144x256xf32, #tpu.memory_space<vmem>>, vector<4x178xf32>,
    %94 = vector.extract_strided_slice %81 {offsets = [0, 20], sizes = [4, 178], strides = [1, 1]} : vector<4x256xf32> to vector<4x178xf32>
    %c24_70 = arith.constant 24 : index
    %c0_71 = arith.constant 0 : index
    %95 = vector.load %arg15[%c24_70, %c0_71] : memref<144x256xf32, #tpu.memory_space<vmem>>, vector<4x178xf32>
    tpu.vector_store %arg15[%c24_70, %c0_71], %94 {strides = array<i32>} : memref<144x256xf32, #tpu.memory_space<vmem>>, vector<4x178xf32>,
    %96 = vector.extract_strided_slice %81 {offsets = [0, 21], sizes = [4, 178], strides = [1, 1]} : vector<4x256xf32> to vector<4x178xf32>
    %c28 = arith.constant 28 : index
    %c0_72 = arith.constant 0 : index
    %97 = vector.load %arg15[%c28, %c0_72] : memref<144x256xf32, #tpu.memory_space<vmem>>, vector<4x178xf32>
    tpu.vector_store %arg15[%c28, %c0_72], %96 {strides = array<i32>} : memref<144x256xf32, #tpu.memory_space<vmem>>, vector<4x178xf32>,
    %98 = vector.extract_strided_slice %81 {offsets = [0, 22], sizes = [4, 178], strides = [1, 1]} : vector<4x256xf32> to vector<4x178xf32>
    %c32_73 = arith.constant 32 : index
    %c0_74 = arith.constant 0 : index
    %99 = vector.load %arg15[%c32_73, %c0_74] : memref<144x256xf32, #tpu.memory_space<vmem>>, vector<4x178xf32>
    tpu.vector_store %arg15[%c32_73, %c0_74], %98 {strides = array<i32>} : memref<144x256xf32, #tpu.memory_space<vmem>>, vector<4x178xf32>,
    %c0_75 = arith.constant 0 : index
    %c0_76 = arith.constant 0 : index
    %100 = vector.load %arg11[%c0_75, %c0_76] : memref<4x36xbf16, #tpu.memory_space<vmem>>, vector<4x36xbf16>
    %c0_77 = arith.constant 0 : index
    %c0_78 = arith.constant 0 : index
    %101 = vector.load %arg15[%c0_77, %c0_78] : memref<144x256xf32, #tpu.memory_space<vmem>>, vector<36x178xf32>
    %102 = arith.truncf %101 : vector<36x178xf32> to vector<36x178xbf16>
    %cst_79 = arith.constant dense<0.000000e+00> : vector<4x178xf32>
    %103 = tpu.matmul %100, %102, %cst_79 {dimension_numbers = #tpu.dot_dimension_numbers<[1], [0], [0], [1], [0, 0, 1, 1], [], []>} : vector<4x36xbf16>, vector<36x178xbf16>, vector<4x178xf32> -> vector<4x178xf32>
    %c12_80 = arith.constant 12 : index
    %c11_81 = arith.constant 11 : index
    %104 = vector.load %arg16[%c12_80, %c11_81] : memref<16x256xf32, #tpu.memory_space<vmem>>, vector<4x178xf32>
    tpu.vector_store %arg16[%c12_80, %c11_81], %103 {strides = array<i32>} : memref<16x256xf32, #tpu.memory_space<vmem>>, vector<4x178xf32>,
    %c0_82 = arith.constant 0 : index
    %c0_83 = arith.constant 0 : index
    %105 = vector.load %arg16[%c0_82, %c0_83] : memref<16x256xf32, #tpu.memory_space<vmem>>, vector<16x256xf32>
    %106 = arith.addf %105, %1 : vector<16x256xf32>
    %c0_84 = arith.constant 0 : index
    %c0_85 = arith.constant 0 : index
    %107 = vector.load %arg2[%c0_84, %c0_85] : memref<16x768xf32, #tpu.memory_space<vmem>>, vector<16x768xf32>
    %108 = arith.truncf %106 : vector<16x256xf32> to vector<16x256xbf16>
    %c0_86 = arith.constant 0 : index
    %c0_87 = arith.constant 0 : index
    %109 = vector.load %arg4[%c0_86, %c0_87] : memref<256x768xbf16, #tpu.memory_space<vmem>>, vector<256x768xbf16>
    %cst_88 = arith.constant dense<0.000000e+00> : vector<16x768xf32>
    %110 = tpu.matmul %108, %109, %cst_88 {dimension_numbers = #tpu.dot_dimension_numbers<[1], [0], [0], [1], [0, 0, 1, 1], [], []>} : vector<16x256xbf16>, vector<256x768xbf16>, vector<16x768xf32> -> vector<16x768xf32>
    %111 = arith.addf %107, %110 : vector<16x768xf32>
    %c0_89 = arith.constant 0 : index
    %c0_90 = arith.constant 0 : index
    %112 = vector.load %arg14[%c0_89, %c0_90] : memref<16x768xf32, #tpu.memory_space<vmem>>, vector<16x768xf32>
    tpu.vector_store %arg14[%c0_89, %c0_90], %111 {strides = array<i32>} : memref<16x768xf32, #tpu.memory_space<vmem>>, vector<16x768xf32>,
    return
  }
  func.func @transform_0(%arg0: i32) -> (i32, i32) {
    %c0_i32 = arith.constant 0 : i32
    %c0_i32_0 = arith.constant 0 : i32
    %c0_i32_1 = arith.constant 0 : i32
    return %c0_i32, %c0_i32_0 : i32, i32
  }
  func.func @transform_1(%arg0: i32) -> (i32, i32) {
    %c0_i32 = arith.constant 0 : i32
    %c0_i32_0 = arith.constant 0 : i32
    %c0_i32_1 = arith.constant 0 : i32
    return %c0_i32, %c0_i32_0 : i32, i32
  }
  func.func @transform_2(%arg0: i32) -> (i32, i32) {
    %c0_i32 = arith.constant 0 : i32
    %c0_i32_0 = arith.constant 0 : i32
    %c0_i32_1 = arith.constant 0 : i32
    return %c0_i32, %c0_i32_0 : i32, i32
  }
  func.func @transform_3(%arg0: i32) -> (i32, i32) {
    %c0_i32 = arith.constant 0 : i32
    %c0_i32_0 = arith.constant 0 : i32
    %c0_i32_1 = arith.constant 0 : i32
    return %c0_i32, %c0_i32_0 : i32, i32
  }
  func.func @transform_4(%arg0: i32) -> (i32, i32) {
    %c0_i32 = arith.constant 0 : i32
    %c0_i32_0 = arith.constant 0 : i32
    %c0_i32_1 = arith.constant 0 : i32
    return %c0_i32, %c0_i32_0 : i32, i32
  }
  func.func @transform_5(%arg0: i32) -> (i32, i32) {
    %c0_i32 = arith.constant 0 : i32
    %c0_i32_0 = arith.constant 0 : i32
    %c0_i32_1 = arith.constant 0 : i32
    return %c0_i32, %c0_i32_0 : i32, i32
  }
  func.func @transform_6(%arg0: i32) -> (i32, i32) {
    %c0_i32 = arith.constant 0 : i32
    %c0_i32_0 = arith.constant 0 : i32
    %c0_i32_1 = arith.constant 0 : i32
    return %c0_i32, %c0_i32_0 : i32, i32
  }
  func.func @transform_7(%arg0: i32) -> (i32, i32) {
    %c0_i32 = arith.constant 0 : i32
    %c0_i32_0 = arith.constant 0 : i32
    %c0_i32_1 = arith.constant 0 : i32
    return %c0_i32, %c0_i32_0 : i32, i32
  }
  func.func @transform_8(%arg0: i32) -> (i32, i32) {
    %c0_i32 = arith.constant 0 : i32
    %c0_i32_0 = arith.constant 0 : i32
    %c0_i32_1 = arith.constant 0 : i32
    return %c0_i32, %c0_i32_0 : i32, i32
  }
  func.func @transform_9(%arg0: i32) -> (i32, i32) {
    %c0_i32 = arith.constant 0 : i32
    %c0_i32_0 = arith.constant 0 : i32
    %c0_i32_1 = arith.constant 0 : i32
    return %c0_i32, %c0_i32_0 : i32, i32
  }
  func.func @transform_10(%arg0: i32) -> (i32, i32) {
    %c0_i32 = arith.constant 0 : i32
    %c0_i32_0 = arith.constant 0 : i32
    %c0_i32_1 = arith.constant 0 : i32
    return %c0_i32, %c0_i32_0 : i32, i32
  }
  func.func @transform_11(%arg0: i32) -> (i32, i32) {
    %c0_i32 = arith.constant 0 : i32
    %c0_i32_0 = arith.constant 0 : i32
    %c0_i32_1 = arith.constant 0 : i32
    return %c0_i32, %c0_i32_0 : i32, i32
  }
  func.func @transform_12(%arg0: i32) -> (i32, i32) {
    %c0_i32 = arith.constant 0 : i32
    %c0_i32_0 = arith.constant 0 : i32
    %c0_i32_1 = arith.constant 0 : i32
    return %c0_i32, %c0_i32_0 : i32, i32
  }
  func.func @transform_13(%arg0: i32) -> (i32, i32) {
    %c0_i32 = arith.constant 0 : i32
    %c0_i32_0 = arith.constant 0 : i32
    %c0_i32_1 = arith.constant 0 : i32
    return %c0_i32, %c0_i32_0 : i32, i32
  }
}

</mosaic_0001>

<bundles_post_ra>
// kernel: hourglass_nchw.6
= control target key start
LH: loop header
LB: loop body
LE: loop exit
PB: predicated region body
PF: predicated region fallthrough
CT: control target
= control target key end

     0   :  { %v1215_v0 = vmov 0   ;;  %vm115_vm0 = vcmask 474112   ;;  %s1216_s30 = smov 127   ;;  %s1219_s23 = smov 121   ;;  %vm218_vm1 = vcmask 130048   ;;  %vm266_vm2 = vcmask 531512   ;;  %s1742_s6 = inlined_call_operand.vmem [shape: f32[16,1], index: 6, kind: input, shape index: {}]   ;;  %s1743_s5 = inlined_call_operand.vmem [shape: f32[16,1], index: 5, kind: input, shape index: {}]   ;;  %s1744_s0 = inlined_call_operand.vmem [shape: f32[16,128], index: 0, kind: input, shape index: {}]   ;;  %s1745_s2 = inlined_call_operand.vmem [shape: f32[1,128], index: 2, kind: input, shape index: {}]   ;;  %s1746_s4 = inlined_call_operand.vmem [shape: bf16[8,144], index: 4, kind: input, shape index: {}]   ;;  %s1747_s8 = inlined_call_operand.vmem [shape: f32[8,1], index: 8, kind: input, shape index: {}]   ;;  %s1748_s9 = inlined_call_operand.vmem [shape: f32[8,1], index: 9, kind: input, shape index: {}]   ;;  %s1749_s11 = inlined_call_operand.vmem [shape: f32[4,1], index: 11, kind: input, shape index: {}]   ;;  %s1750_s7 = inlined_call_operand.vmem [shape: bf16[4,72], index: 7, kind: input, shape index: {}]   ;;  %s1751_s12 = inlined_call_operand.vmem [shape: f32[4,1], index: 12, kind: input, shape index: {}]   ;;  %s1752_s14 = inlined_call_operand.vmem [shape: f32[16,1], index: 14, kind: input, shape index: {}]   ;;  %s1753_s15 = inlined_call_operand.vmem [shape: f32[16,1], index: 15, kind: input, shape index: {}]   ;;  %s1754_s10 = inlined_call_operand.vmem [shape: bf16[4,36], index: 10, kind: input, shape index: {}]   ;;  %s1755_s13 = inlined_call_operand.vmem [shape: bf16[8,144], index: 13, kind: input, shape index: {}]   ;;  %s1756_s17 = inlined_call_operand.vmem [shape: f32[8,1], index: 17, kind: input, shape index: {}]   ;;  %s1757_s18 = inlined_call_operand.vmem [shape: f32[8,1], index: 18, kind: input, shape index: {}]   ;;  %s1758_s20 = inlined_call_operand.vmem [shape: f32[4,1], index: 20, kind: input, shape index: {}]   ;;  %s1759_s16 = inlined_call_operand.vmem [shape: bf16[4,72], index: 16, kind: input, shape index: {}]   ;;  %s1760_s21 = inlined_call_operand.vmem [shape: f32[4,1], index: 21, kind: input, shape index: {}]   ;;  %s1761_s19 = inlined_call_operand.vmem [shape: bf16[4,36], index: 19, kind: input, shape index: {}]   ;;  %s1762_s3 = inlined_call_operand.vmem [shape: bf16[128,256], index: 3, kind: input, shape index: {}]   ;;  %s1763_s1 = inlined_call_operand.vmem [shape: f32[16,256], index: 1, kind: input, shape index: {}]   ;;  %s1764_s22 = inlined_call_operand.vmem [shape: f32[16,256], index: 22, kind: output, shape index: {}]  }
   0x1   :  { %1768 = sst [smem:[#allocation5_spill]] %s1742_s6  ;;  %1186 = vset.pattern.permute.xlu1 %v1215_v0  ;;  %1185 = vset.pattern.permute.xlu0 %v1215_v0  ;;  %s1222_s24 = smov 115   ;;  %vm1226_vm3 = vmmov 0   ;;  %vm338_vm4 = vcmask 1043456   ;;  %vm334_vm5 = vcmask 588800   ;;  %vm386_vm6 = vcmask 527416  }
   0x2   :  { %1769 = sst [smem:[#allocation6_spill]] %s1743_s5  ;;  %s1775_s29 = sld [smem:[#allocation5_spill]]  ;;  %222 = vmatprep.subr.bf16.mxu0 %v1215_v0  ;;  %vm405_vm7 = vcmask 470016   ;;  %vm453_vm8 = vcmask 1041408   ;;  %vm449_vm9 = vcmask 293888  }
   0x3   :  { %1770 = sst [smem:[#allocation7_spill]] %s1744_s0  ;;  %s1776_s6 = sld [smem:[#allocation6_spill]] }
   0x4   :  { %1771 = sst [smem:[#allocation8_spill]] %s1745_s2  ;;  %s1777_s26 = sld [smem:[#allocation7_spill]] }
   0x5   :  { %1772 = sst [smem:[#allocation9_spill]] %s1746_s4  ;;  %s1217_s4 = smov 126  }
   0x6   :  { %1773 = sst [smem:[#allocation10_spill]] %s1747_s8  ;;  %s1220_s5 = smov 120  }
   0x7   :  { %1774 = sst [smem:[#allocation11_spill]] %s1748_s9  ;;  %s1221_s8 = smov 116  }
   0x8   :  { %v91_v1 = vld [vmem:[%s1775_s29] sm:$0xff]  ;;  %v92_v3 = vld [vmem:[%s1775_s29 + $0x8] sm:$0xff]  ;;  %s1778_s29 = sld [smem:[#allocation8_spill]]  ;;  %s1223_s9 = smov 114  }
   0x9   :  { %v77_v2 = vld [vmem:[%s1776_s6] sm:$0xff]  ;;  %95 = vperm.xlu1 %1186, %v91_v1   ;;  %v78_v4 = vld [vmem:[%s1776_s6 + $0x8] sm:$0xff]  ;;  %s1218_s6 = smov 122   ;;  %s1779_s0 = sld [smem:[#allocation9_spill]] }
   0xa   :  { %81 = vperm.xlu0 %1185, %v77_v2   ;;  %v1360_v5 = vld [vmem:[%s1777_s26] sm:$0xff]  ;;  %v1366_v9 = vld [vmem:[%s1777_s26 + $0x8] sm:$0xff]  ;;  %s1780_s28 = sld [smem:[#allocation10_spill]] }
   0xd   :  { %100 = vperm.xlu1 %1186, %v92_v3  }
   0xe   :  { %86 = vperm.xlu0 %1185, %v78_v4   ;;  %v1371_v11 = vld [vmem:[%s1778_s29] ss:$0 sm:$0xff]  ;;  %v1224_v4 = vmov 0.0   ;;  %s1225_s29 = smov 7  }
   0xf   :  { %v1397_v23 = vld [vmem:[%s1779_s0] sm:$0xff]  ;;  %75 = vst [vmem:[#allocation3] sm:$0xff] %v1224_v4  ;;  %76 = vst [vmem:[#allocation3 + $0x8] sm:$0xff] %v1224_v4  ;;  %1125 = vmatprep.subr.bf16.mxu1 %v1224_v4  ;;  %s1781_s0 = sld [smem:[#allocation11_spill]]  ;;  %1135 = vmatprep.mubr.msk.bf16.mxu1 %vm1226_vm3, %v1224_v4 }
  0x10   :  { %v1080_v24 = vcombine.high %v1397_v23, %v1397_v23  ;;  %v269_v25 = vld [vmem:[%s1780_s28] sm:$0xff]  ;;  %v1079_v3 = vcombine.low %v1397_v23, %v1397_v23  ;;  %506 = vst [vmem:[#allocation4] sm:$0xff] %v1224_v4  ;;  %507 = vst [vmem:[#allocation4 + $0x8] sm:$0xff] %v1224_v4 }
  0x12   :  { %1081 = vmatprep.mubr.msk.bf16.mxu0 %vm218_vm1, %v1080_v24 }
  0x88   :  { %v96_v6 = vpop.permute.xlu1 %95 }
  0x89   :  { %v82_v7 = vpop.permute.xlu0 %81 }
  0x8a   :  { %v89_v8 = vmul.f32 %v82_v7, %v1360_v5 }
  0x8c   :  { %v103_v10 = vadd.f32 %v96_v6, %v89_v8  ;;  %v101_v15 = vpop.permute.xlu1 %100 }
  0x8d   :  { %v87_v12 = vpop.permute.xlu0 %86 }
  0x8e   :  { %v105_v13 = vmax.f32 %v103_v10, 0.0  ;;  %v90_v14 = vmul.f32 %v87_v12, %v1366_v9  ;;  %v276_v10 = vld [vmem:[%s1781_s0] sm:$0xff] }
  0x90   :  { %v113_v16 = vmul.f32 %v1371_v11, %v105_v13  ;;  %v104_v17 = vadd.f32 %v101_v15, %v90_v14 }
  0x92   :  { %v106_v18 = vmax.f32 %v104_v17, 0.0  ;;  %120 = vrot.lane.b32.xlu0 %v113_v16, %s1216_s30  ;;  %116 = vst.msk [vmem:[#allocation2] sm:$0xff] %vm115_vm0, %v113_v16 }
  0x94   :  { %v114_v19 = vmul.f32 %v1371_v11, %v106_v18 }
  0x96   :  { %122 = vrot.lane.b32.xlu1 %v114_v19, %s1216_s30  ;;  %128 = vrot.lane.b32.xlu0 %v113_v16, %s1217_s4  ;;  %117 = vst.msk [vmem:[#allocation2 + $0x8] sm:$0xff] %vm115_vm0, %v114_v19 }
  0x99   :  { %v185_v20 = vld [vmem:[#allocation2] sm:$0xff] }
  0x9a   :  { %130 = vrot.lane.b32.xlu1 %v114_v19, %s1217_s4  ;;  %136 = vrot.lane.b32.xlu0 %v113_v16, %s1218_s6 }
  0x9d   :  { %v186_v21 = vld [vmem:[#allocation2 + $0x8] sm:$0xff] }
  0x9e   :  { %138 = vrot.lane.b32.xlu1 %v114_v19, %s1218_s6  ;;  %144 = vrot.lane.b32.xlu0 %v113_v16, %s1219_s23  ;;  %v203_v22 = vpack.c.bf16 %v186_v21, %v185_v20  ;;  %v389_v21 = vld [vmem:[%s1749_s11] sm:$0xf] }
  0xa0   :  { %223 = vmatpush1.bf16.msra.mxu0 %v203_v22 }
  0xa1   :  { %224 = vmatprep.subr.bf16.mxu0 %v1215_v0 }
  0xa2   :  { %146 = vrot.lane.b32.xlu1 %v114_v19, %s1219_s23  ;;  %152 = vrot.lane.b32.xlu0 %v113_v16, %s1220_s5 }
  0xa6   :  { %154 = vrot.lane.b32.xlu1 %v114_v19, %s1220_s5  ;;  %160 = vrot.lane.b32.xlu0 %v113_v16, %s1221_s8 }
  0xaa   :  { %162 = vrot.lane.b32.xlu1 %v114_v19, %s1221_s8  ;;  %168 = vrot.lane.b32.xlu0 %v113_v16, %s1222_s24 }
  0xae   :  { %170 = vrot.lane.b32.xlu1 %v114_v19, %s1222_s24  ;;  %176 = vrot.lane.b32.xlu0 %v113_v16, %s1223_s9 }
  0xb2   :  { %178 = vrot.lane.b32.xlu1 %v114_v19, %s1223_s9 }
  0xb6   :  { %272 = vperm.xlu1 %1186, %v269_v25  }
 0x104   :  { %v121_v26 = vpop.permute.xlu0 %120 }
 0x105   :  { %126 = vst.msk [vmem:[#allocation2 + $0x10] sm:$0xff] %vm115_vm0, %v121_v26 }
 0x108   :  { %v123_v27 = vpop.permute.xlu1 %122  ;;  %v129_v28 = vpop.permute.xlu0 %128 }
 0x109   :  { %127 = vst.msk [vmem:[#allocation2 + $0x18] sm:$0xff] %vm115_vm0, %v123_v27  ;;  %134 = vst.msk [vmem:[#allocation2 + $0x20] sm:$0xff] %vm115_vm0, %v129_v28 }
 0x10c   :  { %v131_v29 = vpop.permute.xlu1 %130  ;;  %v137_v30 = vpop.permute.xlu0 %136  ;;  %v187_v33 = vld [vmem:[#allocation2 + $0x10] sm:$0xff] }
 0x10d   :  { %135 = vst.msk [vmem:[#allocation2 + $0x28] sm:$0xff] %vm115_vm0, %v131_v29  ;;  %142 = vst.msk [vmem:[#allocation2 + $0x30] sm:$0xff] %vm115_vm0, %v137_v30 }
 0x110   :  { %v139_v31 = vpop.permute.xlu1 %138  ;;  %v145_v32 = vpop.permute.xlu0 %144  ;;  %v188_v34 = vld [vmem:[#allocation2 + $0x18] sm:$0xff]  ;;  %v189_v38 = vld [vmem:[#allocation2 + $0x20] sm:$0xff] }
 0x111   :  { %143 = vst.msk [vmem:[#allocation2 + $0x38] sm:$0xff] %vm115_vm0, %v139_v31  ;;  %150 = vst.msk [vmem:[#allocation2 + $0x40] sm:$0xff] %vm115_vm0, %v145_v32  ;;  %v204_v35 = vpack.c.bf16 %v188_v34, %v187_v33 }
 0x113   :  { %225 = vmatpush1.bf16.msra.mxu0 %v204_v35 }
 0x114   :  { %v147_v36 = vpop.permute.xlu1 %146  ;;  %v153_v37 = vpop.permute.xlu0 %152  ;;  %226 = vmatprep.subr.bf16.mxu0 %v1215_v0  ;;  %v190_v39 = vld [vmem:[#allocation2 + $0x28] sm:$0xff]  ;;  %v191_v43 = vld [vmem:[#allocation2 + $0x30] sm:$0xff] }
 0x115   :  { %151 = vst.msk [vmem:[#allocation2 + $0x48] sm:$0xff] %vm115_vm0, %v147_v36  ;;  %158 = vst.msk [vmem:[#allocation2 + $0x50] sm:$0xff] %vm115_vm0, %v153_v37  ;;  %v205_v40 = vpack.c.bf16 %v190_v39, %v189_v38 }
 0x117   :  { %227 = vmatpush1.bf16.msra.mxu0 %v205_v40 }
 0x118   :  { %v155_v41 = vpop.permute.xlu1 %154  ;;  %v161_v42 = vpop.permute.xlu0 %160  ;;  %228 = vmatprep.subr.bf16.mxu0 %v1215_v0  ;;  %v192_v44 = vld [vmem:[#allocation2 + $0x38] sm:$0xff]  ;;  %v193_v48 = vld [vmem:[#allocation2 + $0x40] sm:$0xff] }
 0x119   :  { %159 = vst.msk [vmem:[#allocation2 + $0x58] sm:$0xff] %vm115_vm0, %v155_v41  ;;  %166 = vst.msk [vmem:[#allocation2 + $0x60] sm:$0xff] %vm115_vm0, %v161_v42  ;;  %v206_v45 = vpack.c.bf16 %v192_v44, %v191_v43 }
 0x11b   :  { %229 = vmatpush1.bf16.msra.mxu0 %v206_v45  ;;  %v319_v45 = vld [vmem:[%s1750_s7] sm:$0x3] }
 0x11c   :  { %v163_v46 = vpop.permute.xlu1 %162  ;;  %v169_v47 = vpop.permute.xlu0 %168  ;;  %230 = vmatprep.subr.bf16.mxu0 %v1215_v0  ;;  %v194_v49 = vld [vmem:[#allocation2 + $0x48] sm:$0xff]  ;;  %v195_v53 = vld [vmem:[#allocation2 + $0x50] sm:$0xff] }
 0x11d   :  { %167 = vst.msk [vmem:[#allocation2 + $0x68] sm:$0xff] %vm115_vm0, %v163_v46  ;;  %174 = vst.msk [vmem:[#allocation2 + $0x70] sm:$0xff] %vm115_vm0, %v169_v47  ;;  %v207_v50 = vpack.c.bf16 %v194_v49, %v193_v48  ;;  %v396_v49 = vld [vmem:[%s1751_s12] sm:$0xf] }
 0x11f   :  { %231 = vmatpush1.bf16.msra.mxu0 %v207_v50 }
 0x120   :  { %v171_v51 = vpop.permute.xlu1 %170  ;;  %v177_v52 = vpop.permute.xlu0 %176  ;;  %232 = vmatprep.subr.bf16.mxu0 %v1215_v0  ;;  %v196_v54 = vld [vmem:[#allocation2 + $0x58] sm:$0xff]  ;;  %v197_v57 = vld [vmem:[#allocation2 + $0x60] sm:$0xff] }
 0x121   :  { %175 = vst.msk [vmem:[#allocation2 + $0x78] sm:$0xff] %vm115_vm0, %v171_v51  ;;  %182 = vst.msk [vmem:[#allocation2 + $0x80] sm:$0xff] %vm115_vm0, %v177_v52  ;;  %v208_v55 = vpack.c.bf16 %v196_v54, %v195_v53 }
 0x123   :  { %233 = vmatpush1.bf16.msra.mxu0 %v208_v55 }
 0x124   :  { %v179_v56 = vpop.permute.xlu1 %178  ;;  %234 = vmatprep.subr.bf16.mxu0 %v1215_v0  ;;  %v198_v58 = vld [vmem:[#allocation2 + $0x68] sm:$0xff]  ;;  %v199_v60 = vld [vmem:[#allocation2 + $0x70] sm:$0xff] }
 0x125   :  { %183 = vst.msk [vmem:[#allocation2 + $0x88] sm:$0xff] %vm115_vm0, %v179_v56  ;;  %v209_v59 = vpack.c.bf16 %v198_v58, %v197_v57 }
 0x127   :  { %235 = vmatpush1.bf16.msra.mxu0 %v209_v59  ;;  %v508_v59 = vld [vmem:[%s1752_s14] sm:$0xff] }
 0x128   :  { %236 = vmatprep.subr.bf16.mxu0 %v1215_v0  ;;  %v200_v61 = vld [vmem:[#allocation2 + $0x78] sm:$0xff]  ;;  %v201_v63 = vld [vmem:[#allocation2 + $0x80] sm:$0xff] }
 0x129   :  { %v210_v62 = vpack.c.bf16 %v200_v61, %v199_v60  ;;  %v522_v60 = vld [vmem:[%s1753_s15] sm:$0xff] }
 0x12b   :  { %237 = vmatpush1.bf16.msra.mxu0 %v210_v62 }
 0x12c   :  { %238 = vmatprep.subr.bf16.mxu0 %v1215_v0  ;;  %v202_v1 = vld [vmem:[#allocation2 + $0x88] sm:$0xff] }
 0x12d   :  { %v211_v2 = vpack.c.bf16 %v202_v1, %v201_v63 }
 0x12f   :  { %239 = vmatpush1.bf16.msra.mxu0 %v211_v2 }
 0x130   :  { %1163 = vmatprep.subr.bf16.mxu0 %v1224_v4 }
 0x132   :  { %255 = vmatmul.mubr.bf16.vlgmr.msra.gmra.mrb[0].mxu0 %v1079_v3 }
 0x133   :  { %1169 = vmatprep.mubr.msk.bf16.mxu0 %vm1226_vm3, %v1224_v4 }
 0x135   :  { %v273_v15 = vpop.permute.xlu1 %272 }
 0x205   :  { %v256_v6 = vpop.f32.mrb[0].mxu0 }
 0x206   :  { %263 = vrot.lane.b32.xlu0 %v256_v6, %s1225_s29  ;;  %v258_v7 = vpop.f32.mrb[1].mxu0 }
 0x207   :  { %v259_v8 = vpop.f32.mrb[2].mxu0 }
 0x208   :  { %v260_v12 = vpop.f32.mrb[3].mxu0 }
 0x20a   :  { %279 = vperm.xlu0 %1185, %v276_v10  }
 0x278   :  { %v264_v13 = vpop.permute.xlu0 %263 }
 0x279   :  { %267 = vst.msk [vmem:[#allocation3] sm:$0xff] %vm266_vm2, %v264_v13 }
 0x280   :  { %v1442_v14 = vld [vmem:[#allocation3] sm:$0xff] }
 0x281   :  { %v275_v16 = vmul.f32 %v273_v15, %v1442_v14 }
 0x289   :  { %v280_v17 = vpop.permute.xlu0 %279 }
 0x28a   :  { %v282_v18 = vadd.f32 %v280_v17, %v275_v16 }
 0x28c   :  { %v283_v19 = vmax.f32 %v282_v18, 0.0 }
 0x28e   :  { %v284_v20 = vmul.f32 %v1371_v11, %v283_v19 }
 0x290   :  { %285 = vst.msk [vmem:[#allocation2] sm:$0xff] %vm115_vm0, %v284_v20  ;;  %291 = vrot.lane.b32.xlu0 %v284_v20, %s1217_s4  ;;  %287 = vrot.lane.b32.xlu1 %v284_v20, %s1216_s30 }
 0x294   :  { %299 = vrot.lane.b32.xlu0 %v284_v20, %s1219_s23  ;;  %295 = vrot.lane.b32.xlu1 %v284_v20, %s1218_s6 }
 0x297   :  { %v320_v28 = vld [vmem:[#allocation2] sm:$0xff] }
 0x298   :  { %307 = vrot.lane.b32.xlu0 %v284_v20, %s1221_s8  ;;  %303 = vrot.lane.b32.xlu1 %v284_v20, %s1220_s5 }
 0x29c   :  { %315 = vrot.lane.b32.xlu0 %v284_v20, %s1223_s9  ;;  %311 = vrot.lane.b32.xlu1 %v284_v20, %s1222_s24  ;;  %v440_v20 = vld [vmem:[%s1754_s10] sm:$0x3] }
 0x2a0   :  { %392 = vperm.xlu0 %1185, %v389_v21  }
 0x302   :  { %v292_v22 = vpop.permute.xlu0 %291  ;;  %v288_v23 = vpop.permute.xlu1 %287 }
 0x303   :  { %294 = vst.msk [vmem:[#allocation2 + $0x10] sm:$0xff] %vm115_vm0, %v292_v22  ;;  %290 = vst.msk [vmem:[#allocation2 + $0x8] sm:$0xff] %vm115_vm0, %v288_v23  ;;  %v1520_v22 = vadd.f32 %v1442_v14, %v1360_v5 }
 0x306   :  { %v300_v24 = vpop.permute.xlu0 %299  ;;  %v296_v25 = vpop.permute.xlu1 %295 }
 0x307   :  { %302 = vst.msk [vmem:[#allocation2 + $0x20] sm:$0xff] %vm115_vm0, %v300_v24  ;;  %298 = vst.msk [vmem:[#allocation2 + $0x18] sm:$0xff] %vm115_vm0, %v296_v25 }
 0x30a   :  { %v308_v26 = vpop.permute.xlu0 %307  ;;  %v304_v27 = vpop.permute.xlu1 %303  ;;  %v321_v29 = vld [vmem:[#allocation2 + $0x8] sm:$0xff]  ;;  %v322_v33 = vld [vmem:[#allocation2 + $0x10] sm:$0xff] }
 0x30b   :  { %310 = vst.msk [vmem:[#allocation2 + $0x30] sm:$0xff] %vm115_vm0, %v308_v26  ;;  %306 = vst.msk [vmem:[#allocation2 + $0x28] sm:$0xff] %vm115_vm0, %v304_v27  ;;  %v329_v30 = vpack.c.bf16 %v321_v29, %v320_v28 }
 0x30d   :  { %1126 = vmatpush3.bf16.msra.mxu1 %v329_v30 }
 0x30e   :  { %v316_v31 = vpop.permute.xlu0 %315  ;;  %v312_v32 = vpop.permute.xlu1 %311  ;;  %1127 = vmatprep.subr.bf16.mxu1 %v1224_v4  ;;  %v323_v34 = vld [vmem:[#allocation2 + $0x18] sm:$0xff]  ;;  %v324_v36 = vld [vmem:[#allocation2 + $0x20] sm:$0xff] }
 0x30f   :  { %318 = vst.msk [vmem:[#allocation2 + $0x40] sm:$0xff] %vm115_vm0, %v316_v31  ;;  %314 = vst.msk [vmem:[#allocation2 + $0x38] sm:$0xff] %vm115_vm0, %v312_v32  ;;  %v330_v35 = vpack.c.bf16 %v323_v34, %v322_v33 }
 0x311   :  { %1128 = vmatpush3.bf16.msra.mxu1 %v330_v35 }
 0x312   :  { %1129 = vmatprep.subr.bf16.mxu1 %v1224_v4  ;;  %v325_v37 = vld [vmem:[#allocation2 + $0x28] sm:$0xff]  ;;  %v326_v39 = vld [vmem:[#allocation2 + $0x30] sm:$0xff] }
 0x313   :  { %v331_v38 = vpack.c.bf16 %v325_v37, %v324_v36  ;;  %v509_v37 = vld [vmem:[%s1752_s14 + $0x8] sm:$0xff] }
 0x315   :  { %1130 = vmatpush3.bf16.msra.mxu1 %v331_v38 }
 0x316   :  { %1131 = vmatprep.subr.bf16.mxu1 %v1224_v4  ;;  %v327_v40 = vld [vmem:[#allocation2 + $0x38] sm:$0xff]  ;;  %v328_v41 = vld [vmem:[#allocation2 + $0x40] sm:$0xff] }
 0x317   :  { %v332_v42 = vpack.c.bf16 %v327_v40, %v326_v39  ;;  %v333_v43 = vpack.c.bf16 %v328_v41, %v328_v41  ;;  %v523_v39 = vld [vmem:[%s1753_s15 + $0x8] sm:$0xff] }
 0x319   :  { %1132 = vmatpush3.bf16.msra.mxu1 %v332_v42  ;;  %v340_v44 = vsel %vm338_vm4, %v333_v43, 0 }
 0x31a   :  { %1133 = vmatprep.subr.bf16.mxu1 %v1224_v4 }
 0x31d   :  { %1134 = vmatpush3.bf16.msra.mxu1 %v340_v44 }
 0x31e   :  { %1139 = vmatprep.subr.bf16.mxu1 %v1224_v4 }
 0x31f   :  { %v393_v53 = vpop.permute.xlu0 %392 }
 0x320   :  { %1136 = vmatmul.mubr.msk.bf16.vlgmr.msra.gmra.mrb[0].mxu1 %vm334_vm5, %v319_v45 }
 0x321   :  { %1145 = vmatprep.mubr.msk.bf16.mxu1 %vm1226_vm3, %v1224_v4 }
 0x3f3   :  { %v376_v46 = vpop.f32.mrb[0].mxu1 }
 0x3f4   :  { %383 = vrot.lane.b32.xlu1 %v376_v46, %s1225_s29  ;;  %v1137_v47 = vpop.f32.mrb[1].mxu1 }
 0x3f5   :  { %v379_v48 = vpop.f32.mrb[2].mxu1 }
 0x3f6   :  { %v1138_v50 = vpop.f32.mrb[3].mxu1 }
 0x3f8   :  { %399 = vperm.xlu1 %1186, %v396_v49  }
 0x466   :  { %v384_v51 = vpop.permute.xlu1 %383 }
 0x467   :  { %387 = vst.msk [vmem:[#allocation3 + $0x8] sm:$0xf] %vm386_vm6, %v384_v51 }
 0x46e   :  { %v388_v52 = vld [vmem:[#allocation3 + $0x8] sm:$0xf] }
 0x46f   :  { %v395_v54 = vmul.f32 %v393_v53, %v388_v52  ;;  %v691_v53 = vld [vmem:[%s1756_s17] sm:$0xff] }
 0x477   :  { %v400_v55 = vpop.permute.xlu1 %399 }
 0x478   :  { %v402_v56 = vadd.f32 %v400_v55, %v395_v54 }
 0x47a   :  { %v403_v57 = vmax.f32 %v402_v56, 0.0 }
 0x47c   :  { %v404_v58 = vmul.f32 %v1371_v11, %v403_v57 }
 0x47e   :  { %412 = vrot.lane.b32.xlu1 %v404_v58, %s1217_s4  ;;  %408 = vrot.lane.b32.xlu0 %v404_v58, %s1216_s30  ;;  %406 = vst.msk [vmem:[#allocation2] sm:$0xf] %vm405_vm7, %v404_v58 }
 0x482   :  { %420 = vrot.lane.b32.xlu1 %v404_v58, %s1219_s23  ;;  %416 = vrot.lane.b32.xlu0 %v404_v58, %s1218_s6 }
 0x486   :  { %428 = vrot.lane.b32.xlu1 %v404_v58, %s1221_s8  ;;  %424 = vrot.lane.b32.xlu0 %v404_v58, %s1220_s5 }
 0x48a   :  { %436 = vrot.lane.b32.xlu1 %v404_v58, %s1223_s9  ;;  %432 = vrot.lane.b32.xlu0 %v404_v58, %s1222_s24 }
 0x48e   :  { %512 = vperm.xlu1 %1186, %v508_v59  }
 0x492   :  { %526 = vperm.xlu1 %1186, %v522_v60  }
 0x4f0   :  { %v413_v61 = vpop.permute.xlu1 %412  ;;  %v409_v62 = vpop.permute.xlu0 %408 }
 0x4f1   :  { %415 = vst.msk [vmem:[#allocation2 + $0x8] sm:$0xf] %vm405_vm7, %v413_v61  ;;  %411 = vst.msk [vmem:[#allocation2 + $0x4] sm:$0xf] %vm405_vm7, %v409_v62 }
 0x4f4   :  { %v421_v63 = vpop.permute.xlu1 %420  ;;  %v417_v1 = vpop.permute.xlu0 %416 }
 0x4f5   :  { %423 = vst.msk [vmem:[#allocation2 + $0x10] sm:$0xf] %vm405_vm7, %v421_v63  ;;  %419 = vst.msk [vmem:[#allocation2 + $0xc] sm:$0xf] %vm405_vm7, %v417_v1 }
 0x4f8   :  { %v429_v2 = vpop.permute.xlu1 %428  ;;  %v425_v3 = vpop.permute.xlu0 %424  ;;  %v441_v8 = vld [vmem:[#allocation2] sm:$0xff] }
 0x4f9   :  { %431 = vst.msk [vmem:[#allocation2 + $0x18] sm:$0xf] %vm405_vm7, %v429_v2  ;;  %427 = vst.msk [vmem:[#allocation2 + $0x14] sm:$0xf] %vm405_vm7, %v425_v3 }
 0x4fc   :  { %v437_v6 = vpop.permute.xlu1 %436  ;;  %v433_v7 = vpop.permute.xlu0 %432  ;;  %v442_v10 = vld [vmem:[#allocation2 + $0x8] sm:$0xff] }
 0x4fd   :  { %439 = vst.msk [vmem:[#allocation2 + $0x20] sm:$0xf] %vm405_vm7, %v437_v6  ;;  %435 = vst.msk [vmem:[#allocation2 + $0x1c] sm:$0xf] %vm405_vm7, %v433_v7  ;;  %v446_v12 = vpack.c.bf16 %v442_v10, %v441_v8 }
 0x4ff   :  { %1140 = vmatpush3.bf16.msra.mxu1 %v446_v12 }
 0x500   :  { %1141 = vmatprep.subr.bf16.mxu1 %v1224_v4  ;;  %v443_v13 = vld [vmem:[#allocation2 + $0x10] sm:$0xff] }
 0x504   :  { %v444_v15 = vld [vmem:[#allocation2 + $0x18] sm:$0xff]  ;;  %v445_v16 = vld [vmem:[#allocation2 + $0x20] sm:$0xf] }
 0x505   :  { %v447_v17 = vpack.c.bf16 %v444_v15, %v443_v13  ;;  %v448_v18 = vpack.c.bf16 %v445_v16, %v445_v16 }
 0x507   :  { %1142 = vmatpush3.bf16.msra.mxu1 %v447_v17  ;;  %v455_v19 = vsel %vm453_vm8, %v448_v18, 0 }
 0x508   :  { %1143 = vmatprep.subr.bf16.mxu1 %v1224_v4 }
 0x50b   :  { %1144 = vmatpush3.bf16.msra.mxu1 %v455_v19 }
 0x50c   :  { %645 = vmatprep.subr.bf16.mxu1 %v1215_v0 }
 0x50d   :  { %v513_v21 = vpop.permute.xlu1 %512 }
 0x50e   :  { %1146 = vmatmul.mubr.msk.bf16.vlgmr.msra.gmra.mrb[4].mxu1 %vm449_vm9, %v440_v20  ;;  %v520_v23 = vmul.f32 %v513_v21, %v1520_v22 }
 0x511   :  { %v527_v24 = vpop.permute.xlu1 %526 }
 0x512   :  { %v534_v25 = vadd.f32 %v527_v24, %v520_v23 }
 0x514   :  { %v536_v26 = vmax.f32 %v534_v25, 0.0 }
 0x516   :  { %v538_v27 = vmul.f32 %v1371_v11, %v536_v26 }
 0x518   :  { %540 = vst.msk [vmem:[#allocation2] sm:$0xff] %vm115_vm0, %v538_v27  ;;  %544 = vrot.lane.b32.xlu1 %v538_v27, %s1216_s30 }
 0x51c   :  { %552 = vrot.lane.b32.xlu1 %v538_v27, %s1217_s4 }
 0x51f   :  { %v609_v49 = vld [vmem:[#allocation2] sm:$0xff] }
 0x520   :  { %560 = vrot.lane.b32.xlu1 %v538_v27, %s1218_s6 }
 0x524   :  { %568 = vrot.lane.b32.xlu1 %v538_v27, %s1219_s23 }
 0x528   :  { %576 = vrot.lane.b32.xlu1 %v538_v27, %s1220_s5 }
 0x52c   :  { %584 = vrot.lane.b32.xlu1 %v538_v27, %s1221_s8 }
 0x530   :  { %592 = vrot.lane.b32.xlu1 %v538_v27, %s1222_s24 }
 0x534   :  { %600 = vrot.lane.b32.xlu1 %v538_v27, %s1223_s9 }
 0x58a   :  { %v545_v5 = vpop.permute.xlu1 %544 }
 0x58b   :  { %550 = vst.msk [vmem:[#allocation2 + $0x10] sm:$0xff] %vm115_vm0, %v545_v5 }
 0x58e   :  { %v553_v14 = vpop.permute.xlu1 %552 }
 0x58f   :  { %558 = vst.msk [vmem:[#allocation2 + $0x20] sm:$0xff] %vm115_vm0, %v553_v14 }
 0x592   :  { %v561_v28 = vpop.permute.xlu1 %560  ;;  %v611_v57 = vld [vmem:[#allocation2 + $0x10] sm:$0xff] }
 0x593   :  { %566 = vst.msk [vmem:[#allocation2 + $0x30] sm:$0xff] %vm115_vm0, %v561_v28 }
 0x596   :  { %v569_v29 = vpop.permute.xlu1 %568  ;;  %v613_v61 = vld [vmem:[#allocation2 + $0x20] sm:$0xff] }
 0x597   :  { %574 = vst.msk [vmem:[#allocation2 + $0x40] sm:$0xff] %vm115_vm0, %v569_v29 }
 0x59a   :  { %v577_v30 = vpop.permute.xlu1 %576  ;;  %v615_v2 = vld [vmem:[#allocation2 + $0x30] sm:$0xff] }
 0x59b   :  { %582 = vst.msk [vmem:[#allocation2 + $0x50] sm:$0xff] %vm115_vm0, %v577_v30 }
 0x59e   :  { %v585_v31 = vpop.permute.xlu1 %584  ;;  %v617_v8 = vld [vmem:[#allocation2 + $0x40] sm:$0xff] }
 0x59f   :  { %590 = vst.msk [vmem:[#allocation2 + $0x60] sm:$0xff] %vm115_vm0, %v585_v31  ;;  %v698_v31 = vld [vmem:[%s1757_s18] sm:$0xff] }
 0x5a2   :  { %v593_v32 = vpop.permute.xlu1 %592  ;;  %v619_v15 = vld [vmem:[#allocation2 + $0x50] sm:$0xff] }
 0x5a3   :  { %598 = vst.msk [vmem:[#allocation2 + $0x70] sm:$0xff] %vm115_vm0, %v593_v32 }
 0x5a6   :  { %v601_v33 = vpop.permute.xlu1 %600  ;;  %v621_v19 = vld [vmem:[#allocation2 + $0x60] sm:$0xff] }
 0x5a7   :  { %606 = vst.msk [vmem:[#allocation2 + $0x80] sm:$0xff] %vm115_vm0, %v601_v33 }
 0x5aa   :  { %v623_v23 = vld [vmem:[#allocation2 + $0x70] sm:$0xff] }
 0x5ae   :  { %v625_v26 = vld [vmem:[#allocation2 + $0x80] sm:$0xff] }
 0x5e1   :  { %v491_v34 = vpop.f32.mrb[4].mxu1 }
 0x5e2   :  { %498 = vrot.lane.b32.xlu0 %v491_v34, %s1225_s29  ;;  %v1147_v35 = vpop.f32.mrb[5].mxu1 }
 0x5e3   :  { %v494_v36 = vpop.f32.mrb[6].mxu1 }
 0x5e4   :  { %v1148_v38 = vpop.f32.mrb[7].mxu1 }
 0x5e6   :  { %517 = vperm.xlu0 %1185, %v509_v37  }
 0x5ea   :  { %531 = vperm.xlu0 %1185, %v523_v39  }
 0x654   :  { %v499_v40 = vpop.permute.xlu0 %498 }
 0x655   :  { %501 = vst.msk [vmem:[#allocation3 + $0xc] sm:$0xf] %vm386_vm6, %v499_v40 }
 0x65c   :  { %v503_v41 = vld [vmem:[#allocation3 + $0x8] sm:$0xff] }
 0x65d   :  { %v1551_v43 = vadd.f32 %v503_v41, %v1366_v9  ;;  %v1567_v9 = vld [vmem:[%s1755_s13] sm:$0xff] }
 0x65e   :  { %v1085_v52 = vcombine.high %v1567_v9, %v1567_v9  ;;  %v1084_v14 = vcombine.low %v1567_v9, %v1567_v9  ;;  %v808_v41 = vld [vmem:[%s1758_s20] sm:$0xf] }
 0x660   :  { %1086 = vmatprep.mubr.msk.bf16.mxu1 %vm218_vm1, %v1085_v52 }
 0x665   :  { %v518_v42 = vpop.permute.xlu0 %517 }
 0x666   :  { %v521_v44 = vmul.f32 %v518_v42, %v1551_v43 }
 0x669   :  { %v532_v45 = vpop.permute.xlu0 %531 }
 0x66a   :  { %v535_v46 = vadd.f32 %v532_v45, %v521_v44 }
 0x66c   :  { %v537_v47 = vmax.f32 %v535_v46, 0.0 }
 0x66e   :  { %v539_v48 = vmul.f32 %v1371_v11, %v537_v47 }
 0x670   :  { %541 = vst.msk [vmem:[#allocation2 + $0x8] sm:$0xff] %vm115_vm0, %v539_v48  ;;  %546 = vrot.lane.b32.xlu0 %v539_v48, %s1216_s30 }
 0x674   :  { %554 = vrot.lane.b32.xlu0 %v539_v48, %s1217_s4 }
 0x677   :  { %v610_v50 = vld [vmem:[#allocation2 + $0x8] sm:$0xff] }
 0x678   :  { %562 = vrot.lane.b32.xlu0 %v539_v48, %s1218_s6  ;;  %v627_v51 = vpack.c.bf16 %v610_v50, %v609_v49 }
 0x67a   :  { %646 = vmatpush1.bf16.msra.mxu1 %v627_v51 }
 0x67b   :  { %647 = vmatprep.subr.bf16.mxu1 %v1215_v0 }
 0x67c   :  { %570 = vrot.lane.b32.xlu0 %v539_v48, %s1219_s23 }
 0x680   :  { %578 = vrot.lane.b32.xlu0 %v539_v48, %s1220_s5 }
 0x684   :  { %586 = vrot.lane.b32.xlu0 %v539_v48, %s1221_s8 }
 0x688   :  { %594 = vrot.lane.b32.xlu0 %v539_v48, %s1222_s24 }
 0x68c   :  { %602 = vrot.lane.b32.xlu0 %v539_v48, %s1223_s9 }
 0x690   :  { %694 = vperm.xlu0 %1185, %v691_v53  }
 0x6e2   :  { %v547_v54 = vpop.permute.xlu0 %546 }
 0x6e3   :  { %551 = vst.msk [vmem:[#allocation2 + $0x18] sm:$0xff] %vm115_vm0, %v547_v54 }
 0x6e6   :  { %v555_v55 = vpop.permute.xlu0 %554 }
 0x6e7   :  { %559 = vst.msk [vmem:[#allocation2 + $0x28] sm:$0xff] %vm115_vm0, %v555_v55 }
 0x6ea   :  { %v563_v56 = vpop.permute.xlu0 %562  ;;  %v612_v58 = vld [vmem:[#allocation2 + $0x18] sm:$0xff] }
 0x6eb   :  { %567 = vst.msk [vmem:[#allocation2 + $0x38] sm:$0xff] %vm115_vm0, %v563_v56  ;;  %v628_v59 = vpack.c.bf16 %v612_v58, %v611_v57 }
 0x6ed   :  { %648 = vmatpush1.bf16.msra.mxu1 %v628_v59 }
 0x6ee   :  { %v571_v60 = vpop.permute.xlu0 %570  ;;  %649 = vmatprep.subr.bf16.mxu1 %v1215_v0  ;;  %v614_v62 = vld [vmem:[#allocation2 + $0x28] sm:$0xff] }
 0x6ef   :  { %575 = vst.msk [vmem:[#allocation2 + $0x48] sm:$0xff] %vm115_vm0, %v571_v60  ;;  %v629_v63 = vpack.c.bf16 %v614_v62, %v613_v61 }
 0x6f1   :  { %650 = vmatpush1.bf16.msra.mxu1 %v629_v63 }
 0x6f2   :  { %v579_v1 = vpop.permute.xlu0 %578  ;;  %651 = vmatprep.subr.bf16.mxu1 %v1215_v0  ;;  %v616_v3 = vld [vmem:[#allocation2 + $0x38] sm:$0xff] }
 0x6f3   :  { %583 = vst.msk [vmem:[#allocation2 + $0x58] sm:$0xff] %vm115_vm0, %v579_v1  ;;  %v630_v6 = vpack.c.bf16 %v616_v3, %v615_v2  ;;  %v741_v2 = vld [vmem:[%s1759_s16] sm:$0x3] }
 0x6f5   :  { %652 = vmatpush1.bf16.msra.mxu1 %v630_v6 }
 0x6f6   :  { %v587_v7 = vpop.permute.xlu0 %586  ;;  %653 = vmatprep.subr.bf16.mxu1 %v1215_v0  ;;  %v618_v10 = vld [vmem:[#allocation2 + $0x48] sm:$0xff] }
 0x6f7   :  { %591 = vst.msk [vmem:[#allocation2 + $0x68] sm:$0xff] %vm115_vm0, %v587_v7  ;;  %v631_v12 = vpack.c.bf16 %v618_v10, %v617_v8  ;;  %v815_v8 = vld [vmem:[%s1760_s21] sm:$0xf] }
 0x6f9   :  { %654 = vmatpush1.bf16.msra.mxu1 %v631_v12 }
 0x6fa   :  { %v595_v13 = vpop.permute.xlu0 %594  ;;  %655 = vmatprep.subr.bf16.mxu1 %v1215_v0  ;;  %v620_v16 = vld [vmem:[#allocation2 + $0x58] sm:$0xff] }
 0x6fb   :  { %599 = vst.msk [vmem:[#allocation2 + $0x78] sm:$0xff] %vm115_vm0, %v595_v13  ;;  %v632_v17 = vpack.c.bf16 %v620_v16, %v619_v15 }
 0x6fd   :  { %656 = vmatpush1.bf16.msra.mxu1 %v632_v17 }
 0x6fe   :  { %v603_v18 = vpop.permute.xlu0 %602  ;;  %657 = vmatprep.subr.bf16.mxu1 %v1215_v0  ;;  %v622_v20 = vld [vmem:[#allocation2 + $0x68] sm:$0xff] }
 0x6ff   :  { %607 = vst.msk [vmem:[#allocation2 + $0x88] sm:$0xff] %vm115_vm0, %v603_v18  ;;  %v633_v21 = vpack.c.bf16 %v622_v20, %v621_v19 }
 0x701   :  { %658 = vmatpush1.bf16.msra.mxu1 %v633_v21 }
 0x702   :  { %659 = vmatprep.subr.bf16.mxu1 %v1215_v0  ;;  %v624_v24 = vld [vmem:[#allocation2 + $0x78] sm:$0xff] }
 0x703   :  { %v634_v25 = vpack.c.bf16 %v624_v24, %v623_v23 }
 0x705   :  { %660 = vmatpush1.bf16.msra.mxu1 %v634_v25 }
 0x706   :  { %661 = vmatprep.subr.bf16.mxu1 %v1215_v0  ;;  %v626_v27 = vld [vmem:[#allocation2 + $0x88] sm:$0xff] }
 0x707   :  { %v635_v5 = vpack.c.bf16 %v626_v27, %v625_v26 }
 0x709   :  { %662 = vmatpush1.bf16.msra.mxu1 %v635_v5 }
 0x70a   :  { %1149 = vmatprep.subr.bf16.mxu1 %v1224_v4 }
 0x70c   :  { %678 = vmatmul.mubr.bf16.vlgmr.msra.gmra.mrb[8].mxu1 %v1084_v14 }
 0x70d   :  { %1159 = vmatprep.mubr.msk.bf16.mxu1 %vm1226_vm3, %v1224_v4 }
 0x70f   :  { %v695_v35 = vpop.permute.xlu0 %694 }
 0x7df   :  { %v679_v28 = vpop.f32.mrb[8].mxu1 }
 0x7e0   :  { %686 = vrot.lane.b32.xlu1 %v679_v28, %s1225_s29  ;;  %v681_v29 = vpop.f32.mrb[9].mxu1 }
 0x7e1   :  { %v682_v30 = vpop.f32.mrb[10].mxu1 }
 0x7e2   :  { %v683_v32 = vpop.f32.mrb[11].mxu1 }
 0x7e4   :  { %701 = vperm.xlu1 %1186, %v698_v31  }
 0x852   :  { %v687_v33 = vpop.permute.xlu1 %686 }
 0x853   :  { %689 = vst.msk [vmem:[#allocation4] sm:$0xff] %vm266_vm2, %v687_v33 }
 0x85a   :  { %v1601_v34 = vld [vmem:[#allocation4] sm:$0xff] }
 0x85b   :  { %v697_v36 = vmul.f32 %v695_v35, %v1601_v34 }
 0x863   :  { %v702_v37 = vpop.permute.xlu1 %701 }
 0x864   :  { %v704_v38 = vadd.f32 %v702_v37, %v697_v36  ;;  %v858_v37 = vld [vmem:[%s1761_s19] sm:$0x3] }
 0x866   :  { %v705_v39 = vmax.f32 %v704_v38, 0.0  ;;  %v1191_v38 = vld [vmem:[%s1762_s3] ss:$8 sps:$4 sm:$0xff]  }
 0x868   :  { %v706_v40 = vmul.f32 %v1371_v11, %v705_v39  ;;  %v1193_v39 = vld [vmem:[%s1762_s3 + $0x4] ss:$8 sps:$4 sm:$0xff]  }
 0x86a   :  { %707 = vst.msk [vmem:[#allocation2] sm:$0xff] %vm115_vm0, %v706_v40  ;;  %713 = vrot.lane.b32.xlu1 %v706_v40, %s1217_s4  ;;  %709 = vrot.lane.b32.xlu0 %v706_v40, %s1216_s30 }
 0x86e   :  { %721 = vrot.lane.b32.xlu1 %v706_v40, %s1219_s23  ;;  %717 = vrot.lane.b32.xlu0 %v706_v40, %s1218_s6 }
 0x871   :  { %v742_v49 = vld [vmem:[#allocation2] sm:$0xff] }
 0x872   :  { %729 = vrot.lane.b32.xlu1 %v706_v40, %s1221_s8  ;;  %725 = vrot.lane.b32.xlu0 %v706_v40, %s1220_s5 }
 0x876   :  { %737 = vrot.lane.b32.xlu1 %v706_v40, %s1223_s9  ;;  %733 = vrot.lane.b32.xlu0 %v706_v40, %s1222_s24  ;;  %v1194_v40 = vld [vmem:[%s1762_s3 + $0x10] ss:$8 sps:$4 sm:$0xff]  }
 0x87a   :  { %811 = vperm.xlu1 %1186, %v808_v41   ;;  %v1197_v41 = vld [vmem:[%s1762_s3 + $0x20] ss:$8 sps:$4 sm:$0xff]  }
 0x8dc   :  { %v714_v42 = vpop.permute.xlu1 %713  ;;  %v710_v44 = vpop.permute.xlu0 %709 }
 0x8dd   :  { %716 = vst.msk [vmem:[#allocation2 + $0x10] sm:$0xff] %vm115_vm0, %v714_v42  ;;  %712 = vst.msk [vmem:[#allocation2 + $0x8] sm:$0xff] %vm115_vm0, %v710_v44  ;;  %v1202_v42 = vld [vmem:[%s1762_s3 + $0x34] ss:$8 sps:$4 sm:$0xff]   ;;  %v1200_v44 = vld [vmem:[%s1762_s3 + $0x30] ss:$8 sps:$4 sm:$0xff]  }
 0x8e0   :  { %v722_v45 = vpop.permute.xlu1 %721  ;;  %v718_v46 = vpop.permute.xlu0 %717 }
 0x8e1   :  { %724 = vst.msk [vmem:[#allocation2 + $0x20] sm:$0xff] %vm115_vm0, %v722_v45  ;;  %720 = vst.msk [vmem:[#allocation2 + $0x18] sm:$0xff] %vm115_vm0, %v718_v46  ;;  %v1205_v45 = vld [vmem:[%s1762_s3 + $0x44] ss:$8 sps:$4 sm:$0xff]   ;;  %v1203_v46 = vld [vmem:[%s1762_s3 + $0x40] ss:$8 sps:$4 sm:$0xff]  }
 0x8e4   :  { %v730_v47 = vpop.permute.xlu1 %729  ;;  %v726_v48 = vpop.permute.xlu0 %725  ;;  %v743_v50 = vld [vmem:[#allocation2 + $0x8] sm:$0xff]  ;;  %v744_v53 = vld [vmem:[#allocation2 + $0x10] sm:$0xff] }
 0x8e5   :  { %732 = vst.msk [vmem:[#allocation2 + $0x30] sm:$0xff] %vm115_vm0, %v730_v47  ;;  %728 = vst.msk [vmem:[#allocation2 + $0x28] sm:$0xff] %vm115_vm0, %v726_v48  ;;  %v751_v51 = vpack.c.bf16 %v743_v50, %v742_v49  ;;  %v1208_v47 = vld [vmem:[%s1762_s3 + $0x54] ss:$8 sps:$4 sm:$0xff]   ;;  %v1206_v48 = vld [vmem:[%s1762_s3 + $0x50] ss:$8 sps:$4 sm:$0xff]  }
 0x8e6   :  { %v1211_v49 = vld [vmem:[%s1762_s3 + $0x64] ss:$8 sps:$4 sm:$0xff]   ;;  %v1209_v50 = vld [vmem:[%s1762_s3 + $0x60] ss:$8 sps:$4 sm:$0xff]  }
 0x8e7   :  { %1150 = vmatpush3.bf16.msra.mxu1 %v751_v51  ;;  %v1214_v51 = vld [vmem:[%s1762_s3 + $0x74] ss:$8 sps:$4 sm:$0xff]  }
 0x8e8   :  { %v738_v9 = vpop.permute.xlu1 %737  ;;  %v734_v52 = vpop.permute.xlu0 %733  ;;  %1151 = vmatprep.subr.bf16.mxu1 %v1224_v4  ;;  %v745_v54 = vld [vmem:[#allocation2 + $0x18] sm:$0xff]  ;;  %v746_v56 = vld [vmem:[#allocation2 + $0x20] sm:$0xff] }
 0x8e9   :  { %740 = vst.msk [vmem:[#allocation2 + $0x40] sm:$0xff] %vm115_vm0, %v738_v9  ;;  %736 = vst.msk [vmem:[#allocation2 + $0x38] sm:$0xff] %vm115_vm0, %v734_v52  ;;  %v752_v55 = vpack.c.bf16 %v745_v54, %v744_v53  ;;  %v1212_v9 = vld [vmem:[%s1762_s3 + $0x70] ss:$8 sps:$4 sm:$0xff]  }
 0x8eb   :  { %1152 = vmatpush3.bf16.msra.mxu1 %v752_v55 }
 0x8ec   :  { %1153 = vmatprep.subr.bf16.mxu1 %v1224_v4  ;;  %v747_v57 = vld [vmem:[#allocation2 + $0x28] sm:$0xff]  ;;  %v748_v59 = vld [vmem:[#allocation2 + $0x30] sm:$0xff] }
 0x8ed   :  { %v753_v58 = vpack.c.bf16 %v747_v57, %v746_v56 }
 0x8ef   :  { %1154 = vmatpush3.bf16.msra.mxu1 %v753_v58  ;;  %v920_v58 = vadd.f32 %v1601_v34, %v1520_v22  ;;  %v925_v22 = vld [vmem:[%s1763_s1 + $0x18] sm:$0xff] }
 0x8f0   :  { %1155 = vmatprep.subr.bf16.mxu1 %v1224_v4  ;;  %v749_v60 = vld [vmem:[#allocation2 + $0x38] sm:$0xff]  ;;  %v750_v61 = vld [vmem:[#allocation2 + $0x40] sm:$0xff] }
 0x8f1   :  { %v754_v62 = vpack.c.bf16 %v749_v60, %v748_v59  ;;  %v755_v63 = vpack.c.bf16 %v750_v61, %v750_v61  ;;  %v922_v61 = vld [vmem:[%s1763_s1] sm:$0xff] }
 0x8f3   :  { %1156 = vmatpush3.bf16.msra.mxu1 %v754_v62  ;;  %v760_v1 = vsel %vm338_vm4, %v755_v63, 0  ;;  %v923_v62 = vld [vmem:[%s1763_s1 + $0x8] sm:$0xff] }
 0x8f4   :  { %1157 = vmatprep.subr.bf16.mxu1 %v1224_v4 }
 0x8f7   :  { %1158 = vmatpush3.bf16.msra.mxu1 %v760_v1  ;;  %v924_v1 = vld [vmem:[%s1763_s1 + $0x10] sm:$0xff] }
 0x8f9   :  { %v812_v15 = vpop.permute.xlu1 %811 }
 0x8fa   :  { %1160 = vmatmul.mubr.msk.bf16.vlgmr.msra.gmra.mrb[12].mxu1 %vm334_vm5, %v741_v2 }
 0x9cd   :  { %v796_v3 = vpop.f32.mrb[12].mxu1 }
 0x9ce   :  { %803 = vrot.lane.b32.xlu0 %v796_v3, %s1225_s29  ;;  %v1161_v6 = vpop.f32.mrb[13].mxu1 }
 0x9cf   :  { %v799_v7 = vpop.f32.mrb[14].mxu1 }
 0x9d0   :  { %v1162_v10 = vpop.f32.mrb[15].mxu1 }
 0x9d2   :  { %818 = vperm.xlu0 %1185, %v815_v8  }
 0xa40   :  { %v804_v12 = vpop.permute.xlu0 %803 }
 0xa41   :  { %806 = vst.msk [vmem:[#allocation4 + $0x8] sm:$0xf] %vm386_vm6, %v804_v12 }
 0xa48   :  { %v807_v13 = vld [vmem:[#allocation4 + $0x8] sm:$0xf] }
 0xa49   :  { %v814_v16 = vmul.f32 %v812_v15, %v807_v13 }
 0xa51   :  { %v819_v17 = vpop.permute.xlu0 %818 }
 0xa52   :  { %v821_v18 = vadd.f32 %v819_v17, %v814_v16 }
 0xa54   :  { %v822_v19 = vmax.f32 %v821_v18, 0.0 }
 0xa56   :  { %v823_v20 = vmul.f32 %v1371_v11, %v822_v19 }
 0xa58   :  { %824 = vst.msk [vmem:[#allocation2] sm:$0xf] %vm405_vm7, %v823_v20  ;;  %830 = vrot.lane.b32.xlu0 %v823_v20, %s1217_s4  ;;  %826 = vrot.lane.b32.xlu1 %v823_v20, %s1216_s30 }
 0xa5c   :  { %838 = vrot.lane.b32.xlu0 %v823_v20, %s1219_s23  ;;  %834 = vrot.lane.b32.xlu1 %v823_v20, %s1218_s6 }
 0xa60   :  { %846 = vrot.lane.b32.xlu0 %v823_v20, %s1221_s8  ;;  %842 = vrot.lane.b32.xlu1 %v823_v20, %s1220_s5 }
 0xa64   :  { %854 = vrot.lane.b32.xlu0 %v823_v20, %s1223_s9  ;;  %850 = vrot.lane.b32.xlu1 %v823_v20, %s1222_s24 }
 0xaca   :  { %v831_v21 = vpop.permute.xlu0 %830  ;;  %v827_v11 = vpop.permute.xlu1 %826 }
 0xacb   :  { %833 = vst.msk [vmem:[#allocation2 + $0x8] sm:$0xf] %vm405_vm7, %v831_v21  ;;  %829 = vst.msk [vmem:[#allocation2 + $0x4] sm:$0xf] %vm405_vm7, %v827_v11 }
 0xace   :  { %v839_v23 = vpop.permute.xlu0 %838  ;;  %v835_v24 = vpop.permute.xlu1 %834 }
 0xacf   :  { %841 = vst.msk [vmem:[#allocation2 + $0x10] sm:$0xf] %vm405_vm7, %v839_v23  ;;  %837 = vst.msk [vmem:[#allocation2 + $0xc] sm:$0xf] %vm405_vm7, %v835_v24 }
 0xad2   :  { %v847_v25 = vpop.permute.xlu0 %846  ;;  %v843_v26 = vpop.permute.xlu1 %842  ;;  %v859_v14 = vld [vmem:[#allocation2] sm:$0xff] }
 0xad3   :  { %849 = vst.msk [vmem:[#allocation2 + $0x18] sm:$0xf] %vm405_vm7, %v847_v25  ;;  %845 = vst.msk [vmem:[#allocation2 + $0x14] sm:$0xf] %vm405_vm7, %v843_v26 }
 0xad6   :  { %v855_v27 = vpop.permute.xlu0 %854  ;;  %v851_v5 = vpop.permute.xlu1 %850  ;;  %v860_v28 = vld [vmem:[#allocation2 + $0x8] sm:$0xff] }
 0xad7   :  { %857 = vst.msk [vmem:[#allocation2 + $0x20] sm:$0xf] %vm405_vm7, %v855_v27  ;;  %853 = vst.msk [vmem:[#allocation2 + $0x1c] sm:$0xf] %vm405_vm7, %v851_v5  ;;  %v864_v29 = vpack.c.bf16 %v860_v28, %v859_v14 }
 0xad9   :  { %1164 = vmatpush3.bf16.msra.mxu0 %v864_v29 }
 0xada   :  { %1165 = vmatprep.subr.bf16.mxu0 %v1224_v4  ;;  %v861_v30 = vld [vmem:[#allocation2 + $0x10] sm:$0xff] }
 0xade   :  { %v862_v31 = vld [vmem:[#allocation2 + $0x18] sm:$0xff]  ;;  %v863_v32 = vld [vmem:[#allocation2 + $0x20] sm:$0xf] }
 0xadf   :  { %v865_v33 = vpack.c.bf16 %v862_v31, %v861_v30  ;;  %v866_v35 = vpack.c.bf16 %v863_v32, %v863_v32 }
 0xae1   :  { %1166 = vmatpush3.bf16.msra.mxu0 %v865_v33  ;;  %v871_v36 = vsel %vm453_vm8, %v866_v35, 0 }
 0xae2   :  { %1167 = vmatprep.subr.bf16.mxu0 %v1224_v4  ;;  %v1196_v4 = vld [vmem:[%s1762_s3 + $0x14] ss:$8 sps:$4 sm:$0xff]  }
 0xae5   :  { %1168 = vmatpush3.bf16.msra.mxu0 %v871_v36 }
 0xae6   :  { %1023 = vmatprep.subr.bf16.mxu0 %v1193_v39 }
 0xae8   :  { %1170 = vmatmul.mubr.msk.bf16.vlgmr.msra.gmra.mrb[4].mxu0 %vm449_vm9, %v858_v37 }
 0xae9   :  { %1055 = vmatprep.mubr.bf16.mxu0 %v1215_v0  ;;  %1024 = vmatpush1.bf16.msra.mxu0 %v1191_v38  ;;  %v1199_v0 = vld [vmem:[%s1762_s3 + $0x24] ss:$8 sps:$4 sm:$0xff]  }
 0xaea   :  { %1025 = vmatprep.subr.bf16.mxu0 %v1196_v4 }
 0xaed   :  { %1026 = vmatpush1.bf16.msra.mxu0 %v1194_v40 }
 0xaee   :  { %1027 = vmatprep.subr.bf16.mxu0 %v1199_v0 }
 0xaf1   :  { %1028 = vmatpush1.bf16.msra.mxu0 %v1197_v41 }
 0xaf2   :  { %1029 = vmatprep.subr.bf16.mxu0 %v1202_v42 }
 0xaf5   :  { %1030 = vmatpush1.bf16.msra.mxu0 %v1200_v44 }
 0xaf6   :  { %1031 = vmatprep.subr.bf16.mxu0 %v1205_v45 }
 0xaf9   :  { %1032 = vmatpush1.bf16.msra.mxu0 %v1203_v46 }
 0xafa   :  { %1033 = vmatprep.subr.bf16.mxu0 %v1208_v47 }
 0xafd   :  { %1034 = vmatpush1.bf16.msra.mxu0 %v1206_v48 }
 0xafe   :  { %1035 = vmatprep.subr.bf16.mxu0 %v1211_v49 }
 0xb01   :  { %1036 = vmatpush1.bf16.msra.mxu0 %v1209_v50 }
 0xb02   :  { %1037 = vmatprep.subr.bf16.mxu0 %v1214_v51 }
 0xb05   :  { %1038 = vmatpush1.bf16.msra.mxu0 %v1212_v9 }
 0xbbb   :  { %v907_v52 = vpop.f32.mrb[4].mxu0 }
 0xbbc   :  { %914 = vrot.lane.b32.xlu1 %v907_v52, %s1225_s29  ;;  %v1171_v53 = vpop.f32.mrb[5].mxu0 }
 0xbbd   :  { %v910_v54 = vpop.f32.mrb[6].mxu0 }
 0xbbe   :  { %v1172_v55 = vpop.f32.mrb[7].mxu0 }
 0xc2e   :  { %v915_v56 = vpop.permute.xlu1 %914 }
 0xc2f   :  { %917 = vst.msk [vmem:[#allocation4 + $0xc] sm:$0xf] %vm386_vm6, %v915_v56 }
 0xc36   :  { %v919_v57 = vld [vmem:[#allocation4 + $0x8] sm:$0xff] }
 0xc37   :  { %v921_v59 = vadd.f32 %v919_v57, %v1551_v43 }
 0xc39   :  { %v926_v60 = vpack.c.bf16 %v921_v59, %v920_v58 }
 0xc3b   :  { %1056 = vmatmul.mubr.bf16.vlgmr.msra.gmra.mrb[8].mxu0 %v926_v60 }
 0xd0e   :  { %v1057_v63 = vpop.f32.mrb[8].mxu0 }
 0xd0f   :  { %v1066_v2 = vadd.f32 %v1057_v63, %v922_v61  ;;  %v1059_v3 = vpop.f32.mrb[9].mxu0 }
 0xd10   :  { %v1067_v43 = vadd.f32 %v1059_v3, %v923_v62  ;;  %v1061_v34 = vpop.f32.mrb[10].mxu0 }
 0xd11   :  { %1070 = vst [vmem:[%s1764_s22] sm:$0xff] %v1066_v2  ;;  %v1068_v6 = vadd.f32 %v1061_v34, %v924_v1  ;;  %v1063_v7 = vpop.f32.mrb[11].mxu0 }
 0xd12   :  { %1071 = vst [vmem:[%s1764_s22 + $0x8] sm:$0xff] %v1067_v43  ;;  %v1069_v8 = vadd.f32 %v1063_v7, %v925_v22 }
 0xd13   :  { %1072 = vst [vmem:[%s1764_s22 + $0x10] sm:$0xff] %v1068_v6 }
 0xd14   :  { %1073 = vst [vmem:[%s1764_s22 + $0x18] sm:$0xff] %v1069_v8 }

// kernel: hourglass_nchw.5
= control target key start
LH: loop header
LB: loop body
LE: loop exit
PB: predicated region body
PF: predicated region fallthrough
CT: control target
= control target key end

     0   :  { %v1545_v0 = vmov 0   ;;  %v120_v5 = vlaneseq  ;;  %vm135_vm0 = vcmask 408576   ;;  %s1548_s27 = smov 118   ;;  %s1550_s28 = smov 116   ;;  %vm356_vm1 = vcmask 130048   ;;  %s2162_s6 = inlined_call_operand.vmem [shape: f32[16,1], index: 6, kind: input, shape index: {}]   ;;  %s2163_s5 = inlined_call_operand.vmem [shape: f32[16,1], index: 5, kind: input, shape index: {}]   ;;  %s2164_s0 = inlined_call_operand.vmem [shape: f32[16,256], index: 0, kind: input, shape index: {}]   ;;  %s2165_s1 = inlined_call_operand.vmem [shape: f32[1,256], index: 1, kind: input, shape index: {}]   ;;  %s2166_s4 = inlined_call_operand.vmem [shape: bf16[8,144], index: 4, kind: input, shape index: {}]   ;;  %s2167_s8 = inlined_call_operand.vmem [shape: f32[8,1], index: 8, kind: input, shape index: {}]   ;;  %s2168_s9 = inlined_call_operand.vmem [shape: f32[8,1], index: 9, kind: input, shape index: {}]   ;;  %s2169_s22 = inlined_call_operand.vmem [shape: f32[16,256], index: 22, kind: output, shape index: {0}]   ;;  %s2170_s7 = inlined_call_operand.vmem [shape: bf16[4,72], index: 7, kind: input, shape index: {}]   ;;  %s2171_s11 = inlined_call_operand.vmem [shape: f32[4,1], index: 11, kind: input, shape index: {}]   ;;  %s2172_s12 = inlined_call_operand.vmem [shape: f32[4,1], index: 12, kind: input, shape index: {}]   ;;  %s2173_s14 = inlined_call_operand.vmem [shape: f32[16,1], index: 14, kind: input, shape index: {}]   ;;  %s2174_s3 = inlined_call_operand.vmem [shape: bf16[256,128], index: 3, kind: input, shape index: {}]   ;;  %s2175_s15 = inlined_call_operand.vmem [shape: f32[16,1], index: 15, kind: input, shape index: {}]   ;;  %s2176_s10 = inlined_call_operand.vmem [shape: bf16[4,36], index: 10, kind: input, shape index: {}]   ;;  %s2177_s2 = inlined_call_operand.vmem [shape: f32[1,128], index: 2, kind: input, shape index: {}]   ;;  %s2178_s13 = inlined_call_operand.vmem [shape: bf16[8,144], index: 13, kind: input, shape index: {}]   ;;  %s2179_s17 = inlined_call_operand.vmem [shape: f32[8,1], index: 17, kind: input, shape index: {}]   ;;  %s2180_s18 = inlined_call_operand.vmem [shape: f32[8,1], index: 18, kind: input, shape index: {}]   ;;  %s2181_s23 = inlined_call_operand.vmem [shape: f32[16,128], index: 23, kind: output, shape index: {1}]   ;;  %s2182_s20 = inlined_call_operand.vmem [shape: f32[4,1], index: 20, kind: input, shape index: {}]   ;;  %s2183_s16 = inlined_call_operand.vmem [shape: bf16[4,72], index: 16, kind: input, shape index: {}]   ;;  %s2184_s21 = inlined_call_operand.vmem [shape: f32[4,1], index: 21, kind: input, shape index: {}]   ;;  %s2185_s19 = inlined_call_operand.vmem [shape: bf16[4,36], index: 19, kind: input, shape index: {}]  }
   0x1   :  { %2194 = sst [smem:[#allocation5_spill]] %s2162_s6  ;;  %1519 = vset.pattern.permute.xlu1 %v1545_v0  ;;  %1518 = vset.pattern.permute.xlu0 %v1545_v0  ;;  %s2192_s6 = smov 107   ;;  %vm151_vm2 = vcmask 1039360   ;;  %vm170_vm3 = vcmask 1031168   ;;  %vm189_vm4 = vcmask 965632   ;;  %vm208_vm5 = vcmask 957440  }
   0x2   :  { %2195 = sst [smem:[#allocation6_spill]] %s2163_s5  ;;  %s2202_s24 = sld [smem:[#allocation5_spill]]  ;;  %585 = vmatprep.mubr.bf16.mxu1 %v1545_v0  ;;  %v121_v6 = vshrl.u32 %v120_v5, 7  ;;  %vm227_vm6 = vcmask 949248   ;;  %vm246_vm7 = vcmask 883712   ;;  %vm265_vm8 = vcmask 875520  }
   0x3   :  { %2196 = sst [smem:[#allocation7_spill]] %s2164_s0  ;;  %s2203_s5 = sld [smem:[#allocation6_spill]]  ;;  %vm284_vm9 = vcmask 867328   ;;  %vm411_vm10 = vcmask 1047640   ;;  %vm407_vm11 = vcmask 89088   ;;  %vm413_vm12 = vcmask 498688  }
   0x4   :  { %2197 = sst [smem:[#allocation8_spill]] %s2165_s1  ;;  %s2204_s29 = sld [smem:[#allocation7_spill]]  ;;  %v122_v9 = vsub.s32 0, %v121_v6  ;;  %v126_v10 = vsub.s32 1, %v121_v6  ;;  %vm546_vm13 = vcmask 1043456   ;;  %vm542_vm14 = vcmask 588800  }
   0x5   :  { %2198 = sst [smem:[#allocation9_spill]] %s2166_s4  ;;  %s1546_s0 = smov 127   ;;  %vm603_vm15 = vcmask 1043544  }
   0x6   :  { %2199 = sst [smem:[#allocation10_spill]] %s2167_s8  ;;  %s1551_s1 = smov 108  }
   0x7   :  { %2200 = sst [smem:[#allocation11_spill]] %s2168_s9  ;;  %s1547_s9 = smov 126  }
   0x8   :  { %2201 = sst [smem:[#allocation12_spill]] %s2169_s22  ;;  %v99_v1 = vld [vmem:[%s2202_s24] sm:$0xff]  ;;  %v100_v3 = vld [vmem:[%s2202_s24 + $0x8] sm:$0xff]  ;;  %s2205_s24 = sld [smem:[#allocation8_spill]] }
   0x9   :  { %v83_v2 = vld [vmem:[%s2203_s5] sm:$0xff]  ;;  %103 = vperm.xlu1 %1519, %v99_v1   ;;  %v84_v4 = vld [vmem:[%s2203_s5 + $0x8] sm:$0xff]  ;;  %s1549_s22 = smov 117   ;;  %s2190_s4 = smov 106  }
   0xa   :  { %87 = vperm.xlu0 %1518, %v83_v2   ;;  %v1701_v7 = vld [vmem:[%s2204_s29] sm:$0xff]  ;;  %v1706_v8 = vld [vmem:[%s2204_s29 + $0x8] sm:$0xff]  ;;  %v76_v16 = vld [vmem:[%s2204_s29 + $0x10] sm:$0xff]  ;;  %s2206_s25 = sld [smem:[#allocation9_spill]]  ;;  %s1555_s8 = smov 11  }
   0xb   :  { %v1719_v17 = vld [vmem:[%s2204_s29 + $0x18] sm:$0xff]  ;;  %s2207_s30 = sld [smem:[#allocation10_spill]]  ;;  %s1559_s26 = smov 115  }
   0xd   :  { %108 = vperm.xlu1 %1519, %v100_v3  }
   0xe   :  { %92 = vperm.xlu0 %1518, %v84_v4   ;;  %v78_v13 = vld [vmem:[%s2205_s24] sm:$0x3] }
   0xf   :  { %v1721_v20 = vrot.slane %v78_v13, %v122_v9  ;;  %v1723_v21 = vrot.slane %v78_v13, %v126_v10 }
  0x10   :  { %v1765_v40 = vld [vmem:[%s2206_s25] sm:$0xff]  ;;  %s2210_s25 = smov 106  }
  0x11   :  { %v1416_v41 = vcombine.high %v1765_v40, %v1765_v40 }
  0x13   :  { %1417 = vmatprep.mubr.msk.bf16.mxu0 %vm356_vm1, %v1416_v41 }
  0x88   :  { %v104_v11 = vpop.permute.xlu1 %103 }
  0x89   :  { %v88_v12 = vpop.permute.xlu0 %87 }
  0x8a   :  { %v95_v14 = vmul.f32 %v88_v12, %v1701_v7  ;;  %v96_v15 = vmul.f32 %v88_v12, %v1706_v8 }
  0x8c   :  { %v111_v18 = vadd.f32 %v104_v11, %v95_v14  ;;  %v112_v19 = vadd.f32 %v104_v11, %v96_v15  ;;  %v109_v27 = vpop.permute.xlu1 %108 }
  0x8d   :  { %v93_v22 = vpop.permute.xlu0 %92 }
  0x8e   :  { %v115_v23 = vmax.f32 %v111_v18, 0.0  ;;  %v116_v24 = vmax.f32 %v112_v19, 0.0  ;;  %v97_v25 = vmul.f32 %v93_v22, %v76_v16  ;;  %v98_v26 = vmul.f32 %v93_v22, %v1719_v17 }
  0x90   :  { %v130_v28 = vmul.f32 %v1721_v20, %v115_v23  ;;  %v131_v29 = vmul.f32 %v1723_v21, %v116_v24  ;;  %v113_v30 = vadd.f32 %v109_v27, %v97_v25  ;;  %v114_v31 = vadd.f32 %v109_v27, %v98_v26 }
  0x92   :  { %v117_v32 = vmax.f32 %v113_v30, 0.0  ;;  %v118_v33 = vmax.f32 %v114_v31, 0.0  ;;  %145 = vrot.lane.b32.xlu1 %v131_v29, %s1546_s0  ;;  %143 = vrot.lane.b32.xlu0 %v130_v28, %s1546_s0  ;;  %136 = vst.msk [vmem:[#allocation2 + $0x8] sm:$0xff] %vm135_vm0, %v131_v29 }
  0x94   :  { %v132_v34 = vmul.f32 %v1721_v20, %v117_v32  ;;  %v133_v35 = vmul.f32 %v1723_v21, %v118_v33 }
  0x96   :  { %149 = vrot.lane.b32.xlu1 %v133_v35, %s1546_s0  ;;  %147 = vrot.lane.b32.xlu0 %v132_v34, %s1546_s0  ;;  %138 = vst.msk [vmem:[#allocation2 + $0x18] sm:$0xff] %vm135_vm0, %v133_v35  ;;  %v332_v39 = vpack.c.bf16 %v132_v34, %v130_v28 }
  0x99   :  { %v297_v36 = vld [vmem:[#allocation2 + $0x8] sm:$0xff] }
  0x9a   :  { %164 = vrot.lane.b32.xlu1 %v131_v29, %s1547_s9  ;;  %162 = vrot.lane.b32.xlu0 %v130_v28, %s1547_s9 }
  0x9d   :  { %v299_v37 = vld [vmem:[#allocation2 + $0x18] sm:$0xff] }
  0x9e   :  { %168 = vrot.lane.b32.xlu1 %v133_v35, %s1547_s9  ;;  %166 = vrot.lane.b32.xlu0 %v132_v34, %s1547_s9  ;;  %v333_v38 = vpack.c.bf16 %v299_v37, %v297_v36 }
  0xa0   :  { %360 = vmatprep.subr.bf16.mxu0 %v333_v38 }
  0xa1   :  { %361 = vmatpush1.bf16.msra.mxu0 %v332_v39 }
  0xa2   :  { %183 = vrot.lane.b32.xlu1 %v131_v29, %s1548_s27  ;;  %181 = vrot.lane.b32.xlu0 %v130_v28, %s1548_s27 }
  0xa6   :  { %187 = vrot.lane.b32.xlu1 %v133_v35, %s1548_s27  ;;  %185 = vrot.lane.b32.xlu0 %v132_v34, %s1548_s27 }
  0xaa   :  { %202 = vrot.lane.b32.xlu1 %v131_v29, %s1549_s22  ;;  %200 = vrot.lane.b32.xlu0 %v130_v28, %s1549_s22 }
  0xae   :  { %206 = vrot.lane.b32.xlu1 %v133_v35, %s1549_s22  ;;  %204 = vrot.lane.b32.xlu0 %v132_v34, %s1549_s22 }
  0xb2   :  { %221 = vrot.lane.b32.xlu1 %v131_v29, %s1550_s28  ;;  %219 = vrot.lane.b32.xlu0 %v130_v28, %s1550_s28 }
  0xb6   :  { %225 = vrot.lane.b32.xlu1 %v133_v35, %s1550_s28  ;;  %223 = vrot.lane.b32.xlu0 %v132_v34, %s1550_s28 }
  0xba   :  { %240 = vrot.lane.b32.xlu1 %v131_v29, %s1551_s1  ;;  %238 = vrot.lane.b32.xlu0 %v130_v28, %s1551_s1 }
  0xbe   :  { %244 = vrot.lane.b32.xlu1 %v133_v35, %s1551_s1  ;;  %242 = vrot.lane.b32.xlu0 %v132_v34, %s1551_s1 }
  0xc2   :  { %259 = vrot.lane.b32.xlu1 %v131_v29, %s2192_s6  ;;  %257 = vrot.lane.b32.xlu0 %v130_v28, %s2192_s6 }
  0xc6   :  { %263 = vrot.lane.b32.xlu1 %v133_v35, %s2192_s6  ;;  %261 = vrot.lane.b32.xlu0 %v132_v34, %s2192_s6 }
  0xca   :  { %278 = vrot.lane.b32.xlu1 %v131_v29, %s2190_s4  ;;  %276 = vrot.lane.b32.xlu0 %v130_v28, %s2190_s4 }
  0xce   :  { %282 = vrot.lane.b32.xlu1 %v133_v35, %s2190_s4  ;;  %280 = vrot.lane.b32.xlu0 %v132_v34, %s2190_s4  ;;  %s2208_s4 = sld [smem:[#allocation11_spill]] }
 0x104   :  { %v146_v42 = vpop.permute.xlu1 %145  ;;  %v144_v43 = vpop.permute.xlu0 %143 }
 0x105   :  { %159 = vst.msk [vmem:[#allocation2 + $0x28] sm:$0xff] %vm135_vm0, %v146_v42  ;;  %v152_v53 = vsel %vm151_vm2, %v144_v43, %v146_v42 }
 0x108   :  { %v150_v44 = vpop.permute.xlu1 %149  ;;  %v148_v45 = vpop.permute.xlu0 %147 }
 0x109   :  { %161 = vst.msk [vmem:[#allocation2 + $0x38] sm:$0xff] %vm135_vm0, %v150_v44  ;;  %v153_v48 = vsel %vm151_vm2, %v148_v45, %v150_v44 }
 0x10a   :  { %v334_v55 = vpack.c.bf16 %v153_v48, %v152_v53 }
 0x10c   :  { %v165_v46 = vpop.permute.xlu1 %164  ;;  %v163_v47 = vpop.permute.xlu0 %162  ;;  %v301_v51 = vld [vmem:[#allocation2 + $0x28] sm:$0xff] }
 0x10d   :  { %178 = vst.msk [vmem:[#allocation2 + $0x48] sm:$0xff] %vm135_vm0, %v165_v46  ;;  %v171_v63 = vsel %vm170_vm3, %v163_v47, %v165_v46 }
 0x110   :  { %v169_v49 = vpop.permute.xlu1 %168  ;;  %v167_v50 = vpop.permute.xlu0 %166  ;;  %v303_v52 = vld [vmem:[#allocation2 + $0x38] sm:$0xff] }
 0x111   :  { %180 = vst.msk [vmem:[#allocation2 + $0x58] sm:$0xff] %vm135_vm0, %v169_v49  ;;  %v335_v54 = vpack.c.bf16 %v303_v52, %v301_v51  ;;  %v172_v58 = vsel %vm170_vm3, %v167_v50, %v169_v49 }
 0x112   :  { %v336_v2 = vpack.c.bf16 %v172_v58, %v171_v63 }
 0x113   :  { %362 = vmatprep.subr.bf16.mxu0 %v335_v54 }
 0x114   :  { %v184_v56 = vpop.permute.xlu1 %183  ;;  %v182_v57 = vpop.permute.xlu0 %181  ;;  %363 = vmatpush1.bf16.msra.mxu0 %v334_v55  ;;  %v305_v61 = vld [vmem:[#allocation2 + $0x48] sm:$0xff] }
 0x115   :  { %197 = vst.msk [vmem:[#allocation2 + $0x68] sm:$0xff] %vm135_vm0, %v184_v56  ;;  %v190_v12 = vsel %vm189_vm4, %v182_v57, %v184_v56 }
 0x118   :  { %v188_v59 = vpop.permute.xlu1 %187  ;;  %v186_v60 = vpop.permute.xlu0 %185  ;;  %v307_v62 = vld [vmem:[#allocation2 + $0x58] sm:$0xff] }
 0x119   :  { %199 = vst.msk [vmem:[#allocation2 + $0x78] sm:$0xff] %vm135_vm0, %v188_v59  ;;  %v337_v1 = vpack.c.bf16 %v307_v62, %v305_v61  ;;  %v191_v5 = vsel %vm189_vm4, %v186_v60, %v188_v59 }
 0x11a   :  { %v338_v15 = vpack.c.bf16 %v191_v5, %v190_v12 }
 0x11b   :  { %364 = vmatprep.subr.bf16.mxu0 %v337_v1 }
 0x11c   :  { %v203_v3 = vpop.permute.xlu1 %202  ;;  %v201_v4 = vpop.permute.xlu0 %200  ;;  %365 = vmatpush1.bf16.msra.mxu0 %v336_v2  ;;  %v309_v10 = vld [vmem:[#allocation2 + $0x68] sm:$0xff]  ;;  %v1415_v2 = vcombine.low %v1765_v40, %v1765_v40 }
 0x11d   :  { %216 = vst.msk [vmem:[#allocation2 + $0x88] sm:$0xff] %vm135_vm0, %v203_v3  ;;  %v209_v26 = vsel %vm208_vm5, %v201_v4, %v203_v3  ;;  %v1554_v3 = vmov 0.0  }
 0x11e   :  { %79 = vst [vmem:[#allocation3] sm:$0xff] %v1554_v3  ;;  %80 = vst [vmem:[#allocation3 + $0x8] sm:$0xff] %v1554_v3 }
 0x11f   :  { %81 = vst [vmem:[#allocation3 + $0x10] sm:$0xff] %v1554_v3  ;;  %82 = vst [vmem:[#allocation3 + $0x18] sm:$0xff] %v1554_v3 }
 0x120   :  { %v207_v6 = vpop.permute.xlu1 %206  ;;  %v205_v9 = vpop.permute.xlu0 %204  ;;  %v311_v11 = vld [vmem:[#allocation2 + $0x78] sm:$0xff]  ;;  %977 = vst [vmem:[#allocation4] sm:$0xff] %v1554_v3  ;;  %978 = vst [vmem:[#allocation4 + $0x8] sm:$0xff] %v1554_v3 }
 0x121   :  { %218 = vst.msk [vmem:[#allocation2 + $0x98] sm:$0xff] %vm135_vm0, %v207_v6  ;;  %v210_v13 = vsel %vm208_vm5, %v205_v9, %v207_v6  ;;  %v339_v14 = vpack.c.bf16 %v311_v11, %v309_v10  ;;  %v417_v6 = vld [vmem:[%s2207_s30] sm:$0xff]  ;;  %s2209_s30 = sld [smem:[#allocation12_spill]] }
 0x122   :  { %217 = vst [vmem:[#allocation2 + $0x90] sm:$0xff] %v210_v13  ;;  %v340_v29 = vpack.c.bf16 %v210_v13, %v209_v26  ;;  %v425_v10 = vld [vmem:[%s2208_s4] sm:$0xff] }
 0x123   :  { %366 = vmatprep.subr.bf16.mxu0 %v339_v14 }
 0x124   :  { %v222_v16 = vpop.permute.xlu1 %221  ;;  %v220_v18 = vpop.permute.xlu0 %219  ;;  %367 = vmatpush1.bf16.msra.mxu0 %v338_v15  ;;  %v313_v24 = vld [vmem:[#allocation2 + $0x88] sm:$0xff] }
 0x125   :  { %235 = vst.msk [vmem:[#allocation2 + $0xa8] sm:$0xff] %vm135_vm0, %v222_v16  ;;  %v228_v19 = vsel %vm227_vm6, %v220_v18, %v222_v16 }
 0x126   :  { %234 = vst [vmem:[#allocation2 + $0xa0] sm:$0xff] %v228_v19 }
 0x128   :  { %v226_v22 = vpop.permute.xlu1 %225  ;;  %v224_v23 = vpop.permute.xlu0 %223  ;;  %v315_v25 = vld [vmem:[#allocation2 + $0x98] sm:$0xff] }
 0x129   :  { %237 = vst.msk [vmem:[#allocation2 + $0xb8] sm:$0xff] %vm135_vm0, %v226_v22  ;;  %v229_v27 = vsel %vm227_vm6, %v224_v23, %v226_v22  ;;  %v341_v28 = vpack.c.bf16 %v315_v25, %v313_v24 }
 0x12a   :  { %236 = vst [vmem:[#allocation2 + $0xb0] sm:$0xff] %v229_v27  ;;  %v342_v39 = vpack.c.bf16 %v229_v27, %v228_v19 }
 0x12b   :  { %368 = vmatprep.subr.bf16.mxu0 %v341_v28 }
 0x12c   :  { %v241_v30 = vpop.permute.xlu1 %240  ;;  %v239_v31 = vpop.permute.xlu0 %238  ;;  %369 = vmatpush1.bf16.msra.mxu0 %v340_v29  ;;  %v317_v35 = vld [vmem:[#allocation2 + $0xa8] sm:$0xff] }
 0x12d   :  { %254 = vst.msk [vmem:[#allocation2 + $0xc8] sm:$0xff] %vm135_vm0, %v241_v30  ;;  %v247_v32 = vsel %vm246_vm7, %v239_v31, %v241_v30 }
 0x12e   :  { %253 = vst [vmem:[#allocation2 + $0xc0] sm:$0xff] %v247_v32 }
 0x130   :  { %v245_v33 = vpop.permute.xlu1 %244  ;;  %v243_v34 = vpop.permute.xlu0 %242  ;;  %v319_v36 = vld [vmem:[#allocation2 + $0xb8] sm:$0xff] }
 0x131   :  { %256 = vst.msk [vmem:[#allocation2 + $0xd8] sm:$0xff] %vm135_vm0, %v245_v33  ;;  %v248_v37 = vsel %vm246_vm7, %v243_v34, %v245_v33  ;;  %v343_v38 = vpack.c.bf16 %v319_v36, %v317_v35 }
 0x132   :  { %255 = vst [vmem:[#allocation2 + $0xd0] sm:$0xff] %v248_v37  ;;  %v344_v50 = vpack.c.bf16 %v248_v37, %v247_v32 }
 0x133   :  { %370 = vmatprep.subr.bf16.mxu0 %v343_v38 }
 0x134   :  { %v260_v41 = vpop.permute.xlu1 %259  ;;  %v258_v42 = vpop.permute.xlu0 %257  ;;  %371 = vmatpush1.bf16.msra.mxu0 %v342_v39  ;;  %v321_v46 = vld [vmem:[#allocation2 + $0xc8] sm:$0xff] }
 0x135   :  { %273 = vst.msk [vmem:[#allocation2 + $0xe8] sm:$0xff] %vm135_vm0, %v260_v41  ;;  %v266_v43 = vsel %vm265_vm8, %v258_v42, %v260_v41 }
 0x136   :  { %272 = vst [vmem:[#allocation2 + $0xe0] sm:$0xff] %v266_v43 }
 0x138   :  { %v264_v44 = vpop.permute.xlu1 %263  ;;  %v262_v45 = vpop.permute.xlu0 %261  ;;  %v323_v47 = vld [vmem:[#allocation2 + $0xd8] sm:$0xff] }
 0x139   :  { %275 = vst.msk [vmem:[#allocation2 + $0xf8] sm:$0xff] %vm135_vm0, %v264_v44  ;;  %v267_v48 = vsel %vm265_vm8, %v262_v45, %v264_v44  ;;  %v345_v49 = vpack.c.bf16 %v323_v47, %v321_v46 }
 0x13a   :  { %274 = vst [vmem:[#allocation2 + $0xf0] sm:$0xff] %v267_v48  ;;  %v346_v60 = vpack.c.bf16 %v267_v48, %v266_v43 }
 0x13b   :  { %372 = vmatprep.subr.bf16.mxu0 %v345_v49 }
 0x13c   :  { %v279_v51 = vpop.permute.xlu1 %278  ;;  %v277_v52 = vpop.permute.xlu0 %276  ;;  %373 = vmatpush1.bf16.msra.mxu0 %v344_v50  ;;  %v325_v56 = vld [vmem:[#allocation2 + $0xe8] sm:$0xff] }
 0x13d   :  { %292 = vst.msk [vmem:[#allocation2 + $0x108] sm:$0xff] %vm135_vm0, %v279_v51  ;;  %v285_v53 = vsel %vm284_vm9, %v277_v52, %v279_v51 }
 0x13e   :  { %291 = vst [vmem:[#allocation2 + $0x100] sm:$0xff] %v285_v53 }
 0x140   :  { %v283_v54 = vpop.permute.xlu1 %282  ;;  %v281_v55 = vpop.permute.xlu0 %280  ;;  %v327_v57 = vld [vmem:[#allocation2 + $0xf8] sm:$0xff] }
 0x141   :  { %294 = vst.msk [vmem:[#allocation2 + $0x118] sm:$0xff] %vm135_vm0, %v283_v54  ;;  %v286_v58 = vsel %vm284_vm9, %v281_v55, %v283_v54  ;;  %v347_v59 = vpack.c.bf16 %v327_v57, %v325_v56 }
 0x142   :  { %293 = vst [vmem:[#allocation2 + $0x110] sm:$0xff] %v286_v58  ;;  %v348_v1 = vpack.c.bf16 %v286_v58, %v285_v53 }
 0x143   :  { %374 = vmatprep.subr.bf16.mxu0 %v347_v59 }
 0x144   :  { %375 = vmatpush1.bf16.msra.mxu0 %v346_v60  ;;  %v329_v61 = vld [vmem:[#allocation2 + $0x108] sm:$0xff] }
 0x148   :  { %v331_v62 = vld [vmem:[#allocation2 + $0x118] sm:$0xff] }
 0x149   :  { %v349_v63 = vpack.c.bf16 %v331_v62, %v329_v61 }
 0x14b   :  { %376 = vmatprep.subr.bf16.mxu0 %v349_v63 }
 0x14c   :  { %377 = vmatpush1.bf16.msra.mxu0 %v348_v1 }
 0x14d   :  { %1123 = vmatprep.subr.bf16.mxu0 %v1545_v0 }
 0x14f   :  { %393 = vmatmul.mubr.bf16.vlgmr.msra.gmra.mrb[0].mxu0 %v1415_v2 }
 0x222   :  { %v394_v4 = vpop.f32.mrb[0].mxu0 }
 0x223   :  { %403 = vrot.lane.b32.xlu0 %v394_v4, %s1555_s8  ;;  %v396_v40 = vpop.f32.mrb[1].mxu0 }
 0x224   :  { %405 = vrot.lane.b32.xlu1 %v396_v40, %s1555_s8  ;;  %v398_v5 = vpop.f32.mrb[2].mxu0 }
 0x225   :  { %v399_v9 = vpop.f32.mrb[3].mxu0 }
 0x227   :  { %420 = vperm.xlu0 %1518, %v417_v6  }
 0x228   :  { %428 = vperm.xlu1 %1519, %v425_v10  }
 0x295   :  { %v404_v11 = vpop.permute.xlu0 %403 }
 0x296   :  { %412 = vst.msk [vmem:[#allocation3] sm:$0xff] %vm411_vm10, %v404_v11  ;;  %v406_v12 = vpop.permute.xlu1 %405  ;;  %vm630_vm10 = vcmask 404480  }
 0x297   :  { %v408_v13 = vsel %vm407_vm11, %v404_v11, %v406_v12 }
 0x298   :  { %414 = vst.msk [vmem:[#allocation3 + $0x8] sm:$0xff] %vm413_vm12, %v408_v13  ;;  %v513_v13 = vld [vmem:[%s2170_s7] sm:$0x3]  ;;  %s2211_s7 = smov 107   ;;  %vm644_vm12 = vcmask 408580  }
 0x29d   :  { %v793_v14 = vld [vmem:[#allocation3] sm:$0xff] }
 0x29e   :  { %v797_v15 = vadd.f32 %v793_v14, %v1701_v7 }
 0x29f   :  { %v794_v16 = vld [vmem:[#allocation3 + $0x8] sm:$0xff] }
 0x2a0   :  { %801 = vst [vmem:[%s2209_s30] sm:$0xff] %v797_v15  ;;  %v798_v18 = vadd.f32 %v794_v16, %v1706_v8 }
 0x2a2   :  { %802 = vst [vmem:[%s2209_s30 + $0x8] sm:$0xff] %v798_v18  ;;  %v609_v18 = vld [vmem:[%s2171_s11] sm:$0xf] }
 0x2a6   :  { %v421_v19 = vpop.permute.xlu0 %420 }
 0x2a7   :  { %v423_v22 = vmul.f32 %v793_v14, %v421_v19  ;;  %v424_v23 = vmul.f32 %v794_v16, %v421_v19  ;;  %v429_v24 = vpop.permute.xlu1 %428 }
 0x2a9   :  { %v431_v25 = vadd.f32 %v429_v24, %v423_v22  ;;  %v432_v26 = vadd.f32 %v429_v24, %v424_v23  ;;  %v617_v22 = vld [vmem:[%s2172_s12] sm:$0xf] }
 0x2ab   :  { %v433_v27 = vmax.f32 %v431_v25, 0.0  ;;  %v434_v28 = vmax.f32 %v432_v26, 0.0 }
 0x2ad   :  { %v435_v7 = vmul.f32 %v433_v27, %v1721_v20  ;;  %v436_v29 = vmul.f32 %v434_v28, %v1723_v21 }
 0x2af   :  { %437 = vst [vmem:[#allocation2] sm:$0xff] %v435_v7  ;;  %438 = vst.msk [vmem:[#allocation2 + $0x8] sm:$0xff] %vm135_vm0, %v436_v29  ;;  %443 = vrot.lane.b32.xlu1 %v436_v29, %s1546_s0  ;;  %441 = vrot.lane.b32.xlu0 %v435_v7, %s1546_s0 }
 0x2b3   :  { %452 = vrot.lane.b32.xlu1 %v436_v29, %s1547_s9  ;;  %450 = vrot.lane.b32.xlu0 %v435_v7, %s1547_s9 }
 0x2b6   :  { %v515_v37 = vld [vmem:[#allocation2 + $0x8] sm:$0xff] }
 0x2b7   :  { %461 = vrot.lane.b32.xlu1 %v436_v29, %s1548_s27  ;;  %459 = vrot.lane.b32.xlu0 %v435_v7, %s1548_s27 }
 0x2bb   :  { %470 = vrot.lane.b32.xlu1 %v436_v29, %s1549_s22  ;;  %468 = vrot.lane.b32.xlu0 %v435_v7, %s1549_s22 }
 0x2bf   :  { %479 = vrot.lane.b32.xlu1 %v436_v29, %s1550_s28  ;;  %477 = vrot.lane.b32.xlu0 %v435_v7, %s1550_s28 }
 0x2c3   :  { %488 = vrot.lane.b32.xlu1 %v436_v29, %s1551_s1  ;;  %486 = vrot.lane.b32.xlu0 %v435_v7, %s1551_s1 }
 0x2c7   :  { %497 = vrot.lane.b32.xlu1 %v436_v29, %s2192_s6  ;;  %495 = vrot.lane.b32.xlu0 %v435_v7, %s2192_s6  ;;  %s1558_s6 = smov 120  }
 0x2cb   :  { %506 = vrot.lane.b32.xlu1 %v436_v29, %s2210_s25  ;;  %504 = vrot.lane.b32.xlu0 %v435_v7, %s2210_s25 }
 0x321   :  { %v444_v8 = vpop.permute.xlu1 %443  ;;  %v442_v30 = vpop.permute.xlu0 %441 }
 0x322   :  { %449 = vst.msk [vmem:[#allocation2 + $0x18] sm:$0xff] %vm135_vm0, %v444_v8  ;;  %v445_v31 = vsel %vm151_vm2, %v442_v30, %v444_v8 }
 0x323   :  { %448 = vst [vmem:[#allocation2 + $0x10] sm:$0xff] %v445_v31  ;;  %v532_v42 = vpack.c.bf16 %v445_v31, %v435_v7 }
 0x325   :  { %v453_v32 = vpop.permute.xlu1 %452  ;;  %v451_v33 = vpop.permute.xlu0 %450 }
 0x326   :  { %458 = vst.msk [vmem:[#allocation2 + $0x28] sm:$0xff] %vm135_vm0, %v453_v32  ;;  %v454_v34 = vsel %vm170_vm3, %v451_v33, %v453_v32 }
 0x327   :  { %457 = vst [vmem:[#allocation2 + $0x20] sm:$0xff] %v454_v34 }
 0x329   :  { %v462_v35 = vpop.permute.xlu1 %461  ;;  %v460_v36 = vpop.permute.xlu0 %459  ;;  %v517_v38 = vld [vmem:[#allocation2 + $0x18] sm:$0xff] }
 0x32a   :  { %467 = vst.msk [vmem:[#allocation2 + $0x38] sm:$0xff] %vm135_vm0, %v462_v35  ;;  %v463_v39 = vsel %vm189_vm4, %v460_v36, %v462_v35  ;;  %v533_v41 = vpack.c.bf16 %v517_v38, %v515_v37  ;;  %v994_v38 = vld [vmem:[%s2175_s15 + $0x8] sm:$0xff] }
 0x32b   :  { %466 = vst [vmem:[#allocation2 + $0x30] sm:$0xff] %v463_v39  ;;  %v534_v52 = vpack.c.bf16 %v463_v39, %v454_v34  ;;  %v993_v39 = vld [vmem:[%s2175_s15] sm:$0xff]  ;;  %s1560_s15 = smov 114  }
 0x32c   :  { %553 = vmatprep.subr.bf16.mxu1 %v533_v41 }
 0x32d   :  { %v471_v43 = vpop.permute.xlu1 %470  ;;  %v469_v44 = vpop.permute.xlu0 %468  ;;  %554 = vmatpush1.bf16.msra.mxu1 %v532_v42  ;;  %v519_v48 = vld [vmem:[#allocation2 + $0x28] sm:$0xff] }
 0x32e   :  { %476 = vst.msk [vmem:[#allocation2 + $0x48] sm:$0xff] %vm135_vm0, %v471_v43  ;;  %v472_v45 = vsel %vm208_vm5, %v469_v44, %v471_v43 }
 0x32f   :  { %475 = vst [vmem:[#allocation2 + $0x40] sm:$0xff] %v472_v45 }
 0x331   :  { %v480_v46 = vpop.permute.xlu1 %479  ;;  %v478_v47 = vpop.permute.xlu0 %477  ;;  %v521_v49 = vld [vmem:[#allocation2 + $0x38] sm:$0xff] }
 0x332   :  { %485 = vst.msk [vmem:[#allocation2 + $0x58] sm:$0xff] %vm135_vm0, %v480_v46  ;;  %v481_v50 = vsel %vm227_vm6, %v478_v47, %v480_v46  ;;  %v535_v51 = vpack.c.bf16 %v521_v49, %v519_v48 }
 0x333   :  { %484 = vst [vmem:[#allocation2 + $0x50] sm:$0xff] %v481_v50  ;;  %v536_v62 = vpack.c.bf16 %v481_v50, %v472_v45 }
 0x334   :  { %555 = vmatprep.subr.bf16.mxu1 %v535_v51 }
 0x335   :  { %v489_v53 = vpop.permute.xlu1 %488  ;;  %v487_v54 = vpop.permute.xlu0 %486  ;;  %556 = vmatpush1.bf16.msra.mxu1 %v534_v52  ;;  %v523_v58 = vld [vmem:[#allocation2 + $0x48] sm:$0xff] }
 0x336   :  { %494 = vst.msk [vmem:[#allocation2 + $0x68] sm:$0xff] %vm135_vm0, %v489_v53  ;;  %v490_v55 = vsel %vm246_vm7, %v487_v54, %v489_v53 }
 0x337   :  { %493 = vst [vmem:[#allocation2 + $0x60] sm:$0xff] %v490_v55 }
 0x339   :  { %v498_v56 = vpop.permute.xlu1 %497  ;;  %v496_v57 = vpop.permute.xlu0 %495  ;;  %v525_v59 = vld [vmem:[#allocation2 + $0x58] sm:$0xff] }
 0x33a   :  { %503 = vst.msk [vmem:[#allocation2 + $0x78] sm:$0xff] %vm135_vm0, %v498_v56  ;;  %v499_v60 = vsel %vm265_vm8, %v496_v57, %v498_v56  ;;  %v537_v61 = vpack.c.bf16 %v525_v59, %v523_v58 }
 0x33b   :  { %502 = vst [vmem:[#allocation2 + $0x70] sm:$0xff] %v499_v60  ;;  %v538_v6 = vpack.c.bf16 %v499_v60, %v490_v55 }
 0x33c   :  { %557 = vmatprep.subr.bf16.mxu1 %v537_v61 }
 0x33d   :  { %v507_v63 = vpop.permute.xlu1 %506  ;;  %v505_v1 = vpop.permute.xlu0 %504  ;;  %558 = vmatpush1.bf16.msra.mxu1 %v536_v62  ;;  %v527_v4 = vld [vmem:[#allocation2 + $0x68] sm:$0xff] }
 0x33e   :  { %512 = vst.msk [vmem:[#allocation2 + $0x88] sm:$0xff] %vm135_vm0, %v507_v63  ;;  %v508_v2 = vsel %vm284_vm9, %v505_v1, %v507_v63  ;;  %vm605_vm0 = vcmask 494592  }
 0x33f   :  { %511 = vst [vmem:[#allocation2 + $0x80] sm:$0xff] %v508_v2  ;;  %v540_v9 = vpack.c.bf16 %v508_v2, %v508_v2 }
 0x341   :  { %v529_v40 = vld [vmem:[#allocation2 + $0x78] sm:$0xff]  ;;  %v548_v12 = vsel %vm546_vm13, %v540_v9, 0 }
 0x342   :  { %v539_v5 = vpack.c.bf16 %v529_v40, %v527_v4 }
 0x344   :  { %559 = vmatprep.subr.bf16.mxu1 %v539_v5 }
 0x345   :  { %560 = vmatpush1.bf16.msra.mxu1 %v538_v6  ;;  %v531_v10 = vld [vmem:[#allocation2 + $0x88] sm:$0xff] }
 0x346   :  { %v541_v11 = vpack.c.bf16 %v531_v10, %v531_v10 }
 0x348   :  { %1418 = vmatprep.subr.msk.bf16.mxu1 %vm546_vm13, %v541_v11 }
 0x349   :  { %562 = vmatpush1.bf16.msra.mxu1 %v548_v12 }
 0x34c   :  { %1419 = vmatmul.mubr.msk.bf16.vlgmr.msra.gmra.mrb[0].mxu1 %vm542_vm14, %v513_v13 }
 0x34d   :  { %769 = vmatprep.mubr.bf16.mxu1 %v1545_v0 }
 0x41f   :  { %v587_v14 = vpop.f32.mrb[0].mxu1 }
 0x420   :  { %596 = vrot.lane.b32.xlu0 %v587_v14, %s1555_s8  ;;  %v589_v15 = vpop.f32.mrb[1].mxu1 }
 0x421   :  { %598 = vrot.lane.b32.xlu1 %v589_v15, %s1555_s8  ;;  %v591_v16 = vpop.f32.mrb[2].mxu1 }
 0x422   :  { %v592_v19 = vpop.f32.mrb[3].mxu1 }
 0x424   :  { %612 = vperm.xlu0 %1518, %v609_v18  }
 0x425   :  { %620 = vperm.xlu1 %1519, %v617_v22  }
 0x492   :  { %v597_v23 = vpop.permute.xlu0 %596 }
 0x493   :  { %604 = vst.msk [vmem:[#allocation3 + $0x10] sm:$0xf] %vm603_vm15, %v597_v23  ;;  %v599_v24 = vpop.permute.xlu1 %598 }
 0x494   :  { %v600_v25 = vsel %vm407_vm11, %v597_v23, %v599_v24  ;;  %v1522_v23 = vld [vmem:[%s2174_s3 + $0x40] sm:$0xff]  }
 0x495   :  { %606 = vst.msk [vmem:[#allocation3 + $0x18] sm:$0xf] %vm605_vm0, %v600_v25  ;;  %v709_v25 = vld [vmem:[%s2176_s10] sm:$0x3] }
 0x49a   :  { %v607_v26 = vld [vmem:[#allocation3 + $0x10] sm:$0xf] }
 0x49c   :  { %v608_v28 = vld [vmem:[#allocation3 + $0x18] sm:$0xf] }
 0x4a3   :  { %v613_v27 = vpop.permute.xlu0 %612 }
 0x4a4   :  { %v615_v7 = vmul.f32 %v613_v27, %v607_v26  ;;  %v616_v29 = vmul.f32 %v613_v27, %v608_v28  ;;  %v621_v8 = vpop.permute.xlu1 %620  ;;  %v1523_v26 = vld [vmem:[%s2174_s3] sm:$0xff]   ;;  %v1540_v27 = vld [vmem:[%s2204_s29 + $0x8] sm:$0xff] }
 0x4a5   :  { %v806_v28 = vpack.c.bf16 %v1719_v17, %v1540_v27  ;;  %v1527_v17 = vld [vmem:[%s2174_s3 + $0x10] sm:$0xff]  }
 0x4a6   :  { %v623_v30 = vadd.f32 %v621_v8, %v615_v7  ;;  %v624_v31 = vadd.f32 %v621_v8, %v616_v29  ;;  %v1524_v7 = vld [vmem:[%s2174_s3 + $0x48] sm:$0xff]   ;;  %v1526_v8 = vld [vmem:[%s2174_s3 + $0x50] sm:$0xff]  }
 0x4a7   :  { %v1525_v29 = vld [vmem:[%s2174_s3 + $0x8] sm:$0xff]  }
 0x4a8   :  { %v625_v32 = vmax.f32 %v623_v30, 0.0  ;;  %v626_v33 = vmax.f32 %v624_v31, 0.0  ;;  %v1528_v30 = vld [vmem:[%s2174_s3 + $0x58] sm:$0xff]  }
 0x4a9   :  { %v1529_v31 = vld [vmem:[%s2174_s3 + $0x18] sm:$0xff]  }
 0x4aa   :  { %v627_v34 = vmul.f32 %v625_v32, %v1721_v20  ;;  %v628_v35 = vmul.f32 %v626_v33, %v1723_v21  ;;  %v980_v20 = vld [vmem:[%s2173_s14 + $0x8] sm:$0xff]  ;;  %v979_v21 = vld [vmem:[%s2173_s14] sm:$0xff] }
 0x4ab   :  { %v1530_v32 = vld [vmem:[%s2174_s3 + $0x60] sm:$0xff]  }
 0x4ac   :  { %629 = vst [vmem:[#allocation2] sm:$0xf] %v627_v34  ;;  %648 = vrot.lane.b32.xlu1 %v628_v35, %s1547_s9  ;;  %646 = vrot.lane.b32.xlu0 %v627_v34, %s1547_s9  ;;  %631 = vst.msk [vmem:[#allocation2 + $0x8] sm:$0xf] %vm630_vm10, %v628_v35  ;;  %v635_v36 = vrot.slane %v628_v35, 4  ;;  %v634_v37 = vrot.slane %v627_v34, 4 }
 0x4ad   :  { %v1531_v33 = vld [vmem:[%s2174_s3 + $0x20] sm:$0xff]  }
 0x4b0   :  { %666 = vrot.lane.b32.xlu1 %v628_v35, %s1549_s22  ;;  %664 = vrot.lane.b32.xlu0 %v627_v34, %s1549_s22 }
 0x4b4   :  { %684 = vrot.lane.b32.xlu1 %v628_v35, %s1551_s1  ;;  %682 = vrot.lane.b32.xlu0 %v627_v34, %s1551_s1 }
 0x4b8   :  { %638 = vrot.lane.b32.xlu1 %v635_v36, %s1546_s0  ;;  %636 = vrot.lane.b32.xlu0 %v634_v37, %s1546_s0 }
 0x4bc   :  { %657 = vrot.lane.b32.xlu1 %v635_v36, %s1548_s27  ;;  %655 = vrot.lane.b32.xlu0 %v634_v37, %s1548_s27  ;;  %s1557_s27 = smov 121  }
 0x4c0   :  { %675 = vrot.lane.b32.xlu1 %v635_v36, %s1550_s28  ;;  %673 = vrot.lane.b32.xlu0 %v634_v37, %s1550_s28 }
 0x4c4   :  { %693 = vrot.lane.b32.xlu1 %v635_v36, %s2211_s7  ;;  %691 = vrot.lane.b32.xlu0 %v634_v37, %s2211_s7  ;;  %v1534_v36 = vld [vmem:[%s2174_s3 + $0x70] sm:$0xff]  }
 0x4c5   :  { %v1535_v37 = vld [vmem:[%s2174_s3 + $0x30] sm:$0xff]  }
 0x4c8   :  { %702 = vrot.lane.b32.xlu1 %v628_v35, %s2210_s25  ;;  %700 = vrot.lane.b32.xlu0 %v627_v34, %s2210_s25  ;;  %v1532_v34 = vld [vmem:[%s2174_s3 + $0x68] sm:$0xff]  }
 0x4c9   :  { %v1533_v35 = vld [vmem:[%s2174_s3 + $0x28] sm:$0xff]  }
 0x4cc   :  { %988 = vperm.xlu1 %1519, %v980_v20   ;;  %983 = vperm.xlu0 %1518, %v979_v21   ;;  %v1536_v20 = vld [vmem:[%s2174_s3 + $0x78] sm:$0xff]  }
 0x4cd   :  { %v1537_v21 = vld [vmem:[%s2174_s3 + $0x38] sm:$0xff]  }
 0x4d0   :  { %1002 = vperm.xlu1 %1519, %v994_v38   ;;  %997 = vperm.xlu0 %1518, %v993_v39   ;;  %v1541_v38 = vld [vmem:[%s2204_s29] sm:$0xff]  ;;  %v1992_v39 = vld [vmem:[%s2204_s29 + $0x10] sm:$0xff] }
 0x51e   :  { %v649_v41 = vpop.permute.xlu1 %648  ;;  %v647_v42 = vpop.permute.xlu0 %646 }
 0x51f   :  { %654 = vst.msk [vmem:[#allocation2 + $0x18] sm:$0xf] %vm630_vm10, %v649_v41  ;;  %v650_v43 = vsel %vm170_vm3, %v647_v42, %v649_v41  ;;  %vm726_vm3 = vcmask 293888   ;;  %v805_v41 = vpack.c.bf16 %v1992_v39, %v1541_v38 }
 0x520   :  { %653 = vst [vmem:[#allocation2 + $0x10] sm:$0xf] %v650_v43 }
 0x522   :  { %v667_v44 = vpop.permute.xlu1 %666  ;;  %v665_v45 = vpop.permute.xlu0 %664 }
 0x523   :  { %672 = vst.msk [vmem:[#allocation2 + $0x28] sm:$0xf] %vm630_vm10, %v667_v44  ;;  %v668_v46 = vsel %vm208_vm5, %v665_v45, %v667_v44  ;;  %vm1562_vm5 = vmmov 0  }
 0x524   :  { %671 = vst [vmem:[#allocation2 + $0x20] sm:$0xf] %v668_v46 }
 0x526   :  { %v685_v47 = vpop.permute.xlu1 %684  ;;  %v683_v48 = vpop.permute.xlu0 %682 }
 0x527   :  { %690 = vst.msk [vmem:[#allocation2 + $0x38] sm:$0xf] %vm630_vm10, %v685_v47  ;;  %v686_v49 = vsel %vm246_vm7, %v683_v48, %v685_v47  ;;  %vm1304_vm7 = vcmask 470016  }
 0x528   :  { %689 = vst [vmem:[#allocation2 + $0x30] sm:$0xf] %v686_v49 }
 0x52a   :  { %v639_v50 = vpop.permute.xlu1 %638  ;;  %v637_v51 = vpop.permute.xlu0 %636 }
 0x52b   :  { %645 = vst.msk [vmem:[#allocation2 + $0x8] sm:$0xf0] %vm644_vm12, %v639_v50  ;;  %v640_v52 = vsel %vm151_vm2, %v637_v51, %v639_v50  ;;  %vm730_vm2 = vcmask 1041408  }
 0x52c   :  { %643 = vst [vmem:[#allocation2] sm:$0xf0] %v640_v52 }
 0x52e   :  { %v658_v53 = vpop.permute.xlu1 %657  ;;  %v656_v54 = vpop.permute.xlu0 %655 }
 0x52f   :  { %663 = vst.msk [vmem:[#allocation2 + $0x18] sm:$0xf0] %vm644_vm12, %v658_v53  ;;  %v659_v55 = vsel %vm189_vm4, %v656_v54, %v658_v53  ;;  %vm1017_vm4 = vcmask 474112  }
 0x530   :  { %662 = vst [vmem:[#allocation2 + $0x10] sm:$0xf0] %v659_v55 }
 0x532   :  { %v676_v56 = vpop.permute.xlu1 %675  ;;  %v674_v57 = vpop.permute.xlu0 %673  ;;  %v711_v61 = vld [vmem:[#allocation2 + $0x8] sm:$0xff] }
 0x533   :  { %681 = vst.msk [vmem:[#allocation2 + $0x28] sm:$0xf0] %vm644_vm12, %v676_v56  ;;  %v677_v58 = vsel %vm227_vm6, %v674_v57, %v676_v56  ;;  %v710_v2 = vld [vmem:[#allocation2] sm:$0xff]  ;;  %vm1285_vm6 = vcmask 527416  }
 0x534   :  { %680 = vst [vmem:[#allocation2 + $0x20] sm:$0xf0] %v677_v58 }
 0x536   :  { %v694_v59 = vpop.permute.xlu1 %693  ;;  %v692_v60 = vpop.permute.xlu0 %691  ;;  %v713_v62 = vld [vmem:[#allocation2 + $0x18] sm:$0xff] }
 0x537   :  { %699 = vst.msk [vmem:[#allocation2 + $0x38] sm:$0xf0] %vm644_vm12, %v694_v59  ;;  %v695_v63 = vsel %vm265_vm8, %v692_v60, %v694_v59  ;;  %v721_v1 = vpack.c.bf16 %v713_v62, %v711_v61  ;;  %v712_v4 = vld [vmem:[#allocation2 + $0x10] sm:$0xff]  ;;  %v2009_v59 = vld [vmem:[%s2177_s2] ss:$0 sm:$0xff]  ;;  %s1556_s2 = smov 122  }
 0x538   :  { %698 = vst [vmem:[#allocation2 + $0x30] sm:$0xf0] %v695_v63  ;;  %v720_v40 = vpack.c.bf16 %v712_v4, %v710_v2  ;;  %vm1311_vm8 = vcmask 474116  }
 0x539   :  { %737 = vmatprep.subr.bf16.mxu1 %v721_v1 }
 0x53a   :  { %v703_v5 = vpop.permute.xlu1 %702  ;;  %v701_v6 = vpop.permute.xlu0 %700  ;;  %738 = vmatpush1.bf16.msra.mxu1 %v720_v40  ;;  %v715_v10 = vld [vmem:[#allocation2 + $0x28] sm:$0xff] }
 0x53b   :  { %708 = vst.msk [vmem:[#allocation2 + $0x48] sm:$0xf] %vm630_vm10, %v703_v5  ;;  %v704_v9 = vsel %vm284_vm9, %v701_v6, %v703_v5  ;;  %v714_v13 = vld [vmem:[#allocation2 + $0x20] sm:$0xff]  ;;  %vm789_vm9 = vcmask 1047644  }
 0x53c   :  { %707 = vst [vmem:[#allocation2 + $0x40] sm:$0xf] %v704_v9  ;;  %v2033_v5 = vld [vmem:[%s2178_s13] sm:$0xff]  ;;  %s1561_s13 = smov 7  }
 0x53d   :  { %v1440_v6 = vcombine.high %v2033_v5, %v2033_v5  ;;  %v1170_v9 = vld [vmem:[%s2179_s17] sm:$0xff] }
 0x53e   :  { %v717_v11 = vld [vmem:[#allocation2 + $0x38] sm:$0xff] }
 0x53f   :  { %v723_v12 = vpack.c.bf16 %v717_v11, %v715_v10  ;;  %v716_v14 = vld [vmem:[#allocation2 + $0x30] sm:$0xff]  ;;  %1441 = vmatprep.mubr.msk.bf16.mxu0 %vm356_vm1, %v1440_v6  ;;  %vm1167_vm1 = vcmask 531512  }
 0x540   :  { %v722_v15 = vpack.c.bf16 %v716_v14, %v714_v13 }
 0x541   :  { %739 = vmatprep.subr.bf16.mxu1 %v723_v12 }
 0x542   :  { %740 = vmatpush1.bf16.msra.mxu1 %v722_v15  ;;  %v719_v16 = vld [vmem:[#allocation2 + $0x48] sm:$0xf] }
 0x543   :  { %v725_v18 = vpack.c.bf16 %v719_v16, %v719_v16  ;;  %v718_v19 = vld [vmem:[#allocation2 + $0x40] sm:$0xf] }
 0x544   :  { %v724_v22 = vpack.c.bf16 %v718_v19, %v718_v19 }
 0x545   :  { %1420 = vmatprep.subr.msk.bf16.mxu1 %vm730_vm2, %v725_v18 }
 0x546   :  { %v732_v24 = vsel %vm730_vm2, %v724_v22, 0 }
 0x547   :  { %742 = vmatpush1.bf16.msra.mxu1 %v732_v24 }
 0x548   :  { %1444 = vmatprep.subr.bf16.mxu1 %v1522_v23 }
 0x54a   :  { %1421 = vmatmul.mubr.msk.bf16.vlgmr.msra.gmra.mrb[4].mxu1 %vm726_vm3, %v709_v25 }
 0x54b   :  { %1445 = vmatpush3.bf16.msra.mxu1 %v1523_v26  ;;  %967 = vmatprep.mubr.bf16.mxu1 %v806_v28  ;;  %v984_v46 = vpop.permute.xlu0 %983  ;;  %v989_v48 = vpop.permute.xlu1 %988 }
 0x54c   :  { %1446 = vmatprep.subr.bf16.mxu1 %v1524_v7 }
 0x54f   :  { %1447 = vmatpush3.bf16.msra.mxu1 %v1525_v29  ;;  %v998_v55 = vpop.permute.xlu0 %997  ;;  %v1003_v58 = vpop.permute.xlu1 %1002 }
 0x550   :  { %1448 = vmatprep.subr.bf16.mxu1 %v1526_v8 }
 0x553   :  { %1449 = vmatpush3.bf16.msra.mxu1 %v1527_v17 }
 0x554   :  { %1450 = vmatprep.subr.bf16.mxu1 %v1528_v30 }
 0x557   :  { %1451 = vmatpush3.bf16.msra.mxu1 %v1529_v31 }
 0x558   :  { %1452 = vmatprep.subr.bf16.mxu1 %v1530_v32 }
 0x55b   :  { %1453 = vmatpush3.bf16.msra.mxu1 %v1531_v33 }
 0x55c   :  { %1454 = vmatprep.subr.bf16.mxu1 %v1532_v34 }
 0x55f   :  { %1455 = vmatpush3.bf16.msra.mxu1 %v1533_v35 }
 0x560   :  { %1456 = vmatprep.subr.bf16.mxu1 %v1534_v36 }
 0x563   :  { %1457 = vmatpush3.bf16.msra.mxu1 %v1535_v37 }
 0x564   :  { %1458 = vmatprep.subr.bf16.mxu1 %v1536_v20 }
 0x567   :  { %1459 = vmatpush3.bf16.msra.mxu1 %v1537_v21 }
 0x568   :  { %1476 = vmatprep.subr.bf16.mxu1 %v1554_v3 }
 0x56a   :  { %968 = vmatmul.mubr.bf16.vlgmr.msra.gmra.mrb[8].mxu1 %v805_v41 }
 0x56b   :  { %1486 = vmatprep.mubr.msk.bf16.mxu1 %vm1562_vm5, %v1554_v3 }
 0x61d   :  { %v1996_v42 = vpop.f32.mrb[4].mxu1 }
 0x61e   :  { %v1998_v43 = vpop.f32.mrb[5].mxu1 }
 0x61f   :  { %v775_v44 = vpop.f32.mrb[6].mxu1 }
 0x620   :  { %v776_v45 = vpop.f32.mrb[7].mxu1 }
 0x63d   :  { %v1460_v47 = vpop.f32.mrb[8].mxu1 }
 0x63e   :  { %v1461_v49 = vpop.f32.mrb[9].mxu1 }
 0x63f   :  { %v2000_v50 = vadd.f32 %v1461_v49, %v1460_v47  ;;  %v1463_v51 = vpop.f32.mrb[10].mxu1 }
 0x640   :  { %v1464_v52 = vpop.f32.mrb[11].mxu1 }
 0x641   :  { %v991_v53 = vmul.f32 %v2000_v50, %v984_v46  ;;  %v2003_v54 = vadd.f32 %v1464_v52, %v1463_v51 }
 0x643   :  { %v1005_v56 = vadd.f32 %v998_v55, %v991_v53  ;;  %v992_v57 = vmul.f32 %v2003_v54, %v989_v48  ;;  %v1439_v53 = vcombine.low %v2033_v5, %v2033_v5 }
 0x645   :  { %v1007_v60 = vmax.f32 %v1005_v56, 0.0  ;;  %v1006_v61 = vadd.f32 %v1003_v58, %v992_v57 }
 0x647   :  { %v1015_v62 = vmul.f32 %v2009_v59, %v1007_v60  ;;  %v1008_v63 = vmax.f32 %v1006_v61, 0.0 }
 0x649   :  { %v1016_v1 = vmul.f32 %v2009_v59, %v1008_v63  ;;  %1022 = vrot.lane.b32.xlu0 %v1015_v62, %s1546_s0  ;;  %1018 = vst.msk [vmem:[#allocation2] sm:$0xff] %vm1017_vm4, %v1015_v62 }
 0x64b   :  { %1024 = vrot.lane.b32.xlu1 %v1016_v1, %s1546_s0  ;;  %1019 = vst.msk [vmem:[#allocation2 + $0x10] sm:$0xff] %vm1017_vm4, %v1016_v1 }
 0x64d   :  { %1030 = vrot.lane.b32.xlu0 %v1015_v62, %s1547_s9 }
 0x64f   :  { %1032 = vrot.lane.b32.xlu1 %v1016_v1, %s1547_s9 }
 0x650   :  { %v1087_v2 = vld [vmem:[#allocation2] sm:$0xff] }
 0x651   :  { %1038 = vrot.lane.b32.xlu0 %v1015_v62, %s1556_s2 }
 0x652   :  { %v1088_v4 = vld [vmem:[#allocation2 + $0x10] sm:$0xff] }
 0x653   :  { %1040 = vrot.lane.b32.xlu1 %v1016_v1, %s1556_s2  ;;  %v1105_v40 = vpack.c.bf16 %v1088_v4, %v1087_v2 }
 0x655   :  { %1046 = vrot.lane.b32.xlu0 %v1015_v62, %s1557_s27  ;;  %1124 = vmatpush1.bf16.msra.mxu0 %v1105_v40 }
 0x656   :  { %1125 = vmatprep.subr.bf16.mxu0 %v1545_v0 }
 0x657   :  { %1048 = vrot.lane.b32.xlu1 %v1016_v1, %s1557_s27 }
 0x659   :  { %1054 = vrot.lane.b32.xlu0 %v1015_v62, %s1558_s6 }
 0x65b   :  { %1056 = vrot.lane.b32.xlu1 %v1016_v1, %s1558_s6 }
 0x65d   :  { %1062 = vrot.lane.b32.xlu0 %v1015_v62, %s1550_s28 }
 0x65f   :  { %1064 = vrot.lane.b32.xlu1 %v1016_v1, %s1550_s28 }
 0x661   :  { %1070 = vrot.lane.b32.xlu0 %v1015_v62, %s1559_s26 }
 0x663   :  { %1072 = vrot.lane.b32.xlu1 %v1016_v1, %s1559_s26 }
 0x665   :  { %1078 = vrot.lane.b32.xlu0 %v1015_v62, %s1560_s15 }
 0x667   :  { %1080 = vrot.lane.b32.xlu1 %v1016_v1, %s1560_s15 }
 0x66b   :  { %1173 = vperm.xlu1 %1519, %v1170_v9  }
 0x6bb   :  { %v1023_v10 = vpop.permute.xlu0 %1022 }
 0x6bc   :  { %1028 = vst.msk [vmem:[#allocation2 + $0x20] sm:$0xff] %vm1017_vm4, %v1023_v10 }
 0x6bd   :  { %v1025_v11 = vpop.permute.xlu1 %1024 }
 0x6be   :  { %1029 = vst.msk [vmem:[#allocation2 + $0x30] sm:$0xff] %vm1017_vm4, %v1025_v11 }
 0x6bf   :  { %v1031_v12 = vpop.permute.xlu0 %1030 }
 0x6c0   :  { %1036 = vst.msk [vmem:[#allocation2 + $0x40] sm:$0xff] %vm1017_vm4, %v1031_v12 }
 0x6c1   :  { %v1033_v13 = vpop.permute.xlu1 %1032 }
 0x6c2   :  { %1037 = vst.msk [vmem:[#allocation2 + $0x50] sm:$0xff] %vm1017_vm4, %v1033_v13 }
 0x6c3   :  { %v1039_v14 = vpop.permute.xlu0 %1038  ;;  %v1089_v16 = vld [vmem:[#allocation2 + $0x20] sm:$0xff] }
 0x6c4   :  { %1044 = vst.msk [vmem:[#allocation2 + $0x60] sm:$0xff] %vm1017_vm4, %v1039_v14 }
 0x6c5   :  { %v1041_v15 = vpop.permute.xlu1 %1040  ;;  %v1090_v18 = vld [vmem:[#allocation2 + $0x30] sm:$0xff] }
 0x6c6   :  { %1045 = vst.msk [vmem:[#allocation2 + $0x70] sm:$0xff] %vm1017_vm4, %v1041_v15  ;;  %v1106_v19 = vpack.c.bf16 %v1090_v18, %v1089_v16 }
 0x6c7   :  { %v1047_v22 = vpop.permute.xlu0 %1046  ;;  %v1091_v24 = vld [vmem:[#allocation2 + $0x40] sm:$0xff] }
 0x6c8   :  { %1052 = vst.msk [vmem:[#allocation2 + $0x80] sm:$0xff] %vm1017_vm4, %v1047_v22  ;;  %1126 = vmatpush1.bf16.msra.mxu0 %v1106_v19  ;;  %v2098_v19 = vld [vmem:[#allocation4 + $0x8] sm:$0xff] }
 0x6c9   :  { %v1049_v23 = vpop.permute.xlu1 %1048  ;;  %1127 = vmatprep.subr.bf16.mxu0 %v1545_v0  ;;  %v1092_v25 = vld [vmem:[#allocation2 + $0x50] sm:$0xff] }
 0x6ca   :  { %1053 = vst.msk [vmem:[#allocation2 + $0x90] sm:$0xff] %vm1017_vm4, %v1049_v23  ;;  %v1107_v26 = vpack.c.bf16 %v1092_v25, %v1091_v24 }
 0x6cb   :  { %v1055_v27 = vpop.permute.xlu0 %1054  ;;  %v1093_v7 = vld [vmem:[#allocation2 + $0x60] sm:$0xff] }
 0x6cc   :  { %1060 = vst.msk [vmem:[#allocation2 + $0xa0] sm:$0xff] %vm1017_vm4, %v1055_v27  ;;  %1128 = vmatpush1.bf16.msra.mxu0 %v1107_v26 }
 0x6cd   :  { %v1057_v28 = vpop.permute.xlu1 %1056  ;;  %1129 = vmatprep.subr.bf16.mxu0 %v1545_v0  ;;  %v1094_v29 = vld [vmem:[#allocation2 + $0x70] sm:$0xff] }
 0x6ce   :  { %1061 = vst.msk [vmem:[#allocation2 + $0xb0] sm:$0xff] %vm1017_vm4, %v1057_v28  ;;  %v1108_v8 = vpack.c.bf16 %v1094_v29, %v1093_v7 }
 0x6cf   :  { %v1063_v17 = vpop.permute.xlu0 %1062  ;;  %v1095_v31 = vld [vmem:[#allocation2 + $0x80] sm:$0xff] }
 0x6d0   :  { %1068 = vst.msk [vmem:[#allocation2 + $0xc0] sm:$0xff] %vm1017_vm4, %v1063_v17  ;;  %1130 = vmatpush1.bf16.msra.mxu0 %v1108_v8 }
 0x6d1   :  { %v1065_v30 = vpop.permute.xlu1 %1064  ;;  %1131 = vmatprep.subr.bf16.mxu0 %v1545_v0  ;;  %v1096_v32 = vld [vmem:[#allocation2 + $0x90] sm:$0xff] }
 0x6d2   :  { %1069 = vst.msk [vmem:[#allocation2 + $0xd0] sm:$0xff] %vm1017_vm4, %v1065_v30  ;;  %v1109_v33 = vpack.c.bf16 %v1096_v32, %v1095_v31  ;;  %v1220_v31 = vld [vmem:[%s2183_s16] sm:$0x3] }
 0x6d3   :  { %v1071_v34 = vpop.permute.xlu0 %1070  ;;  %v1097_v36 = vld [vmem:[#allocation2 + $0xa0] sm:$0xff] }
 0x6d4   :  { %1076 = vst.msk [vmem:[#allocation2 + $0xe0] sm:$0xff] %vm1017_vm4, %v1071_v34  ;;  %1132 = vmatpush1.bf16.msra.mxu0 %v1109_v33 }
 0x6d5   :  { %v1073_v35 = vpop.permute.xlu1 %1072  ;;  %1133 = vmatprep.subr.bf16.mxu0 %v1545_v0  ;;  %v1098_v37 = vld [vmem:[#allocation2 + $0xb0] sm:$0xff] }
 0x6d6   :  { %1077 = vst.msk [vmem:[#allocation2 + $0xf0] sm:$0xff] %vm1017_vm4, %v1073_v35  ;;  %v1110_v20 = vpack.c.bf16 %v1098_v37, %v1097_v36  ;;  %v1295_v35 = vld [vmem:[%s2184_s21] sm:$0xf] }
 0x6d7   :  { %v1079_v21 = vpop.permute.xlu0 %1078  ;;  %v1099_v41 = vld [vmem:[#allocation2 + $0xc0] sm:$0xff] }
 0x6d8   :  { %1084 = vst.msk [vmem:[#allocation2 + $0x100] sm:$0xff] %vm1017_vm4, %v1079_v21  ;;  %1134 = vmatpush1.bf16.msra.mxu0 %v1110_v20 }
 0x6d9   :  { %v1081_v38 = vpop.permute.xlu1 %1080  ;;  %1135 = vmatprep.subr.bf16.mxu0 %v1545_v0  ;;  %v1100_v44 = vld [vmem:[#allocation2 + $0xd0] sm:$0xff] }
 0x6da   :  { %1085 = vst.msk [vmem:[#allocation2 + $0x110] sm:$0xff] %vm1017_vm4, %v1081_v38  ;;  %v1111_v45 = vpack.c.bf16 %v1100_v44, %v1099_v41 }
 0x6db   :  { %v1101_v46 = vld [vmem:[#allocation2 + $0xe0] sm:$0xff] }
 0x6dc   :  { %1136 = vmatpush1.bf16.msra.mxu0 %v1111_v45 }
 0x6dd   :  { %1137 = vmatprep.subr.bf16.mxu0 %v1545_v0  ;;  %v1102_v47 = vld [vmem:[#allocation2 + $0xf0] sm:$0xff] }
 0x6de   :  { %v1112_v48 = vpack.c.bf16 %v1102_v47, %v1101_v46 }
 0x6df   :  { %v1103_v49 = vld [vmem:[#allocation2 + $0x100] sm:$0xff] }
 0x6e0   :  { %1138 = vmatpush1.bf16.msra.mxu0 %v1112_v48  ;;  %v781_v48 = vrot.slane %v1998_v43, 4 }
 0x6e1   :  { %1139 = vmatprep.subr.bf16.mxu0 %v1545_v0  ;;  %v1104_v51 = vld [vmem:[#allocation2 + $0x110] sm:$0xff]  ;;  %v1177_v0 = vld [vmem:[%s2180_s18] sm:$0xff] }
 0x6e2   :  { %v1113_v52 = vpack.c.bf16 %v1104_v51, %v1103_v49 }
 0x6e4   :  { %1140 = vmatpush1.bf16.msra.mxu0 %v1113_v52 }
 0x6e5   :  { %1490 = vmatprep.subr.bf16.mxu0 %v1554_v3 }
 0x6e7   :  { %1156 = vmatmul.mubr.bf16.vlgmr.msra.gmra.mrb[4].mxu0 %v1439_v53 }
 0x6e8   :  { %1496 = vmatprep.mubr.msk.bf16.mxu0 %vm1562_vm5, %v1554_v3 }
 0x6ea   :  { %v1174_v63 = vpop.permute.xlu1 %1173 }
 0x7ba   :  { %v1157_v55 = vpop.f32.mrb[4].mxu0 }
 0x7bb   :  { %1164 = vrot.lane.b32.xlu0 %v1157_v55, %s1561_s13  ;;  %v1159_v56 = vpop.f32.mrb[5].mxu0 }
 0x7bc   :  { %v1160_v57 = vpop.f32.mrb[6].mxu0 }
 0x7bd   :  { %v1161_v58 = vpop.f32.mrb[7].mxu0 }
 0x7bf   :  { %1180 = vperm.xlu0 %1518, %v1177_v0  }
 0x82d   :  { %v1165_v60 = vpop.permute.xlu0 %1164 }
 0x82e   :  { %1168 = vst.msk [vmem:[#allocation4] sm:$0xff] %vm1167_vm1, %v1165_v60 }
 0x835   :  { %v1401_v61 = vld [vmem:[#allocation4] sm:$0xff] }
 0x836   :  { %v1403_v62 = vadd.f32 %v2000_v50, %v1401_v61  ;;  %v1176_v1 = vmul.f32 %v1401_v61, %v1174_v63  ;;  %v1288_v50 = vld [vmem:[%s2182_s20] sm:$0xf] }
 0x838   :  { %1405 = vst [vmem:[%s2181_s23] sm:$0xff] %v1403_v62 }
 0x83e   :  { %v1181_v2 = vpop.permute.xlu0 %1180 }
 0x83f   :  { %v1183_v4 = vadd.f32 %v1181_v2, %v1176_v1 }
 0x841   :  { %v1184_v40 = vmax.f32 %v1183_v4, 0.0 }
 0x843   :  { %v1185_v5 = vmul.f32 %v2009_v59, %v1184_v40 }
 0x845   :  { %1186 = vst.msk [vmem:[#allocation2] sm:$0xff] %vm1017_vm4, %v1185_v5  ;;  %1192 = vrot.lane.b32.xlu0 %v1185_v5, %s1547_s9  ;;  %1188 = vrot.lane.b32.xlu1 %v1185_v5, %s1546_s0 }
 0x849   :  { %1200 = vrot.lane.b32.xlu0 %v1185_v5, %s1557_s27  ;;  %1196 = vrot.lane.b32.xlu1 %v1185_v5, %s1556_s2 }
 0x84c   :  { %v1221_v14 = vld [vmem:[#allocation2] sm:$0xff] }
 0x84d   :  { %1208 = vrot.lane.b32.xlu0 %v1185_v5, %s1550_s28  ;;  %1204 = vrot.lane.b32.xlu1 %v1185_v5, %s1558_s6 }
 0x851   :  { %1216 = vrot.lane.b32.xlu0 %v1185_v5, %s1560_s15  ;;  %1212 = vrot.lane.b32.xlu1 %v1185_v5, %s1559_s26 }
 0x855   :  { %1291 = vperm.xlu0 %1518, %v1288_v50  }
 0x8b7   :  { %v1193_v6 = vpop.permute.xlu0 %1192  ;;  %v1189_v9 = vpop.permute.xlu1 %1188 }
 0x8b8   :  { %1195 = vst.msk [vmem:[#allocation2 + $0x20] sm:$0xff] %vm1017_vm4, %v1193_v6  ;;  %1191 = vst.msk [vmem:[#allocation2 + $0x10] sm:$0xff] %vm1017_vm4, %v1189_v9  ;;  %v1544_v9 = vld [vmem:[%s2204_s29 + $0x18] sm:$0xff] }
 0x8bb   :  { %v1201_v10 = vpop.permute.xlu0 %1200  ;;  %v1197_v11 = vpop.permute.xlu1 %1196 }
 0x8bc   :  { %1203 = vst.msk [vmem:[#allocation2 + $0x40] sm:$0xff] %vm1017_vm4, %v1201_v10  ;;  %1199 = vst.msk [vmem:[#allocation2 + $0x30] sm:$0xff] %vm1017_vm4, %v1197_v11 }
 0x8bf   :  { %v1209_v12 = vpop.permute.xlu0 %1208  ;;  %v1205_v13 = vpop.permute.xlu1 %1204  ;;  %v1222_v15 = vld [vmem:[#allocation2 + $0x10] sm:$0xff]  ;;  %v1223_v22 = vld [vmem:[#allocation2 + $0x20] sm:$0xff] }
 0x8c0   :  { %1211 = vst.msk [vmem:[#allocation2 + $0x60] sm:$0xff] %vm1017_vm4, %v1209_v12  ;;  %1207 = vst.msk [vmem:[#allocation2 + $0x50] sm:$0xff] %vm1017_vm4, %v1205_v13  ;;  %v1230_v3 = vpack.c.bf16 %v1222_v15, %v1221_v14  ;;  %v1341_v12 = vld [vmem:[%s2185_s19] sm:$0x3] }
 0x8c2   :  { %1477 = vmatpush3.bf16.msra.mxu1 %v1230_v3 }
 0x8c3   :  { %v1217_v16 = vpop.permute.xlu0 %1216  ;;  %v1213_v18 = vpop.permute.xlu1 %1212  ;;  %1478 = vmatprep.subr.bf16.mxu1 %v2098_v19  ;;  %v1224_v23 = vld [vmem:[#allocation2 + $0x30] sm:$0xff]  ;;  %v1225_v25 = vld [vmem:[#allocation2 + $0x40] sm:$0xff] }
 0x8c4   :  { %1219 = vst.msk [vmem:[#allocation2 + $0x80] sm:$0xff] %vm1017_vm4, %v1217_v16  ;;  %1215 = vst.msk [vmem:[#allocation2 + $0x70] sm:$0xff] %vm1017_vm4, %v1213_v18  ;;  %v1231_v24 = vpack.c.bf16 %v1224_v23, %v1223_v22 }
 0x8c6   :  { %1479 = vmatpush3.bf16.msra.mxu1 %v1231_v24 }
 0x8c7   :  { %1480 = vmatprep.subr.bf16.mxu1 %v2098_v19  ;;  %v1226_v26 = vld [vmem:[#allocation2 + $0x50] sm:$0xff]  ;;  %v1227_v28 = vld [vmem:[#allocation2 + $0x60] sm:$0xff] }
 0x8c8   :  { %v1232_v27 = vpack.c.bf16 %v1226_v26, %v1225_v25 }
 0x8ca   :  { %1481 = vmatpush3.bf16.msra.mxu1 %v1232_v27 }
 0x8cb   :  { %1482 = vmatprep.subr.bf16.mxu1 %v2098_v19  ;;  %v1228_v7 = vld [vmem:[#allocation2 + $0x70] sm:$0xff]  ;;  %v1229_v29 = vld [vmem:[#allocation2 + $0x80] sm:$0xff] }
 0x8cc   :  { %v1233_v8 = vpack.c.bf16 %v1228_v7, %v1227_v28  ;;  %v1234_v17 = vpack.c.bf16 %v1229_v29, %v1229_v29 }
 0x8ce   :  { %1483 = vmatpush3.bf16.msra.mxu1 %v1233_v8  ;;  %v1239_v30 = vsel %vm546_vm13, %v1234_v17, 0  ;;  %vm791_vm13 = vcmask 498692  }
 0x8cf   :  { %1484 = vmatprep.subr.bf16.mxu1 %v2098_v19 }
 0x8d2   :  { %1485 = vmatpush3.bf16.msra.mxu1 %v1239_v30 }
 0x8d4   :  { %v1292_v21 = vpop.permute.xlu0 %1291 }
 0x8d5   :  { %1487 = vmatmul.mubr.msk.bf16.vlgmr.msra.gmra.mrb[12].mxu1 %vm542_vm14, %v1220_v31 }
 0x9a8   :  { %v1275_v32 = vpop.f32.mrb[12].mxu1 }
 0x9a9   :  { %1282 = vrot.lane.b32.xlu1 %v1275_v32, %s1561_s13  ;;  %v1488_v33 = vpop.f32.mrb[13].mxu1 }
 0x9aa   :  { %v1278_v34 = vpop.f32.mrb[14].mxu1 }
 0x9ab   :  { %v1489_v36 = vpop.f32.mrb[15].mxu1 }
 0x9ad   :  { %1298 = vperm.xlu1 %1519, %v1295_v35  }
 0xa1b   :  { %v1283_v37 = vpop.permute.xlu1 %1282 }
 0xa1c   :  { %1286 = vst.msk [vmem:[#allocation4 + $0x8] sm:$0xf] %vm1285_vm6, %v1283_v37 }
 0xa23   :  { %v1287_v20 = vld [vmem:[#allocation4 + $0x8] sm:$0xf] }
 0xa24   :  { %v1294_v38 = vmul.f32 %v1292_v21, %v1287_v20 }
 0xa2c   :  { %v1299_v41 = vpop.permute.xlu1 %1298 }
 0xa2d   :  { %v1301_v44 = vadd.f32 %v1299_v41, %v1294_v38 }
 0xa2f   :  { %v1302_v45 = vmax.f32 %v1301_v44, 0.0 }
 0xa31   :  { %v1303_v46 = vmul.f32 %v2009_v59, %v1302_v45  ;;  %v780_v59 = vrot.slane %v1996_v42, 4 }
 0xa33   :  { %1313 = vrot.lane.b32.xlu1 %v1303_v46, %s1547_s9  ;;  %v1307_v47 = vrot.slane %v1303_v46, 4  ;;  %1305 = vst.msk [vmem:[#allocation2] sm:$0xf] %vm1304_vm7, %v1303_v46 }
 0xa35   :  { %1308 = vrot.lane.b32.xlu0 %v1307_v47, %s1546_s0 }
 0xa37   :  { %1321 = vrot.lane.b32.xlu1 %v1303_v46, %s1557_s27 }
 0xa39   :  { %1317 = vrot.lane.b32.xlu0 %v1307_v47, %s1556_s2 }
 0xa3b   :  { %1329 = vrot.lane.b32.xlu1 %v1303_v46, %s1550_s28 }
 0xa3d   :  { %1325 = vrot.lane.b32.xlu0 %v1307_v47, %s1558_s6 }
 0xa3f   :  { %1337 = vrot.lane.b32.xlu1 %v1303_v46, %s1560_s15 }
 0xa41   :  { %1333 = vrot.lane.b32.xlu0 %v1307_v47, %s1559_s26 }
 0xa43   :  { %784 = vrot.lane.b32.xlu1 %v781_v48, %s1555_s8 }
 0xa45   :  { %782 = vrot.lane.b32.xlu0 %v780_v59, %s1555_s8 }
 0xaa5   :  { %v1314_v49 = vpop.permute.xlu1 %1313 }
 0xaa6   :  { %1316 = vst.msk [vmem:[#allocation2 + $0x10] sm:$0xf] %vm1304_vm7, %v1314_v49 }
 0xaa7   :  { %v1309_v51 = vpop.permute.xlu0 %1308 }
 0xaa8   :  { %1312 = vst.msk [vmem:[#allocation2] sm:$0xf0] %vm1311_vm8, %v1309_v51 }
 0xaa9   :  { %v1322_v52 = vpop.permute.xlu1 %1321 }
 0xaaa   :  { %1324 = vst.msk [vmem:[#allocation2 + $0x20] sm:$0xf] %vm1304_vm7, %v1322_v52 }
 0xaab   :  { %v1318_v53 = vpop.permute.xlu0 %1317 }
 0xaac   :  { %1320 = vst.msk [vmem:[#allocation2 + $0x10] sm:$0xf0] %vm1311_vm8, %v1318_v53 }
 0xaad   :  { %v1330_v43 = vpop.permute.xlu1 %1329 }
 0xaae   :  { %1332 = vst.msk [vmem:[#allocation2 + $0x30] sm:$0xf] %vm1304_vm7, %v1330_v43 }
 0xaaf   :  { %v1326_v42 = vpop.permute.xlu0 %1325  ;;  %v1342_v57 = vld [vmem:[#allocation2] sm:$0xff] }
 0xab0   :  { %1328 = vst.msk [vmem:[#allocation2 + $0x20] sm:$0xf0] %vm1311_vm8, %v1326_v42 }
 0xab1   :  { %v1338_v55 = vpop.permute.xlu1 %1337 }
 0xab2   :  { %1340 = vst.msk [vmem:[#allocation2 + $0x40] sm:$0xf] %vm1304_vm7, %v1338_v55 }
 0xab3   :  { %v1334_v56 = vpop.permute.xlu0 %1333  ;;  %v1343_v0 = vld [vmem:[#allocation2 + $0x10] sm:$0xff] }
 0xab4   :  { %1336 = vst.msk [vmem:[#allocation2 + $0x30] sm:$0xf0] %vm1311_vm8, %v1334_v56  ;;  %v1347_v58 = vpack.c.bf16 %v1343_v0, %v1342_v57 }
 0xab5   :  { %v785_v60 = vpop.permute.xlu1 %784 }
 0xab6   :  { %1491 = vmatpush3.bf16.msra.mxu0 %v1347_v58 }
 0xab7   :  { %v783_v61 = vpop.permute.xlu0 %782  ;;  %1492 = vmatprep.subr.bf16.mxu0 %v2098_v19  ;;  %v1344_v1 = vld [vmem:[#allocation2 + $0x20] sm:$0xff] }
 0xab8   :  { %v786_v62 = vsel %vm407_vm11, %v783_v61, %v785_v60  ;;  %790 = vst.msk [vmem:[#allocation3 + $0x10] sm:$0xf0] %vm789_vm9, %v783_v61 }
 0xab9   :  { %792 = vst.msk [vmem:[#allocation3 + $0x18] sm:$0xf0] %vm791_vm13, %v786_v62  ;;  %v1346_v63 = vld [vmem:[#allocation2 + $0x40] sm:$0xf] }
 0xaba   :  { %v1349_v40 = vpack.c.bf16 %v1346_v63, %v1346_v63 }
 0xabb   :  { %v1345_v2 = vld [vmem:[#allocation2 + $0x30] sm:$0xff] }
 0xabc   :  { %v1348_v4 = vpack.c.bf16 %v1345_v2, %v1344_v1  ;;  %v1354_v11 = vsel %vm730_vm2, %v1349_v40, 0 }
 0xabe   :  { %1493 = vmatpush3.bf16.msra.mxu0 %v1348_v4 }
 0xabf   :  { %v795_v5 = vld [vmem:[#allocation3 + $0x10] sm:$0xff]  ;;  %1494 = vmatprep.subr.bf16.mxu0 %v2098_v19 }
 0xac0   :  { %v796_v50 = vld [vmem:[#allocation3 + $0x18] sm:$0xff]  ;;  %v799_v6 = vadd.f32 %v1992_v39, %v795_v5 }
 0xac1   :  { %v800_v10 = vadd.f32 %v1544_v9, %v796_v50 }
 0xac2   :  { %803 = vst [vmem:[%s2209_s30 + $0x10] sm:$0xff] %v799_v6  ;;  %1495 = vmatpush3.bf16.msra.mxu0 %v1354_v11 }
 0xac3   :  { %804 = vst [vmem:[%s2209_s30 + $0x18] sm:$0xff] %v800_v10 }
 0xac5   :  { %1497 = vmatmul.mubr.msk.bf16.vlgmr.msra.gmra.mrb[8].mxu0 %vm726_vm3, %v1341_v12 }
 0xb98   :  { %v1390_v39 = vpop.f32.mrb[8].mxu0 }
 0xb99   :  { %1397 = vrot.lane.b32.xlu0 %v1390_v39, %s1561_s13  ;;  %v1498_v13 = vpop.f32.mrb[9].mxu0 }
 0xb9a   :  { %v1393_v14 = vpop.f32.mrb[10].mxu0 }
 0xb9b   :  { %v1499_v15 = vpop.f32.mrb[11].mxu0 }
 0xc0b   :  { %v1398_v3 = vpop.permute.xlu0 %1397 }
 0xc0c   :  { %1400 = vst.msk [vmem:[#allocation4 + $0xc] sm:$0xf] %vm1285_vm6, %v1398_v3 }
 0xc13   :  { %v1402_v16 = vld [vmem:[#allocation4 + $0x8] sm:$0xff] }
 0xc14   :  { %v1404_v18 = vadd.f32 %v2003_v54, %v1402_v16 }
 0xc16   :  { %1406 = vst [vmem:[%s2181_s23 + $0x8] sm:$0xff] %v1404_v18 }

// kernel: hourglass_nchw.7
= control target key start
LH: loop header
LB: loop body
LE: loop exit
PB: predicated region body
PF: predicated region fallthrough
CT: control target
= control target key end

     0   :  { %v1785_v0 = vmov 0   ;;  %v91_v5 = vlaneseq  ;;  %vm106_vm0 = vcmask 408576   ;;  %s1787_s24 = smov 126   ;;  %s1788_s25 = smov 118   ;;  %vm327_vm1 = vcmask 130048   ;;  %s2462_s6 = inlined_call_operand.vmem [shape: f32[16,1], index: 6, kind: input, shape index: {}]   ;;  %s2463_s5 = inlined_call_operand.vmem [shape: f32[16,1], index: 5, kind: input, shape index: {}]   ;;  %s2464_s0 = inlined_call_operand.vmem [shape: f32[16,256], index: 0, kind: input, shape index: {}]   ;;  %s2465_s2 = inlined_call_operand.vmem [shape: f32[1,256], index: 2, kind: input, shape index: {}]   ;;  %s2466_s4 = inlined_call_operand.vmem [shape: bf16[8,144], index: 4, kind: input, shape index: {}]   ;;  %s2467_s8 = inlined_call_operand.vmem [shape: f32[8,1], index: 8, kind: input, shape index: {}]   ;;  %s2468_s9 = inlined_call_operand.vmem [shape: f32[8,1], index: 9, kind: input, shape index: {}]   ;;  %s2469_s7 = inlined_call_operand.vmem [shape: bf16[4,72], index: 7, kind: input, shape index: {}]   ;;  %s2470_s11 = inlined_call_operand.vmem [shape: f32[4,1], index: 11, kind: input, shape index: {}]   ;;  %s2471_s12 = inlined_call_operand.vmem [shape: f32[4,1], index: 12, kind: input, shape index: {}]   ;;  %s2472_s10 = inlined_call_operand.vmem [shape: bf16[4,36], index: 10, kind: input, shape index: {}]   ;;  %s2473_s3 = inlined_call_operand.vmem [shape: bf16[256,768], index: 3, kind: input, shape index: {}]   ;;  %s2474_s1 = inlined_call_operand.vmem [shape: f32[16,768], index: 1, kind: input, shape index: {}]   ;;  %s2475_s13 = inlined_call_operand.vmem [shape: f32[16,768], index: 13, kind: output, shape index: {}]  }
   0x1   :  { %1634 = vset.pattern.permute.xlu1 %v1785_v0  ;;  %1633 = vset.pattern.permute.xlu0 %v1785_v0  ;;  %v70_v1 = vld [vmem:[%s2462_s6] sm:$0xff]  ;;  %v71_v3 = vld [vmem:[%s2462_s6 + $0x8] sm:$0xff]  ;;  %v48_v16 = vld [vmem:[%s2464_s0 + $0x10] sm:$0xff]  ;;  %s1789_s26 = smov 117   ;;  %s1790_s27 = smov 116   ;;  %vm122_vm2 = vcmask 1039360  }
   0x2   :  { %v54_v2 = vld [vmem:[%s2463_s5] sm:$0xff]  ;;  %74 = vperm.xlu1 %1634, %v70_v1   ;;  %v55_v4 = vld [vmem:[%s2463_s5 + $0x8] sm:$0xff]  ;;  %v92_v6 = vshrl.u32 %v91_v5, 7  ;;  %v49_v17 = vld [vmem:[%s2464_s0 + $0x18] sm:$0xff]  ;;  %s1791_s28 = smov 108   ;;  %s1792_s29 = smov 107  }
   0x3   :  { %58 = vperm.xlu0 %1633, %v54_v2   ;;  %v46_v7 = vld [vmem:[%s2464_s0] sm:$0xff]  ;;  %v47_v8 = vld [vmem:[%s2464_s0 + $0x8] sm:$0xff]  ;;  %s1793_s30 = smov 106   ;;  %vm141_vm3 = vcmask 1031168   ;;  %vm160_vm4 = vcmask 965632   ;;  %vm179_vm5 = vcmask 957440  }
   0x4   :  { %v93_v9 = vsub.s32 0, %v92_v6  ;;  %v97_v10 = vsub.s32 1, %v92_v6  ;;  %v45_v13 = vld [vmem:[%s2465_s2] sm:$0x3]  ;;  %s1786_s2 = smov 127   ;;  %vm198_vm6 = vcmask 949248  }
   0x5   :  { %v1938_v40 = vld [vmem:[%s2466_s4] sm:$0xff]  ;;  %vm217_vm7 = vcmask 883712   ;;  %vm236_vm8 = vcmask 875520   ;;  %vm255_vm9 = vcmask 867328   ;;  %s1795_s4 = smov 11   ;;  %vm382_vm10 = vcmask 1047640  }
   0x6   :  { %79 = vperm.xlu1 %1634, %v71_v3   ;;  %v1895_v20 = vrot.slane %v45_v13, %v93_v9  ;;  %v1897_v21 = vrot.slane %v45_v13, %v97_v10  ;;  %v1520_v41 = vcombine.high %v1938_v40, %v1938_v40  ;;  %vm378_vm11 = vcmask 89088  }
   0x7   :  { %63 = vperm.xlu0 %1633, %v55_v4   ;;  %vm384_vm12 = vcmask 498688   ;;  %vm517_vm13 = vcmask 1043456   ;;  %vm513_vm14 = vcmask 588800   ;;  %vm574_vm15 = vcmask 1043544  }
   0x8   :  { %1521 = vmatprep.mubr.msk.bf16.mxu0 %vm327_vm1, %v1520_v41  ;;  %vm601_vm1 = vcmask 404480  }
  0x81   :  { %v75_v11 = vpop.permute.xlu1 %74 }
  0x82   :  { %v59_v12 = vpop.permute.xlu0 %58 }
  0x83   :  { %v66_v14 = vmul.f32 %v59_v12, %v46_v7  ;;  %v67_v15 = vmul.f32 %v59_v12, %v47_v8 }
  0x85   :  { %v82_v18 = vadd.f32 %v75_v11, %v66_v14  ;;  %v83_v19 = vadd.f32 %v75_v11, %v67_v15  ;;  %v80_v27 = vpop.permute.xlu1 %79 }
  0x86   :  { %v64_v22 = vpop.permute.xlu0 %63 }
  0x87   :  { %v86_v23 = vmax.f32 %v82_v18, 0.0  ;;  %v87_v24 = vmax.f32 %v83_v19, 0.0  ;;  %v68_v25 = vmul.f32 %v64_v22, %v48_v16  ;;  %v69_v26 = vmul.f32 %v64_v22, %v49_v17 }
  0x89   :  { %v101_v28 = vmul.f32 %v1895_v20, %v86_v23  ;;  %v102_v29 = vmul.f32 %v1897_v21, %v87_v24  ;;  %v84_v30 = vadd.f32 %v80_v27, %v68_v25  ;;  %v85_v31 = vadd.f32 %v80_v27, %v69_v26 }
  0x8b   :  { %v88_v32 = vmax.f32 %v84_v30, 0.0  ;;  %v89_v33 = vmax.f32 %v85_v31, 0.0  ;;  %116 = vrot.lane.b32.xlu1 %v102_v29, %s1786_s2  ;;  %114 = vrot.lane.b32.xlu0 %v101_v28, %s1786_s2  ;;  %107 = vst.msk [vmem:[#allocation2 + $0x8] sm:$0xff] %vm106_vm0, %v102_v29 }
  0x8d   :  { %v103_v34 = vmul.f32 %v1895_v20, %v88_v32  ;;  %v104_v35 = vmul.f32 %v1897_v21, %v89_v33 }
  0x8f   :  { %120 = vrot.lane.b32.xlu1 %v104_v35, %s1786_s2  ;;  %118 = vrot.lane.b32.xlu0 %v103_v34, %s1786_s2  ;;  %109 = vst.msk [vmem:[#allocation2 + $0x18] sm:$0xff] %vm106_vm0, %v104_v35  ;;  %v303_v39 = vpack.c.bf16 %v103_v34, %v101_v28 }
  0x92   :  { %v268_v36 = vld [vmem:[#allocation2 + $0x8] sm:$0xff] }
  0x93   :  { %135 = vrot.lane.b32.xlu1 %v102_v29, %s1787_s24  ;;  %133 = vrot.lane.b32.xlu0 %v101_v28, %s1787_s24 }
  0x96   :  { %v270_v37 = vld [vmem:[#allocation2 + $0x18] sm:$0xff] }
  0x97   :  { %139 = vrot.lane.b32.xlu1 %v104_v35, %s1787_s24  ;;  %137 = vrot.lane.b32.xlu0 %v103_v34, %s1787_s24  ;;  %v304_v38 = vpack.c.bf16 %v270_v37, %v268_v36 }
  0x99   :  { %331 = vmatprep.subr.bf16.mxu0 %v304_v38 }
  0x9a   :  { %332 = vmatpush1.bf16.msra.mxu0 %v303_v39 }
  0x9b   :  { %154 = vrot.lane.b32.xlu1 %v102_v29, %s1788_s25  ;;  %152 = vrot.lane.b32.xlu0 %v101_v28, %s1788_s25 }
  0x9f   :  { %158 = vrot.lane.b32.xlu1 %v104_v35, %s1788_s25  ;;  %156 = vrot.lane.b32.xlu0 %v103_v34, %s1788_s25 }
  0xa3   :  { %173 = vrot.lane.b32.xlu1 %v102_v29, %s1789_s26  ;;  %171 = vrot.lane.b32.xlu0 %v101_v28, %s1789_s26 }
  0xa7   :  { %177 = vrot.lane.b32.xlu1 %v104_v35, %s1789_s26  ;;  %175 = vrot.lane.b32.xlu0 %v103_v34, %s1789_s26 }
  0xab   :  { %192 = vrot.lane.b32.xlu1 %v102_v29, %s1790_s27  ;;  %190 = vrot.lane.b32.xlu0 %v101_v28, %s1790_s27 }
  0xaf   :  { %196 = vrot.lane.b32.xlu1 %v104_v35, %s1790_s27  ;;  %194 = vrot.lane.b32.xlu0 %v103_v34, %s1790_s27 }
  0xb3   :  { %211 = vrot.lane.b32.xlu1 %v102_v29, %s1791_s28  ;;  %209 = vrot.lane.b32.xlu0 %v101_v28, %s1791_s28 }
  0xb7   :  { %215 = vrot.lane.b32.xlu1 %v104_v35, %s1791_s28  ;;  %213 = vrot.lane.b32.xlu0 %v103_v34, %s1791_s28 }
  0xbb   :  { %230 = vrot.lane.b32.xlu1 %v102_v29, %s1792_s29  ;;  %228 = vrot.lane.b32.xlu0 %v101_v28, %s1792_s29 }
  0xbf   :  { %234 = vrot.lane.b32.xlu1 %v104_v35, %s1792_s29  ;;  %232 = vrot.lane.b32.xlu0 %v103_v34, %s1792_s29 }
  0xc3   :  { %249 = vrot.lane.b32.xlu1 %v102_v29, %s1793_s30  ;;  %247 = vrot.lane.b32.xlu0 %v101_v28, %s1793_s30 }
  0xc7   :  { %253 = vrot.lane.b32.xlu1 %v104_v35, %s1793_s30  ;;  %251 = vrot.lane.b32.xlu0 %v103_v34, %s1793_s30 }
  0xfd   :  { %v117_v42 = vpop.permute.xlu1 %116  ;;  %v115_v43 = vpop.permute.xlu0 %114 }
  0xfe   :  { %130 = vst.msk [vmem:[#allocation2 + $0x28] sm:$0xff] %vm106_vm0, %v117_v42  ;;  %v123_v53 = vsel %vm122_vm2, %v115_v43, %v117_v42 }
 0x101   :  { %v121_v44 = vpop.permute.xlu1 %120  ;;  %v119_v45 = vpop.permute.xlu0 %118 }
 0x102   :  { %132 = vst.msk [vmem:[#allocation2 + $0x38] sm:$0xff] %vm106_vm0, %v121_v44  ;;  %v124_v48 = vsel %vm122_vm2, %v119_v45, %v121_v44 }
 0x103   :  { %v305_v55 = vpack.c.bf16 %v124_v48, %v123_v53 }
 0x105   :  { %v136_v46 = vpop.permute.xlu1 %135  ;;  %v134_v47 = vpop.permute.xlu0 %133  ;;  %v272_v51 = vld [vmem:[#allocation2 + $0x28] sm:$0xff] }
 0x106   :  { %149 = vst.msk [vmem:[#allocation2 + $0x48] sm:$0xff] %vm106_vm0, %v136_v46  ;;  %v142_v63 = vsel %vm141_vm3, %v134_v47, %v136_v46 }
 0x109   :  { %v140_v49 = vpop.permute.xlu1 %139  ;;  %v138_v50 = vpop.permute.xlu0 %137  ;;  %v274_v52 = vld [vmem:[#allocation2 + $0x38] sm:$0xff] }
 0x10a   :  { %151 = vst.msk [vmem:[#allocation2 + $0x58] sm:$0xff] %vm106_vm0, %v140_v49  ;;  %v306_v54 = vpack.c.bf16 %v274_v52, %v272_v51  ;;  %v143_v58 = vsel %vm141_vm3, %v138_v50, %v140_v49 }
 0x10b   :  { %v307_v2 = vpack.c.bf16 %v143_v58, %v142_v63  ;;  %v1794_v63 = vmov 0.0  }
 0x10c   :  { %333 = vmatprep.subr.bf16.mxu0 %v306_v54  ;;  %50 = vst [vmem:[#allocation3] sm:$0xff] %v1794_v63  ;;  %51 = vst [vmem:[#allocation3 + $0x8] sm:$0xff] %v1794_v63 }
 0x10d   :  { %v155_v56 = vpop.permute.xlu1 %154  ;;  %v153_v57 = vpop.permute.xlu0 %152  ;;  %334 = vmatpush1.bf16.msra.mxu0 %v305_v55  ;;  %v276_v61 = vld [vmem:[#allocation2 + $0x48] sm:$0xff]  ;;  %52 = vst [vmem:[#allocation3 + $0x10] sm:$0xff] %v1794_v63  ;;  %53 = vst [vmem:[#allocation3 + $0x18] sm:$0xff] %v1794_v63 }
 0x10e   :  { %168 = vst.msk [vmem:[#allocation2 + $0x68] sm:$0xff] %vm106_vm0, %v155_v56  ;;  %v161_v10 = vsel %vm160_vm4, %v153_v57, %v155_v56 }
 0x111   :  { %v159_v59 = vpop.permute.xlu1 %158  ;;  %v157_v60 = vpop.permute.xlu0 %156  ;;  %v278_v62 = vld [vmem:[#allocation2 + $0x58] sm:$0xff] }
 0x112   :  { %170 = vst.msk [vmem:[#allocation2 + $0x78] sm:$0xff] %vm106_vm0, %v159_v59  ;;  %v308_v1 = vpack.c.bf16 %v278_v62, %v276_v61  ;;  %v162_v5 = vsel %vm160_vm4, %v157_v60, %v159_v59  ;;  %v1519_v62 = vcombine.low %v1938_v40, %v1938_v40  ;;  %v388_v40 = vld [vmem:[%s2467_s8] sm:$0xff] }
 0x113   :  { %v309_v13 = vpack.c.bf16 %v162_v5, %v161_v10  ;;  %v396_v5 = vld [vmem:[%s2468_s9] sm:$0xff] }
 0x114   :  { %335 = vmatprep.subr.bf16.mxu0 %v308_v1 }
 0x115   :  { %v174_v3 = vpop.permute.xlu1 %173  ;;  %v172_v4 = vpop.permute.xlu0 %171  ;;  %336 = vmatpush1.bf16.msra.mxu0 %v307_v2  ;;  %v280_v8 = vld [vmem:[#allocation2 + $0x68] sm:$0xff] }
 0x116   :  { %187 = vst.msk [vmem:[#allocation2 + $0x88] sm:$0xff] %vm106_vm0, %v174_v3  ;;  %v180_v23 = vsel %vm179_vm5, %v172_v4, %v174_v3 }
 0x119   :  { %v178_v6 = vpop.permute.xlu1 %177  ;;  %v176_v7 = vpop.permute.xlu0 %175  ;;  %v282_v9 = vld [vmem:[#allocation2 + $0x78] sm:$0xff] }
 0x11a   :  { %189 = vst.msk [vmem:[#allocation2 + $0x98] sm:$0xff] %vm106_vm0, %v178_v6  ;;  %v181_v11 = vsel %vm179_vm5, %v176_v7, %v178_v6  ;;  %v310_v12 = vpack.c.bf16 %v282_v9, %v280_v8 }
 0x11b   :  { %v311_v26 = vpack.c.bf16 %v181_v11, %v180_v23 }
 0x11c   :  { %337 = vmatprep.subr.bf16.mxu0 %v310_v12 }
 0x11d   :  { %v193_v14 = vpop.permute.xlu1 %192  ;;  %v191_v15 = vpop.permute.xlu0 %190  ;;  %338 = vmatpush1.bf16.msra.mxu0 %v309_v13  ;;  %v284_v19 = vld [vmem:[#allocation2 + $0x88] sm:$0xff] }
 0x11e   :  { %206 = vst.msk [vmem:[#allocation2 + $0xa8] sm:$0xff] %vm106_vm0, %v193_v14  ;;  %v199_v16 = vsel %vm198_vm6, %v191_v15, %v193_v14 }
 0x121   :  { %v197_v17 = vpop.permute.xlu1 %196  ;;  %v195_v18 = vpop.permute.xlu0 %194  ;;  %v286_v22 = vld [vmem:[#allocation2 + $0x98] sm:$0xff] }
 0x122   :  { %208 = vst.msk [vmem:[#allocation2 + $0xb8] sm:$0xff] %vm106_vm0, %v197_v17  ;;  %v200_v24 = vsel %vm198_vm6, %v195_v18, %v197_v17  ;;  %v312_v25 = vpack.c.bf16 %v286_v22, %v284_v19 }
 0x123   :  { %v313_v36 = vpack.c.bf16 %v200_v24, %v199_v16 }
 0x124   :  { %339 = vmatprep.subr.bf16.mxu0 %v312_v25 }
 0x125   :  { %v212_v27 = vpop.permute.xlu1 %211  ;;  %v210_v28 = vpop.permute.xlu0 %209  ;;  %340 = vmatpush1.bf16.msra.mxu0 %v311_v26  ;;  %v288_v32 = vld [vmem:[#allocation2 + $0xa8] sm:$0xff] }
 0x126   :  { %225 = vst.msk [vmem:[#allocation2 + $0xc8] sm:$0xff] %vm106_vm0, %v212_v27  ;;  %v218_v29 = vsel %vm217_vm7, %v210_v28, %v212_v27 }
 0x129   :  { %v216_v30 = vpop.permute.xlu1 %215  ;;  %v214_v31 = vpop.permute.xlu0 %213  ;;  %v290_v33 = vld [vmem:[#allocation2 + $0xb8] sm:$0xff] }
 0x12a   :  { %227 = vst.msk [vmem:[#allocation2 + $0xd8] sm:$0xff] %vm106_vm0, %v216_v30  ;;  %v219_v34 = vsel %vm217_vm7, %v214_v31, %v216_v30  ;;  %v314_v35 = vpack.c.bf16 %v290_v33, %v288_v32 }
 0x12b   :  { %v315_v47 = vpack.c.bf16 %v219_v34, %v218_v29 }
 0x12c   :  { %341 = vmatprep.subr.bf16.mxu0 %v314_v35 }
 0x12d   :  { %v231_v37 = vpop.permute.xlu1 %230  ;;  %v229_v38 = vpop.permute.xlu0 %228  ;;  %342 = vmatpush1.bf16.msra.mxu0 %v313_v36  ;;  %v292_v43 = vld [vmem:[#allocation2 + $0xc8] sm:$0xff] }
 0x12e   :  { %244 = vst.msk [vmem:[#allocation2 + $0xe8] sm:$0xff] %vm106_vm0, %v231_v37  ;;  %v237_v39 = vsel %vm236_vm8, %v229_v38, %v231_v37 }
 0x131   :  { %v235_v41 = vpop.permute.xlu1 %234  ;;  %v233_v42 = vpop.permute.xlu0 %232  ;;  %v294_v44 = vld [vmem:[#allocation2 + $0xd8] sm:$0xff] }
 0x132   :  { %246 = vst.msk [vmem:[#allocation2 + $0xf8] sm:$0xff] %vm106_vm0, %v235_v41  ;;  %v238_v45 = vsel %vm236_vm8, %v233_v42, %v235_v41  ;;  %v316_v46 = vpack.c.bf16 %v294_v44, %v292_v43 }
 0x133   :  { %v317_v57 = vpack.c.bf16 %v238_v45, %v237_v39 }
 0x134   :  { %343 = vmatprep.subr.bf16.mxu0 %v316_v46 }
 0x135   :  { %v250_v48 = vpop.permute.xlu1 %249  ;;  %v248_v49 = vpop.permute.xlu0 %247  ;;  %344 = vmatpush1.bf16.msra.mxu0 %v315_v47  ;;  %v296_v53 = vld [vmem:[#allocation2 + $0xe8] sm:$0xff] }
 0x136   :  { %263 = vst.msk [vmem:[#allocation2 + $0x108] sm:$0xff] %vm106_vm0, %v250_v48  ;;  %v256_v50 = vsel %vm255_vm9, %v248_v49, %v250_v48 }
 0x139   :  { %v254_v51 = vpop.permute.xlu1 %253  ;;  %v252_v52 = vpop.permute.xlu0 %251  ;;  %v298_v54 = vld [vmem:[#allocation2 + $0xf8] sm:$0xff] }
 0x13a   :  { %265 = vst.msk [vmem:[#allocation2 + $0x118] sm:$0xff] %vm106_vm0, %v254_v51  ;;  %v257_v55 = vsel %vm255_vm9, %v252_v52, %v254_v51  ;;  %v318_v56 = vpack.c.bf16 %v298_v54, %v296_v53 }
 0x13b   :  { %v319_v61 = vpack.c.bf16 %v257_v55, %v256_v50 }
 0x13c   :  { %345 = vmatprep.subr.bf16.mxu0 %v318_v56 }
 0x13d   :  { %346 = vmatpush1.bf16.msra.mxu0 %v317_v57  ;;  %v300_v58 = vld [vmem:[#allocation2 + $0x108] sm:$0xff] }
 0x141   :  { %v302_v59 = vld [vmem:[#allocation2 + $0x118] sm:$0xff] }
 0x142   :  { %v320_v60 = vpack.c.bf16 %v302_v59, %v300_v58 }
 0x144   :  { %347 = vmatprep.subr.bf16.mxu0 %v320_v60 }
 0x145   :  { %348 = vmatpush1.bf16.msra.mxu0 %v319_v61 }
 0x148   :  { %364 = vmatmul.mubr.bf16.vlgmr.msra.gmra.mrb[0].mxu0 %v1519_v62 }
 0x149   :  { %556 = vmatprep.mubr.bf16.mxu0 %v1785_v0 }
 0x21b   :  { %v365_v1 = vpop.f32.mrb[0].mxu0 }
 0x21c   :  { %374 = vrot.lane.b32.xlu0 %v365_v1, %s1795_s4  ;;  %v367_v2 = vpop.f32.mrb[1].mxu0 }
 0x21d   :  { %376 = vrot.lane.b32.xlu1 %v367_v2, %s1795_s4  ;;  %v369_v3 = vpop.f32.mrb[2].mxu0 }
 0x21e   :  { %v370_v4 = vpop.f32.mrb[3].mxu0 }
 0x21f   :  { %v484_v4 = vld [vmem:[%s2469_s7] sm:$0x3] }
 0x220   :  { %391 = vperm.xlu0 %1633, %v388_v40  }
 0x221   :  { %399 = vperm.xlu1 %1634, %v396_v5  }
 0x28e   :  { %v375_v6 = vpop.permute.xlu0 %374 }
 0x28f   :  { %383 = vst.msk [vmem:[#allocation3] sm:$0xff] %vm382_vm10, %v375_v6  ;;  %v377_v7 = vpop.permute.xlu1 %376  ;;  %vm615_vm10 = vcmask 408580  }
 0x290   :  { %v379_v8 = vsel %vm378_vm11, %v375_v6, %v377_v7 }
 0x291   :  { %385 = vst.msk [vmem:[#allocation3 + $0x8] sm:$0xff] %vm384_vm12, %v379_v8  ;;  %v580_v8 = vld [vmem:[%s2470_s11] sm:$0xf] }
 0x296   :  { %v1988_v9 = vld [vmem:[#allocation3] sm:$0xff] }
 0x298   :  { %v1990_v11 = vld [vmem:[#allocation3 + $0x8] sm:$0xff] }
 0x29f   :  { %v392_v10 = vpop.permute.xlu0 %391 }
 0x2a0   :  { %v394_v12 = vmul.f32 %v392_v10, %v1988_v9  ;;  %v395_v13 = vmul.f32 %v392_v10, %v1990_v11  ;;  %v400_v14 = vpop.permute.xlu1 %399 }
 0x2a2   :  { %v402_v15 = vadd.f32 %v400_v14, %v394_v12  ;;  %v403_v16 = vadd.f32 %v400_v14, %v395_v13  ;;  %v588_v12 = vld [vmem:[%s2471_s12] sm:$0xf] }
 0x2a4   :  { %v404_v17 = vmax.f32 %v402_v15, 0.0  ;;  %v405_v18 = vmax.f32 %v403_v16, 0.0 }
 0x2a6   :  { %v406_v19 = vmul.f32 %v404_v17, %v1895_v20  ;;  %v407_v22 = vmul.f32 %v405_v18, %v1897_v21 }
 0x2a8   :  { %408 = vst [vmem:[#allocation2] sm:$0xff] %v406_v19  ;;  %409 = vst.msk [vmem:[#allocation2 + $0x8] sm:$0xff] %vm106_vm0, %v407_v22  ;;  %414 = vrot.lane.b32.xlu1 %v407_v22, %s1786_s2  ;;  %412 = vrot.lane.b32.xlu0 %v406_v19, %s1786_s2 }
 0x2ac   :  { %423 = vrot.lane.b32.xlu1 %v407_v22, %s1787_s24  ;;  %421 = vrot.lane.b32.xlu0 %v406_v19, %s1787_s24 }
 0x2af   :  { %v486_v31 = vld [vmem:[#allocation2 + $0x8] sm:$0xff] }
 0x2b0   :  { %432 = vrot.lane.b32.xlu1 %v407_v22, %s1788_s25  ;;  %430 = vrot.lane.b32.xlu0 %v406_v19, %s1788_s25 }
 0x2b4   :  { %441 = vrot.lane.b32.xlu1 %v407_v22, %s1789_s26  ;;  %439 = vrot.lane.b32.xlu0 %v406_v19, %s1789_s26 }
 0x2b8   :  { %450 = vrot.lane.b32.xlu1 %v407_v22, %s1790_s27  ;;  %448 = vrot.lane.b32.xlu0 %v406_v19, %s1790_s27 }
 0x2bc   :  { %459 = vrot.lane.b32.xlu1 %v407_v22, %s1791_s28  ;;  %457 = vrot.lane.b32.xlu0 %v406_v19, %s1791_s28 }
 0x2c0   :  { %468 = vrot.lane.b32.xlu1 %v407_v22, %s1792_s29  ;;  %466 = vrot.lane.b32.xlu0 %v406_v19, %s1792_s29 }
 0x2c4   :  { %477 = vrot.lane.b32.xlu1 %v407_v22, %s1793_s30  ;;  %475 = vrot.lane.b32.xlu0 %v406_v19, %s1793_s30 }
 0x31a   :  { %v415_v23 = vpop.permute.xlu1 %414  ;;  %v413_v24 = vpop.permute.xlu0 %412 }
 0x31b   :  { %420 = vst.msk [vmem:[#allocation2 + $0x18] sm:$0xff] %vm106_vm0, %v415_v23  ;;  %v416_v25 = vsel %vm122_vm2, %v413_v24, %v415_v23 }
 0x31c   :  { %419 = vst [vmem:[#allocation2 + $0x10] sm:$0xff] %v416_v25  ;;  %v503_v35 = vpack.c.bf16 %v416_v25, %v406_v19 }
 0x31e   :  { %v424_v26 = vpop.permute.xlu1 %423  ;;  %v422_v27 = vpop.permute.xlu0 %421 }
 0x31f   :  { %429 = vst.msk [vmem:[#allocation2 + $0x28] sm:$0xff] %vm106_vm0, %v424_v26  ;;  %v425_v28 = vsel %vm141_vm3, %v422_v27, %v424_v26 }
 0x320   :  { %428 = vst [vmem:[#allocation2 + $0x20] sm:$0xff] %v425_v28 }
 0x322   :  { %v433_v29 = vpop.permute.xlu1 %432  ;;  %v431_v30 = vpop.permute.xlu0 %430  ;;  %v488_v32 = vld [vmem:[#allocation2 + $0x18] sm:$0xff] }
 0x323   :  { %438 = vst.msk [vmem:[#allocation2 + $0x38] sm:$0xff] %vm106_vm0, %v433_v29  ;;  %v434_v33 = vsel %vm160_vm4, %v431_v30, %v433_v29  ;;  %v504_v34 = vpack.c.bf16 %v488_v32, %v486_v31 }
 0x324   :  { %437 = vst [vmem:[#allocation2 + $0x30] sm:$0xff] %v434_v33  ;;  %v505_v46 = vpack.c.bf16 %v434_v33, %v425_v28 }
 0x325   :  { %524 = vmatprep.subr.bf16.mxu0 %v504_v34 }
 0x326   :  { %v442_v36 = vpop.permute.xlu1 %441  ;;  %v440_v37 = vpop.permute.xlu0 %439  ;;  %525 = vmatpush1.bf16.msra.mxu0 %v503_v35  ;;  %v490_v42 = vld [vmem:[#allocation2 + $0x28] sm:$0xff] }
 0x327   :  { %447 = vst.msk [vmem:[#allocation2 + $0x48] sm:$0xff] %vm106_vm0, %v442_v36  ;;  %v443_v38 = vsel %vm179_vm5, %v440_v37, %v442_v36 }
 0x328   :  { %446 = vst [vmem:[#allocation2 + $0x40] sm:$0xff] %v443_v38 }
 0x32a   :  { %v451_v39 = vpop.permute.xlu1 %450  ;;  %v449_v41 = vpop.permute.xlu0 %448  ;;  %v492_v43 = vld [vmem:[#allocation2 + $0x38] sm:$0xff] }
 0x32b   :  { %456 = vst.msk [vmem:[#allocation2 + $0x58] sm:$0xff] %vm106_vm0, %v451_v39  ;;  %v452_v44 = vsel %vm198_vm6, %v449_v41, %v451_v39  ;;  %v506_v45 = vpack.c.bf16 %v492_v43, %v490_v42 }
 0x32c   :  { %v507_v56 = vpack.c.bf16 %v452_v44, %v443_v38 }
 0x32d   :  { %526 = vmatprep.subr.bf16.mxu0 %v506_v45 }
 0x32e   :  { %v460_v47 = vpop.permute.xlu1 %459  ;;  %v458_v48 = vpop.permute.xlu0 %457  ;;  %527 = vmatpush1.bf16.msra.mxu0 %v505_v46  ;;  %v494_v52 = vld [vmem:[#allocation2 + $0x48] sm:$0xff] }
 0x32f   :  { %465 = vst.msk [vmem:[#allocation2 + $0x68] sm:$0xff] %vm106_vm0, %v460_v47  ;;  %v461_v49 = vsel %vm217_vm7, %v458_v48, %v460_v47 }
 0x332   :  { %v469_v50 = vpop.permute.xlu1 %468  ;;  %v467_v51 = vpop.permute.xlu0 %466  ;;  %v496_v53 = vld [vmem:[#allocation2 + $0x58] sm:$0xff] }
 0x333   :  { %474 = vst.msk [vmem:[#allocation2 + $0x78] sm:$0xff] %vm106_vm0, %v469_v50  ;;  %v470_v54 = vsel %vm236_vm8, %v467_v51, %v469_v50  ;;  %v508_v55 = vpack.c.bf16 %v496_v53, %v494_v52 }
 0x334   :  { %v509_v63 = vpack.c.bf16 %v470_v54, %v461_v49 }
 0x335   :  { %528 = vmatprep.subr.bf16.mxu0 %v508_v55 }
 0x336   :  { %v478_v57 = vpop.permute.xlu1 %477  ;;  %v476_v58 = vpop.permute.xlu0 %475  ;;  %529 = vmatpush1.bf16.msra.mxu0 %v507_v56  ;;  %v498_v60 = vld [vmem:[#allocation2 + $0x68] sm:$0xff] }
 0x337   :  { %483 = vst.msk [vmem:[#allocation2 + $0x88] sm:$0xff] %vm106_vm0, %v478_v57  ;;  %v479_v59 = vsel %vm255_vm9, %v476_v58, %v478_v57  ;;  %vm576_vm0 = vcmask 494592  }
 0x338   :  { %v511_v1 = vpack.c.bf16 %v479_v59, %v479_v59 }
 0x33a   :  { %v500_v61 = vld [vmem:[#allocation2 + $0x78] sm:$0xff]  ;;  %v519_v40 = vsel %vm517_vm13, %v511_v1, 0 }
 0x33b   :  { %v510_v62 = vpack.c.bf16 %v500_v61, %v498_v60 }
 0x33d   :  { %530 = vmatprep.subr.bf16.mxu0 %v510_v62 }
 0x33e   :  { %531 = vmatpush1.bf16.msra.mxu0 %v509_v63  ;;  %v502_v2 = vld [vmem:[#allocation2 + $0x88] sm:$0xff] }
 0x33f   :  { %v512_v3 = vpack.c.bf16 %v502_v2, %v502_v2 }
 0x341   :  { %1522 = vmatprep.subr.msk.bf16.mxu0 %vm517_vm13, %v512_v3 }
 0x342   :  { %533 = vmatpush1.bf16.msra.mxu0 %v519_v40 }
 0x345   :  { %1523 = vmatmul.mubr.msk.bf16.vlgmr.msra.gmra.mrb[4].mxu0 %vm513_vm14, %v484_v4 }
 0x346   :  { %740 = vmatprep.mubr.bf16.mxu0 %v1785_v0 }
 0x418   :  { %v558_v5 = vpop.f32.mrb[4].mxu0 }
 0x419   :  { %567 = vrot.lane.b32.xlu0 %v558_v5, %s1795_s4  ;;  %v560_v6 = vpop.f32.mrb[5].mxu0 }
 0x41a   :  { %569 = vrot.lane.b32.xlu1 %v560_v6, %s1795_s4  ;;  %v562_v7 = vpop.f32.mrb[6].mxu0 }
 0x41b   :  { %v563_v10 = vpop.f32.mrb[7].mxu0  ;;  %v680_v7 = vld [vmem:[%s2472_s10] sm:$0x3] }
 0x41c   :  { %v1639_v10 = vld [vmem:[%s2473_s3] ss:$24 sps:$4 sm:$0xff]  }
 0x41d   :  { %583 = vperm.xlu0 %1633, %v580_v8   ;;  %v1637_v8 = vld [vmem:[%s2473_s3 + $0x4] ss:$24 sps:$4 sm:$0xff]  }
 0x41e   :  { %591 = vperm.xlu1 %1634, %v588_v12   ;;  %1362 = vmatprep.subr.bf16.mxu1 %v1637_v8  ;;  %v1640_v12 = vld [vmem:[%s2473_s3 + $0x8] ss:$24 sps:$4 sm:$0xff]  }
 0x41f   :  { %1363 = vmatpush1.bf16.msra.mxu1 %v1639_v10  ;;  %v1729_v8 = vld [vmem:[%s2473_s3 + $0x2d0] ss:$24 sps:$4 sm:$0xff]  }
 0x420   :  { %v1730_v10 = vld [vmem:[%s2473_s3 + $0x2d8] ss:$24 sps:$4 sm:$0xff]  }
 0x48b   :  { %v568_v0 = vpop.permute.xlu0 %567 }
 0x48c   :  { %575 = vst.msk [vmem:[#allocation3 + $0x10] sm:$0xf] %vm574_vm15, %v568_v0  ;;  %v570_v13 = vpop.permute.xlu1 %569 }
 0x48d   :  { %v571_v14 = vsel %vm378_vm11, %v568_v0, %v570_v13  ;;  %v1642_v0 = vld [vmem:[%s2473_s3 + $0xc] ss:$24 sps:$4 sm:$0xff]  }
 0x48e   :  { %577 = vst.msk [vmem:[#allocation3 + $0x18] sm:$0xf] %vm576_vm0, %v571_v14  ;;  %v1643_v13 = vld [vmem:[%s2473_s3 + $0x34] ss:$24 sps:$4 sm:$0xff]   ;;  %v1645_v14 = vld [vmem:[%s2473_s3 + $0x30] ss:$24 sps:$4 sm:$0xff]  }
 0x48f   :  { %1364 = vmatprep.subr.bf16.mxu1 %v1643_v13 }
 0x490   :  { %1365 = vmatpush1.bf16.msra.mxu1 %v1645_v14 }
 0x493   :  { %v578_v15 = vld [vmem:[#allocation3 + $0x10] sm:$0xf] }
 0x495   :  { %v579_v17 = vld [vmem:[#allocation3 + $0x18] sm:$0xf] }
 0x49c   :  { %v584_v16 = vpop.permute.xlu0 %583 }
 0x49d   :  { %v586_v18 = vmul.f32 %v584_v16, %v578_v15  ;;  %v587_v19 = vmul.f32 %v584_v16, %v579_v17  ;;  %v592_v22 = vpop.permute.xlu1 %591  ;;  %v1646_v15 = vld [vmem:[%s2473_s3 + $0x38] ss:$24 sps:$4 sm:$0xff]   ;;  %v1648_v16 = vld [vmem:[%s2473_s3 + $0x3c] ss:$24 sps:$4 sm:$0xff]  }
 0x49e   :  { %v1649_v17 = vld [vmem:[%s2473_s3 + $0x64] ss:$24 sps:$4 sm:$0xff]  }
 0x49f   :  { %v594_v23 = vadd.f32 %v592_v22, %v586_v18  ;;  %v595_v24 = vadd.f32 %v592_v22, %v587_v19  ;;  %v1651_v18 = vld [vmem:[%s2473_s3 + $0x60] ss:$24 sps:$4 sm:$0xff]   ;;  %v1654_v19 = vld [vmem:[%s2473_s3 + $0x6c] ss:$24 sps:$4 sm:$0xff]   ;;  %1366 = vmatprep.subr.bf16.mxu1 %v1649_v17 }
 0x4a0   :  { %v1655_v22 = vld [vmem:[%s2473_s3 + $0x94] ss:$24 sps:$4 sm:$0xff]   ;;  %1367 = vmatpush1.bf16.msra.mxu1 %v1651_v18 }
 0x4a1   :  { %v596_v25 = vmax.f32 %v594_v23, 0.0  ;;  %v597_v26 = vmax.f32 %v595_v24, 0.0  ;;  %v1652_v23 = vld [vmem:[%s2473_s3 + $0x68] ss:$24 sps:$4 sm:$0xff]   ;;  %v1660_v24 = vld [vmem:[%s2473_s3 + $0x9c] ss:$24 sps:$4 sm:$0xff]   ;;  %1368 = vmatprep.subr.bf16.mxu1 %v1655_v22 }
 0x4a3   :  { %v598_v27 = vmul.f32 %v596_v25, %v1895_v20  ;;  %v599_v28 = vmul.f32 %v597_v26, %v1897_v21  ;;  %v1657_v25 = vld [vmem:[%s2473_s3 + $0x90] ss:$24 sps:$4 sm:$0xff]   ;;  %v1661_v26 = vld [vmem:[%s2473_s3 + $0xc4] ss:$24 sps:$4 sm:$0xff]  }
 0x4a4   :  { %1369 = vmatpush1.bf16.msra.mxu1 %v1657_v25  ;;  %v1781_v25 = vld [vmem:[%s2464_s0 + $0x10] sm:$0xff] }
 0x4a5   :  { %600 = vst [vmem:[#allocation2] sm:$0xf] %v598_v27  ;;  %619 = vrot.lane.b32.xlu1 %v599_v28, %s1787_s24  ;;  %617 = vrot.lane.b32.xlu0 %v598_v27, %s1787_s24  ;;  %602 = vst.msk [vmem:[#allocation2 + $0x8] sm:$0xf] %vm601_vm1, %v599_v28  ;;  %v606_v29 = vrot.slane %v599_v28, 4  ;;  %v605_v30 = vrot.slane %v598_v27, 4 }
 0x4a6   :  { %1370 = vmatprep.subr.bf16.mxu1 %v1661_v26 }
 0x4a9   :  { %637 = vrot.lane.b32.xlu1 %v599_v28, %s1789_s26  ;;  %635 = vrot.lane.b32.xlu0 %v598_v27, %s1789_s26 }
 0x4ad   :  { %655 = vrot.lane.b32.xlu1 %v599_v28, %s1791_s28  ;;  %653 = vrot.lane.b32.xlu0 %v598_v27, %s1791_s28 }
 0x4b1   :  { %609 = vrot.lane.b32.xlu1 %v606_v29, %s1786_s2  ;;  %607 = vrot.lane.b32.xlu0 %v605_v30, %s1786_s2 }
 0x4b5   :  { %628 = vrot.lane.b32.xlu1 %v606_v29, %s1788_s25  ;;  %626 = vrot.lane.b32.xlu0 %v605_v30, %s1788_s25 }
 0x4b9   :  { %646 = vrot.lane.b32.xlu1 %v606_v29, %s1790_s27  ;;  %644 = vrot.lane.b32.xlu0 %v605_v30, %s1790_s27 }
 0x4bd   :  { %664 = vrot.lane.b32.xlu1 %v606_v29, %s1792_s29  ;;  %662 = vrot.lane.b32.xlu0 %v605_v30, %s1792_s29  ;;  %v1663_v29 = vld [vmem:[%s2473_s3 + $0xc0] ss:$24 sps:$4 sm:$0xff]   ;;  %v1667_v30 = vld [vmem:[%s2473_s3 + $0xf4] ss:$24 sps:$4 sm:$0xff]  }
 0x4be   :  { %1371 = vmatpush1.bf16.msra.mxu1 %v1663_v29  ;;  %v1783_v29 = vld [vmem:[%s2464_s0 + $0x18] sm:$0xff] }
 0x4bf   :  { %1372 = vmatprep.subr.bf16.mxu1 %v1667_v30 }
 0x4c1   :  { %673 = vrot.lane.b32.xlu1 %v599_v28, %s1793_s30  ;;  %671 = vrot.lane.b32.xlu0 %v598_v27, %s1793_s30  ;;  %v1658_v27 = vld [vmem:[%s2473_s3 + $0x98] ss:$24 sps:$4 sm:$0xff]   ;;  %v1666_v28 = vld [vmem:[%s2473_s3 + $0xcc] ss:$24 sps:$4 sm:$0xff]  }
 0x517   :  { %v620_v20 = vpop.permute.xlu1 %619  ;;  %v618_v21 = vpop.permute.xlu0 %617 }
 0x518   :  { %625 = vst.msk [vmem:[#allocation2 + $0x18] sm:$0xf] %vm601_vm1, %v620_v20  ;;  %v621_v31 = vsel %vm141_vm3, %v618_v21, %v620_v20  ;;  %vm697_vm3 = vcmask 293888   ;;  %v1664_v20 = vld [vmem:[%s2473_s3 + $0xc8] ss:$24 sps:$4 sm:$0xff]  }
 0x519   :  { %624 = vst [vmem:[#allocation2 + $0x10] sm:$0xf] %v621_v31  ;;  %v1672_v21 = vld [vmem:[%s2473_s3 + $0xfc] ss:$24 sps:$4 sm:$0xff]   ;;  %v1669_v31 = vld [vmem:[%s2473_s3 + $0xf0] ss:$24 sps:$4 sm:$0xff]  }
 0x51a   :  { %1373 = vmatpush1.bf16.msra.mxu1 %v1669_v31 }
 0x51b   :  { %v638_v32 = vpop.permute.xlu1 %637  ;;  %v636_v33 = vpop.permute.xlu0 %635 }
 0x51c   :  { %643 = vst.msk [vmem:[#allocation2 + $0x28] sm:$0xf] %vm601_vm1, %v638_v32  ;;  %v639_v34 = vsel %vm179_vm5, %v636_v33, %v638_v32  ;;  %v1673_v32 = vld [vmem:[%s2473_s3 + $0x124] ss:$24 sps:$4 sm:$0xff]   ;;  %v1670_v33 = vld [vmem:[%s2473_s3 + $0xf8] ss:$24 sps:$4 sm:$0xff]  }
 0x51d   :  { %642 = vst [vmem:[#allocation2 + $0x20] sm:$0xf] %v639_v34  ;;  %v1678_v34 = vld [vmem:[%s2473_s3 + $0x12c] ss:$24 sps:$4 sm:$0xff]   ;;  %1374 = vmatprep.subr.bf16.mxu1 %v1673_v32  ;;  %vm762_vm5 = vcmask 498692  }
 0x51e   :  { %v1733_v32 = vld [vmem:[%s2473_s3 + $0x10] ss:$24 sps:$4 sm:$0xff]  }
 0x51f   :  { %v656_v35 = vpop.permute.xlu1 %655  ;;  %v654_v36 = vpop.permute.xlu0 %653 }
 0x520   :  { %661 = vst.msk [vmem:[#allocation2 + $0x38] sm:$0xf] %vm601_vm1, %v656_v35  ;;  %v657_v37 = vsel %vm217_vm7, %v654_v36, %v656_v35  ;;  %v1675_v35 = vld [vmem:[%s2473_s3 + $0x120] ss:$24 sps:$4 sm:$0xff]   ;;  %v1679_v36 = vld [vmem:[%s2473_s3 + $0x154] ss:$24 sps:$4 sm:$0xff]  }
 0x521   :  { %660 = vst [vmem:[#allocation2 + $0x30] sm:$0xf] %v657_v37  ;;  %v1676_v37 = vld [vmem:[%s2473_s3 + $0x128] ss:$24 sps:$4 sm:$0xff]   ;;  %1375 = vmatpush1.bf16.msra.mxu1 %v1675_v35 }
 0x522   :  { %1376 = vmatprep.subr.bf16.mxu1 %v1679_v36  ;;  %v1739_v35 = vld [vmem:[%s2473_s3 + $0x70] ss:$24 sps:$4 sm:$0xff]   ;;  %v1744_v36 = vld [vmem:[%s2473_s3 + $0xa4] ss:$24 sps:$4 sm:$0xff]  }
 0x523   :  { %v610_v38 = vpop.permute.xlu1 %609  ;;  %v608_v39 = vpop.permute.xlu0 %607 }
 0x524   :  { %616 = vst.msk [vmem:[#allocation2 + $0x8] sm:$0xf0] %vm615_vm10, %v610_v38  ;;  %v611_v41 = vsel %vm122_vm2, %v608_v39, %v610_v38  ;;  %vm701_vm2 = vcmask 1041408   ;;  %v1684_v38 = vld [vmem:[%s2473_s3 + $0x15c] ss:$24 sps:$4 sm:$0xff]  }
 0x525   :  { %614 = vst [vmem:[#allocation2] sm:$0xf0] %v611_v41  ;;  %v1681_v39 = vld [vmem:[%s2473_s3 + $0x150] ss:$24 sps:$4 sm:$0xff]   ;;  %v1685_v41 = vld [vmem:[%s2473_s3 + $0x184] ss:$24 sps:$4 sm:$0xff]  }
 0x526   :  { %1377 = vmatpush1.bf16.msra.mxu1 %v1681_v39  ;;  %v1745_v39 = vld [vmem:[%s2473_s3 + $0xd0] ss:$24 sps:$4 sm:$0xff]  }
 0x527   :  { %v629_v42 = vpop.permute.xlu1 %628  ;;  %v627_v43 = vpop.permute.xlu0 %626  ;;  %1378 = vmatprep.subr.bf16.mxu1 %v1685_v41  ;;  %v1750_v41 = vld [vmem:[%s2473_s3 + $0x104] ss:$24 sps:$4 sm:$0xff]  }
 0x528   :  { %634 = vst.msk [vmem:[#allocation2 + $0x18] sm:$0xf0] %vm615_vm10, %v629_v42  ;;  %v630_v44 = vsel %vm160_vm4, %v627_v43, %v629_v42  ;;  %v1682_v42 = vld [vmem:[%s2473_s3 + $0x158] ss:$24 sps:$4 sm:$0xff]   ;;  %v1690_v43 = vld [vmem:[%s2473_s3 + $0x18c] ss:$24 sps:$4 sm:$0xff]  }
 0x529   :  { %633 = vst [vmem:[#allocation2 + $0x10] sm:$0xf0] %v630_v44  ;;  %v1687_v44 = vld [vmem:[%s2473_s3 + $0x180] ss:$24 sps:$4 sm:$0xff]   ;;  %vm760_vm4 = vcmask 1047644  }
 0x52a   :  { %1379 = vmatpush1.bf16.msra.mxu1 %v1687_v44  ;;  %v1751_v44 = vld [vmem:[%s2473_s3 + $0x130] ss:$24 sps:$4 sm:$0xff]  }
 0x52b   :  { %v647_v45 = vpop.permute.xlu1 %646  ;;  %v645_v46 = vpop.permute.xlu0 %644  ;;  %v682_v50 = vld [vmem:[#allocation2 + $0x8] sm:$0xff] }
 0x52c   :  { %652 = vst.msk [vmem:[#allocation2 + $0x28] sm:$0xf0] %vm615_vm10, %v647_v45  ;;  %v648_v47 = vsel %vm198_vm6, %v645_v46, %v647_v45  ;;  %v681_v54 = vld [vmem:[#allocation2] sm:$0xff]  ;;  %v1691_v46 = vld [vmem:[%s2473_s3 + $0x1b4] ss:$24 sps:$4 sm:$0xff]  }
 0x52d   :  { %651 = vst [vmem:[#allocation2 + $0x20] sm:$0xf0] %v648_v47  ;;  %v1688_v45 = vld [vmem:[%s2473_s3 + $0x188] ss:$24 sps:$4 sm:$0xff]   ;;  %1380 = vmatprep.subr.bf16.mxu1 %v1691_v46 }
 0x52e   :  { %v1693_v47 = vld [vmem:[%s2473_s3 + $0x1b0] ss:$24 sps:$4 sm:$0xff]   ;;  %v1754_v46 = vld [vmem:[%s2473_s3 + $0x160] ss:$24 sps:$4 sm:$0xff]  }
 0x52f   :  { %v665_v48 = vpop.permute.xlu1 %664  ;;  %v663_v49 = vpop.permute.xlu0 %662  ;;  %v684_v51 = vld [vmem:[#allocation2 + $0x18] sm:$0xff]  ;;  %1381 = vmatpush1.bf16.msra.mxu1 %v1693_v47  ;;  %v1759_v47 = vld [vmem:[%s2473_s3 + $0x194] ss:$24 sps:$4 sm:$0xff]  }
 0x530   :  { %670 = vst.msk [vmem:[#allocation2 + $0x38] sm:$0xf0] %vm615_vm10, %v665_v48  ;;  %v666_v52 = vsel %vm236_vm8, %v663_v49, %v665_v48  ;;  %v692_v53 = vpack.c.bf16 %v684_v51, %v682_v50  ;;  %v683_v55 = vld [vmem:[#allocation2 + $0x10] sm:$0xff]  ;;  %v1697_v49 = vld [vmem:[%s2473_s3 + $0x1e4] ss:$24 sps:$4 sm:$0xff]  }
 0x531   :  { %669 = vst [vmem:[#allocation2 + $0x30] sm:$0xf0] %v666_v52  ;;  %v691_v56 = vpack.c.bf16 %v683_v55, %v681_v54  ;;  %v1696_v48 = vld [vmem:[%s2473_s3 + $0x1bc] ss:$24 sps:$4 sm:$0xff]   ;;  %v1694_v50 = vld [vmem:[%s2473_s3 + $0x1b8] ss:$24 sps:$4 sm:$0xff]   ;;  %1382 = vmatprep.subr.bf16.mxu1 %v1697_v49 }
 0x532   :  { %708 = vmatprep.subr.bf16.mxu0 %v692_v53  ;;  %v1702_v51 = vld [vmem:[%s2473_s3 + $0x1ec] ss:$24 sps:$4 sm:$0xff]   ;;  %v1699_v52 = vld [vmem:[%s2473_s3 + $0x1e0] ss:$24 sps:$4 sm:$0xff]   ;;  %v1708_v55 = vld [vmem:[%s2473_s3 + $0x21c] ss:$24 sps:$4 sm:$0xff]  }
 0x533   :  { %v674_v57 = vpop.permute.xlu1 %673  ;;  %v672_v58 = vpop.permute.xlu0 %671  ;;  %709 = vmatpush1.bf16.msra.mxu0 %v691_v56  ;;  %v686_v60 = vld [vmem:[#allocation2 + $0x28] sm:$0xff]  ;;  %1383 = vmatpush1.bf16.msra.mxu1 %v1699_v52  ;;  %v1762_v49 = vld [vmem:[%s2473_s3 + $0x1c4] ss:$24 sps:$4 sm:$0xff]  }
 0x534   :  { %679 = vst.msk [vmem:[#allocation2 + $0x48] sm:$0xf] %vm601_vm1, %v674_v57  ;;  %v675_v59 = vsel %vm255_vm9, %v672_v58, %v674_v57  ;;  %v685_v63 = vld [vmem:[#allocation2 + $0x20] sm:$0xff]  ;;  %v1703_v53 = vld [vmem:[%s2473_s3 + $0x214] ss:$24 sps:$4 sm:$0xff]  }
 0x535   :  { %678 = vst [vmem:[#allocation2 + $0x40] sm:$0xf] %v675_v59  ;;  %v1700_v54 = vld [vmem:[%s2473_s3 + $0x1e8] ss:$24 sps:$4 sm:$0xff]   ;;  %v1709_v57 = vld [vmem:[%s2473_s3 + $0x244] ss:$24 sps:$4 sm:$0xff]   ;;  %1384 = vmatprep.subr.bf16.mxu1 %v1703_v53 }
 0x536   :  { %v1705_v56 = vld [vmem:[%s2473_s3 + $0x210] ss:$24 sps:$4 sm:$0xff]   ;;  %v1714_v59 = vld [vmem:[%s2473_s3 + $0x24c] ss:$24 sps:$4 sm:$0xff]  }
 0x537   :  { %v688_v61 = vld [vmem:[#allocation2 + $0x38] sm:$0xff]  ;;  %1385 = vmatpush1.bf16.msra.mxu1 %v1705_v56  ;;  %v1763_v52 = vld [vmem:[%s2473_s3 + $0x1f0] ss:$24 sps:$4 sm:$0xff]  }
 0x538   :  { %v694_v62 = vpack.c.bf16 %v688_v61, %v686_v60  ;;  %v687_v1 = vld [vmem:[#allocation2 + $0x30] sm:$0xff]  ;;  %v1711_v60 = vld [vmem:[%s2473_s3 + $0x240] ss:$24 sps:$4 sm:$0xff]   ;;  %1386 = vmatprep.subr.bf16.mxu1 %v1709_v57  ;;  %v1768_v53 = vld [vmem:[%s2473_s3 + $0x224] ss:$24 sps:$4 sm:$0xff]  }
 0x539   :  { %v693_v2 = vpack.c.bf16 %v687_v1, %v685_v63  ;;  %v1706_v58 = vld [vmem:[%s2473_s3 + $0x218] ss:$24 sps:$4 sm:$0xff]   ;;  %v1712_v61 = vld [vmem:[%s2473_s3 + $0x248] ss:$24 sps:$4 sm:$0xff]   ;;  %v1720_v1 = vld [vmem:[%s2473_s3 + $0x27c] ss:$24 sps:$4 sm:$0xff]  }
 0x53a   :  { %710 = vmatprep.subr.bf16.mxu0 %v694_v62  ;;  %v1715_v62 = vld [vmem:[%s2473_s3 + $0x274] ss:$24 sps:$4 sm:$0xff]   ;;  %v1717_v63 = vld [vmem:[%s2473_s3 + $0x270] ss:$24 sps:$4 sm:$0xff]   ;;  %v1774_v57 = vld [vmem:[%s2473_s3 + $0x284] ss:$24 sps:$4 sm:$0xff]  }
 0x53b   :  { %711 = vmatpush1.bf16.msra.mxu0 %v693_v2  ;;  %v690_v3 = vld [vmem:[#allocation2 + $0x48] sm:$0xf]  ;;  %1387 = vmatpush1.bf16.msra.mxu1 %v1711_v60  ;;  %v1718_v2 = vld [vmem:[%s2473_s3 + $0x278] ss:$24 sps:$4 sm:$0xff]  }
 0x53c   :  { %v696_v40 = vpack.c.bf16 %v690_v3, %v690_v3  ;;  %v689_v4 = vld [vmem:[#allocation2 + $0x40] sm:$0xf]  ;;  %1388 = vmatprep.subr.bf16.mxu1 %v1715_v62  ;;  %v1721_v3 = vld [vmem:[%s2473_s3 + $0x2a4] ss:$24 sps:$4 sm:$0xff]   ;;  %v1769_v56 = vld [vmem:[%s2473_s3 + $0x250] ss:$24 sps:$4 sm:$0xff]  }
 0x53d   :  { %v695_v5 = vpack.c.bf16 %v689_v4, %v689_v4  ;;  %v1726_v4 = vld [vmem:[%s2473_s3 + $0x2ac] ss:$24 sps:$4 sm:$0xff]   ;;  %v1775_v60 = vld [vmem:[%s2473_s3 + $0x2b0] ss:$24 sps:$4 sm:$0xff]   ;;  %v1778_v62 = vld [vmem:[%s2473_s3 + $0x2e0] ss:$24 sps:$4 sm:$0xff]  }
 0x53e   :  { %1524 = vmatprep.subr.msk.bf16.mxu0 %vm701_vm2, %v696_v40  ;;  %v1723_v40 = vld [vmem:[%s2473_s3 + $0x2a0] ss:$24 sps:$4 sm:$0xff]  }
 0x53f   :  { %v703_v6 = vsel %vm701_vm2, %v695_v5, 0  ;;  %1389 = vmatpush1.bf16.msra.mxu1 %v1717_v63  ;;  %v1724_v5 = vld [vmem:[%s2473_s3 + $0x2a8] ss:$24 sps:$4 sm:$0xff]  }
 0x540   :  { %713 = vmatpush1.bf16.msra.mxu0 %v703_v6  ;;  %1390 = vmatprep.subr.bf16.mxu1 %v1721_v3  ;;  %v1727_v6 = vld [vmem:[%s2473_s3 + $0x2d4] ss:$24 sps:$4 sm:$0xff]   ;;  %v772_v63 = vld [vmem:[%s2474_s1] sm:$0xff]  ;;  %v775_v3 = vld [vmem:[%s2474_s1 + $0x18] sm:$0xff] }
 0x541   :  { %1405 = vmatprep.subr.bf16.mxu0 %v1642_v0 }
 0x543   :  { %1525 = vmatmul.mubr.msk.bf16.vlgmr.msra.gmra.mrb[8].mxu0 %vm697_vm3, %v680_v7  ;;  %v1732_v7 = vld [vmem:[%s2473_s3 + $0x2dc] ss:$24 sps:$4 sm:$0xff]   ;;  %1391 = vmatpush1.bf16.msra.mxu1 %v1723_v40 }
 0x544   :  { %1406 = vmatpush1.bf16.msra.mxu0 %v1640_v12  ;;  %1392 = vmatprep.subr.bf16.mxu1 %v1727_v6  ;;  %v780_v6 = vld [vmem:[%s2474_s1 + $0x40] sm:$0xff] }
 0x545   :  { %1407 = vmatprep.subr.bf16.mxu0 %v1648_v16  ;;  %v1735_v16 = vld [vmem:[%s2473_s3 + $0x14] ss:$24 sps:$4 sm:$0xff]  }
 0x547   :  { %1393 = vmatpush1.bf16.msra.mxu1 %v1729_v8 }
 0x548   :  { %1408 = vmatpush1.bf16.msra.mxu0 %v1646_v15  ;;  %1448 = vmatprep.subr.bf16.mxu1 %v1735_v16 }
 0x549   :  { %1409 = vmatprep.subr.bf16.mxu0 %v1654_v19 }
 0x54c   :  { %1410 = vmatpush1.bf16.msra.mxu0 %v1652_v23 }
 0x54d   :  { %1411 = vmatprep.subr.bf16.mxu0 %v1660_v24 }
 0x550   :  { %1412 = vmatpush1.bf16.msra.mxu0 %v1658_v27  ;;  %v1782_v27 = vld [vmem:[%s2464_s0 + $0x8] sm:$0xff] }
 0x551   :  { %1413 = vmatprep.subr.bf16.mxu0 %v1666_v28  ;;  %v769_v28 = vadd.f32 %v1782_v27, %v1990_v11  ;;  %v1738_v11 = vld [vmem:[%s2473_s3 + $0x44] ss:$24 sps:$4 sm:$0xff]   ;;  %v777_v27 = vld [vmem:[%s2474_s1 + $0x28] sm:$0xff] }
 0x554   :  { %1414 = vmatpush1.bf16.msra.mxu0 %v1664_v20  ;;  %v1784_v20 = vld [vmem:[%s2464_s0] sm:$0xff] }
 0x555   :  { %1415 = vmatprep.subr.bf16.mxu0 %v1672_v21  ;;  %v768_v21 = vadd.f32 %v1784_v20, %v1988_v9  ;;  %v1736_v9 = vld [vmem:[%s2473_s3 + $0x40] ss:$24 sps:$4 sm:$0xff]  }
 0x558   :  { %1416 = vmatpush1.bf16.msra.mxu0 %v1670_v33 }
 0x559   :  { %1417 = vmatprep.subr.bf16.mxu0 %v1678_v34  ;;  %v1741_v34 = vld [vmem:[%s2473_s3 + $0x74] ss:$24 sps:$4 sm:$0xff]  }
 0x55c   :  { %1418 = vmatpush1.bf16.msra.mxu0 %v1676_v37  ;;  %v1742_v37 = vld [vmem:[%s2473_s3 + $0xa0] ss:$24 sps:$4 sm:$0xff]  }
 0x55d   :  { %1419 = vmatprep.subr.bf16.mxu0 %v1684_v38  ;;  %v1747_v38 = vld [vmem:[%s2473_s3 + $0xd4] ss:$24 sps:$4 sm:$0xff]  }
 0x560   :  { %1420 = vmatpush1.bf16.msra.mxu0 %v1682_v42  ;;  %v1748_v42 = vld [vmem:[%s2473_s3 + $0x100] ss:$24 sps:$4 sm:$0xff]  }
 0x561   :  { %1421 = vmatprep.subr.bf16.mxu0 %v1690_v43  ;;  %v1753_v43 = vld [vmem:[%s2473_s3 + $0x134] ss:$24 sps:$4 sm:$0xff]  }
 0x564   :  { %1422 = vmatpush1.bf16.msra.mxu0 %v1688_v45  ;;  %v1756_v45 = vld [vmem:[%s2473_s3 + $0x164] ss:$24 sps:$4 sm:$0xff]  }
 0x565   :  { %1423 = vmatprep.subr.bf16.mxu0 %v1696_v48  ;;  %v1757_v48 = vld [vmem:[%s2473_s3 + $0x190] ss:$24 sps:$4 sm:$0xff]  }
 0x568   :  { %1424 = vmatpush1.bf16.msra.mxu0 %v1694_v50  ;;  %v1760_v50 = vld [vmem:[%s2473_s3 + $0x1c0] ss:$24 sps:$4 sm:$0xff]  }
 0x569   :  { %1425 = vmatprep.subr.bf16.mxu0 %v1702_v51  ;;  %v1765_v51 = vld [vmem:[%s2473_s3 + $0x1f4] ss:$24 sps:$4 sm:$0xff]  }
 0x56c   :  { %1426 = vmatpush1.bf16.msra.mxu0 %v1700_v54  ;;  %v1766_v54 = vld [vmem:[%s2473_s3 + $0x220] ss:$24 sps:$4 sm:$0xff]  }
 0x56d   :  { %1427 = vmatprep.subr.bf16.mxu0 %v1708_v55  ;;  %v1771_v55 = vld [vmem:[%s2473_s3 + $0x254] ss:$24 sps:$4 sm:$0xff]  }
 0x570   :  { %1428 = vmatpush1.bf16.msra.mxu0 %v1706_v58  ;;  %v1772_v58 = vld [vmem:[%s2473_s3 + $0x280] ss:$24 sps:$4 sm:$0xff]  }
 0x571   :  { %1429 = vmatprep.subr.bf16.mxu0 %v1714_v59  ;;  %v1777_v59 = vld [vmem:[%s2473_s3 + $0x2b4] ss:$24 sps:$4 sm:$0xff]  }
 0x574   :  { %1430 = vmatpush1.bf16.msra.mxu0 %v1712_v61  ;;  %v1780_v61 = vld [vmem:[%s2473_s3 + $0x2e4] ss:$24 sps:$4 sm:$0xff]  }
 0x575   :  { %1431 = vmatprep.subr.bf16.mxu0 %v1720_v1  ;;  %v774_v1 = vld [vmem:[%s2474_s1 + $0x10] sm:$0xff] }
 0x578   :  { %1432 = vmatpush1.bf16.msra.mxu0 %v1718_v2  ;;  %v773_v2 = vld [vmem:[%s2474_s1 + $0x8] sm:$0xff] }
 0x579   :  { %1433 = vmatprep.subr.bf16.mxu0 %v1726_v4 }
 0x57c   :  { %1434 = vmatpush1.bf16.msra.mxu0 %v1724_v5  ;;  %v778_v5 = vld [vmem:[%s2474_s1 + $0x30] sm:$0xff] }
 0x57d   :  { %1435 = vmatprep.subr.bf16.mxu0 %v1732_v7 }
 0x580   :  { %1436 = vmatpush1.bf16.msra.mxu0 %v1730_v10 }
 0x616   :  { %v742_v12 = vpop.f32.mrb[8].mxu0 }
 0x617   :  { %v751_v0 = vrot.slane %v742_v12, 4  ;;  %v744_v13 = vpop.f32.mrb[9].mxu0 }
 0x618   :  { %v752_v14 = vrot.slane %v744_v13, 4  ;;  %v746_v15 = vpop.f32.mrb[10].mxu0  ;;  %v781_v13 = vld [vmem:[%s2474_s1 + $0x48] sm:$0xff] }
 0x619   :  { %753 = vrot.lane.b32.xlu0 %v751_v0, %s1795_s4  ;;  %v747_v17 = vpop.f32.mrb[11].mxu0  ;;  %v779_v0 = vld [vmem:[%s2474_s1 + $0x38] sm:$0xff] }
 0x61a   :  { %755 = vrot.lane.b32.xlu1 %v752_v14, %s1795_s4 }
 0x68b   :  { %v754_v18 = vpop.permute.xlu0 %753 }
 0x68c   :  { %761 = vst.msk [vmem:[#allocation3 + $0x10] sm:$0xf0] %vm760_vm4, %v754_v18  ;;  %v756_v19 = vpop.permute.xlu1 %755 }
 0x68d   :  { %v757_v22 = vsel %vm378_vm11, %v754_v18, %v756_v19 }
 0x68e   :  { %763 = vst.msk [vmem:[#allocation3 + $0x18] sm:$0xf0] %vm762_vm5, %v757_v22 }
 0x693   :  { %v766_v23 = vld [vmem:[#allocation3 + $0x10] sm:$0xff] }
 0x694   :  { %v770_v26 = vadd.f32 %v1781_v25, %v766_v23 }
 0x695   :  { %v767_v24 = vld [vmem:[#allocation3 + $0x18] sm:$0xff] }
 0x696   :  { %v771_v30 = vadd.f32 %v1783_v29, %v767_v24  ;;  %v2295_v33 = vpack.c.bf16 %v770_v26, %v768_v21  ;;  %v776_v26 = vld [vmem:[%s2474_s1 + $0x20] sm:$0xff]  ;;  %v782_v29 = vld [vmem:[%s2474_s1 + $0x50] sm:$0xff]  ;;  %v783_v21 = vld [vmem:[%s2474_s1 + $0x58] sm:$0xff] }
 0x698   :  { %v785_v31 = vpack.c.bf16 %v771_v30, %v769_v28 }
 0x69a   :  { %1394 = vmatprep.mubr.bf16.mxu1 %v785_v31  ;;  %1437 = vmatprep.mubr.bf16.mxu0 %v785_v31 }
 0x69b   :  { %1395 = vmatmul.mubr.bf16.vlgmr.msra.gmra.mrb[0].mxu1 %v2295_v33  ;;  %1438 = vmatmul.mubr.bf16.vlgmr.msra.gmra.mrb[12].mxu0 %v2295_v33 }
 0x69c   :  { %1449 = vmatpush1.bf16.msra.mxu1 %v1733_v32  ;;  %1480 = vmatprep.mubr.bf16.mxu1 %v785_v31 }
 0x69d   :  { %1450 = vmatprep.subr.bf16.mxu1 %v1738_v11 }
 0x6a0   :  { %1451 = vmatpush1.bf16.msra.mxu1 %v1736_v9 }
 0x6a1   :  { %1452 = vmatprep.subr.bf16.mxu1 %v1741_v34 }
 0x6a4   :  { %1453 = vmatpush1.bf16.msra.mxu1 %v1739_v35 }
 0x6a5   :  { %1454 = vmatprep.subr.bf16.mxu1 %v1744_v36 }
 0x6a8   :  { %1455 = vmatpush1.bf16.msra.mxu1 %v1742_v37 }
 0x6a9   :  { %1456 = vmatprep.subr.bf16.mxu1 %v1747_v38 }
 0x6ac   :  { %1457 = vmatpush1.bf16.msra.mxu1 %v1745_v39 }
 0x6ad   :  { %1458 = vmatprep.subr.bf16.mxu1 %v1750_v41 }
 0x6b0   :  { %1459 = vmatpush1.bf16.msra.mxu1 %v1748_v42 }
 0x6b1   :  { %1460 = vmatprep.subr.bf16.mxu1 %v1753_v43 }
 0x6b4   :  { %1461 = vmatpush1.bf16.msra.mxu1 %v1751_v44 }
 0x6b5   :  { %1462 = vmatprep.subr.bf16.mxu1 %v1756_v45 }
 0x6b8   :  { %1463 = vmatpush1.bf16.msra.mxu1 %v1754_v46 }
 0x6b9   :  { %1464 = vmatprep.subr.bf16.mxu1 %v1759_v47 }
 0x6bc   :  { %1465 = vmatpush1.bf16.msra.mxu1 %v1757_v48 }
 0x6bd   :  { %1466 = vmatprep.subr.bf16.mxu1 %v1762_v49 }
 0x6c0   :  { %1467 = vmatpush1.bf16.msra.mxu1 %v1760_v50 }
 0x6c1   :  { %1468 = vmatprep.subr.bf16.mxu1 %v1765_v51 }
 0x6c4   :  { %1469 = vmatpush1.bf16.msra.mxu1 %v1763_v52 }
 0x6c5   :  { %1470 = vmatprep.subr.bf16.mxu1 %v1768_v53 }
 0x6c8   :  { %1471 = vmatpush1.bf16.msra.mxu1 %v1766_v54 }
 0x6c9   :  { %1472 = vmatprep.subr.bf16.mxu1 %v1771_v55 }
 0x6cc   :  { %1473 = vmatpush1.bf16.msra.mxu1 %v1769_v56 }
 0x6cd   :  { %1474 = vmatprep.subr.bf16.mxu1 %v1774_v57 }
 0x6d0   :  { %1475 = vmatpush1.bf16.msra.mxu1 %v1772_v58 }
 0x6d1   :  { %1476 = vmatprep.subr.bf16.mxu1 %v1777_v59 }
 0x6d4   :  { %1477 = vmatpush1.bf16.msra.mxu1 %v1775_v60 }
 0x6d5   :  { %1478 = vmatprep.subr.bf16.mxu1 %v1780_v61 }
 0x6d8   :  { %1479 = vmatpush1.bf16.msra.mxu1 %v1778_v62 }
 0x6db   :  { %1481 = vmatmul.mubr.bf16.vlgmr.msra.gmra.mrb[4].mxu1 %v2295_v33 }
 0x76e   :  { %v1396_v40 = vpop.f32.mrb[0].mxu1  ;;  %v1439_v4 = vpop.f32.mrb[12].mxu0 }
 0x76f   :  { %v1491_v7 = vadd.f32 %v1396_v40, %v772_v63  ;;  %v1493_v8 = vadd.f32 %v1439_v4, %v774_v1  ;;  %v1398_v10 = vpop.f32.mrb[1].mxu1  ;;  %v1441_v12 = vpop.f32.mrb[13].mxu0 }
 0x770   :  { %v1492_v14 = vadd.f32 %v1398_v10, %v773_v2  ;;  %v1494_v15 = vadd.f32 %v1441_v12, %v775_v3  ;;  %v1400_v16 = vpop.f32.mrb[2].mxu1  ;;  %v1443_v17 = vpop.f32.mrb[14].mxu0 }
 0x771   :  { %1503 = vst [vmem:[%s2475_s13] sm:$0xff] %v1491_v7  ;;  %1505 = vst [vmem:[%s2475_s13 + $0x10] sm:$0xff] %v1493_v8  ;;  %v1497_v18 = vadd.f32 %v1400_v16, %v778_v5  ;;  %v1499_v19 = vadd.f32 %v1443_v17, %v780_v6  ;;  %v1402_v22 = vpop.f32.mrb[3].mxu1  ;;  %v1445_v23 = vpop.f32.mrb[15].mxu0 }
 0x772   :  { %1504 = vst [vmem:[%s2475_s13 + $0x8] sm:$0xff] %v1492_v14  ;;  %1506 = vst [vmem:[%s2475_s13 + $0x18] sm:$0xff] %v1494_v15  ;;  %v1498_v24 = vadd.f32 %v1402_v22, %v779_v0  ;;  %v1500_v25 = vadd.f32 %v1445_v23, %v781_v13 }
 0x773   :  { %1509 = vst [vmem:[%s2475_s13 + $0x30] sm:$0xff] %v1497_v18  ;;  %1511 = vst [vmem:[%s2475_s13 + $0x40] sm:$0xff] %v1499_v19 }
 0x774   :  { %1510 = vst [vmem:[%s2475_s13 + $0x38] sm:$0xff] %v1498_v24  ;;  %1512 = vst [vmem:[%s2475_s13 + $0x48] sm:$0xff] %v1500_v25 }
 0x7ae   :  { %v1482_v28 = vpop.f32.mrb[4].mxu1 }
 0x7af   :  { %v1495_v30 = vadd.f32 %v1482_v28, %v776_v26  ;;  %v1484_v20 = vpop.f32.mrb[5].mxu1 }
 0x7b0   :  { %v1496_v31 = vadd.f32 %v1484_v20, %v777_v27  ;;  %v1486_v32 = vpop.f32.mrb[6].mxu1 }
 0x7b1   :  { %1507 = vst [vmem:[%s2475_s13 + $0x20] sm:$0xff] %v1495_v30  ;;  %v1501_v33 = vadd.f32 %v1486_v32, %v782_v29  ;;  %v1488_v11 = vpop.f32.mrb[7].mxu1 }
 0x7b2   :  { %1508 = vst [vmem:[%s2475_s13 + $0x28] sm:$0xff] %v1496_v31  ;;  %v1502_v9 = vadd.f32 %v1488_v11, %v783_v21 }
 0x7b3   :  { %1513 = vst [vmem:[%s2475_s13 + $0x50] sm:$0xff] %v1501_v33 }
 0x7b4   :  { %1514 = vst [vmem:[%s2475_s13 + $0x58] sm:$0xff] %v1502_v9 }

// kernel: hourglass_nchw.4
= control target key start
LH: loop header
LB: loop body
LE: loop exit
PB: predicated region body
PF: predicated region fallthrough
CT: control target
= control target key end

     0   :  { %v160_v0 = vlaneseq  ;;  %v3739_v1 = vmov 0   ;;  %vm206_vm0 = vcmask 801792   ;;  %s3741_s26 = smov 126   ;;  %s3744_s25 = smov 109   ;;  %vm243_vm1 = vcmask 1039360   ;;  %s5452_s6 = inlined_call_operand.vmem [shape: f32[16,1], index: 6, kind: input, shape index: {}]   ;;  %s5453_s5 = inlined_call_operand.vmem [shape: f32[16,1], index: 5, kind: input, shape index: {}]   ;;  %s5454_s1 = inlined_call_operand.vmem [shape: f32[1,768], index: 1, kind: input, shape index: {}]   ;;  %s5455_s0 = inlined_call_operand.vmem [shape: f32[16,768], index: 0, kind: input, shape index: {}]   ;;  %s5456_s22 = inlined_call_operand.vmem [shape: f32[16,768], index: 22, kind: output, shape index: {0}]   ;;  %s5457_s4 = inlined_call_operand.vmem [shape: bf16[8,144], index: 4, kind: input, shape index: {}]   ;;  %s5458_s8 = inlined_call_operand.vmem [shape: f32[8,1], index: 8, kind: input, shape index: {}]   ;;  %s5459_s9 = inlined_call_operand.vmem [shape: f32[8,1], index: 9, kind: input, shape index: {}]   ;;  %s5460_s7 = inlined_call_operand.vmem [shape: bf16[4,72], index: 7, kind: input, shape index: {}]   ;;  %s5461_s11 = inlined_call_operand.vmem [shape: f32[4,1], index: 11, kind: input, shape index: {}]   ;;  %s5462_s12 = inlined_call_operand.vmem [shape: f32[4,1], index: 12, kind: input, shape index: {}]   ;;  %s5463_s14 = inlined_call_operand.vmem [shape: f32[16,1], index: 14, kind: input, shape index: {}]   ;;  %s5464_s3 = inlined_call_operand.vmem [shape: bf16[768,256], index: 3, kind: input, shape index: {}]   ;;  %s5465_s15 = inlined_call_operand.vmem [shape: f32[16,1], index: 15, kind: input, shape index: {}]   ;;  %s5466_s10 = inlined_call_operand.vmem [shape: bf16[4,36], index: 10, kind: input, shape index: {}]   ;;  %s5467_s2 = inlined_call_operand.vmem [shape: f32[1,256], index: 2, kind: input, shape index: {}]   ;;  %s5468_s13 = inlined_call_operand.vmem [shape: bf16[8,144], index: 13, kind: input, shape index: {}]   ;;  %s5469_s17 = inlined_call_operand.vmem [shape: f32[8,1], index: 17, kind: input, shape index: {}]   ;;  %s5470_s18 = inlined_call_operand.vmem [shape: f32[8,1], index: 18, kind: input, shape index: {}]   ;;  %s5471_s23 = inlined_call_operand.vmem [shape: f32[16,256], index: 23, kind: output, shape index: {1}]   ;;  %s5472_s16 = inlined_call_operand.vmem [shape: bf16[4,72], index: 16, kind: input, shape index: {}]   ;;  %s5473_s20 = inlined_call_operand.vmem [shape: f32[4,1], index: 20, kind: input, shape index: {}]   ;;  %s5474_s21 = inlined_call_operand.vmem [shape: f32[4,1], index: 21, kind: input, shape index: {}]   ;;  %s5475_s19 = inlined_call_operand.vmem [shape: bf16[4,36], index: 19, kind: input, shape index: {}]  }
   0x1   :  { %5489 = sst [smem:[#allocation5_spill]] %s5452_s6  ;;  %3566 = vset.pattern.permute.xlu1 %v3739_v1  ;;  %3565 = vset.pattern.permute.xlu0 %v3739_v1  ;;  %s5482_s27 = smov 91   ;;  %vm777_vm2 = vcmask 130048   ;;  %vm292_vm3 = vcmask 1031168   ;;  %vm341_vm4 = vcmask 900096   ;;  %vm390_vm5 = vcmask 891904  }
   0x2   :  { %5490 = sst [smem:[#allocation6_spill]] %s5453_s5  ;;  %s5497_s24 = sld [smem:[#allocation5_spill]]  ;;  %v3891_v6 = vshrl.u32 %v160_v0, 7  ;;  %vm439_vm6 = vcmask 883712   ;;  %vm494_vm7 = vcmask 752640   ;;  %vm549_vm8 = vcmask 744448  }
   0x3   :  { %5491 = sst [smem:[#allocation7_spill]] %s5454_s1  ;;  %s5498_s5 = sld [smem:[#allocation6_spill]]  ;;  %vm604_vm9 = vcmask 736256   ;;  %vm928_vm10 = vcmask 1047704   ;;  %vm918_vm11 = vcmask 154624   ;;  %vm933_vm12 = vcmask 957440  }
   0x4   :  { %5492 = sst [smem:[#allocation8_spill]] %s5455_s0  ;;  %s5499_s29 = sld [smem:[#allocation7_spill]]  ;;  %v182_v8 = vsub.s32 5, %v3891_v6  ;;  %v166_v11 = vsub.s32 1, %v3891_v6  ;;  %v170_v15 = vsub.s32 2, %v3891_v6  ;;  %v162_v17 = vsub.s32 0, %v3891_v6 }
   0x5   :  { %5493 = sst [smem:[#allocation9_spill]] %s5456_s22  ;;  %s5500_s22 = sld [smem:[#allocation8_spill]]  ;;  %v178_v18 = vsub.s32 4, %v3891_v6  ;;  %v174_v34 = vsub.s32 3, %v3891_v6  ;;  %vm3750_vm13 = vmmov 0   ;;  %vm1264_vm14 = vcmask 1043456  }
   0x6   :  { %5494 = sst [smem:[#allocation10_spill]] %s5457_s4  ;;  %s3742_s1 = smov 110   ;;  %vm1260_vm15 = vcmask 588800  }
   0x7   :  { %5495 = sst [smem:[#allocation11_spill]] %s5458_s8  ;;  %s5501_s6 = sld [smem:[#allocation9_spill]] }
   0x8   :  { %5496 = sst [smem:[#allocation12_spill]] %s5459_s9  ;;  %v123_v2 = vld [vmem:[%s5497_s24] sm:$0xff]  ;;  %v124_v4 = vld [vmem:[%s5497_s24 + $0x8] sm:$0xff]  ;;  %s3745_s4 = smov 108  }
   0x9   :  { %v99_v3 = vld [vmem:[%s5498_s5] sm:$0xff]  ;;  %127 = vperm.xlu1 %3566, %v123_v2   ;;  %v100_v5 = vld [vmem:[%s5498_s5 + $0x8] sm:$0xff]  ;;  %s3740_s5 = smov 127   ;;  %s5486_s8 = smov 92  }
   0xa   :  { %103 = vperm.xlu0 %3565, %v99_v3   ;;  %v86_v7 = vld [vmem:[%s5499_s29] sm:$0x3f]  ;;  %s5480_s9 = smov 90   ;;  %s5502_s0 = sld [smem:[#allocation10_spill]] }
   0xb   :  { %v3897_v9 = vrot.slane %v86_v7, %v182_v8  ;;  %v74_v10 = vld [vmem:[%s5500_s22] sm:$0xff]  ;;  %v75_v12 = vld [vmem:[%s5500_s22 + $0x8] sm:$0xff]  ;;  %v76_v13 = vld [vmem:[%s5500_s22 + $0x10] sm:$0xff]  ;;  %v3929_v26 = vrot.slane %v86_v7, %v166_v11  ;;  %v3934_v30 = vrot.slane %v86_v7, %v170_v15  ;;  %v3947_v36 = vrot.slane %v86_v7, %v178_v18  ;;  %s5484_s30 = smov 19   ;;  %s5503_s29 = sld [smem:[#allocation11_spill]] }
   0xc   :  { %v77_v14 = vld [vmem:[%s5500_s22 + $0x18] sm:$0xff]  ;;  %v78_v16 = vld [vmem:[%s5500_s22 + $0x20] sm:$0xff]  ;;  %v80_v31 = vld [vmem:[%s5500_s22 + $0x30] sm:$0xff]  ;;  %v3954_v41 = vrot.slane %v86_v7, %v162_v17  ;;  %v3979_v56 = vrot.slane %v86_v7, %v174_v34  ;;  %s3754_s24 = smov 107   ;;  %s3755_s28 = smov 106  }
   0xd   :  { %132 = vperm.xlu1 %3566, %v124_v4   ;;  %v81_v32 = vld [vmem:[%s5500_s22 + $0x38] sm:$0xff]  ;;  %v82_v33 = vld [vmem:[%s5500_s22 + $0x40] sm:$0xff]  ;;  %v83_v42 = vld [vmem:[%s5500_s22 + $0x48] sm:$0xff] }
   0xe   :  { %108 = vperm.xlu0 %3565, %v100_v5   ;;  %v84_v43 = vld [vmem:[%s5500_s22 + $0x50] sm:$0xff] }
  0x88   :  { %v3920_v20 = vpop.permute.xlu1 %127 }
  0x89   :  { %v3918_v19 = vpop.permute.xlu0 %103 }
  0x8a   :  { %v111_v21 = vmul.f32 %v3918_v19, %v74_v10  ;;  %v112_v22 = vmul.f32 %v3918_v19, %v75_v12  ;;  %v113_v23 = vmul.f32 %v3918_v19, %v76_v13  ;;  %v114_v24 = vmul.f32 %v3918_v19, %v77_v14 }
  0x8b   :  { %v115_v25 = vmul.f32 %v3918_v19, %v78_v16 }
  0x8c   :  { %v135_v27 = vadd.f32 %v3920_v20, %v111_v21  ;;  %v136_v28 = vadd.f32 %v3920_v20, %v112_v22  ;;  %v137_v29 = vadd.f32 %v3920_v20, %v113_v23  ;;  %v138_v38 = vadd.f32 %v3920_v20, %v114_v24  ;;  %v3971_v51 = vpop.permute.xlu1 %132  ;;  %v4053_v21 = vld [vmem:[%s5500_s22 + $0x58] sm:$0xff]  ;;  %v4058_v22 = vld [vmem:[%s5500_s22 + $0x28] sm:$0xff] }
  0x8d   :  { %v139_v35 = vadd.f32 %v3920_v20, %v115_v25  ;;  %v3949_v37 = vpop.permute.xlu0 %108  ;;  %v3743_v23 = vmov 0.0   ;;  %1949 = vst [vmem:[%s5501_s6 + $0x58] sm:$0xff] %v4053_v21  ;;  %1943 = vst [vmem:[%s5501_s6 + $0x28] sm:$0xff] %v4058_v22 }
  0x8e   :  { %v148_v39 = vmax.f32 %v136_v28, 0.0  ;;  %v149_v40 = vmax.f32 %v137_v29, 0.0  ;;  %v117_v45 = vmul.f32 %v3949_v37, %v80_v31  ;;  %v118_v46 = vmul.f32 %v3949_v37, %v81_v32  ;;  %98 = vst [vmem:[#allocation3 + $0x58] sm:$0xff] %v3743_v23  ;;  %87 = vst [vmem:[#allocation3] sm:$0xff] %v3743_v23 }
  0x8f   :  { %v151_v44 = vmax.f32 %v139_v35, 0.0  ;;  %v119_v47 = vmul.f32 %v3949_v37, %v82_v33  ;;  %v147_v48 = vmax.f32 %v135_v27, 0.0  ;;  %v120_v53 = vmul.f32 %v3949_v37, %v83_v42  ;;  %91 = vst [vmem:[#allocation3 + $0x20] sm:$0xff] %v3743_v23  ;;  %93 = vst [vmem:[#allocation3 + $0x30] sm:$0xff] %v3743_v23  ;;  %v4173_v27 = vld [vmem:[%s5502_s0] sm:$0xff] }
  0x90   :  { %v3966_v49 = vmul.f32 %v3929_v26, %v148_v39  ;;  %v3969_v50 = vmul.f32 %v3934_v30, %v149_v40  ;;  %v121_v54 = vmul.f32 %v3949_v37, %v84_v43  ;;  %v141_v55 = vadd.f32 %v3971_v51, %v117_v45  ;;  %94 = vst [vmem:[#allocation3 + $0x38] sm:$0xff] %v3743_v23 }
  0x91   :  { %v3974_v52 = vmul.f32 %v3947_v36, %v151_v44  ;;  %v142_v57 = vadd.f32 %v3971_v51, %v118_v46  ;;  %v143_v58 = vadd.f32 %v3971_v51, %v119_v47  ;;  %v150_v59 = vmax.f32 %v138_v38, 0.0  ;;  %95 = vst [vmem:[#allocation3 + $0x40] sm:$0xff] %v3743_v23  ;;  %96 = vst [vmem:[#allocation3 + $0x48] sm:$0xff] %v3743_v23 }
  0x92   :  { %227 = vrot.lane.b32.xlu1 %v3969_v50, %s3740_s5  ;;  %225 = vrot.lane.b32.xlu0 %v3966_v49, %s3740_s5  ;;  %v144_v60 = vadd.f32 %v3971_v51, %v120_v53  ;;  %v145_v61 = vadd.f32 %v3971_v51, %v121_v54  ;;  %v153_v62 = vmax.f32 %v141_v55, 0.0  ;;  %v3992_v2 = vmul.f32 %v3954_v41, %v147_v48 }
  0x93   :  { %207 = vst.msk [vmem:[#allocation2 + $0x20] sm:$0xff] %vm206_vm0, %v3974_v52  ;;  %v154_v63 = vmax.f32 %v142_v57, 0.0  ;;  %v155_v0 = vmax.f32 %v143_v58, 0.0  ;;  %v4004_v10 = vmul.f32 %v3979_v56, %v150_v59  ;;  %97 = vst [vmem:[#allocation3 + $0x50] sm:$0xff] %v3743_v23  ;;  %v4177_v28 = vcombine.high %v4173_v27, %v4173_v27 }
  0x94   :  { %v156_v3 = vmax.f32 %v144_v60, 0.0  ;;  %v157_v4 = vmax.f32 %v145_v61, 0.0  ;;  %v3995_v5 = vmul.f32 %v3954_v41, %v153_v62  ;;  %2662 = vst [vmem:[#allocation4] sm:$0xff] %v3743_v23  ;;  %2663 = vst [vmem:[#allocation4 + $0x8] sm:$0xff] %v3743_v23 }
  0x95   :  { %v3998_v7 = vmul.f32 %v3929_v26, %v154_v63  ;;  %v4001_v8 = vmul.f32 %v3934_v30, %v155_v0  ;;  %2664 = vst [vmem:[#allocation4 + $0x10] sm:$0xff] %v3743_v23  ;;  %2665 = vst [vmem:[#allocation4 + $0x18] sm:$0xff] %v3743_v23  ;;  %3389 = vmatprep.mubr.msk.bf16.mxu0 %vm777_vm2, %v4177_v28  ;;  %3390 = vmatprep.mubr.msk.bf16.mxu1 %vm777_vm2, %v4177_v28 }
  0x96   :  { %v4007_v12 = vmul.f32 %v3979_v56, %v156_v3  ;;  %v4010_v13 = vmul.f32 %v3947_v36, %v157_v4  ;;  %v726_v14 = vpack.c.bf16 %v3995_v5, %v3992_v2  ;;  %v122_v4 = vmul.f32 %v3949_v37, %v4053_v21 }
  0x97   :  { %237 = vrot.lane.b32.xlu1 %v4001_v8, %s3740_s5  ;;  %235 = vrot.lane.b32.xlu0 %v3998_v7, %s3740_s5  ;;  %v727_v15 = vpack.c.bf16 %v3998_v7, %v3966_v49  ;;  %v728_v18 = vpack.c.bf16 %v4001_v8, %v3969_v50 }
  0x98   :  { %v729_v16 = vpack.c.bf16 %v4007_v12, %v4004_v10  ;;  %212 = vst.msk [vmem:[#allocation2 + $0x50] sm:$0xff] %vm206_vm0, %v4010_v13  ;;  %v146_v37 = vadd.f32 %v3971_v51, %v122_v4 }
  0x99   :  { %781 = vmatprep.subr.bf16.mxu0 %v727_v15 }
  0x9a   :  { %822 = vmatprep.subr.bf16.mxu1 %v729_v16  ;;  %782 = vmatpush1.bf16.msra.mxu0 %v726_v14 }
  0x9b   :  { %233 = vrot.lane.b32.xlu1 %v3995_v5, %s3740_s5  ;;  %223 = vrot.lane.b32.xlu0 %v3992_v2, %s3740_s5 }
  0x9c   :  { %823 = vmatpush1.bf16.msra.mxu1 %v728_v18 }
  0x9f   :  { %276 = vrot.lane.b32.xlu1 %v3969_v50, %s3741_s26  ;;  %274 = vrot.lane.b32.xlu0 %v3966_v49, %s3741_s26 }
  0xa3   :  { %286 = vrot.lane.b32.xlu1 %v4001_v8, %s3741_s26  ;;  %284 = vrot.lane.b32.xlu0 %v3998_v7, %s3741_s26 }
  0xa7   :  { %282 = vrot.lane.b32.xlu1 %v3995_v5, %s3741_s26  ;;  %272 = vrot.lane.b32.xlu0 %v3992_v2, %s3741_s26 }
  0xab   :  { %325 = vrot.lane.b32.xlu1 %v3969_v50, %s3742_s1  ;;  %323 = vrot.lane.b32.xlu0 %v3966_v49, %s3742_s1 }
  0xaf   :  { %335 = vrot.lane.b32.xlu1 %v4001_v8, %s3742_s1  ;;  %333 = vrot.lane.b32.xlu0 %v3998_v7, %s3742_s1 }
  0xb3   :  { %331 = vrot.lane.b32.xlu1 %v3995_v5, %s3742_s1  ;;  %321 = vrot.lane.b32.xlu0 %v3992_v2, %s3742_s1 }
  0xb7   :  { %374 = vrot.lane.b32.xlu1 %v3969_v50, %s3744_s25  ;;  %372 = vrot.lane.b32.xlu0 %v3966_v49, %s3744_s25 }
  0xbb   :  { %384 = vrot.lane.b32.xlu1 %v4001_v8, %s3744_s25  ;;  %382 = vrot.lane.b32.xlu0 %v3998_v7, %s3744_s25 }
  0xbf   :  { %380 = vrot.lane.b32.xlu1 %v3995_v5, %s3744_s25  ;;  %370 = vrot.lane.b32.xlu0 %v3992_v2, %s3744_s25 }
  0xc3   :  { %231 = vrot.lane.b32.xlu1 %v3974_v52, %s3740_s5  ;;  %229 = vrot.lane.b32.xlu0 %v4004_v10, %s3740_s5 }
  0xc7   :  { %241 = vrot.lane.b32.xlu1 %v4010_v13, %s3740_s5  ;;  %239 = vrot.lane.b32.xlu0 %v4007_v12, %s3740_s5 }
  0xcb   :  { %423 = vrot.lane.b32.xlu1 %v3969_v50, %s3745_s4  ;;  %421 = vrot.lane.b32.xlu0 %v3966_v49, %s3745_s4 }
  0xcf   :  { %433 = vrot.lane.b32.xlu1 %v4001_v8, %s3745_s4  ;;  %431 = vrot.lane.b32.xlu0 %v3998_v7, %s3745_s4 }
  0xd3   :  { %429 = vrot.lane.b32.xlu1 %v3995_v5, %s3745_s4  ;;  %419 = vrot.lane.b32.xlu0 %v3992_v2, %s3745_s4 }
  0xd7   :  { %280 = vrot.lane.b32.xlu1 %v3974_v52, %s3741_s26  ;;  %278 = vrot.lane.b32.xlu0 %v4004_v10, %s3741_s26 }
  0xdb   :  { %290 = vrot.lane.b32.xlu1 %v4010_v13, %s3741_s26  ;;  %288 = vrot.lane.b32.xlu0 %v4007_v12, %s3741_s26 }
  0xdf   :  { %474 = vrot.lane.b32.xlu1 %v3969_v50, %s5486_s8  ;;  %472 = vrot.lane.b32.xlu0 %v3966_v49, %s5486_s8 }
  0xe3   :  { %486 = vrot.lane.b32.xlu1 %v4001_v8, %s5486_s8  ;;  %484 = vrot.lane.b32.xlu0 %v3998_v7, %s5486_s8 }
  0xe7   :  { %482 = vrot.lane.b32.xlu1 %v3995_v5, %s5486_s8  ;;  %470 = vrot.lane.b32.xlu0 %v3992_v2, %s5486_s8 }
  0xeb   :  { %329 = vrot.lane.b32.xlu1 %v3974_v52, %s3742_s1  ;;  %327 = vrot.lane.b32.xlu0 %v4004_v10, %s3742_s1 }
  0xef   :  { %339 = vrot.lane.b32.xlu1 %v4010_v13, %s3742_s1  ;;  %337 = vrot.lane.b32.xlu0 %v4007_v12, %s3742_s1 }
  0xf3   :  { %529 = vrot.lane.b32.xlu1 %v3969_v50, %s5482_s27  ;;  %527 = vrot.lane.b32.xlu0 %v3966_v49, %s5482_s27 }
  0xf7   :  { %541 = vrot.lane.b32.xlu1 %v4001_v8, %s5482_s27  ;;  %539 = vrot.lane.b32.xlu0 %v3998_v7, %s5482_s27 }
  0xfb   :  { %537 = vrot.lane.b32.xlu1 %v3995_v5, %s5482_s27  ;;  %525 = vrot.lane.b32.xlu0 %v3992_v2, %s5482_s27 }
  0xff   :  { %378 = vrot.lane.b32.xlu1 %v3974_v52, %s3744_s25  ;;  %376 = vrot.lane.b32.xlu0 %v4004_v10, %s3744_s25 }
 0x103   :  { %388 = vrot.lane.b32.xlu1 %v4010_v13, %s3744_s25  ;;  %386 = vrot.lane.b32.xlu0 %v4007_v12, %s3744_s25 }
 0x104   :  { %v4164_v24 = vpop.permute.xlu1 %227  ;;  %v226_v25 = vpop.permute.xlu0 %225 }
 0x105   :  { %v245_v32 = vsel %vm243_vm1, %v226_v25, %v4164_v24 }
 0x107   :  { %584 = vrot.lane.b32.xlu1 %v3969_v50, %s5480_s9  ;;  %582 = vrot.lane.b32.xlu0 %v3966_v49, %s5480_s9 }
 0x109   :  { %v4179_v29 = vpop.permute.xlu1 %237  ;;  %v236_v31 = vpop.permute.xlu0 %235 }
 0x10a   :  { %v249_v33 = vsel %vm243_vm1, %v236_v31, %v4179_v29 }
 0x10b   :  { %596 = vrot.lane.b32.xlu1 %v4001_v8, %s5480_s9  ;;  %594 = vrot.lane.b32.xlu0 %v3998_v7, %s5480_s9  ;;  %v732_v34 = vpack.c.bf16 %v249_v33, %v245_v32 }
 0x10d   :  { %v234_v35 = vpop.permute.xlu1 %233  ;;  %v224_v38 = vpop.permute.xlu0 %223  ;;  %783 = vmatprep.subr.bf16.mxu0 %v732_v34 }
 0x10e   :  { %v248_v39 = vsel %vm243_vm1, %v234_v35, %v236_v31  ;;  %v244_v40 = vsel %vm243_vm1, %v224_v38, %v226_v25 }
 0x10f   :  { %592 = vrot.lane.b32.xlu1 %v3995_v5, %s5480_s9  ;;  %580 = vrot.lane.b32.xlu0 %v3992_v2, %s5480_s9  ;;  %v731_v42 = vpack.c.bf16 %v248_v39, %v244_v40  ;;  %v116_v5 = vmul.f32 %v3918_v19, %v4058_v22  ;;  %v158_v22 = vmax.f32 %v146_v37, 0.0 }
 0x111   :  { %v4199_v43 = vpop.permute.xlu1 %276  ;;  %v275_v44 = vpop.permute.xlu0 %274  ;;  %784 = vmatpush1.bf16.msra.mxu0 %v731_v42  ;;  %v140_v18 = vadd.f32 %v3920_v20, %v116_v5  ;;  %v201_v32 = vmul.f32 %v3897_v9, %v158_v22 }
 0x112   :  { %v294_v47 = vsel %vm292_vm3, %v275_v44, %v4199_v43 }
 0x113   :  { %427 = vrot.lane.b32.xlu1 %v3974_v52, %s3745_s4  ;;  %425 = vrot.lane.b32.xlu0 %v4004_v10, %s3745_s4  ;;  %v152_v25 = vmax.f32 %v140_v18, 0.0 }
 0x115   :  { %v4205_v45 = vpop.permute.xlu1 %286  ;;  %v285_v46 = vpop.permute.xlu0 %284  ;;  %v195_v33 = vmul.f32 %v3897_v9, %v152_v25 }
 0x116   :  { %v298_v48 = vsel %vm292_vm3, %v285_v46, %v4205_v45 }
 0x117   :  { %437 = vrot.lane.b32.xlu1 %v4010_v13, %s3745_s4  ;;  %435 = vrot.lane.b32.xlu0 %v4007_v12, %s3745_s4  ;;  %v737_v49 = vpack.c.bf16 %v298_v48, %v294_v47 }
 0x119   :  { %v283_v50 = vpop.permute.xlu1 %282  ;;  %v273_v53 = vpop.permute.xlu0 %272  ;;  %785 = vmatprep.subr.bf16.mxu0 %v737_v49 }
 0x11a   :  { %v297_v54 = vsel %vm292_vm3, %v283_v50, %v285_v46  ;;  %v293_v55 = vsel %vm292_vm3, %v273_v53, %v275_v44 }
 0x11b   :  { %478 = vrot.lane.b32.xlu1 %v3974_v52, %s5486_s8  ;;  %476 = vrot.lane.b32.xlu0 %v4004_v10, %s5486_s8  ;;  %v736_v57 = vpack.c.bf16 %v297_v54, %v293_v55 }
 0x11d   :  { %v4221_v58 = vpop.permute.xlu1 %325  ;;  %v324_v59 = vpop.permute.xlu0 %323  ;;  %786 = vmatpush1.bf16.msra.mxu0 %v736_v57 }
 0x11e   :  { %v343_v62 = vsel %vm341_vm4, %v324_v59, %v4221_v58 }
 0x11f   :  { %490 = vrot.lane.b32.xlu1 %v4010_v13, %s5486_s8  ;;  %488 = vrot.lane.b32.xlu0 %v4007_v12, %s5486_s8 }
 0x121   :  { %v4227_v60 = vpop.permute.xlu1 %335  ;;  %v334_v61 = vpop.permute.xlu0 %333 }
 0x122   :  { %v347_v63 = vsel %vm341_vm4, %v334_v61, %v4227_v60 }
 0x123   :  { %533 = vrot.lane.b32.xlu1 %v3974_v52, %s5482_s27  ;;  %531 = vrot.lane.b32.xlu0 %v4004_v10, %s5482_s27  ;;  %v742_v0 = vpack.c.bf16 %v347_v63, %v343_v62 }
 0x125   :  { %v332_v2 = vpop.permute.xlu1 %331  ;;  %v322_v3 = vpop.permute.xlu0 %321  ;;  %787 = vmatprep.subr.bf16.mxu0 %v742_v0 }
 0x126   :  { %v346_v7 = vsel %vm341_vm4, %v332_v2, %v334_v61  ;;  %v342_v8 = vsel %vm341_vm4, %v322_v3, %v324_v59 }
 0x127   :  { %545 = vrot.lane.b32.xlu1 %v4010_v13, %s5482_s27  ;;  %543 = vrot.lane.b32.xlu0 %v4007_v12, %s5482_s27  ;;  %v741_v14 = vpack.c.bf16 %v346_v7, %v342_v8 }
 0x129   :  { %v4247_v15 = vpop.permute.xlu1 %374  ;;  %v373_v16 = vpop.permute.xlu0 %372  ;;  %788 = vmatpush1.bf16.msra.mxu0 %v741_v14 }
 0x12a   :  { %v392_v31 = vsel %vm390_vm5, %v373_v16, %v4247_v15 }
 0x12b   :  { %588 = vrot.lane.b32.xlu1 %v3974_v52, %s5480_s9  ;;  %586 = vrot.lane.b32.xlu0 %v4004_v10, %s5480_s9 }
 0x12d   :  { %v4255_v19 = vpop.permute.xlu1 %384  ;;  %v383_v21 = vpop.permute.xlu0 %382 }
 0x12e   :  { %v396_v51 = vsel %vm390_vm5, %v383_v21, %v4255_v19 }
 0x12f   :  { %415 = vst [vmem:[#allocation2 + $0x1b8] sm:$0xff] %v396_v51  ;;  %600 = vrot.lane.b32.xlu1 %v4010_v13, %s5480_s9  ;;  %598 = vrot.lane.b32.xlu0 %v4007_v12, %s5480_s9  ;;  %v747_v20 = vpack.c.bf16 %v396_v51, %v392_v31 }
 0x131   :  { %v381_v52 = vpop.permute.xlu1 %380  ;;  %v371_v10 = vpop.permute.xlu0 %370  ;;  %789 = vmatprep.subr.bf16.mxu0 %v747_v20 }
 0x132   :  { %v395_v34 = vsel %vm390_vm5, %v381_v52, %v383_v21  ;;  %v391_v35 = vsel %vm390_vm5, %v371_v10, %v373_v16 }
 0x133   :  { %492 = vrot.lane.b32.xlu1 %v201_v32, %s5486_s8  ;;  %480 = vrot.lane.b32.xlu0 %v195_v33, %s5486_s8  ;;  %v746_v13 = vpack.c.bf16 %v395_v34, %v391_v35 }
 0x135   :  { %v232_v38 = vpop.permute.xlu1 %231  ;;  %v230_v39 = vpop.permute.xlu0 %229  ;;  %790 = vmatpush1.bf16.msra.mxu0 %v746_v13 }
 0x136   :  { %266 = vst.msk [vmem:[#allocation2 + $0x80] sm:$0xff] %vm206_vm0, %v232_v38  ;;  %v246_v42 = vsel %vm243_vm1, %v4164_v24, %v230_v39  ;;  %v247_v44 = vsel %vm243_vm1, %v230_v39, %v232_v38 }
 0x137   :  { %547 = vrot.lane.b32.xlu1 %v201_v32, %s5482_s27  ;;  %535 = vrot.lane.b32.xlu0 %v195_v33, %s5482_s27  ;;  %s5504_s27 = sld [smem:[#allocation12_spill]] }
 0x139   :  { %v242_v12 = vpop.permute.xlu1 %241  ;;  %v240_v40 = vpop.permute.xlu0 %239 }
 0x13a   :  { %271 = vst.msk [vmem:[#allocation2 + $0xb0] sm:$0xff] %vm206_vm0, %v242_v12  ;;  %v250_v46 = vsel %vm243_vm1, %v4179_v29, %v240_v40  ;;  %v251_v47 = vsel %vm243_vm1, %v240_v40, %v242_v12 }
 0x13b   :  { %602 = vrot.lane.b32.xlu1 %v201_v32, %s5480_s9  ;;  %590 = vrot.lane.b32.xlu0 %v195_v33, %s5480_s9  ;;  %v734_v48 = vpack.c.bf16 %v251_v47, %v247_v44  ;;  %v733_v49 = vpack.c.bf16 %v250_v46, %v246_v42 }
 0x13d   :  { %v4283_v50 = vpop.permute.xlu1 %423  ;;  %v422_v53 = vpop.permute.xlu0 %421  ;;  %824 = vmatprep.subr.bf16.mxu1 %v734_v48 }
 0x13e   :  { %v441_v24 = vsel %vm439_vm6, %v422_v53, %v4283_v50  ;;  %825 = vmatpush1.bf16.msra.mxu1 %v733_v49 }
 0x13f   :  { %459 = vst [vmem:[#allocation2 + $0x1e8] sm:$0xff] %v441_v24 }
 0x141   :  { %v4287_v54 = vpop.permute.xlu1 %433  ;;  %v432_v29 = vpop.permute.xlu0 %431 }
 0x142   :  { %v445_v55 = vsel %vm439_vm6, %v432_v29, %v4287_v54 }
 0x143   :  { %464 = vst [vmem:[#allocation2 + $0x218] sm:$0xff] %v445_v55  ;;  %v752_v57 = vpack.c.bf16 %v445_v55, %v441_v24 }
 0x145   :  { %v430_v59 = vpop.permute.xlu1 %429  ;;  %v420_v61 = vpop.permute.xlu0 %419  ;;  %791 = vmatprep.subr.bf16.mxu0 %v752_v57 }
 0x146   :  { %v444_v62 = vsel %vm439_vm6, %v430_v59, %v432_v29  ;;  %v440_v63 = vsel %vm439_vm6, %v420_v61, %v422_v53 }
 0x147   :  { %v751_v0 = vpack.c.bf16 %v444_v62, %v440_v63 }
 0x149   :  { %v281_v2 = vpop.permute.xlu1 %280  ;;  %v279_v3 = vpop.permute.xlu0 %278  ;;  %792 = vmatpush1.bf16.msra.mxu0 %v751_v0 }
 0x14a   :  { %315 = vst.msk [vmem:[#allocation2 + $0xe0] sm:$0xff] %vm206_vm0, %v281_v2  ;;  %v295_v7 = vsel %vm292_vm3, %v4199_v43, %v279_v3  ;;  %v296_v8 = vsel %vm292_vm3, %v279_v3, %v281_v2 }
 0x14d   :  { %v291_v4 = vpop.permute.xlu1 %290  ;;  %v289_v5 = vpop.permute.xlu0 %288 }
 0x14e   :  { %320 = vst.msk [vmem:[#allocation2 + $0x110] sm:$0xff] %vm206_vm0, %v291_v4  ;;  %v299_v14 = vsel %vm292_vm3, %v4205_v45, %v289_v5  ;;  %v300_v16 = vsel %vm292_vm3, %v289_v5, %v291_v4 }
 0x14f   :  { %v739_v37 = vpack.c.bf16 %v300_v16, %v296_v8  ;;  %v738_v18 = vpack.c.bf16 %v299_v14, %v295_v7 }
 0x151   :  { %v4301_v21 = vpop.permute.xlu1 %474  ;;  %v473_v22 = vpop.permute.xlu0 %472  ;;  %826 = vmatprep.subr.bf16.mxu1 %v739_v37 }
 0x152   :  { %v496_v25 = vsel %vm494_vm7, %v473_v22, %v4301_v21  ;;  %827 = vmatpush1.bf16.msra.mxu1 %v738_v18 }
 0x153   :  { %516 = vst [vmem:[#allocation2 + $0x248] sm:$0xff] %v496_v25 }
 0x155   :  { %v4305_v43 = vpop.permute.xlu1 %486  ;;  %v485_v31 = vpop.permute.xlu0 %484 }
 0x156   :  { %v501_v45 = vsel %vm494_vm7, %v485_v31, %v4305_v43 }
 0x157   :  { %521 = vst [vmem:[#allocation2 + $0x278] sm:$0xff] %v501_v45  ;;  %v757_v51 = vpack.c.bf16 %v501_v45, %v496_v25 }
 0x159   :  { %v483_v20 = vpop.permute.xlu1 %482  ;;  %v471_v52 = vpop.permute.xlu0 %470  ;;  %793 = vmatprep.subr.bf16.mxu0 %v757_v51 }
 0x15a   :  { %v500_v10 = vsel %vm494_vm7, %v483_v20, %v485_v31  ;;  %v495_v32 = vsel %vm494_vm7, %v471_v52, %v473_v22 }
 0x15b   :  { %v756_v33 = vpack.c.bf16 %v500_v10, %v495_v32  ;;  %v4349_v10 = vcombine.low %v4173_v27, %v4173_v27  ;;  %v645_v32 = vld [vmem:[#allocation2 + $0x50] sm:$0xff] }
 0x15d   :  { %v330_v34 = vpop.permute.xlu1 %329  ;;  %v328_v35 = vpop.permute.xlu0 %327  ;;  %794 = vmatpush1.bf16.msra.mxu0 %v756_v33 }
 0x15e   :  { %364 = vst.msk [vmem:[#allocation2 + $0x140] sm:$0xff] %vm206_vm0, %v330_v34  ;;  %v344_v39 = vsel %vm341_vm4, %v4221_v58, %v328_v35  ;;  %v345_v12 = vsel %vm341_vm4, %v328_v35, %v330_v34 }
 0x161   :  { %v340_v13 = vpop.permute.xlu1 %339  ;;  %v338_v38 = vpop.permute.xlu0 %337 }
 0x162   :  { %369 = vst.msk [vmem:[#allocation2 + $0x170] sm:$0xff] %vm206_vm0, %v340_v13  ;;  %v348_v40 = vsel %vm341_vm4, %v4227_v60, %v338_v38  ;;  %v349_v42 = vsel %vm341_vm4, %v338_v38, %v340_v13  ;;  %v640_v38 = vld [vmem:[#allocation2 + $0x20] sm:$0xff] }
 0x163   :  { %v744_v44 = vpack.c.bf16 %v349_v42, %v345_v12  ;;  %v743_v46 = vpack.c.bf16 %v348_v40, %v344_v39  ;;  %v730_v39 = vpack.c.bf16 %v645_v32, %v640_v38  ;;  %v655_v12 = vld [vmem:[#allocation2 + $0xb0] sm:$0xff] }
 0x165   :  { %v4319_v47 = vpop.permute.xlu1 %529  ;;  %v528_v48 = vpop.permute.xlu0 %527  ;;  %828 = vmatprep.subr.bf16.mxu1 %v744_v44  ;;  %v650_v44 = vld [vmem:[#allocation2 + $0x80] sm:$0xff] }
 0x166   :  { %v551_v49 = vsel %vm549_vm8, %v528_v48, %v4319_v47  ;;  %829 = vmatpush1.bf16.msra.mxu1 %v743_v46 }
 0x167   :  { %571 = vst [vmem:[#allocation2 + $0x2a8] sm:$0xff] %v551_v49 }
 0x169   :  { %v4323_v58 = vpop.permute.xlu1 %541  ;;  %v540_v53 = vpop.permute.xlu0 %539 }
 0x16a   :  { %v556_v60 = vsel %vm549_vm8, %v540_v53, %v4323_v58 }
 0x16b   :  { %576 = vst [vmem:[#allocation2 + $0x2d8] sm:$0xff] %v556_v60  ;;  %v762_v24 = vpack.c.bf16 %v556_v60, %v551_v49 }
 0x16d   :  { %v538_v29 = vpop.permute.xlu1 %537  ;;  %v526_v55 = vpop.permute.xlu0 %525  ;;  %795 = vmatprep.subr.bf16.mxu0 %v762_v24 }
 0x16e   :  { %v555_v57 = vsel %vm549_vm8, %v538_v29, %v540_v53  ;;  %v550_v59 = vsel %vm549_vm8, %v526_v55, %v528_v48  ;;  %v735_v48 = vpack.c.bf16 %v655_v12, %v650_v44  ;;  %v665_v53 = vld [vmem:[#allocation2 + $0x110] sm:$0xff] }
 0x16f   :  { %v761_v61 = vpack.c.bf16 %v555_v57, %v550_v59  ;;  %v675_v57 = vld [vmem:[#allocation2 + $0x170] sm:$0xff] }
 0x171   :  { %v379_v62 = vpop.permute.xlu1 %378  ;;  %v377_v63 = vpop.permute.xlu0 %376  ;;  %796 = vmatpush1.bf16.msra.mxu0 %v761_v61 }
 0x172   :  { %413 = vst.msk [vmem:[#allocation2 + $0x1a0] sm:$0xff] %vm206_vm0, %v379_v62  ;;  %v393_v3 = vsel %vm390_vm5, %v4247_v15, %v377_v63  ;;  %v394_v4 = vsel %vm390_vm5, %v377_v63, %v379_v62 }
 0x175   :  { %v389_v0 = vpop.permute.xlu1 %388  ;;  %v387_v2 = vpop.permute.xlu0 %386 }
 0x176   :  { %418 = vst.msk [vmem:[#allocation2 + $0x1d0] sm:$0xff] %vm206_vm0, %v389_v0  ;;  %v397_v5 = vsel %vm390_vm5, %v4255_v19, %v387_v2  ;;  %v398_v7 = vsel %vm390_vm5, %v387_v2, %v389_v0  ;;  %v670_v0 = vld [vmem:[#allocation2 + $0x140] sm:$0xff] }
 0x177   :  { %v749_v8 = vpack.c.bf16 %v398_v7, %v394_v4  ;;  %v748_v14 = vpack.c.bf16 %v397_v5, %v393_v3  ;;  %v745_v2 = vpack.c.bf16 %v675_v57, %v670_v0 }
 0x179   :  { %v4337_v16 = vpop.permute.xlu1 %584  ;;  %v583_v37 = vpop.permute.xlu0 %582  ;;  %830 = vmatprep.subr.bf16.mxu1 %v749_v8 }
 0x17a   :  { %v606_v18 = vsel %vm604_vm9, %v583_v37, %v4337_v16  ;;  %831 = vmatpush1.bf16.msra.mxu1 %v748_v14 }
 0x17b   :  { %626 = vst [vmem:[#allocation2 + $0x308] sm:$0xff] %v606_v18 }
 0x17d   :  { %v4341_v15 = vpop.permute.xlu1 %596  ;;  %v595_v22 = vpop.permute.xlu0 %594  ;;  %v685_v4 = vld [vmem:[#allocation2 + $0x1d0] sm:$0xff] }
 0x17e   :  { %v611_v19 = vsel %vm604_vm9, %v595_v22, %v4341_v15 }
 0x17f   :  { %631 = vst [vmem:[#allocation2 + $0x338] sm:$0xff] %v611_v19  ;;  %v767_v25 = vpack.c.bf16 %v611_v19, %v606_v18 }
 0x181   :  { %v593_v31 = vpop.permute.xlu1 %592  ;;  %v581_v45 = vpop.permute.xlu0 %580  ;;  %797 = vmatprep.subr.bf16.mxu0 %v767_v25 }
 0x182   :  { %v610_v51 = vsel %vm604_vm9, %v593_v31, %v595_v22  ;;  %v605_v20 = vsel %vm604_vm9, %v581_v45, %v583_v37 }
 0x183   :  { %v766_v52 = vpack.c.bf16 %v610_v51, %v605_v20 }
 0x185   :  { %v428_v33 = vpop.permute.xlu1 %427  ;;  %v426_v34 = vpop.permute.xlu0 %425  ;;  %798 = vmatpush1.bf16.msra.mxu0 %v766_v52 }
 0x186   :  { %462 = vst.msk [vmem:[#allocation2 + $0x200] sm:$0xff] %vm206_vm0, %v428_v33  ;;  %v442_v35 = vsel %vm439_vm6, %v4283_v50, %v426_v34  ;;  %v443_v13 = vsel %vm439_vm6, %v426_v34, %v428_v33  ;;  %863 = vmatprep.subr.bf16.mxu0 %v3739_v1 }
 0x188   :  { %814 = vmatmul.mubr.bf16.vlgmr.msra.gmra.mrb[0].mxu0 %v4349_v10 }
 0x189   :  { %v438_v27 = vpop.permute.xlu1 %437  ;;  %v436_v40 = vpop.permute.xlu0 %435  ;;  %864 = vmatpush1.bf16.msra.mxu0 %v730_v39  ;;  %3391 = vmatprep.mubr.msk.bf16.mxu0 %vm777_vm2, %v4177_v28 }
 0x18a   :  { %467 = vst.msk [vmem:[#allocation2 + $0x230] sm:$0xff] %vm206_vm0, %v438_v27  ;;  %v446_v50 = vsel %vm439_vm6, %v4287_v54, %v436_v40  ;;  %v447_v42 = vsel %vm439_vm6, %v436_v40, %v438_v27  ;;  %865 = vmatprep.subr.bf16.mxu0 %v3739_v1  ;;  %v660_v54 = vld [vmem:[#allocation2 + $0xe0] sm:$0xff] }
 0x18b   :  { %v754_v46 = vpack.c.bf16 %v447_v42, %v443_v13  ;;  %v753_v49 = vpack.c.bf16 %v446_v50, %v442_v35  ;;  %v740_v55 = vpack.c.bf16 %v665_v53, %v660_v54 }
 0x18d   :  { %v479_v60 = vpop.permute.xlu1 %478  ;;  %v477_v24 = vpop.permute.xlu0 %476  ;;  %832 = vmatprep.subr.bf16.mxu1 %v754_v46  ;;  %866 = vmatpush1.bf16.msra.mxu0 %v735_v48  ;;  %v690_v45 = vld [vmem:[#allocation2 + $0x200] sm:$0xff] }
 0x18e   :  { %v497_v28 = vsel %vm494_vm7, %v4301_v21, %v477_v24  ;;  %v498_v29 = vsel %vm494_vm7, %v477_v24, %v479_v60  ;;  %833 = vmatpush1.bf16.msra.mxu1 %v753_v49  ;;  %867 = vmatprep.subr.bf16.mxu0 %v3739_v1 }
 0x191   :  { %v491_v59 = vpop.permute.xlu1 %490  ;;  %v489_v61 = vpop.permute.xlu0 %488  ;;  %868 = vmatpush1.bf16.msra.mxu0 %v740_v55  ;;  %v695_v18 = vld [vmem:[#allocation2 + $0x230] sm:$0xff] }
 0x192   :  { %v502_v62 = vsel %vm494_vm7, %v4305_v43, %v489_v61  ;;  %v503_v63 = vsel %vm494_vm7, %v489_v61, %v491_v59  ;;  %869 = vmatprep.subr.bf16.mxu0 %v3739_v1  ;;  %v680_v43 = vld [vmem:[#allocation2 + $0x1a0] sm:$0xff]  ;;  %v755_v51 = vpack.c.bf16 %v695_v18, %v690_v45 }
 0x193   :  { %v759_v21 = vpack.c.bf16 %v503_v63, %v498_v29  ;;  %v758_v3 = vpack.c.bf16 %v502_v62, %v497_v28  ;;  %v750_v37 = vpack.c.bf16 %v685_v4, %v680_v43 }
 0x195   :  { %v534_v5 = vpop.permute.xlu1 %533  ;;  %v532_v7 = vpop.permute.xlu0 %531  ;;  %834 = vmatprep.subr.bf16.mxu1 %v759_v21  ;;  %870 = vmatpush1.bf16.msra.mxu0 %v745_v2  ;;  %v941_v2 = vld [vmem:[%s5503_s29] sm:$0xff]  ;;  %s5507_s29 = smov 90  }
 0x196   :  { %v552_v8 = vsel %vm549_vm8, %v4319_v47, %v532_v7  ;;  %v553_v14 = vsel %vm549_vm8, %v532_v7, %v534_v5  ;;  %835 = vmatpush1.bf16.msra.mxu1 %v758_v3  ;;  %871 = vmatprep.subr.bf16.mxu0 %v3739_v1 }
 0x199   :  { %v546_v22 = vpop.permute.xlu1 %545  ;;  %v544_v19 = vpop.permute.xlu0 %543  ;;  %872 = vmatpush1.bf16.msra.mxu0 %v750_v37 }
 0x19a   :  { %v557_v25 = vsel %vm549_vm8, %v4323_v58, %v544_v19  ;;  %v558_v31 = vsel %vm549_vm8, %v544_v19, %v546_v22  ;;  %873 = vmatprep.subr.bf16.mxu0 %v3739_v1 }
 0x19b   :  { %v764_v47 = vpack.c.bf16 %v558_v31, %v553_v14  ;;  %v763_v20 = vpack.c.bf16 %v557_v25, %v552_v8  ;;  %v3715_v25 = vld [vmem:[%s5500_s22 + $0x8] sm:$0xff] }
 0x19d   :  { %v589_v52 = vpop.permute.xlu1 %588  ;;  %v587_v32 = vpop.permute.xlu0 %586  ;;  %836 = vmatprep.subr.bf16.mxu1 %v764_v47  ;;  %874 = vmatpush1.bf16.msra.mxu0 %v755_v51  ;;  %v3716_v47 = vld [vmem:[%s5500_s22] sm:$0xff] }
 0x19e   :  { %v607_v33 = vsel %vm604_vm9, %v4337_v16, %v587_v32  ;;  %v608_v34 = vsel %vm604_vm9, %v587_v32, %v589_v52  ;;  %837 = vmatpush1.bf16.msra.mxu1 %v763_v20  ;;  %875 = vmatprep.subr.bf16.mxu0 %v3739_v1 }
 0x1a1   :  { %v601_v58 = vpop.permute.xlu1 %600  ;;  %v599_v35 = vpop.permute.xlu0 %598 }
 0x1a2   :  { %v612_v13 = vsel %vm604_vm9, %v4341_v15, %v599_v35  ;;  %v613_v38 = vsel %vm604_vm9, %v599_v35, %v601_v58 }
 0x1a3   :  { %v769_v39 = vpack.c.bf16 %v613_v38, %v608_v34  ;;  %v768_v12 = vpack.c.bf16 %v612_v13, %v607_v33  ;;  %v3717_v34 = vld [vmem:[%s5500_s22 + $0x10] sm:$0xff]  ;;  %v3718_v13 = vld [vmem:[%s5500_s22 + $0x18] sm:$0xff] }
 0x1a5   :  { %v493_v27 = vpop.permute.xlu1 %492  ;;  %v481_v40 = vpop.permute.xlu0 %480  ;;  %838 = vmatprep.subr.bf16.mxu1 %v769_v39 }
 0x1a6   :  { %v504_v50 = vsel %vm494_vm7, %v491_v59, %v493_v27  ;;  %v499_v16 = vsel %vm494_vm7, %v479_v60, %v481_v40  ;;  %839 = vmatpush1.bf16.msra.mxu1 %v768_v12 }
 0x1a7   :  { %524 = vst.msk [vmem:[#allocation2 + $0x290] sm:$0xff] %vm206_vm0, %v504_v50  ;;  %519 = vst.msk [vmem:[#allocation2 + $0x260] sm:$0xff] %vm206_vm0, %v499_v16 }
 0x1a9   :  { %v548_v42 = vpop.permute.xlu1 %547  ;;  %v536_v44 = vpop.permute.xlu0 %535  ;;  %855 = vmatmul.mubr.bf16.vlgmr.msra.gmra.mrb[0].mxu1 %v4349_v10 }
 0x1aa   :  { %v559_v15 = vsel %vm549_vm8, %v546_v22, %v548_v42  ;;  %v554_v46 = vsel %vm549_vm8, %v534_v5, %v536_v44  ;;  %1312 = vmatprep.mubr.bf16.mxu1 %v3739_v1 }
 0x1ab   :  { %579 = vst.msk [vmem:[#allocation2 + $0x2f0] sm:$0xff] %vm206_vm0, %v559_v15  ;;  %574 = vst.msk [vmem:[#allocation2 + $0x2c0] sm:$0xff] %vm206_vm0, %v554_v46 }
 0x1ad   :  { %v603_v48 = vpop.permute.xlu1 %602  ;;  %v591_v49 = vpop.permute.xlu0 %590 }
 0x1ae   :  { %v614_v53 = vsel %vm604_vm9, %v601_v58, %v603_v48  ;;  %v609_v60 = vsel %vm604_vm9, %v589_v52, %v591_v49  ;;  %v700_v24 = vld [vmem:[#allocation2 + $0x260] sm:$0xff]  ;;  %v705_v28 = vld [vmem:[#allocation2 + $0x290] sm:$0xff] }
 0x1af   :  { %634 = vst.msk [vmem:[#allocation2 + $0x350] sm:$0xff] %vm206_vm0, %v614_v53  ;;  %629 = vst.msk [vmem:[#allocation2 + $0x320] sm:$0xff] %vm206_vm0, %v609_v60  ;;  %v760_v29 = vpack.c.bf16 %v705_v28, %v700_v24 }
 0x1b1   :  { %876 = vmatpush1.bf16.msra.mxu0 %v760_v29 }
 0x1b2   :  { %877 = vmatprep.subr.bf16.mxu0 %v3739_v1  ;;  %v710_v54 = vld [vmem:[#allocation2 + $0x2c0] sm:$0xff]  ;;  %v715_v55 = vld [vmem:[#allocation2 + $0x2f0] sm:$0xff] }
 0x1b3   :  { %v765_v57 = vpack.c.bf16 %v715_v55, %v710_v54 }
 0x1b5   :  { %878 = vmatpush1.bf16.msra.mxu0 %v765_v57 }
 0x1b6   :  { %879 = vmatprep.subr.bf16.mxu0 %v3739_v1  ;;  %v720_v59 = vld [vmem:[#allocation2 + $0x320] sm:$0xff]  ;;  %v725_v61 = vld [vmem:[#allocation2 + $0x350] sm:$0xff] }
 0x1b7   :  { %v770_v62 = vpack.c.bf16 %v725_v61, %v720_v59  ;;  %v3719_v61 = vld [vmem:[%s5500_s22 + $0x20] sm:$0xff] }
 0x1b9   :  { %880 = vmatpush1.bf16.msra.mxu0 %v770_v62 }
 0x1ba   :  { %3515 = vmatprep.subr.bf16.mxu0 %v3743_v23 }
 0x1bc   :  { %896 = vmatmul.mubr.bf16.vlgmr.msra.gmra.mrb[4].mxu0 %v4349_v10  ;;  %v953_v10 = vld [vmem:[%s5504_s27] sm:$0xff]  ;;  %s5505_s27 = smov 92  }
 0x25b   :  { %v815_v63 = vpop.f32.mrb[0].mxu0 }
 0x25c   :  { %v817_v0 = vpop.f32.mrb[1].mxu0  ;;  %908 = vrot.lane.b32.xlu0 %v815_v63, %s5484_s30 }
 0x25d   :  { %910 = vrot.lane.b32.xlu1 %v817_v0, %s5484_s30  ;;  %v819_v21 = vpop.f32.mrb[2].mxu0 }
 0x25e   :  { %v820_v3 = vpop.f32.mrb[3].mxu0 }
 0x261   :  { %944 = vperm.xlu1 %3566, %v941_v2   ;;  %v4549_v2 = vld [vmem:[#allocation3 + $0x58] sm:$0xff] }
 0x262   :  { %3525 = vmatprep.mubr.msk.bf16.mxu0 %vm3750_vm13, %v4549_v2 }
 0x27c   :  { %v856_v4 = vpop.f32.mrb[0].mxu1 }
 0x27d   :  { %v858_v5 = vpop.f32.mrb[1].mxu1  ;;  %912 = vrot.lane.b32.xlu0 %v856_v4, %s5484_s30 }
 0x27e   :  { %v860_v23 = vpop.f32.mrb[2].mxu1  ;;  %914 = vrot.lane.b32.xlu1 %v858_v5, %s5484_s30 }
 0x27f   :  { %v861_v7 = vpop.f32.mrb[3].mxu1 }
 0x281   :  { %956 = vperm.xlu0 %3565, %v953_v10  }
 0x28f   :  { %v897_v8 = vpop.f32.mrb[4].mxu0 }
 0x290   :  { %916 = vrot.lane.b32.xlu0 %v897_v8, %s5484_s30  ;;  %v899_v14 = vpop.f32.mrb[5].mxu0  ;;  %s5506_s30 = smov 91  }
 0x291   :  { %v900_v43 = vpop.f32.mrb[6].mxu0 }
 0x292   :  { %v901_v37 = vpop.f32.mrb[7].mxu0 }
 0x2ce   :  { %v909_v18 = vpop.permute.xlu0 %908 }
 0x2cf   :  { %929 = vst.msk [vmem:[#allocation3] sm:$0xff] %vm928_vm10, %v909_v18  ;;  %v911_v22 = vpop.permute.xlu1 %910  ;;  %vm1431_vm10 = vcmask 953344  }
 0x2d0   :  { %v919_v19 = vsel %vm918_vm11, %v909_v18, %v911_v22 }
 0x2d1   :  { %v1927_v31 = vadd.f32 %v3715_v25, %v919_v19 }
 0x2d3   :  { %1939 = vst [vmem:[%s5501_s6 + $0x8] sm:$0xff] %v1927_v31 }
 0x2d6   :  { %v1914_v45 = vld [vmem:[#allocation3] sm:$0xff] }
 0x2d7   :  { %v1926_v51 = vadd.f32 %v3716_v47, %v1914_v45 }
 0x2d9   :  { %1938 = vst [vmem:[%s5501_s6] sm:$0xff] %v1926_v51 }
 0x2e0   :  { %v4429_v20 = vpop.permute.xlu1 %944 }
 0x2e1   :  { %v947_v39 = vmul.f32 %v1914_v45, %v4429_v20  ;;  %v948_v12 = vmul.f32 %v4429_v20, %v919_v19  ;;  %v952_v3 = vmul.f32 %v4549_v2, %v4429_v20 }
 0x2ef   :  { %v913_v52 = vpop.permute.xlu0 %912 }
 0x2f0   :  { %v920_v32 = vsel %vm918_vm11, %v911_v22, %v913_v52  ;;  %v915_v33 = vpop.permute.xlu1 %914 }
 0x2f1   :  { %v1928_v58 = vadd.f32 %v3717_v34, %v920_v32  ;;  %v921_v35 = vsel %vm918_vm11, %v913_v52, %v915_v33  ;;  %v949_v27 = vmul.f32 %v4429_v20, %v920_v32 }
 0x2f2   :  { %v1929_v38 = vadd.f32 %v3718_v13, %v921_v35  ;;  %v950_v40 = vmul.f32 %v4429_v20, %v921_v35 }
 0x2f3   :  { %1940 = vst [vmem:[%s5501_s6 + $0x10] sm:$0xff] %v1928_v58 }
 0x2f4   :  { %1941 = vst [vmem:[%s5501_s6 + $0x18] sm:$0xff] %v1929_v38 }
 0x300   :  { %v4449_v50 = vpop.permute.xlu0 %956 }
 0x301   :  { %v959_v16 = vadd.f32 %v4449_v50, %v947_v39  ;;  %v960_v42 = vadd.f32 %v4449_v50, %v948_v12  ;;  %v961_v44 = vadd.f32 %v4449_v50, %v949_v27  ;;  %v962_v15 = vadd.f32 %v4449_v50, %v950_v40 }
 0x302   :  { %v964_v4 = vadd.f32 %v4449_v50, %v952_v3 }
 0x303   :  { %v965_v46 = vmax.f32 %v959_v16, 0.0  ;;  %v966_v48 = vmax.f32 %v960_v42, 0.0  ;;  %v967_v49 = vmax.f32 %v961_v44, 0.0  ;;  %v968_v53 = vmax.f32 %v962_v15, 0.0 }
 0x304   :  { %v917_v60 = vpop.permute.xlu0 %916  ;;  %v970_v5 = vmax.f32 %v964_v4, 0.0 }
 0x305   :  { %v4456_v24 = vmul.f32 %v965_v46, %v3954_v41  ;;  %v4459_v28 = vmul.f32 %v966_v48, %v3929_v26  ;;  %v4462_v29 = vmul.f32 %v967_v49, %v3934_v30  ;;  %v4465_v54 = vmul.f32 %v968_v53, %v3979_v56 }
 0x306   :  { %v922_v55 = vsel %vm918_vm11, %v915_v33, %v917_v60  ;;  %v976_v23 = vmul.f32 %v970_v5, %v3897_v9 }
 0x307   :  { %977 = vst [vmem:[#allocation2] sm:$0xff] %v4456_v24  ;;  %978 = vst [vmem:[#allocation2 + $0x8] sm:$0xff] %v4459_v28  ;;  %987 = vrot.lane.b32.xlu1 %v4456_v24, %s3740_s5  ;;  %1011 = vrot.lane.b32.xlu0 %v4456_v24, %s3741_s26 }
 0x308   :  { %979 = vst [vmem:[#allocation2 + $0x10] sm:$0xff] %v4462_v29  ;;  %980 = vst [vmem:[#allocation2 + $0x18] sm:$0xff] %v4465_v54 }
 0x309   :  { %934 = vst.msk [vmem:[#allocation3 + $0x20] sm:$0xff] %vm933_vm12, %v922_v55 }
 0x30b   :  { %1035 = vrot.lane.b32.xlu1 %v4456_v24, %s3742_s1  ;;  %1059 = vrot.lane.b32.xlu0 %v4456_v24, %s3744_s25 }
 0x30f   :  { %1083 = vrot.lane.b32.xlu1 %v4456_v24, %s3745_s4  ;;  %1108 = vrot.lane.b32.xlu0 %v4456_v24, %s5505_s27 }
 0x310   :  { %v939_v57 = vld [vmem:[#allocation3 + $0x20] sm:$0xff] }
 0x311   :  { %v951_v59 = vmul.f32 %v4429_v20, %v939_v57  ;;  %v1930_v62 = vadd.f32 %v3719_v61, %v939_v57 }
 0x313   :  { %v963_v63 = vadd.f32 %v4449_v50, %v951_v59  ;;  %1942 = vst [vmem:[%s5501_s6 + $0x20] sm:$0xff] %v1930_v62  ;;  %1135 = vrot.lane.b32.xlu1 %v4456_v24, %s5506_s30  ;;  %1162 = vrot.lane.b32.xlu0 %v4456_v24, %s5507_s29 }
 0x315   :  { %v969_v0 = vmax.f32 %v963_v63, 0.0 }
 0x317   :  { %v975_v21 = vmul.f32 %v969_v0, %v3947_v36  ;;  %989 = vrot.lane.b32.xlu1 %v4459_v28, %s3740_s5  ;;  %991 = vrot.lane.b32.xlu0 %v4462_v29, %s3740_s5 }
 0x319   :  { %981 = vst.msk [vmem:[#allocation2 + $0x20] sm:$0xff] %vm206_vm0, %v975_v21 }
 0x31b   :  { %1015 = vrot.lane.b32.xlu1 %v4462_v29, %s3741_s26  ;;  %1013 = vrot.lane.b32.xlu0 %v4459_v28, %s3741_s26 }
 0x31f   :  { %1039 = vrot.lane.b32.xlu1 %v4462_v29, %s3742_s1  ;;  %1037 = vrot.lane.b32.xlu0 %v4459_v28, %s3742_s1 }
 0x323   :  { %1063 = vrot.lane.b32.xlu1 %v4462_v29, %s3744_s25  ;;  %1061 = vrot.lane.b32.xlu0 %v4459_v28, %s3744_s25 }
 0x327   :  { %1087 = vrot.lane.b32.xlu1 %v4462_v29, %s3745_s4  ;;  %1085 = vrot.lane.b32.xlu0 %v4459_v28, %s3745_s4 }
 0x32b   :  { %1112 = vrot.lane.b32.xlu1 %v4462_v29, %s5505_s27  ;;  %1110 = vrot.lane.b32.xlu0 %v4459_v28, %s5505_s27 }
 0x32f   :  { %1139 = vrot.lane.b32.xlu1 %v4462_v29, %s5506_s30  ;;  %1137 = vrot.lane.b32.xlu0 %v4459_v28, %s5506_s30 }
 0x333   :  { %1164 = vrot.lane.b32.xlu1 %v4459_v28, %s5507_s29  ;;  %1166 = vrot.lane.b32.xlu0 %v4462_v29, %s5507_s29 }
 0x337   :  { %993 = vrot.lane.b32.xlu1 %v4465_v54, %s3740_s5  ;;  %995 = vrot.lane.b32.xlu0 %v975_v21, %s3740_s5 }
 0x33b   :  { %1017 = vrot.lane.b32.xlu1 %v4465_v54, %s3741_s26  ;;  %1019 = vrot.lane.b32.xlu0 %v975_v21, %s3741_s26 }
 0x33f   :  { %1041 = vrot.lane.b32.xlu1 %v4465_v54, %s3742_s1  ;;  %1043 = vrot.lane.b32.xlu0 %v975_v21, %s3742_s1 }
 0x343   :  { %1065 = vrot.lane.b32.xlu1 %v4465_v54, %s3744_s25  ;;  %1067 = vrot.lane.b32.xlu0 %v975_v21, %s3744_s25 }
 0x347   :  { %1089 = vrot.lane.b32.xlu1 %v4465_v54, %s3745_s4  ;;  %1091 = vrot.lane.b32.xlu0 %v975_v21, %s3745_s4 }
 0x34b   :  { %1114 = vrot.lane.b32.xlu1 %v4465_v54, %s5505_s27  ;;  %1116 = vrot.lane.b32.xlu0 %v975_v21, %s5505_s27 }
 0x34f   :  { %1141 = vrot.lane.b32.xlu1 %v4465_v54, %s5506_s30  ;;  %1143 = vrot.lane.b32.xlu0 %v975_v21, %s5506_s30 }
 0x353   :  { %1168 = vrot.lane.b32.xlu1 %v4465_v54, %s5507_s29  ;;  %1170 = vrot.lane.b32.xlu0 %v975_v21, %s5507_s29 }
 0x357   :  { %1118 = vrot.lane.b32.xlu1 %v976_v23, %s5505_s27  ;;  %1145 = vrot.lane.b32.xlu0 %v976_v23, %s5506_s30 }
 0x35b   :  { %1172 = vrot.lane.b32.xlu1 %v976_v23, %s5507_s29 }
 0x379   :  { %v988_v10 = vpop.permute.xlu1 %987  ;;  %v1012_v7 = vpop.permute.xlu0 %1011 }
 0x37d   :  { %v1036_v8 = vpop.permute.xlu1 %1035  ;;  %v1060_v14 = vpop.permute.xlu0 %1059 }
 0x381   :  { %v1084_v43 = vpop.permute.xlu1 %1083  ;;  %v1109_v37 = vpop.permute.xlu0 %1108 }
 0x385   :  { %v1136_v18 = vpop.permute.xlu1 %1135  ;;  %v1163_v22 = vpop.permute.xlu0 %1162 }
 0x389   :  { %v990_v19 = vpop.permute.xlu1 %989  ;;  %v4566_v25 = vpop.permute.xlu0 %991 }
 0x38a   :  { %v997_v31 = vsel %vm243_vm1, %v988_v10, %v990_v19  ;;  %v998_v45 = vsel %vm243_vm1, %v990_v19, %v4566_v25 }
 0x38b   :  { %1006 = vst [vmem:[#allocation2 + $0x30] sm:$0xff] %v997_v31  ;;  %1007 = vst [vmem:[#allocation2 + $0x38] sm:$0xff] %v998_v45  ;;  %v1236_v47 = vpack.c.bf16 %v998_v45, %v4459_v28  ;;  %v1235_v51 = vpack.c.bf16 %v997_v31, %v4456_v24  ;;  %v1194_v45 = vld [vmem:[#allocation2 + $0x20] sm:$0xff] }
 0x38d   :  { %v4573_v20 = vpop.permute.xlu1 %1015  ;;  %v1014_v52 = vpop.permute.xlu0 %1013  ;;  %1280 = vmatprep.subr.bf16.mxu1 %v1236_v47 }
 0x38e   :  { %v1021_v32 = vsel %vm292_vm3, %v1012_v7, %v1014_v52  ;;  %v1022_v33 = vsel %vm292_vm3, %v1014_v52, %v4573_v20  ;;  %1281 = vmatpush1.bf16.msra.mxu1 %v1235_v51 }
 0x38f   :  { %1030 = vst [vmem:[#allocation2 + $0x60] sm:$0xff] %v1021_v32  ;;  %1031 = vst [vmem:[#allocation2 + $0x68] sm:$0xff] %v1022_v33 }
 0x391   :  { %v4578_v34 = vpop.permute.xlu1 %1039  ;;  %v1038_v58 = vpop.permute.xlu0 %1037 }
 0x392   :  { %v1045_v35 = vsel %vm341_vm4, %v1036_v8, %v1038_v58  ;;  %v1046_v13 = vsel %vm341_vm4, %v1038_v58, %v4578_v34 }
 0x393   :  { %1054 = vst [vmem:[#allocation2 + $0x90] sm:$0xff] %v1045_v35  ;;  %1055 = vst [vmem:[#allocation2 + $0x98] sm:$0xff] %v1046_v13  ;;  %v1241_v38 = vpack.c.bf16 %v1046_v13, %v1022_v33  ;;  %v1240_v39 = vpack.c.bf16 %v1045_v35, %v1021_v32 }
 0x395   :  { %v4583_v12 = vpop.permute.xlu1 %1063  ;;  %v1062_v27 = vpop.permute.xlu0 %1061  ;;  %1282 = vmatprep.subr.bf16.mxu1 %v1241_v38 }
 0x396   :  { %v1069_v40 = vsel %vm390_vm5, %v1060_v14, %v1062_v27  ;;  %v1070_v50 = vsel %vm390_vm5, %v1062_v27, %v4583_v12  ;;  %1283 = vmatpush1.bf16.msra.mxu1 %v1240_v39 }
 0x397   :  { %1078 = vst [vmem:[#allocation2 + $0xc0] sm:$0xff] %v1069_v40  ;;  %1079 = vst [vmem:[#allocation2 + $0xc8] sm:$0xff] %v1070_v50 }
 0x399   :  { %v4588_v16 = vpop.permute.xlu1 %1087  ;;  %v1086_v42 = vpop.permute.xlu0 %1085 }
 0x39a   :  { %v1093_v44 = vsel %vm439_vm6, %v1084_v43, %v1086_v42  ;;  %v1094_v15 = vsel %vm439_vm6, %v1086_v42, %v4588_v16  ;;  %v4617_v43 = vld [vmem:[%s5460_s7] sm:$0x3]  ;;  %s5508_s7 = smov 19  }
 0x39b   :  { %1103 = vst [vmem:[#allocation2 + $0xf8] sm:$0xff] %v1094_v15  ;;  %v1246_v46 = vpack.c.bf16 %v1094_v15, %v1070_v50  ;;  %v1245_v48 = vpack.c.bf16 %v1093_v44, %v1069_v40 }
 0x39d   :  { %v4593_v49 = vpop.permute.xlu1 %1112  ;;  %v1111_v53 = vpop.permute.xlu0 %1110  ;;  %1284 = vmatprep.subr.bf16.mxu1 %v1246_v46 }
 0x39e   :  { %v1121_v60 = vsel %vm494_vm7, %v1111_v53, %v4593_v49  ;;  %1285 = vmatpush1.bf16.msra.mxu1 %v1245_v48  ;;  %v1120_v55 = vsel %vm494_vm7, %v1109_v37, %v1111_v53 }
 0x39f   :  { %1131 = vst [vmem:[#allocation2 + $0x128] sm:$0xff] %v1121_v60 }
 0x3a1   :  { %v4597_v24 = vpop.permute.xlu1 %1139  ;;  %v1138_v28 = vpop.permute.xlu0 %1137 }
 0x3a2   :  { %v1147_v57 = vsel %vm549_vm8, %v1136_v18, %v1138_v28  ;;  %v1148_v59 = vsel %vm549_vm8, %v1138_v28, %v4597_v24 }
 0x3a3   :  { %1158 = vst [vmem:[#allocation2 + $0x158] sm:$0xff] %v1148_v59  ;;  %v1251_v61 = vpack.c.bf16 %v1148_v59, %v1121_v60  ;;  %v1250_v62 = vpack.c.bf16 %v1147_v57, %v1120_v55 }
 0x3a5   :  { %v1165_v63 = vpop.permute.xlu1 %1164  ;;  %v4603_v0 = vpop.permute.xlu0 %1166  ;;  %1286 = vmatprep.subr.bf16.mxu1 %v1251_v61 }
 0x3a6   :  { %v1174_v21 = vsel %vm604_vm9, %v1163_v22, %v1165_v63  ;;  %v1175_v3 = vsel %vm604_vm9, %v1165_v63, %v4603_v0  ;;  %1287 = vmatpush1.bf16.msra.mxu1 %v1250_v62 }
 0x3a7   :  { %1185 = vst [vmem:[#allocation2 + $0x188] sm:$0xff] %v1175_v3  ;;  %v1256_v4 = vpack.c.bf16 %v1175_v3, %v1175_v3  ;;  %v1255_v5 = vpack.c.bf16 %v1174_v21, %v1174_v21 }
 0x3a9   :  { %v994_v23 = vpop.permute.xlu1 %993  ;;  %v996_v10 = vpop.permute.xlu0 %995  ;;  %3392 = vmatprep.subr.msk.bf16.mxu1 %vm1264_vm14, %v1256_v4  ;;  %v1266_v7 = vsel %vm1264_vm14, %v1255_v5, 0 }
 0x3aa   :  { %v999_v8 = vsel %vm243_vm1, %v4566_v25, %v994_v23  ;;  %v1000_v14 = vsel %vm243_vm1, %v994_v23, %v996_v10  ;;  %1010 = vst.msk [vmem:[#allocation2 + $0x50] sm:$0xff] %vm206_vm0, %v996_v10  ;;  %1289 = vmatpush1.bf16.msra.mxu1 %v1266_v7 }
 0x3ab   :  { %1008 = vst [vmem:[#allocation2 + $0x40] sm:$0xff] %v999_v8  ;;  %1009 = vst [vmem:[#allocation2 + $0x48] sm:$0xff] %v1000_v14  ;;  %v1238_v37 = vpack.c.bf16 %v1000_v14, %v4465_v54  ;;  %v1237_v18 = vpack.c.bf16 %v999_v8, %v4462_v29 }
 0x3ad   :  { %v1018_v22 = vpop.permute.xlu1 %1017  ;;  %v1020_v19 = vpop.permute.xlu0 %1019  ;;  %3393 = vmatmul.mubr.msk.bf16.vlgmr.msra.gmra.mrb[4].mxu1 %vm1260_vm15, %v4617_v43  ;;  %1321 = vmatprep.subr.bf16.mxu1 %v1238_v37 }
 0x3ae   :  { %v1023_v25 = vsel %vm292_vm3, %v4573_v20, %v1018_v22  ;;  %v1024_v31 = vsel %vm292_vm3, %v1018_v22, %v1020_v19  ;;  %1034 = vst.msk [vmem:[#allocation2 + $0x80] sm:$0xff] %vm206_vm0, %v1020_v19  ;;  %1322 = vmatpush1.bf16.msra.mxu1 %v1237_v18  ;;  %1353 = vmatprep.mubr.bf16.mxu1 %v3739_v1 }
 0x3af   :  { %1032 = vst [vmem:[#allocation2 + $0x70] sm:$0xff] %v1023_v25  ;;  %1033 = vst [vmem:[#allocation2 + $0x78] sm:$0xff] %v1024_v31 }
 0x3b1   :  { %v1042_v54 = vpop.permute.xlu1 %1041  ;;  %v1044_v29 = vpop.permute.xlu0 %1043  ;;  %v1199_v47 = vld [vmem:[#allocation2 + $0x50] sm:$0xff] }
 0x3b2   :  { %v1047_v51 = vsel %vm341_vm4, %v4578_v34, %v1042_v54  ;;  %v1048_v52 = vsel %vm341_vm4, %v1042_v54, %v1044_v29  ;;  %1058 = vst.msk [vmem:[#allocation2 + $0xb0] sm:$0xff] %vm206_vm0, %v1044_v29  ;;  %v1239_v20 = vpack.c.bf16 %v1199_v47, %v1194_v45 }
 0x3b3   :  { %1056 = vst [vmem:[#allocation2 + $0xa0] sm:$0xff] %v1047_v51  ;;  %1057 = vst [vmem:[#allocation2 + $0xa8] sm:$0xff] %v1048_v52  ;;  %v1243_v32 = vpack.c.bf16 %v1048_v52, %v1024_v31  ;;  %v1242_v33 = vpack.c.bf16 %v1047_v51, %v1023_v25  ;;  %v1439_v52 = vld [vmem:[%s5461_s11] sm:$0xf] }
 0x3b4   :  { %3516 = vmatpush3.bf16.msra.mxu0 %v1239_v20 }
 0x3b5   :  { %v1066_v58 = vpop.permute.xlu1 %1065  ;;  %v1068_v35 = vpop.permute.xlu0 %1067  ;;  %3517 = vmatprep.subr.bf16.mxu0 %v4549_v2  ;;  %1323 = vmatprep.subr.bf16.mxu1 %v1243_v32  ;;  %v1204_v27 = vld [vmem:[#allocation2 + $0x80] sm:$0xff] }
 0x3b6   :  { %v1071_v13 = vsel %vm390_vm5, %v4583_v12, %v1066_v58  ;;  %v1072_v34 = vsel %vm390_vm5, %v1066_v58, %v1068_v35  ;;  %1082 = vst.msk [vmem:[#allocation2 + $0xe0] sm:$0xff] %vm206_vm0, %v1068_v35  ;;  %1324 = vmatpush1.bf16.msra.mxu1 %v1242_v33  ;;  %v1451_v33 = vld [vmem:[%s5462_s12] sm:$0xf] }
 0x3b7   :  { %1080 = vst [vmem:[#allocation2 + $0xd0] sm:$0xff] %v1071_v13  ;;  %1081 = vst [vmem:[#allocation2 + $0xd8] sm:$0xff] %v1072_v34 }
 0x3b9   :  { %v1090_v38 = vpop.permute.xlu1 %1089  ;;  %v1092_v39 = vpop.permute.xlu0 %1091  ;;  %v1209_v40 = vld [vmem:[#allocation2 + $0xb0] sm:$0xff] }
 0x3ba   :  { %v1095_v50 = vsel %vm439_vm6, %v4588_v16, %v1090_v38  ;;  %v1096_v42 = vsel %vm439_vm6, %v1090_v38, %v1092_v39  ;;  %1106 = vst.msk [vmem:[#allocation2 + $0x110] sm:$0xff] %vm206_vm0, %v1092_v39  ;;  %v1244_v44 = vpack.c.bf16 %v1209_v40, %v1204_v27 }
 0x3bb   :  { %v1248_v12 = vpack.c.bf16 %v1096_v42, %v1072_v34  ;;  %v1247_v15 = vpack.c.bf16 %v1095_v50, %v1071_v13 }
 0x3bc   :  { %3518 = vmatpush3.bf16.msra.mxu0 %v1244_v44 }
 0x3bd   :  { %v1115_v46 = vpop.permute.xlu1 %1114  ;;  %v1117_v48 = vpop.permute.xlu0 %1116  ;;  %3519 = vmatprep.subr.bf16.mxu0 %v4549_v2  ;;  %1325 = vmatprep.subr.bf16.mxu1 %v1248_v12  ;;  %v1214_v55 = vld [vmem:[#allocation2 + $0xe0] sm:$0xff] }
 0x3be   :  { %v1122_v53 = vsel %vm494_vm7, %v4593_v49, %v1115_v46  ;;  %v1123_v60 = vsel %vm494_vm7, %v1115_v46, %v1117_v48  ;;  %1326 = vmatpush1.bf16.msra.mxu1 %v1247_v15 }
 0x3c1   :  { %v1142_v16 = vpop.permute.xlu1 %1141  ;;  %v1144_v28 = vpop.permute.xlu0 %1143  ;;  %v1219_v57 = vld [vmem:[#allocation2 + $0x110] sm:$0xff] }
 0x3c2   :  { %v1149_v59 = vsel %vm549_vm8, %v4597_v24, %v1142_v16  ;;  %v1150_v61 = vsel %vm549_vm8, %v1142_v16, %v1144_v28  ;;  %v1249_v62 = vpack.c.bf16 %v1219_v57, %v1214_v55 }
 0x3c3   :  { %v1253_v63 = vpack.c.bf16 %v1150_v61, %v1123_v60  ;;  %v1252_v21 = vpack.c.bf16 %v1149_v59, %v1122_v53 }
 0x3c4   :  { %3520 = vmatpush3.bf16.msra.mxu0 %v1249_v62 }
 0x3c5   :  { %v1169_v3 = vpop.permute.xlu1 %1168  ;;  %v1171_v4 = vpop.permute.xlu0 %1170  ;;  %1327 = vmatprep.subr.bf16.mxu1 %v1253_v63  ;;  %3521 = vmatprep.subr.bf16.mxu0 %v4549_v2 }
 0x3c6   :  { %v1176_v49 = vsel %vm604_vm9, %v4603_v0, %v1169_v3  ;;  %v1177_v5 = vsel %vm604_vm9, %v1169_v3, %v1171_v4  ;;  %1328 = vmatpush1.bf16.msra.mxu1 %v1252_v21 }
 0x3c7   :  { %v1258_v23 = vpack.c.bf16 %v1177_v5, %v1177_v5  ;;  %v1257_v10 = vpack.c.bf16 %v1176_v49, %v1176_v49 }
 0x3c9   :  { %v1119_v24 = vpop.permute.xlu1 %1118  ;;  %v1146_v7 = vpop.permute.xlu0 %1145  ;;  %3394 = vmatprep.subr.msk.bf16.mxu1 %vm1264_vm14, %v1258_v23  ;;  %v1272_v8 = vsel %vm1264_vm14, %v1257_v10, 0 }
 0x3ca   :  { %v1124_v14 = vsel %vm494_vm7, %v1117_v48, %v1119_v24  ;;  %v1151_v37 = vsel %vm549_vm8, %v1144_v28, %v1146_v7  ;;  %1330 = vmatpush1.bf16.msra.mxu1 %v1272_v8 }
 0x3cb   :  { %1134 = vst.msk [vmem:[#allocation2 + $0x140] sm:$0xff] %vm206_vm0, %v1124_v14  ;;  %1161 = vst.msk [vmem:[#allocation2 + $0x170] sm:$0xff] %vm206_vm0, %v1151_v37 }
 0x3cd   :  { %v1173_v0 = vpop.permute.xlu1 %1172  ;;  %3395 = vmatmul.mubr.msk.bf16.vlgmr.msra.gmra.mrb[8].mxu1 %vm1260_vm15, %v4617_v43 }
 0x3ce   :  { %v1178_v18 = vsel %vm604_vm9, %v1171_v4, %v1173_v0  ;;  %1788 = vmatprep.mubr.bf16.mxu1 %v3739_v1 }
 0x3cf   :  { %1188 = vst.msk [vmem:[#allocation2 + $0x1a0] sm:$0xff] %vm206_vm0, %v1178_v18  ;;  %vm1426_vm0 = vcmask 1043608  }
 0x3d2   :  { %v1224_v22 = vld [vmem:[#allocation2 + $0x140] sm:$0xff]  ;;  %v1229_v19 = vld [vmem:[#allocation2 + $0x170] sm:$0xff] }
 0x3d3   :  { %v1254_v25 = vpack.c.bf16 %v1229_v19, %v1224_v22 }
 0x3d5   :  { %3522 = vmatpush3.bf16.msra.mxu0 %v1254_v25  ;;  %v1438_v25 = vld [vmem:[#allocation3 + $0x58] sm:$0xf] }
 0x3d6   :  { %3523 = vmatprep.subr.bf16.mxu0 %v4549_v2  ;;  %v1234_v31 = vld [vmem:[#allocation2 + $0x1a0] sm:$0xff] }
 0x3d7   :  { %v1259_v54 = vpack.c.bf16 %v1234_v31, %v1234_v31 }
 0x3d9   :  { %v1278_v29 = vsel %vm1264_vm14, %v1259_v54, 0 }
 0x3da   :  { %3524 = vmatpush3.bf16.msra.mxu0 %v1278_v29 }
 0x3db   :  { %3529 = vmatprep.subr.bf16.mxu0 %v4549_v2 }
 0x3dd   :  { %3526 = vmatmul.mubr.msk.bf16.vlgmr.msra.gmra.mrb[8].mxu0 %vm1260_vm15, %v4617_v43 }
 0x3de   :  { %3535 = vmatprep.mubr.msk.bf16.mxu0 %vm3750_vm13, %v4549_v2  ;;  %vm1479_vm13 = vcmask 797696  }
 0x480   :  { %v1314_v45 = vpop.f32.mrb[4].mxu1 }
 0x481   :  { %v1316_v47 = vpop.f32.mrb[5].mxu1  ;;  %1407 = vrot.lane.b32.xlu0 %v1314_v45, %s5508_s7 }
 0x482   :  { %1409 = vrot.lane.b32.xlu1 %v1316_v47, %s5508_s7  ;;  %v1318_v51 = vpop.f32.mrb[6].mxu1 }
 0x483   :  { %v1319_v20 = vpop.f32.mrb[7].mxu1  ;;  %v2666_v51 = vld [vmem:[%s5463_s14] sm:$0xff] }
 0x484   :  { %v2683_v20 = vld [vmem:[%s5465_s15 + $0x8] sm:$0xff] }
 0x486   :  { %1442 = vperm.xlu1 %3566, %v1439_v52   ;;  %v2667_v52 = vld [vmem:[%s5463_s14 + $0x8] sm:$0xff] }
 0x4a0   :  { %v1355_v32 = vpop.f32.mrb[8].mxu1 }
 0x4a1   :  { %1411 = vrot.lane.b32.xlu0 %v1355_v32, %s5508_s7  ;;  %v1357_v43 = vpop.f32.mrb[9].mxu1 }
 0x4a2   :  { %1413 = vrot.lane.b32.xlu1 %v1357_v43, %s5508_s7  ;;  %v1359_v2 = vpop.f32.mrb[10].mxu1 }
 0x4a3   :  { %v1360_v58 = vpop.f32.mrb[11].mxu1 }
 0x4a5   :  { %1454 = vperm.xlu0 %3565, %v1451_v33  }
 0x4b0   :  { %v1396_v35 = vpop.f32.mrb[8].mxu0 }
 0x4b1   :  { %1415 = vrot.lane.b32.xlu0 %v1396_v35, %s5508_s7  ;;  %v3527_v13 = vpop.f32.mrb[9].mxu0 }
 0x4b2   :  { %v1399_v34 = vpop.f32.mrb[10].mxu0 }
 0x4b3   :  { %v3528_v38 = vpop.f32.mrb[11].mxu0 }
 0x4f3   :  { %v1408_v39 = vpop.permute.xlu0 %1407 }
 0x4f4   :  { %v1410_v27 = vpop.permute.xlu1 %1409  ;;  %1427 = vst.msk [vmem:[#allocation3 + $0x30] sm:$0xf] %vm1426_vm0, %v1408_v39  ;;  %vm5488_vm0 = vcmask 293888  }
 0x4f5   :  { %v1417_v40 = vsel %vm918_vm11, %v1408_v39, %v1410_v27 }
 0x4f6   :  { %1428 = vst [vmem:[#allocation3 + $0x38] sm:$0xf] %v1417_v40 }
 0x4fb   :  { %v1433_v46 = vld [vmem:[#allocation3 + $0x30] sm:$0xf] }
 0x4fd   :  { %v1434_v48 = vld [vmem:[#allocation3 + $0x38] sm:$0xf] }
 0x505   :  { %v4682_v50 = vpop.permute.xlu1 %1442 }
 0x506   :  { %v1445_v16 = vmul.f32 %v4682_v50, %v1433_v46  ;;  %v1446_v28 = vmul.f32 %v4682_v50, %v1434_v48  ;;  %v1450_v31 = vmul.f32 %v4682_v50, %v1438_v25 }
 0x513   :  { %v1412_v42 = vpop.permute.xlu0 %1411 }
 0x514   :  { %v1418_v44 = vsel %vm918_vm11, %v1410_v27, %v1412_v42  ;;  %v1414_v12 = vpop.permute.xlu1 %1413 }
 0x515   :  { %1429 = vst [vmem:[#allocation3 + $0x40] sm:$0xf] %v1418_v44  ;;  %v1419_v15 = vsel %vm918_vm11, %v1412_v42, %v1414_v12 }
 0x516   :  { %1430 = vst [vmem:[#allocation3 + $0x48] sm:$0xf] %v1419_v15 }
 0x51c   :  { %v1435_v53 = vld [vmem:[#allocation3 + $0x40] sm:$0xf] }
 0x51d   :  { %v1436_v60 = vld [vmem:[#allocation3 + $0x48] sm:$0xf]  ;;  %v1447_v55 = vmul.f32 %v4682_v50, %v1435_v53 }
 0x51e   :  { %v1448_v57 = vmul.f32 %v4682_v50, %v1436_v60 }
 0x524   :  { %v4690_v59 = vpop.permute.xlu0 %1454 }
 0x525   :  { %v1457_v61 = vadd.f32 %v4690_v59, %v1445_v16  ;;  %v1458_v62 = vadd.f32 %v4690_v59, %v1446_v28  ;;  %v1459_v63 = vadd.f32 %v4690_v59, %v1447_v55  ;;  %v1460_v21 = vadd.f32 %v4690_v59, %v1448_v57 }
 0x526   :  { %v1462_v54 = vadd.f32 %v4690_v59, %v1450_v31 }
 0x527   :  { %v1463_v3 = vmax.f32 %v1457_v61, 0.0  ;;  %v1464_v4 = vmax.f32 %v1458_v62, 0.0  ;;  %v1465_v49 = vmax.f32 %v1459_v63, 0.0  ;;  %v1466_v5 = vmax.f32 %v1460_v21, 0.0 }
 0x528   :  { %v1416_v23 = vpop.permute.xlu0 %1415  ;;  %v1468_v29 = vmax.f32 %v1462_v54, 0.0 }
 0x529   :  { %v1420_v10 = vsel %vm918_vm11, %v1414_v12, %v1416_v23  ;;  %v1470_v24 = vmul.f32 %v1464_v4, %v3929_v26  ;;  %v1469_v7 = vmul.f32 %v1463_v3, %v3954_v41  ;;  %v1471_v8 = vmul.f32 %v1465_v49, %v3934_v30 }
 0x52a   :  { %1432 = vst.msk [vmem:[#allocation3 + $0x50] sm:$0xf] %vm1431_vm10, %v1420_v10  ;;  %v1472_v14 = vmul.f32 %v1466_v5, %v3979_v56  ;;  %v1474_v45 = vmul.f32 %v1468_v29, %v3897_v9  ;;  %v2682_v9 = vld [vmem:[%s5465_s15] sm:$0xff]  ;;  %vm2770_vm10 = vcmask 965632  }
 0x52b   :  { %1518 = vrot.lane.b32.xlu1 %v1470_v24, %s3741_s26  ;;  %1476 = vst [vmem:[#allocation2 + $0x8] sm:$0xf] %v1470_v24  ;;  %1475 = vst [vmem:[#allocation2] sm:$0xf] %v1469_v7  ;;  %1516 = vrot.lane.b32.xlu0 %v1469_v7, %s3741_s26  ;;  %v1486_v37 = vrot.slane %v1469_v7, 4  ;;  %v1487_v18 = vrot.slane %v1470_v24, 4 }
 0x52c   :  { %1477 = vst [vmem:[#allocation2 + $0x10] sm:$0xf] %v1471_v8  ;;  %1478 = vst [vmem:[#allocation2 + $0x18] sm:$0xf] %v1472_v14  ;;  %v1489_v22 = vrot.slane %v1472_v14, 4  ;;  %v1640_v47 = vrot.slane %v1474_v45, 4 }
 0x52f   :  { %1491 = vrot.lane.b32.xlu1 %v1486_v37, %s3740_s5  ;;  %1564 = vrot.lane.b32.xlu0 %v1469_v7, %s3744_s25 }
 0x531   :  { %v1437_v26 = vld [vmem:[#allocation3 + $0x50] sm:$0xf] }
 0x532   :  { %v1449_v41 = vmul.f32 %v4682_v50, %v1437_v26 }
 0x533   :  { %1540 = vrot.lane.b32.xlu1 %v1486_v37, %s3742_s1  ;;  %1613 = vrot.lane.b32.xlu0 %v1469_v7, %s5505_s27 }
 0x534   :  { %v1461_v30 = vadd.f32 %v4690_v59, %v1449_v41 }
 0x536   :  { %v1467_v56 = vmax.f32 %v1461_v30, 0.0 }
 0x537   :  { %1588 = vrot.lane.b32.xlu1 %v1486_v37, %s3745_s4  ;;  %1668 = vrot.lane.b32.xlu0 %v1469_v7, %s5507_s29 }
 0x538   :  { %v1473_v0 = vmul.f32 %v1467_v56, %v3947_v36  ;;  %v1488_v36 = vrot.slane %v1471_v8, 4 }
 0x53a   :  { %1480 = vst.msk [vmem:[#allocation2 + $0x20] sm:$0xf] %vm1479_vm13, %v1473_v0  ;;  %v1490_v19 = vrot.slane %v1473_v0, 4 }
 0x53b   :  { %1641 = vrot.lane.b32.xlu1 %v1486_v37, %s5506_s30  ;;  %1566 = vrot.lane.b32.xlu0 %v1470_v24, %s3744_s25 }
 0x53f   :  { %1670 = vrot.lane.b32.xlu1 %v1470_v24, %s5507_s29  ;;  %1615 = vrot.lane.b32.xlu0 %v1470_v24, %s5505_s27 }
 0x543   :  { %1493 = vrot.lane.b32.xlu1 %v1487_v18, %s3740_s5  ;;  %1590 = vrot.lane.b32.xlu0 %v1487_v18, %s3745_s4 }
 0x547   :  { %1542 = vrot.lane.b32.xlu1 %v1487_v18, %s3742_s1  ;;  %1643 = vrot.lane.b32.xlu0 %v1487_v18, %s5506_s30 }
 0x54b   :  { %1568 = vrot.lane.b32.xlu1 %v1471_v8, %s3744_s25  ;;  %1520 = vrot.lane.b32.xlu0 %v1471_v8, %s3741_s26 }
 0x54f   :  { %1617 = vrot.lane.b32.xlu1 %v1471_v8, %s5505_s27  ;;  %1672 = vrot.lane.b32.xlu0 %v1471_v8, %s5507_s29 }
 0x553   :  { %1522 = vrot.lane.b32.xlu1 %v1472_v14, %s3741_s26  ;;  %1524 = vrot.lane.b32.xlu0 %v1473_v0, %s3741_s26 }
 0x557   :  { %1570 = vrot.lane.b32.xlu1 %v1472_v14, %s3744_s25  ;;  %1572 = vrot.lane.b32.xlu0 %v1473_v0, %s3744_s25  ;;  %s3753_s25 = smov 116  }
 0x55b   :  { %1619 = vrot.lane.b32.xlu1 %v1472_v14, %s5505_s27  ;;  %1621 = vrot.lane.b32.xlu0 %v1473_v0, %s5505_s27 }
 0x55f   :  { %1592 = vrot.lane.b32.xlu1 %v1488_v36, %s3745_s4  ;;  %1495 = vrot.lane.b32.xlu0 %v1488_v36, %s3740_s5 }
 0x563   :  { %1645 = vrot.lane.b32.xlu1 %v1488_v36, %s5506_s30  ;;  %1544 = vrot.lane.b32.xlu0 %v1488_v36, %s3742_s1 }
 0x567   :  { %1497 = vrot.lane.b32.xlu1 %v1489_v22, %s3740_s5  ;;  %1499 = vrot.lane.b32.xlu0 %v1490_v19, %s3740_s5 }
 0x56b   :  { %1546 = vrot.lane.b32.xlu1 %v1489_v22, %s3742_s1  ;;  %1548 = vrot.lane.b32.xlu0 %v1490_v19, %s3742_s1  ;;  %s3752_s1 = smov 117  }
 0x56f   :  { %1594 = vrot.lane.b32.xlu1 %v1489_v22, %s3745_s4  ;;  %1596 = vrot.lane.b32.xlu0 %v1490_v19, %s3745_s4 }
 0x573   :  { %1647 = vrot.lane.b32.xlu1 %v1489_v22, %s5506_s30  ;;  %1649 = vrot.lane.b32.xlu0 %v1490_v19, %s5506_s30 }
 0x577   :  { %1674 = vrot.lane.b32.xlu1 %v1472_v14, %s5507_s29  ;;  %1676 = vrot.lane.b32.xlu0 %v1473_v0, %s5507_s29 }
 0x57b   :  { %1623 = vrot.lane.b32.xlu1 %v1474_v45, %s5505_s27  ;;  %1651 = vrot.lane.b32.xlu0 %v1640_v47, %s5506_s30 }
 0x57f   :  { %1678 = vrot.lane.b32.xlu1 %v1474_v45, %s5507_s29  ;;  %2670 = vperm.xlu0 %3565, %v2666_v51  }
 0x583   :  { %2675 = vperm.xlu1 %3566, %v2667_v52   ;;  %2686 = vperm.xlu0 %3565, %v2682_v9  }
 0x587   :  { %2691 = vperm.xlu1 %3566, %v2683_v20  }
 0x59d   :  { %v1519_v32 = vpop.permute.xlu1 %1518  ;;  %v1517_v43 = vpop.permute.xlu0 %1516 }
 0x59e   :  { %v1526_v2 = vsel %vm292_vm3, %v1517_v43, %v1519_v32 }
 0x59f   :  { %1535 = vst [vmem:[#allocation2 + $0x30] sm:$0xf] %v1526_v2 }
 0x5a1   :  { %v1492_v33 = vpop.permute.xlu1 %1491  ;;  %v1565_v58 = vpop.permute.xlu0 %1564 }
 0x5a5   :  { %v1541_v35 = vpop.permute.xlu1 %1540  ;;  %v1614_v13 = vpop.permute.xlu0 %1613 }
 0x5a9   :  { %v1589_v34 = vpop.permute.xlu1 %1588  ;;  %v1669_v38 = vpop.permute.xlu0 %1668 }
 0x5ad   :  { %v1642_v39 = vpop.permute.xlu1 %1641  ;;  %v1567_v27 = vpop.permute.xlu0 %1566 }
 0x5ae   :  { %v1574_v40 = vsel %vm390_vm5, %v1565_v58, %v1567_v27 }
 0x5af   :  { %1583 = vst [vmem:[#allocation2 + $0x60] sm:$0xf] %v1574_v40 }
 0x5b1   :  { %v1671_v50 = vpop.permute.xlu1 %1670  ;;  %v1616_v42 = vpop.permute.xlu0 %1615 }
 0x5b2   :  { %v1680_v44 = vsel %vm604_vm9, %v1669_v38, %v1671_v50  ;;  %v1625_v12 = vsel %vm494_vm7, %v1614_v13, %v1616_v42 }
 0x5b3   :  { %1690 = vst [vmem:[#allocation2 + $0xc0] sm:$0xf] %v1680_v44  ;;  %1635 = vst [vmem:[#allocation2 + $0x90] sm:$0xf] %v1625_v12 }
 0x5b5   :  { %v1494_v15 = vpop.permute.xlu1 %1493  ;;  %v1591_v46 = vpop.permute.xlu0 %1590 }
 0x5b6   :  { %v1501_v48 = vsel %vm243_vm1, %v1492_v33, %v1494_v15  ;;  %v1598_v53 = vsel %vm439_vm6, %v1589_v34, %v1591_v46 }
 0x5b7   :  { %1510 = vst [vmem:[#allocation2] sm:$0xf0] %v1501_v48  ;;  %1607 = vst [vmem:[#allocation2 + $0x60] sm:$0xf0] %v1598_v53 }
 0x5b9   :  { %v1543_v60 = vpop.permute.xlu1 %1542  ;;  %v1644_v16 = vpop.permute.xlu0 %1643 }
 0x5ba   :  { %v1550_v28 = vsel %vm341_vm4, %v1541_v35, %v1543_v60  ;;  %v1653_v55 = vsel %vm549_vm8, %v1642_v39, %v1644_v16  ;;  %v1716_v12 = vld [vmem:[#allocation2 + $0xc0] sm:$0xf] }
 0x5bb   :  { %1559 = vst [vmem:[#allocation2 + $0x30] sm:$0xf0] %v1550_v28  ;;  %1663 = vst [vmem:[#allocation2 + $0x90] sm:$0xf0] %v1653_v55  ;;  %v1731_v55 = vpack.c.bf16 %v1716_v12, %v1716_v12  ;;  %v3625_v12 = vld [vmem:[%s5464_s3 + $0x14] ss:$8 sps:$4 sm:$0xff]  }
 0x5bd   :  { %v1569_v57 = vpop.permute.xlu1 %1568  ;;  %v1521_v59 = vpop.permute.xlu0 %1520 }
 0x5be   :  { %v1575_v61 = vsel %vm390_vm5, %v1567_v27, %v1569_v57  ;;  %v1527_v62 = vsel %vm292_vm3, %v1519_v32, %v1521_v59  ;;  %v1696_v35 = vld [vmem:[#allocation2] sm:$0xff] }
 0x5bf   :  { %1584 = vst [vmem:[#allocation2 + $0x68] sm:$0xf] %v1575_v61  ;;  %1536 = vst [vmem:[#allocation2 + $0x38] sm:$0xf] %v1527_v62 }
 0x5c1   :  { %v1618_v63 = vpop.permute.xlu1 %1617  ;;  %v4773_v21 = vpop.permute.xlu0 %1672 }
 0x5c2   :  { %v1626_v3 = vsel %vm494_vm7, %v1616_v42, %v1618_v63  ;;  %v1681_v4 = vsel %vm604_vm9, %v1671_v50, %v4773_v21  ;;  %v1701_v9 = vld [vmem:[#allocation2 + $0x30] sm:$0xff] }
 0x5c3   :  { %1636 = vst [vmem:[#allocation2 + $0x98] sm:$0xf] %v1626_v3  ;;  %1691 = vst [vmem:[#allocation2 + $0xc8] sm:$0xf] %v1681_v4  ;;  %v1721_v13 = vpack.c.bf16 %v1701_v9, %v1696_v35  ;;  %v1711_v40 = vld [vmem:[#allocation2 + $0x90] sm:$0xff] }
 0x5c5   :  { %v1523_v49 = vpop.permute.xlu1 %1522  ;;  %v1525_v5 = vpop.permute.xlu0 %1524 }
 0x5c6   :  { %v1528_v23 = vsel %vm292_vm3, %v1521_v59, %v1523_v49  ;;  %v1529_v10 = vsel %vm292_vm3, %v1523_v49, %v1525_v5  ;;  %1539 = vst.msk [vmem:[#allocation2 + $0x50] sm:$0xf] %vm1479_vm13, %v1525_v5 }
 0x5c7   :  { %1537 = vst [vmem:[#allocation2 + $0x40] sm:$0xf] %v1528_v23  ;;  %1538 = vst [vmem:[#allocation2 + $0x48] sm:$0xf] %v1529_v10  ;;  %v3721_v10 = vld [vmem:[#allocation3 + $0x58] sm:$0xff] }
 0x5c9   :  { %v1571_v24 = vpop.permute.xlu1 %1570  ;;  %v1573_v7 = vpop.permute.xlu0 %1572 }
 0x5ca   :  { %v1576_v8 = vsel %vm390_vm5, %v1569_v57, %v1571_v24  ;;  %v1577_v14 = vsel %vm390_vm5, %v1571_v24, %v1573_v7  ;;  %1587 = vst.msk [vmem:[#allocation2 + $0x80] sm:$0xf] %vm1479_vm13, %v1573_v7  ;;  %vm1514_vm5 = vcmask 801796   ;;  %v1717_v44 = vld [vmem:[#allocation2 + $0xc8] sm:$0xf] }
 0x5cb   :  { %1585 = vst [vmem:[#allocation2 + $0x70] sm:$0xf] %v1576_v8  ;;  %1586 = vst [vmem:[#allocation2 + $0x78] sm:$0xf] %v1577_v14  ;;  %v4812_v8 = vld [vmem:[%s5466_s10] sm:$0x3] }
 0x5cd   :  { %v1620_v37 = vpop.permute.xlu1 %1619  ;;  %v4784_v26 = vpop.permute.xlu0 %1621 }
 0x5ce   :  { %v1627_v41 = vsel %vm494_vm7, %v1618_v63, %v1620_v37  ;;  %v1628_v30 = vsel %vm494_vm7, %v1620_v37, %v4784_v26 }
 0x5cf   :  { %1637 = vst [vmem:[#allocation2 + $0xa0] sm:$0xf] %v1627_v41  ;;  %1638 = vst [vmem:[#allocation2 + $0xa8] sm:$0xf] %v1628_v30 }
 0x5d1   :  { %v1593_v56 = vpop.permute.xlu1 %1592  ;;  %v1496_v0 = vpop.permute.xlu0 %1495 }
 0x5d2   :  { %v1599_v18 = vsel %vm439_vm6, %v1591_v46, %v1593_v56  ;;  %v1502_v36 = vsel %vm243_vm1, %v1494_v15, %v1496_v0  ;;  %v1706_v15 = vld [vmem:[#allocation2 + $0x60] sm:$0xff] }
 0x5d3   :  { %1608 = vst [vmem:[#allocation2 + $0x68] sm:$0xf0] %v1599_v18  ;;  %1511 = vst [vmem:[#allocation2 + $0x8] sm:$0xf0] %v1502_v36  ;;  %v1726_v46 = vpack.c.bf16 %v1711_v40, %v1706_v15  ;;  %v3724_v15 = vld [vmem:[%s5500_s22 + $0x8] sm:$0xff] }
 0x5d5   :  { %v1646_v22 = vpop.permute.xlu1 %1645  ;;  %v1545_v19 = vpop.permute.xlu0 %1544 }
 0x5d6   :  { %v1654_v25 = vsel %vm549_vm8, %v1644_v16, %v1646_v22  ;;  %v1551_v31 = vsel %vm341_vm4, %v1543_v60, %v1545_v19  ;;  %v1732_v60 = vpack.c.bf16 %v1717_v44, %v1717_v44  ;;  %v3580_v44 = vld [vmem:[%s5464_s3 + $0x134] ss:$8 sps:$4 sm:$0xff]  }
 0x5d7   :  { %1664 = vst [vmem:[#allocation2 + $0x98] sm:$0xf0] %v1654_v25  ;;  %1560 = vst [vmem:[#allocation2 + $0x38] sm:$0xf0] %v1551_v31 }
 0x5d9   :  { %v1498_v54 = vpop.permute.xlu1 %1497  ;;  %v1500_v29 = vpop.permute.xlu0 %1499 }
 0x5da   :  { %v1503_v45 = vsel %vm243_vm1, %v1496_v0, %v1498_v54  ;;  %v1504_v47 = vsel %vm243_vm1, %v1498_v54, %v1500_v29  ;;  %1515 = vst.msk [vmem:[#allocation2 + $0x20] sm:$0xf0] %vm1514_vm5, %v1500_v29  ;;  %v1697_v43 = vld [vmem:[#allocation2 + $0x8] sm:$0xff] }
 0x5db   :  { %1512 = vst [vmem:[#allocation2 + $0x10] sm:$0xf0] %v1503_v45  ;;  %1513 = vst [vmem:[#allocation2 + $0x18] sm:$0xf0] %v1504_v47  ;;  %v1707_v34 = vld [vmem:[#allocation2 + $0x68] sm:$0xff] }
 0x5dd   :  { %v1547_v51 = vpop.permute.xlu1 %1546  ;;  %v1549_v52 = vpop.permute.xlu0 %1548 }
 0x5de   :  { %v1552_v20 = vsel %vm341_vm4, %v1545_v19, %v1547_v51  ;;  %v1553_v32 = vsel %vm341_vm4, %v1547_v51, %v1549_v52  ;;  %1563 = vst.msk [vmem:[#allocation2 + $0x50] sm:$0xf0] %vm1514_vm5, %v1549_v52  ;;  %v1702_v2 = vld [vmem:[#allocation2 + $0x38] sm:$0xff]  ;;  %vm1740_vm4 = vcmask 1041408   ;;  %v3571_v51 = vld [vmem:[%s5464_s3 + $0x104] ss:$8 sps:$4 sm:$0xff]  }
 0x5df   :  { %v1712_v33 = vld [vmem:[#allocation2 + $0x98] sm:$0xff]  ;;  %1561 = vst [vmem:[#allocation2 + $0x40] sm:$0xf0] %v1552_v20  ;;  %1562 = vst [vmem:[#allocation2 + $0x48] sm:$0xf0] %v1553_v32  ;;  %v1722_v58 = vpack.c.bf16 %v1702_v2, %v1697_v43  ;;  %v1742_v49 = vsel %vm1740_vm4, %v1731_v55, 0 }
 0x5e0   :  { %v1727_v27 = vpack.c.bf16 %v1712_v33, %v1707_v34  ;;  %v3569_v32 = vld [vmem:[%s5464_s3 + $0x100] ss:$8 sps:$4 sm:$0xff]   ;;  %v3574_v2 = vld [vmem:[%s5464_s3 + $0x114] ss:$8 sps:$4 sm:$0xff]  }
 0x5e1   :  { %v1595_v38 = vpop.permute.xlu1 %1594  ;;  %1756 = vmatprep.subr.bf16.mxu1 %v1722_v58  ;;  %v1597_v39 = vpop.permute.xlu0 %1596  ;;  %v1700_v16 = vld [vmem:[#allocation2 + $0x20] sm:$0xff]  ;;  %v3722_v33 = vld [vmem:[%s5500_s22 + $0x18] sm:$0xff]  ;;  %v3723_v58 = vld [vmem:[%s5500_s22 + $0x48] sm:$0xff] }
 0x5e2   :  { %v1600_v50 = vsel %vm439_vm6, %v1593_v56, %v1595_v38  ;;  %v1601_v42 = vsel %vm439_vm6, %v1595_v38, %v1597_v39  ;;  %1611 = vst.msk [vmem:[#allocation2 + $0x80] sm:$0xf0] %vm1514_vm5, %v1597_v39  ;;  %1757 = vmatpush1.bf16.msra.mxu1 %v1721_v13  ;;  %v1699_v63 = vld [vmem:[#allocation2 + $0x18] sm:$0xff]  ;;  %v1698_v14 = vld [vmem:[#allocation2 + $0x10] sm:$0xff]  ;;  %v1953_v35 = vpack.c.bf16 %v3723_v58, %v3722_v33  ;;  %v3577_v39 = vld [vmem:[%s5464_s3 + $0x124] ss:$8 sps:$4 sm:$0xff]  }
 0x5e3   :  { %1609 = vst [vmem:[#allocation2 + $0x70] sm:$0xf0] %v1600_v50  ;;  %1610 = vst [vmem:[#allocation2 + $0x78] sm:$0xf0] %v1601_v42  ;;  %1758 = vmatprep.subr.bf16.mxu1 %v1727_v27  ;;  %v3572_v13 = vld [vmem:[%s5464_s3 + $0x110] ss:$8 sps:$4 sm:$0xff]  }
 0x5e4   :  { %v3619_v27 = vld [vmem:[%s5464_s3 + $0x4] ss:$8 sps:$4 sm:$0xff]   ;;  %v3575_v50 = vld [vmem:[%s5464_s3 + $0x120] ss:$8 sps:$4 sm:$0xff]  }
 0x5e5   :  { %v1648_v48 = vpop.permute.xlu1 %1647  ;;  %v1650_v53 = vpop.permute.xlu0 %1649  ;;  %v1705_v28 = vld [vmem:[#allocation2 + $0x50] sm:$0xff]  ;;  %v3617_v42 = vld [vmem:[%s5464_s3] ss:$8 sps:$4 sm:$0xff]  }
 0x5e6   :  { %v1655_v57 = vsel %vm549_vm8, %v1646_v22, %v1648_v48  ;;  %v1656_v59 = vsel %vm549_vm8, %v1648_v48, %v1650_v53  ;;  %1759 = vmatpush1.bf16.msra.mxu1 %v1726_v46  ;;  %v1725_v61 = vpack.c.bf16 %v1705_v28, %v1700_v16  ;;  %v1704_v62 = vld [vmem:[#allocation2 + $0x48] sm:$0xff]  ;;  %v1703_v23 = vld [vmem:[#allocation2 + $0x40] sm:$0xff]  ;;  %v3725_v46 = vld [vmem:[%s5500_s22 + $0x38] sm:$0xff] }
 0x5e7   :  { %1665 = vst [vmem:[#allocation2 + $0xa0] sm:$0xf0] %v1655_v57  ;;  %1666 = vst [vmem:[#allocation2 + $0xa8] sm:$0xf0] %v1656_v59  ;;  %3397 = vmatprep.subr.msk.bf16.mxu1 %vm1740_vm4, %v1732_v60  ;;  %v1724_v5 = vpack.c.bf16 %v1704_v62, %v1699_v63  ;;  %v1723_v37 = vpack.c.bf16 %v1703_v23, %v1698_v14  ;;  %v1951_v48 = vpack.c.bf16 %v3725_v46, %v3724_v15  ;;  %v3623_v60 = vld [vmem:[%s5464_s3 + $0x10] ss:$8 sps:$4 sm:$0xff]  }
 0x5e8   :  { %3530 = vmatpush3.bf16.msra.mxu0 %v1725_v61  ;;  %v3583_v16 = vld [vmem:[%s5464_s3 + $0x144] ss:$8 sps:$4 sm:$0xff]   ;;  %v3581_v55 = vld [vmem:[%s5464_s3 + $0x140] ss:$8 sps:$4 sm:$0xff]   ;;  %v3586_v59 = vld [vmem:[%s5464_s3 + $0x154] ss:$8 sps:$4 sm:$0xff]  }
 0x5e9   :  { %v1675_v3 = vpop.permute.xlu1 %1674  ;;  %v1677_v4 = vpop.permute.xlu0 %1676  ;;  %3531 = vmatprep.subr.bf16.mxu0 %v3721_v10  ;;  %v1710_v9 = vld [vmem:[#allocation2 + $0x80] sm:$0xff]  ;;  %v3637_v61 = vld [vmem:[%s5464_s3 + $0x34] ss:$8 sps:$4 sm:$0xff]   ;;  %v3584_v62 = vld [vmem:[%s5464_s3 + $0x150] ss:$8 sps:$4 sm:$0xff]  }
 0x5ea   :  { %v1682_v24 = vsel %vm604_vm9, %v4773_v21, %v1675_v3  ;;  %v1683_v7 = vsel %vm604_vm9, %v1675_v3, %v1677_v4  ;;  %1761 = vmatpush1.bf16.msra.mxu1 %v1742_v49  ;;  %v1709_v21 = vld [vmem:[#allocation2 + $0x78] sm:$0xff]  ;;  %v1708_v36 = vld [vmem:[#allocation2 + $0x70] sm:$0xff]  ;;  %v3631_v28 = vld [vmem:[%s5464_s3 + $0x24] ss:$8 sps:$4 sm:$0xff]  }
 0x5eb   :  { %1692 = vst [vmem:[#allocation2 + $0xd0] sm:$0xf] %v1682_v24  ;;  %1693 = vst [vmem:[#allocation2 + $0xd8] sm:$0xf] %v1683_v7  ;;  %1797 = vmatprep.subr.bf16.mxu1 %v1724_v5  ;;  %v3629_v57 = vld [vmem:[%s5464_s3 + $0x20] ss:$8 sps:$4 sm:$0xff]  }
 0x5ec   :  { %v3635_v63 = vld [vmem:[%s5464_s3 + $0x30] ss:$8 sps:$4 sm:$0xff]   ;;  %v3589_v3 = vld [vmem:[%s5464_s3 + $0x164] ss:$8 sps:$4 sm:$0xff]   ;;  %v3587_v49 = vld [vmem:[%s5464_s3 + $0x160] ss:$8 sps:$4 sm:$0xff]  }
 0x5ed   :  { %v1624_v41 = vpop.permute.xlu1 %1623  ;;  %3398 = vmatmul.mubr.msk.bf16.vlgmr.msra.gmra.mrb[12].mxu1 %vm5488_vm0, %v4812_v8  ;;  %v1652_v30 = vpop.permute.xlu0 %1651  ;;  %v3641_v5 = vld [vmem:[%s5464_s3 + $0x40] ss:$8 sps:$4 sm:$0xff]   ;;  %v3592_v23 = vld [vmem:[%s5464_s3 + $0x174] ss:$8 sps:$4 sm:$0xff]   ;;  %v3590_v24 = vld [vmem:[%s5464_s3 + $0x170] ss:$8 sps:$4 sm:$0xff]  }
 0x5ee   :  { %v1629_v56 = vsel %vm494_vm7, %v4784_v26, %v1624_v41  ;;  %v1657_v0 = vsel %vm549_vm8, %v1650_v53, %v1652_v30  ;;  %1798 = vmatpush1.bf16.msra.mxu1 %v1723_v37  ;;  %v1714_v18 = vld [vmem:[#allocation2 + $0xa8] sm:$0xff]  ;;  %v1713_v22 = vld [vmem:[#allocation2 + $0xa0] sm:$0xff]  ;;  %1829 = vmatprep.mubr.bf16.mxu1 %v3739_v1  ;;  %v3578_v53 = vld [vmem:[%s5464_s3 + $0x130] ss:$8 sps:$4 sm:$0xff]   ;;  %vm2718_vm7 = vcmask 408576   ;;  %vm2844_vm8 = vcmask 875520  }
 0x5ef   :  { %1639 = vst.msk [vmem:[#allocation2 + $0xb0] sm:$0xf] %vm1479_vm13, %v1629_v56  ;;  %v1729_v19 = vpack.c.bf16 %v1714_v18, %v1709_v21  ;;  %v1728_v25 = vpack.c.bf16 %v1713_v22, %v1708_v36  ;;  %v3647_v7 = vld [vmem:[%s5464_s3 + $0x50] ss:$8 sps:$4 sm:$0xff]   ;;  %v3655_v14 = vld [vmem:[%s5464_s3 + $0x64] ss:$8 sps:$4 sm:$0xff]  }
 0x5f0   :  { %1667 = vst.msk [vmem:[#allocation2 + $0xb0] sm:$0xf0] %vm1514_vm5, %v1657_v0  ;;  %v3593_v37 = vld [vmem:[%s5464_s3 + $0x180] ss:$8 sps:$4 sm:$0xff]   ;;  %v3598_v30 = vld [vmem:[%s5464_s3 + $0x194] ss:$8 sps:$4 sm:$0xff]  }
 0x5f1   :  { %v1679_v31 = vpop.permute.xlu1 %1678  ;;  %1799 = vmatprep.subr.bf16.mxu1 %v1729_v19  ;;  %v3653_v41 = vld [vmem:[%s5464_s3 + $0x60] ss:$8 sps:$4 sm:$0xff]   ;;  %v3661_v21 = vld [vmem:[%s5464_s3 + $0x74] ss:$8 sps:$4 sm:$0xff]   ;;  %v3596_v56 = vld [vmem:[%s5464_s3 + $0x190] ss:$8 sps:$4 sm:$0xff]  }
 0x5f2   :  { %v1684_v54 = vsel %vm604_vm9, %v1677_v4, %v1679_v31  ;;  %1800 = vmatpush1.bf16.msra.mxu1 %v1728_v25  ;;  %v1719_v26 = vld [vmem:[#allocation2 + $0xd8] sm:$0xf]  ;;  %v1718_v29 = vld [vmem:[#allocation2 + $0xd0] sm:$0xf]  ;;  %v3643_v4 = vld [vmem:[%s5464_s3 + $0x44] ss:$8 sps:$4 sm:$0xff]  }
 0x5f3   :  { %1694 = vst.msk [vmem:[#allocation2 + $0xe0] sm:$0xf] %vm1479_vm13, %v1684_v54  ;;  %v1734_v45 = vpack.c.bf16 %v1719_v26, %v1719_v26  ;;  %v1733_v47 = vpack.c.bf16 %v1718_v29, %v1718_v29  ;;  %v3659_v0 = vld [vmem:[%s5464_s3 + $0x70] ss:$8 sps:$4 sm:$0xff]   ;;  %v3601_v18 = vld [vmem:[%s5464_s3 + $0x1a4] ss:$8 sps:$4 sm:$0xff]  }
 0x5f4   :  { %v3667_v36 = vld [vmem:[%s5464_s3 + $0x84] ss:$8 sps:$4 sm:$0xff]   ;;  %v3599_v22 = vld [vmem:[%s5464_s3 + $0x1a0] ss:$8 sps:$4 sm:$0xff]   ;;  %v3604_v25 = vld [vmem:[%s5464_s3 + $0x1b4] ss:$8 sps:$4 sm:$0xff]  }
 0x5f5   :  { %3399 = vmatprep.subr.msk.bf16.mxu1 %vm1740_vm4, %v1734_v45  ;;  %v1748_v52 = vsel %vm1740_vm4, %v1733_v47, 0  ;;  %v3665_v19 = vld [vmem:[%s5464_s3 + $0x80] ss:$8 sps:$4 sm:$0xff]   ;;  %v3673_v31 = vld [vmem:[%s5464_s3 + $0x94] ss:$8 sps:$4 sm:$0xff]   ;;  %vm2863_vm9 = vcmask 867328  }
 0x5f6   :  { %1802 = vmatpush1.bf16.msra.mxu1 %v1748_v52  ;;  %v3602_v54 = vld [vmem:[%s5464_s3 + $0x1b0] ss:$8 sps:$4 sm:$0xff]   ;;  %v3607_v29 = vld [vmem:[%s5464_s3 + $0x1c4] ss:$8 sps:$4 sm:$0xff]   ;;  %v3605_v47 = vld [vmem:[%s5464_s3 + $0x1c0] ss:$8 sps:$4 sm:$0xff]  }
 0x5f7   :  { %v1715_v20 = vld [vmem:[#allocation2 + $0xb0] sm:$0xff]  ;;  %2575 = vmatprep.subr.bf16.mxu1 %v3571_v51  ;;  %v3679_v45 = vld [vmem:[%s5464_s3 + $0xa4] ss:$8 sps:$4 sm:$0xff]   ;;  %v3677_v51 = vld [vmem:[%s5464_s3 + $0xa0] ss:$8 sps:$4 sm:$0xff]   ;;  %vm2989_vm13 = vcmask 1047640  }
 0x5f8   :  { %v1730_v43 = vpack.c.bf16 %v1715_v20, %v1710_v9  ;;  %v3671_v26 = vld [vmem:[%s5464_s3 + $0x90] ss:$8 sps:$4 sm:$0xff]   ;;  %v3610_v52 = vld [vmem:[%s5464_s3 + $0x1d4] ss:$8 sps:$4 sm:$0xff]   ;;  %v3611_v33 = vld [vmem:[%s5464_s3 + $0x1e0] ss:$8 sps:$4 sm:$0xff]  }
 0x5f9   :  { %3400 = vmatmul.mubr.msk.bf16.vlgmr.msra.gmra.mrb[16].mxu1 %vm5488_vm0, %v4812_v8  ;;  %v3685_v9 = vld [vmem:[%s5464_s3 + $0xb4] ss:$8 sps:$4 sm:$0xff]   ;;  %v3608_v20 = vld [vmem:[%s5464_s3 + $0x1d0] ss:$8 sps:$4 sm:$0xff]   ;;  %v3689_v58 = vld [vmem:[%s5464_s3 + $0xc0] ss:$8 sps:$4 sm:$0xff]  }
 0x5fa   :  { %3532 = vmatpush3.bf16.msra.mxu0 %v1730_v43  ;;  %2576 = vmatpush1.bf16.msra.mxu1 %v3569_v32  ;;  %v1720_v34 = vld [vmem:[#allocation2 + $0xe0] sm:$0xf]  ;;  %v3683_v32 = vld [vmem:[%s5464_s3 + $0xb0] ss:$8 sps:$4 sm:$0xff]   ;;  %v3613_v43 = vld [vmem:[%s5464_s3 + $0x1e4] ss:$8 sps:$4 sm:$0xff]  }
 0x5fb   :  { %3533 = vmatprep.subr.bf16.mxu0 %v3721_v10  ;;  %2577 = vmatprep.subr.bf16.mxu1 %v3574_v2  ;;  %v1735_v38 = vpack.c.bf16 %v1720_v34, %v1720_v34  ;;  %v3649_v10 = vld [vmem:[%s5464_s3 + $0x54] ss:$8 sps:$4 sm:$0xff]   ;;  %v3691_v2 = vld [vmem:[%s5464_s3 + $0xc4] ss:$8 sps:$4 sm:$0xff]   ;;  %v3614_v34 = vld [vmem:[%s5464_s3 + $0x1f0] ss:$8 sps:$4 sm:$0xff]  }
 0x5fc   :  { %2607 = vmatprep.mubr.bf16.mxu1 %v1953_v35  ;;  %v3616_v35 = vld [vmem:[%s5464_s3 + $0x1f4] ss:$8 sps:$4 sm:$0xff]   ;;  %vm2985_vm5 = vcmask 89088  }
 0x5fd   :  { %v1754_v40 = vsel %vm1740_vm4, %v1735_v38, 0  ;;  %v3695_v38 = vld [vmem:[%s5464_s3 + $0xd0] ss:$8 sps:$4 sm:$0xff]   ;;  %v3628_v15 = vld [vmem:[%s5464_s3 + $0x214] ss:$8 sps:$4 sm:$0xff]  }
 0x5fe   :  { %3534 = vmatpush3.bf16.msra.mxu0 %v1754_v40  ;;  %2578 = vmatpush1.bf16.msra.mxu1 %v3572_v13  ;;  %v3697_v13 = vld [vmem:[%s5464_s3 + $0xd4] ss:$8 sps:$4 sm:$0xff]  }
 0x5ff   :  { %2579 = vmatprep.subr.bf16.mxu1 %v3577_v39  ;;  %2532 = vmatprep.subr.bf16.mxu0 %v3619_v27  ;;  %v3622_v39 = vld [vmem:[%s5464_s3 + $0x204] ss:$8 sps:$4 sm:$0xff]   ;;  %v3726_v40 = vld [vmem:[%s5500_s22 + $0x10] sm:$0xff] }
 0x600   :  { %v3703_v27 = vld [vmem:[%s5464_s3 + $0xe4] ss:$8 sps:$4 sm:$0xff]   ;;  %v3709_v46 = vld [vmem:[%s5464_s3 + $0xf4] ss:$8 sps:$4 sm:$0xff]  }
 0x601   :  { %3536 = vmatmul.mubr.msk.bf16.vlgmr.msra.gmra.mrb[12].mxu0 %vm5488_vm0, %v4812_v8  ;;  %v3595_v8 = vld [vmem:[%s5464_s3 + $0x184] ss:$8 sps:$4 sm:$0xff]   ;;  %vm2991_vm0 = vcmask 498688  }
 0x602   :  { %2580 = vmatpush1.bf16.msra.mxu1 %v3575_v50  ;;  %2533 = vmatpush1.bf16.msra.mxu0 %v3617_v42  ;;  %v3727_v50 = vld [vmem:[%s5500_s22 + $0x40] sm:$0xff] }
 0x603   :  { %2581 = vmatprep.subr.bf16.mxu1 %v3580_v44  ;;  %2534 = vmatprep.subr.bf16.mxu0 %v3625_v12  ;;  %v1952_v42 = vpack.c.bf16 %v3727_v50, %v3726_v40  ;;  %v3620_v44 = vld [vmem:[%s5464_s3 + $0x200] ss:$8 sps:$4 sm:$0xff]  }
 0x604   :  { %2564 = vmatprep.mubr.bf16.mxu0 %v1951_v48  ;;  %v3701_v12 = vld [vmem:[%s5464_s3 + $0xe0] ss:$8 sps:$4 sm:$0xff]   ;;  %v3728_v48 = vld [vmem:[%s5500_s22 + $0x58] sm:$0xff] }
 0x606   :  { %2582 = vmatpush1.bf16.msra.mxu1 %v3578_v53  ;;  %2535 = vmatpush1.bf16.msra.mxu0 %v3623_v60  ;;  %v3729_v53 = vld [vmem:[%s5500_s22 + $0x28] sm:$0xff] }
 0x607   :  { %2583 = vmatprep.subr.bf16.mxu1 %v3583_v16  ;;  %2536 = vmatprep.subr.bf16.mxu0 %v3631_v28  ;;  %v1955_v60 = vpack.c.bf16 %v3728_v48, %v3729_v53  ;;  %v3626_v16 = vld [vmem:[%s5464_s3 + $0x210] ss:$8 sps:$4 sm:$0xff]   ;;  %v2661_v48 = vld [vmem:[%s5467_s2] sm:$0x3]  ;;  %s3751_s2 = smov 118  }
 0x608   :  { %v3707_v28 = vld [vmem:[%s5464_s3 + $0xf0] ss:$8 sps:$4 sm:$0xff]  }
 0x60a   :  { %2584 = vmatpush1.bf16.msra.mxu1 %v3581_v55  ;;  %2537 = vmatpush1.bf16.msra.mxu0 %v3629_v57  ;;  %v3634_v55 = vld [vmem:[%s5464_s3 + $0x224] ss:$8 sps:$4 sm:$0xff]  }
 0x60b   :  { %2585 = vmatprep.subr.bf16.mxu1 %v3586_v59  ;;  %2538 = vmatprep.subr.bf16.mxu0 %v3637_v61  ;;  %v3730_v57 = vld [vmem:[%s5500_s22] sm:$0xff]  ;;  %v3731_v59 = vld [vmem:[%s5500_s22 + $0x30] sm:$0xff] }
 0x60c   :  { %v1950_v61 = vpack.c.bf16 %v3731_v59, %v3730_v57 }
 0x60e   :  { %2586 = vmatpush1.bf16.msra.mxu1 %v3584_v62  ;;  %2539 = vmatpush1.bf16.msra.mxu0 %v3635_v63  ;;  %v3632_v62 = vld [vmem:[%s5464_s3 + $0x220] ss:$8 sps:$4 sm:$0xff]   ;;  %v3640_v63 = vld [vmem:[%s5464_s3 + $0x234] ss:$8 sps:$4 sm:$0xff]  }
 0x60f   :  { %2587 = vmatprep.subr.bf16.mxu1 %v3589_v3  ;;  %2540 = vmatprep.subr.bf16.mxu0 %v3643_v4  ;;  %v3638_v3 = vld [vmem:[%s5464_s3 + $0x230] ss:$8 sps:$4 sm:$0xff]   ;;  %v3646_v4 = vld [vmem:[%s5464_s3 + $0x244] ss:$8 sps:$4 sm:$0xff]  }
 0x612   :  { %2588 = vmatpush1.bf16.msra.mxu1 %v3587_v49  ;;  %2541 = vmatpush1.bf16.msra.mxu0 %v3641_v5  ;;  %v3644_v49 = vld [vmem:[%s5464_s3 + $0x240] ss:$8 sps:$4 sm:$0xff]   ;;  %v3652_v5 = vld [vmem:[%s5464_s3 + $0x254] ss:$8 sps:$4 sm:$0xff]  }
 0x613   :  { %2589 = vmatprep.subr.bf16.mxu1 %v3592_v23  ;;  %2542 = vmatprep.subr.bf16.mxu0 %v3649_v10  ;;  %v3650_v23 = vld [vmem:[%s5464_s3 + $0x250] ss:$8 sps:$4 sm:$0xff]   ;;  %v3658_v10 = vld [vmem:[%s5464_s3 + $0x264] ss:$8 sps:$4 sm:$0xff]  }
 0x616   :  { %2590 = vmatpush1.bf16.msra.mxu1 %v3590_v24  ;;  %2543 = vmatpush1.bf16.msra.mxu0 %v3647_v7  ;;  %v3656_v24 = vld [vmem:[%s5464_s3 + $0x260] ss:$8 sps:$4 sm:$0xff]   ;;  %v3664_v7 = vld [vmem:[%s5464_s3 + $0x274] ss:$8 sps:$4 sm:$0xff]  }
 0x617   :  { %2591 = vmatprep.subr.bf16.mxu1 %v3595_v8  ;;  %2544 = vmatprep.subr.bf16.mxu0 %v3655_v14  ;;  %v3662_v8 = vld [vmem:[%s5464_s3 + $0x270] ss:$8 sps:$4 sm:$0xff]   ;;  %v3670_v14 = vld [vmem:[%s5464_s3 + $0x284] ss:$8 sps:$4 sm:$0xff]  }
 0x61a   :  { %2592 = vmatpush1.bf16.msra.mxu1 %v3593_v37  ;;  %2545 = vmatpush1.bf16.msra.mxu0 %v3653_v41  ;;  %v3668_v37 = vld [vmem:[%s5464_s3 + $0x280] ss:$8 sps:$4 sm:$0xff]   ;;  %v3676_v41 = vld [vmem:[%s5464_s3 + $0x294] ss:$8 sps:$4 sm:$0xff]  }
 0x61b   :  { %2593 = vmatprep.subr.bf16.mxu1 %v3598_v30  ;;  %2546 = vmatprep.subr.bf16.mxu0 %v3661_v21  ;;  %v3674_v30 = vld [vmem:[%s5464_s3 + $0x290] ss:$8 sps:$4 sm:$0xff]   ;;  %v3682_v21 = vld [vmem:[%s5464_s3 + $0x2a4] ss:$8 sps:$4 sm:$0xff]  }
 0x61e   :  { %2594 = vmatpush1.bf16.msra.mxu1 %v3596_v56  ;;  %2547 = vmatpush1.bf16.msra.mxu0 %v3659_v0  ;;  %v3680_v56 = vld [vmem:[%s5464_s3 + $0x2a0] ss:$8 sps:$4 sm:$0xff]   ;;  %v3688_v0 = vld [vmem:[%s5464_s3 + $0x2b4] ss:$8 sps:$4 sm:$0xff]  }
 0x61f   :  { %2595 = vmatprep.subr.bf16.mxu1 %v3601_v18  ;;  %2548 = vmatprep.subr.bf16.mxu0 %v3667_v36  ;;  %v3686_v18 = vld [vmem:[%s5464_s3 + $0x2b0] ss:$8 sps:$4 sm:$0xff]   ;;  %v3694_v36 = vld [vmem:[%s5464_s3 + $0x2c4] ss:$8 sps:$4 sm:$0xff]  }
 0x622   :  { %2596 = vmatpush1.bf16.msra.mxu1 %v3599_v22  ;;  %2549 = vmatpush1.bf16.msra.mxu0 %v3665_v19  ;;  %v3692_v22 = vld [vmem:[%s5464_s3 + $0x2c0] ss:$8 sps:$4 sm:$0xff]   ;;  %v3700_v19 = vld [vmem:[%s5464_s3 + $0x2d4] ss:$8 sps:$4 sm:$0xff]  }
 0x623   :  { %2597 = vmatprep.subr.bf16.mxu1 %v3604_v25  ;;  %2550 = vmatprep.subr.bf16.mxu0 %v3673_v31  ;;  %v3698_v25 = vld [vmem:[%s5464_s3 + $0x2d0] ss:$8 sps:$4 sm:$0xff]   ;;  %v3706_v31 = vld [vmem:[%s5464_s3 + $0x2e4] ss:$8 sps:$4 sm:$0xff]  }
 0x626   :  { %2598 = vmatpush1.bf16.msra.mxu1 %v3602_v54  ;;  %2551 = vmatpush1.bf16.msra.mxu0 %v3671_v26  ;;  %v3704_v54 = vld [vmem:[%s5464_s3 + $0x2e0] ss:$8 sps:$4 sm:$0xff]   ;;  %v3712_v26 = vld [vmem:[%s5464_s3 + $0x2f4] ss:$8 sps:$4 sm:$0xff]  }
 0x627   :  { %2599 = vmatprep.subr.bf16.mxu1 %v3607_v29  ;;  %2552 = vmatprep.subr.bf16.mxu0 %v3679_v45  ;;  %v3710_v29 = vld [vmem:[%s5464_s3 + $0x2f0] ss:$8 sps:$4 sm:$0xff]   ;;  %v3732_v45 = vld [vmem:[%s5500_s22 + $0x20] sm:$0xff] }
 0x62a   :  { %2600 = vmatpush1.bf16.msra.mxu1 %v3605_v47  ;;  %2553 = vmatpush1.bf16.msra.mxu0 %v3677_v51  ;;  %v3733_v47 = vld [vmem:[%s5500_s22 + $0x50] sm:$0xff] }
 0x62b   :  { %2601 = vmatprep.subr.bf16.mxu1 %v3610_v52  ;;  %2554 = vmatprep.subr.bf16.mxu0 %v3685_v9  ;;  %v1954_v51 = vpack.c.bf16 %v3733_v47, %v3732_v45 }
 0x62e   :  { %2602 = vmatpush1.bf16.msra.mxu1 %v3608_v20  ;;  %2555 = vmatpush1.bf16.msra.mxu0 %v3683_v32 }
 0x62f   :  { %2603 = vmatprep.subr.bf16.mxu1 %v3613_v43  ;;  %2556 = vmatprep.subr.bf16.mxu0 %v3691_v2 }
 0x632   :  { %2604 = vmatpush1.bf16.msra.mxu1 %v3611_v33  ;;  %2557 = vmatpush1.bf16.msra.mxu0 %v3689_v58 }
 0x633   :  { %2605 = vmatprep.subr.bf16.mxu1 %v3616_v35  ;;  %2558 = vmatprep.subr.bf16.mxu0 %v3697_v13 }
 0x636   :  { %2606 = vmatpush1.bf16.msra.mxu1 %v3614_v34  ;;  %2559 = vmatpush1.bf16.msra.mxu0 %v3695_v38 }
 0x637   :  { %2618 = vmatprep.subr.bf16.mxu1 %v3622_v39  ;;  %2560 = vmatprep.subr.bf16.mxu0 %v3703_v27 }
 0x639   :  { %2608 = vmatmul.mubr.bf16.vlgmr.msra.gmra.mrb[20].mxu1 %v1952_v42  ;;  %v2671_v42 = vpop.permute.xlu0 %2670 }
 0x63a   :  { %2619 = vmatpush1.bf16.msra.mxu1 %v3620_v44  ;;  %2561 = vmatpush1.bf16.msra.mxu0 %v3701_v12  ;;  %v2676_v12 = vpop.permute.xlu1 %2675 }
 0x63b   :  { %2620 = vmatprep.subr.bf16.mxu1 %v3628_v15  ;;  %2562 = vmatprep.subr.bf16.mxu0 %v3709_v46 }
 0x63c   :  { %2650 = vmatprep.mubr.bf16.mxu1 %v1955_v60 }
 0x63d   :  { %v2687_v57 = vpop.permute.xlu0 %2686 }
 0x63e   :  { %2621 = vmatpush1.bf16.msra.mxu1 %v3626_v16  ;;  %2563 = vmatpush1.bf16.msra.mxu0 %v3707_v28 }
 0x63f   :  { %2622 = vmatprep.subr.bf16.mxu1 %v3634_v55 }
 0x641   :  { %2565 = vmatmul.mubr.bf16.vlgmr.msra.gmra.mrb[16].mxu0 %v1950_v61 }
 0x642   :  { %2623 = vmatpush1.bf16.msra.mxu1 %v3632_v62 }
 0x643   :  { %2624 = vmatprep.subr.bf16.mxu1 %v3640_v63  ;;  %v5180_v63 = vrot.slane %v2661_v48, %v162_v17 }
 0x646   :  { %2625 = vmatpush1.bf16.msra.mxu1 %v3638_v3 }
 0x647   :  { %2626 = vmatprep.subr.bf16.mxu1 %v3646_v4  ;;  %v5184_v4 = vrot.slane %v2661_v48, %v166_v11 }
 0x64a   :  { %2627 = vmatpush1.bf16.msra.mxu1 %v3644_v49 }
 0x64b   :  { %2628 = vmatprep.subr.bf16.mxu1 %v3652_v5  ;;  %v2692_v5 = vpop.permute.xlu1 %2691 }
 0x64e   :  { %2629 = vmatpush1.bf16.msra.mxu1 %v3650_v23 }
 0x64f   :  { %2630 = vmatprep.subr.bf16.mxu1 %v3658_v10 }
 0x652   :  { %2631 = vmatpush1.bf16.msra.mxu1 %v3656_v24 }
 0x653   :  { %2632 = vmatprep.subr.bf16.mxu1 %v3664_v7 }
 0x656   :  { %2633 = vmatpush1.bf16.msra.mxu1 %v3662_v8 }
 0x657   :  { %2634 = vmatprep.subr.bf16.mxu1 %v3670_v14 }
 0x65a   :  { %2635 = vmatpush1.bf16.msra.mxu1 %v3668_v37 }
 0x65b   :  { %2636 = vmatprep.subr.bf16.mxu1 %v3676_v41 }
 0x65e   :  { %2637 = vmatpush1.bf16.msra.mxu1 %v3674_v30 }
 0x65f   :  { %2638 = vmatprep.subr.bf16.mxu1 %v3682_v21 }
 0x662   :  { %2639 = vmatpush1.bf16.msra.mxu1 %v3680_v56 }
 0x663   :  { %2640 = vmatprep.subr.bf16.mxu1 %v3688_v0 }
 0x666   :  { %2641 = vmatpush1.bf16.msra.mxu1 %v3686_v18  ;;  %v5228_v18 = vld [vmem:[%s5468_s13] sm:$0xff]  ;;  %s3756_s13 = smov 11  }
 0x667   :  { %2642 = vmatprep.subr.bf16.mxu1 %v3694_v36  ;;  %v3499_v36 = vcombine.high %v5228_v18, %v5228_v18 }
 0x669   :  { %3500 = vmatprep.mubr.msk.bf16.mxu0 %vm777_vm2, %v3499_v36  ;;  %vm2807_vm2 = vcmask 949248  }
 0x66a   :  { %2643 = vmatpush1.bf16.msra.mxu1 %v3692_v22 }
 0x66b   :  { %2644 = vmatprep.subr.bf16.mxu1 %v3700_v19 }
 0x66e   :  { %2645 = vmatpush1.bf16.msra.mxu1 %v3698_v25 }
 0x66f   :  { %2646 = vmatprep.subr.bf16.mxu1 %v3706_v31 }
 0x672   :  { %2647 = vmatpush1.bf16.msra.mxu1 %v3704_v54 }
 0x673   :  { %2648 = vmatprep.subr.bf16.mxu1 %v3712_v26 }
 0x676   :  { %2649 = vmatpush1.bf16.msra.mxu1 %v3710_v29 }
 0x679   :  { %2651 = vmatmul.mubr.bf16.vlgmr.msra.gmra.mrb[20].mxu1 %v1954_v51 }
 0x6c0   :  { %v5155_v52 = vpop.f32.mrb[12].mxu1 }
 0x6c1   :  { %v5157_v9 = vpop.f32.mrb[13].mxu1 }
 0x6c2   :  { %v1794_v20 = vpop.f32.mrb[14].mxu1 }
 0x6c3   :  { %v1795_v32 = vpop.f32.mrb[15].mxu1 }
 0x6cc   :  { %v5159_v43 = vpop.f32.mrb[16].mxu1 }
 0x6cd   :  { %v5161_v2 = vpop.f32.mrb[17].mxu1 }
 0x6ce   :  { %v1835_v33 = vpop.f32.mrb[18].mxu1 }
 0x6cf   :  { %v1836_v58 = vpop.f32.mrb[19].mxu1 }
 0x6d4   :  { %v5163_v35 = vpop.f32.mrb[12].mxu0 }
 0x6d5   :  { %v3537_v13 = vpop.f32.mrb[13].mxu0 }
 0x6d6   :  { %v1875_v34 = vpop.f32.mrb[14].mxu0 }
 0x6d7   :  { %v3538_v38 = vpop.f32.mrb[15].mxu0 }
 0x714   :  { %v2566_v39 = vpop.f32.mrb[16].mxu0 }
 0x715   :  { %v2568_v27 = vpop.f32.mrb[17].mxu0 }
 0x716   :  { %v2570_v40 = vpop.f32.mrb[18].mxu0 }
 0x717   :  { %v2572_v50 = vpop.f32.mrb[19].mxu0 }
 0x74c   :  { %v2652_v44 = vpop.f32.mrb[20].mxu1 }
 0x74d   :  { %v5165_v15 = vadd.f32 %v2652_v44, %v2566_v39  ;;  %v2654_v46 = vpop.f32.mrb[21].mxu1 }
 0x74e   :  { %v5170_v53 = vadd.f32 %v2654_v46, %v2568_v27  ;;  %v2656_v60 = vpop.f32.mrb[22].mxu1 }
 0x74f   :  { %v2678_v16 = vmul.f32 %v5165_v15, %v2671_v42  ;;  %v5173_v28 = vadd.f32 %v2656_v60, %v2570_v40  ;;  %v2658_v55 = vpop.f32.mrb[23].mxu1 }
 0x750   :  { %v2679_v59 = vmul.f32 %v5170_v53, %v2671_v42  ;;  %v5176_v61 = vadd.f32 %v2658_v55, %v2572_v50 }
 0x751   :  { %v2694_v62 = vadd.f32 %v2687_v57, %v2678_v16  ;;  %v2680_v10 = vmul.f32 %v5173_v28, %v2676_v12 }
 0x752   :  { %v2695_v3 = vadd.f32 %v2687_v57, %v2679_v59  ;;  %v2681_v49 = vmul.f32 %v5176_v61, %v2676_v12 }
 0x753   :  { %v2698_v23 = vmax.f32 %v2694_v62, 0.0  ;;  %v2696_v37 = vadd.f32 %v2692_v5, %v2680_v10 }
 0x754   :  { %v2699_v24 = vmax.f32 %v2695_v3, 0.0  ;;  %v2697_v7 = vadd.f32 %v2692_v5, %v2681_v49 }
 0x755   :  { %v2713_v8 = vmul.f32 %v5180_v63, %v2698_v23  ;;  %v2700_v11 = vmax.f32 %v2696_v37, 0.0 }
 0x756   :  { %v2714_v14 = vmul.f32 %v5184_v4, %v2699_v24  ;;  %v2701_v17 = vmax.f32 %v2697_v7, 0.0 }
 0x757   :  { %2726 = vrot.lane.b32.xlu0 %v2713_v8, %s3740_s5  ;;  %v2715_v41 = vmul.f32 %v5180_v63, %v2700_v11 }
 0x758   :  { %v2716_v6 = vmul.f32 %v5184_v4, %v2701_v17  ;;  %2728 = vrot.lane.b32.xlu1 %v2714_v14, %s3740_s5  ;;  %2719 = vst.msk [vmem:[#allocation2 + $0x8] sm:$0xff] %vm2718_vm7, %v2714_v14 }
 0x759   :  { %v2911_v0 = vpack.c.bf16 %v2715_v41, %v2713_v8 }
 0x75a   :  { %2721 = vst.msk [vmem:[#allocation2 + $0x38] sm:$0xff] %vm2718_vm7, %v2716_v6 }
 0x75b   :  { %2744 = vrot.lane.b32.xlu0 %v2713_v8, %s3741_s26 }
 0x75c   :  { %2746 = vrot.lane.b32.xlu1 %v2714_v14, %s3741_s26 }
 0x75f   :  { %2762 = vrot.lane.b32.xlu0 %v2713_v8, %s3751_s2  ;;  %v2876_v30 = vld [vmem:[#allocation2 + $0x8] sm:$0xff] }
 0x760   :  { %2764 = vrot.lane.b32.xlu1 %v2714_v14, %s3751_s2 }
 0x761   :  { %v2878_v21 = vld [vmem:[#allocation2 + $0x38] sm:$0xff] }
 0x762   :  { %v2912_v56 = vpack.c.bf16 %v2878_v21, %v2876_v30 }
 0x763   :  { %2781 = vrot.lane.b32.xlu0 %v2713_v8, %s3752_s1 }
 0x764   :  { %2783 = vrot.lane.b32.xlu1 %v2714_v14, %s3752_s1  ;;  %2938 = vmatprep.subr.bf16.mxu0 %v2912_v56 }
 0x765   :  { %2939 = vmatpush1.bf16.msra.mxu0 %v2911_v0 }
 0x767   :  { %2799 = vrot.lane.b32.xlu0 %v2713_v8, %s3753_s25 }
 0x768   :  { %2801 = vrot.lane.b32.xlu1 %v2714_v14, %s3753_s25 }
 0x76b   :  { %2818 = vrot.lane.b32.xlu0 %v2713_v8, %s3745_s4 }
 0x76c   :  { %2820 = vrot.lane.b32.xlu1 %v2714_v14, %s3745_s4 }
 0x76f   :  { %2836 = vrot.lane.b32.xlu0 %v2713_v8, %s3754_s24 }
 0x770   :  { %2838 = vrot.lane.b32.xlu1 %v2714_v14, %s3754_s24 }
 0x773   :  { %2855 = vrot.lane.b32.xlu0 %v2713_v8, %s3755_s28 }
 0x774   :  { %2857 = vrot.lane.b32.xlu1 %v2714_v14, %s3755_s28 }
 0x777   :  { %2730 = vrot.lane.b32.xlu0 %v2715_v41, %s3740_s5 }
 0x778   :  { %2732 = vrot.lane.b32.xlu1 %v2716_v6, %s3740_s5 }
 0x77b   :  { %2748 = vrot.lane.b32.xlu0 %v2715_v41, %s3741_s26 }
 0x77c   :  { %2750 = vrot.lane.b32.xlu1 %v2716_v6, %s3741_s26 }
 0x77f   :  { %2766 = vrot.lane.b32.xlu0 %v2715_v41, %s3751_s2 }
 0x780   :  { %2768 = vrot.lane.b32.xlu1 %v2716_v6, %s3751_s2 }
 0x783   :  { %2785 = vrot.lane.b32.xlu0 %v2715_v41, %s3752_s1 }
 0x784   :  { %2787 = vrot.lane.b32.xlu1 %v2716_v6, %s3752_s1 }
 0x787   :  { %2803 = vrot.lane.b32.xlu0 %v2715_v41, %s3753_s25 }
 0x788   :  { %2805 = vrot.lane.b32.xlu1 %v2716_v6, %s3753_s25 }
 0x78b   :  { %2822 = vrot.lane.b32.xlu0 %v2715_v41, %s3745_s4 }
 0x78c   :  { %2824 = vrot.lane.b32.xlu1 %v2716_v6, %s3745_s4 }
 0x78f   :  { %2840 = vrot.lane.b32.xlu0 %v2715_v41, %s3754_s24 }
 0x790   :  { %2842 = vrot.lane.b32.xlu1 %v2716_v6, %s3754_s24 }
 0x793   :  { %2859 = vrot.lane.b32.xlu0 %v2715_v41, %s3755_s28 }
 0x794   :  { %2861 = vrot.lane.b32.xlu1 %v2716_v6, %s3755_s28 }
 0x7c9   :  { %v2727_v22 = vpop.permute.xlu0 %2726 }
 0x7ca   :  { %v2729_v19 = vpop.permute.xlu1 %2728 }
 0x7cb   :  { %2741 = vst.msk [vmem:[#allocation2 + $0x68] sm:$0xff] %vm2718_vm7, %v2729_v19  ;;  %v2734_v57 = vsel %vm243_vm1, %v2727_v22, %v2729_v19 }
 0x7cd   :  { %v2745_v25 = vpop.permute.xlu0 %2744 }
 0x7ce   :  { %v2747_v31 = vpop.permute.xlu1 %2746 }
 0x7cf   :  { %2759 = vst.msk [vmem:[#allocation2 + $0xc8] sm:$0xff] %vm2718_vm7, %v2747_v31  ;;  %v2752_v24 = vsel %vm292_vm3, %v2745_v25, %v2747_v31 }
 0x7d1   :  { %v2763_v54 = vpop.permute.xlu0 %2762 }
 0x7d2   :  { %v2765_v26 = vpop.permute.xlu1 %2764  ;;  %v2880_v16 = vld [vmem:[#allocation2 + $0x68] sm:$0xff] }
 0x7d3   :  { %2778 = vst.msk [vmem:[#allocation2 + $0x128] sm:$0xff] %vm2718_vm7, %v2765_v26  ;;  %v2771_v30 = vsel %vm2770_vm10, %v2763_v54, %v2765_v26 }
 0x7d5   :  { %v5237_v29 = vpop.permute.xlu0 %2781 }
 0x7d6   :  { %v5239_v45 = vpop.permute.xlu1 %2783  ;;  %v2884_v23 = vld [vmem:[#allocation2 + $0xc8] sm:$0xff] }
 0x7d7   :  { %2796 = vst.msk [vmem:[#allocation2 + $0x188] sm:$0xff] %vm2718_vm7, %v5239_v45  ;;  %v2789_v31 = vsel %vm933_vm12, %v5237_v29, %v5239_v45 }
 0x7d9   :  { %v2800_v47 = vpop.permute.xlu0 %2799 }
 0x7da   :  { %v2802_v51 = vpop.permute.xlu1 %2801  ;;  %v2888_v11 = vld [vmem:[#allocation2 + $0x128] sm:$0xff] }
 0x7db   :  { %v5244_v20 = vsel %vm2807_vm2, %v2800_v47, %v2802_v51  ;;  %2815 = vst.msk [vmem:[#allocation2 + $0x1e8] sm:$0xff] %vm2718_vm7, %v2802_v51 }
 0x7dd   :  { %v2819_v32 = vpop.permute.xlu0 %2818 }
 0x7de   :  { %v2821_v33 = vpop.permute.xlu1 %2820  ;;  %v2892_v19 = vld [vmem:[#allocation2 + $0x188] sm:$0xff] }
 0x7df   :  { %v5248_v58 = vsel %vm439_vm6, %v2819_v32, %v2821_v33  ;;  %2833 = vst.msk [vmem:[#allocation2 + $0x248] sm:$0xff] %vm2718_vm7, %v2821_v33 }
 0x7e1   :  { %v2837_v13 = vpop.permute.xlu0 %2836 }
 0x7e2   :  { %v2839_v34 = vpop.permute.xlu1 %2838  ;;  %v2896_v33 = vld [vmem:[#allocation2 + $0x1e8] sm:$0xff] }
 0x7e3   :  { %v5252_v38 = vsel %vm2844_vm8, %v2837_v13, %v2839_v34  ;;  %2852 = vst.msk [vmem:[#allocation2 + $0x2a8] sm:$0xff] %vm2718_vm7, %v2839_v34 }
 0x7e5   :  { %v2856_v39 = vpop.permute.xlu0 %2855 }
 0x7e6   :  { %v2858_v27 = vpop.permute.xlu1 %2857 }
 0x7e7   :  { %v5256_v40 = vsel %vm2863_vm9, %v2856_v39, %v2858_v27  ;;  %2871 = vst.msk [vmem:[#allocation2 + $0x308] sm:$0xff] %vm2718_vm7, %v2858_v27 }
 0x7e9   :  { %v2731_v50 = vpop.permute.xlu0 %2730 }
 0x7ea   :  { %v2733_v42 = vpop.permute.xlu1 %2732 }
 0x7eb   :  { %2743 = vst.msk [vmem:[#allocation2 + $0x98] sm:$0xff] %vm2718_vm7, %v2733_v42  ;;  %v2735_v46 = vsel %vm243_vm1, %v2731_v50, %v2733_v42  ;;  %v2900_v50 = vld [vmem:[#allocation2 + $0x248] sm:$0xff] }
 0x7ec   :  { %v2913_v62 = vpack.c.bf16 %v2735_v46, %v2734_v57 }
 0x7ed   :  { %v2749_v44 = vpop.permute.xlu0 %2748 }
 0x7ee   :  { %v2751_v12 = vpop.permute.xlu1 %2750 }
 0x7ef   :  { %2761 = vst.msk [vmem:[#allocation2 + $0xf8] sm:$0xff] %vm2718_vm7, %v2751_v12  ;;  %v2753_v3 = vsel %vm292_vm3, %v2749_v44, %v2751_v12 }
 0x7f0   :  { %v2915_v14 = vpack.c.bf16 %v2753_v3, %v2752_v24  ;;  %v3498_v3 = vcombine.low %v5228_v18, %v5228_v18  ;;  %v3003_v18 = vld [vmem:[%s5470_s18] sm:$0xff] }
 0x7f1   :  { %v2767_v48 = vpop.permute.xlu0 %2766 }
 0x7f2   :  { %v2769_v60 = vpop.permute.xlu1 %2768  ;;  %v2882_v55 = vld [vmem:[#allocation2 + $0x98] sm:$0xff] }
 0x7f3   :  { %2780 = vst.msk [vmem:[#allocation2 + $0x158] sm:$0xff] %vm2718_vm7, %v2769_v60  ;;  %v2914_v59 = vpack.c.bf16 %v2882_v55, %v2880_v16  ;;  %v2772_v17 = vsel %vm2770_vm10, %v2767_v48, %v2769_v60  ;;  %v2904_v48 = vld [vmem:[#allocation2 + $0x2a8] sm:$0xff] }
 0x7f4   :  { %v2917_v0 = vpack.c.bf16 %v2772_v17, %v2771_v30  ;;  %v2908_v55 = vld [vmem:[#allocation2 + $0x308] sm:$0xff] }
 0x7f5   :  { %v2786_v49 = vpop.permute.xlu0 %2785  ;;  %2940 = vmatprep.subr.bf16.mxu0 %v2914_v59 }
 0x7f6   :  { %v2788_v5 = vpop.permute.xlu1 %2787  ;;  %2941 = vmatpush1.bf16.msra.mxu0 %v2913_v62  ;;  %v2886_v10 = vld [vmem:[#allocation2 + $0xf8] sm:$0xff] }
 0x7f7   :  { %v2790_v7 = vsel %vm933_vm12, %v2786_v49, %v2788_v5  ;;  %2798 = vst.msk [vmem:[#allocation2 + $0x1b8] sm:$0xff] %vm2718_vm7, %v2788_v5  ;;  %v2916_v8 = vpack.c.bf16 %v2886_v10, %v2884_v23 }
 0x7f8   :  { %v2919_v26 = vpack.c.bf16 %v2790_v7, %v2789_v31 }
 0x7f9   :  { %v2804_v37 = vpop.permute.xlu0 %2803  ;;  %2942 = vmatprep.subr.bf16.mxu0 %v2916_v8 }
 0x7fa   :  { %v2806_v6 = vpop.permute.xlu1 %2805  ;;  %2943 = vmatpush1.bf16.msra.mxu0 %v2915_v14  ;;  %v2890_v41 = vld [vmem:[#allocation2 + $0x158] sm:$0xff] }
 0x7fb   :  { %v2809_v21 = vsel %vm2807_vm2, %v2804_v37, %v2806_v6  ;;  %2817 = vst.msk [vmem:[#allocation2 + $0x218] sm:$0xff] %vm2718_vm7, %v2806_v6  ;;  %v2918_v56 = vpack.c.bf16 %v2890_v41, %v2888_v11 }
 0x7fc   :  { %v2921_v27 = vpack.c.bf16 %v2809_v21, %v5244_v20 }
 0x7fd   :  { %v2823_v36 = vpop.permute.xlu0 %2822  ;;  %2944 = vmatprep.subr.bf16.mxu0 %v2918_v56 }
 0x7fe   :  { %v2825_v22 = vpop.permute.xlu1 %2824  ;;  %2945 = vmatpush1.bf16.msra.mxu0 %v2917_v0  ;;  %v2894_v25 = vld [vmem:[#allocation2 + $0x1b8] sm:$0xff] }
 0x7ff   :  { %v2827_v47 = vsel %vm439_vm6, %v2823_v36, %v2825_v22  ;;  %2835 = vst.msk [vmem:[#allocation2 + $0x278] sm:$0xff] %vm2718_vm7, %v2825_v22  ;;  %v2920_v54 = vpack.c.bf16 %v2894_v25, %v2892_v19 }
 0x800   :  { %v2923_v46 = vpack.c.bf16 %v2827_v47, %v5248_v58 }
 0x801   :  { %v2841_v51 = vpop.permute.xlu0 %2840  ;;  %2946 = vmatprep.subr.bf16.mxu0 %v2920_v54 }
 0x802   :  { %v2843_v32 = vpop.permute.xlu1 %2842  ;;  %2947 = vmatpush1.bf16.msra.mxu0 %v2919_v26  ;;  %v2898_v13 = vld [vmem:[#allocation2 + $0x218] sm:$0xff] }
 0x803   :  { %v2846_v34 = vsel %vm2844_vm8, %v2841_v51, %v2843_v32  ;;  %2854 = vst.msk [vmem:[#allocation2 + $0x2d8] sm:$0xff] %vm2718_vm7, %v2843_v32  ;;  %v2922_v39 = vpack.c.bf16 %v2898_v13, %v2896_v33 }
 0x804   :  { %v2925_v20 = vpack.c.bf16 %v2846_v34, %v5252_v38 }
 0x805   :  { %v2860_v29 = vpop.permute.xlu0 %2859  ;;  %2948 = vmatprep.subr.bf16.mxu0 %v2922_v39 }
 0x806   :  { %v2862_v45 = vpop.permute.xlu1 %2861  ;;  %2949 = vmatpush1.bf16.msra.mxu0 %v2921_v27  ;;  %v2902_v42 = vld [vmem:[#allocation2 + $0x278] sm:$0xff] }
 0x807   :  { %v2865_v44 = vsel %vm2863_vm9, %v2860_v29, %v2862_v45  ;;  %2873 = vst.msk [vmem:[#allocation2 + $0x338] sm:$0xff] %vm2718_vm7, %v2862_v45  ;;  %v2924_v12 = vpack.c.bf16 %v2902_v42, %v2900_v50 }
 0x808   :  { %v2927_v62 = vpack.c.bf16 %v2865_v44, %v5256_v40  ;;  %v2995_v40 = vld [vmem:[%s5469_s17] sm:$0xff] }
 0x809   :  { %2950 = vmatprep.subr.bf16.mxu0 %v2924_v12 }
 0x80a   :  { %2951 = vmatpush1.bf16.msra.mxu0 %v2923_v46  ;;  %v2906_v60 = vld [vmem:[#allocation2 + $0x2d8] sm:$0xff] }
 0x80b   :  { %v2926_v16 = vpack.c.bf16 %v2906_v60, %v2904_v48 }
 0x80d   :  { %2952 = vmatprep.subr.bf16.mxu0 %v2926_v16 }
 0x80e   :  { %2953 = vmatpush1.bf16.msra.mxu0 %v2925_v20  ;;  %v2910_v57 = vld [vmem:[#allocation2 + $0x338] sm:$0xff] }
 0x80f   :  { %v2928_v59 = vpack.c.bf16 %v2910_v57, %v2908_v55 }
 0x811   :  { %2954 = vmatprep.subr.bf16.mxu0 %v2928_v59 }
 0x812   :  { %2955 = vmatpush1.bf16.msra.mxu0 %v2927_v62 }
 0x815   :  { %2971 = vmatmul.mubr.bf16.vlgmr.msra.gmra.mrb[20].mxu0 %v3498_v3 }
 0x816   :  { %3161 = vmatprep.mubr.bf16.mxu0 %v3739_v1 }
 0x8e8   :  { %v2972_v58 = vpop.f32.mrb[20].mxu0 }
 0x8e9   :  { %2981 = vrot.lane.b32.xlu0 %v2972_v58, %s3756_s13  ;;  %v2974_v38 = vpop.f32.mrb[21].mxu0 }
 0x8ea   :  { %2983 = vrot.lane.b32.xlu1 %v2974_v38, %s3756_s13  ;;  %v2976_v49 = vpop.f32.mrb[22].mxu0 }
 0x8eb   :  { %v2977_v5 = vpop.f32.mrb[23].mxu0 }
 0x8ed   :  { %2998 = vperm.xlu0 %3565, %v2995_v40  }
 0x8ee   :  { %3006 = vperm.xlu1 %3566, %v3003_v18  }
 0x95b   :  { %v2982_v23 = vpop.permute.xlu0 %2981 }
 0x95c   :  { %2990 = vst.msk [vmem:[#allocation4] sm:$0xff] %vm2989_vm13, %v2982_v23  ;;  %v2984_v10 = vpop.permute.xlu1 %2983 }
 0x95d   :  { %v2986_v24 = vsel %vm2985_vm5, %v2982_v23, %v2984_v10 }
 0x95e   :  { %2992 = vst.msk [vmem:[#allocation4 + $0x8] sm:$0xff] %vm2991_vm0, %v2986_v24  ;;  %vm3206_vm0 = vcmask 404480  }
 0x963   :  { %v3367_v7 = vld [vmem:[#allocation4] sm:$0xff] }
 0x964   :  { %v3371_v8 = vadd.f32 %v5165_v15, %v3367_v7 }
 0x965   :  { %v3368_v14 = vld [vmem:[#allocation4 + $0x8] sm:$0xff] }
 0x966   :  { %3375 = vst [vmem:[%s5471_s23] sm:$0xff] %v3371_v8  ;;  %v3372_v17 = vadd.f32 %v5170_v53, %v3368_v14 }
 0x968   :  { %3376 = vst [vmem:[%s5471_s23 + $0x8] sm:$0xff] %v3372_v17 }
 0x96c   :  { %v2999_v37 = vpop.permute.xlu0 %2998 }
 0x96d   :  { %v3001_v6 = vmul.f32 %v3367_v7, %v2999_v37  ;;  %v3002_v11 = vmul.f32 %v3368_v14, %v2999_v37  ;;  %v3007_v41 = vpop.permute.xlu1 %3006  ;;  %v3091_v37 = vld [vmem:[%s5472_s16] sm:$0x3] }
 0x96f   :  { %v3009_v30 = vadd.f32 %v3007_v41, %v3001_v6  ;;  %v3010_v21 = vadd.f32 %v3007_v41, %v3002_v11 }
 0x971   :  { %v3011_v56 = vmax.f32 %v3009_v30, 0.0  ;;  %v3012_v0 = vmax.f32 %v3010_v21, 0.0  ;;  %v3185_v30 = vld [vmem:[%s5473_s20] sm:$0xf] }
 0x973   :  { %v3013_v15 = vmul.f32 %v3011_v56, %v5180_v63  ;;  %v3014_v36 = vmul.f32 %v3012_v0, %v5184_v4  ;;  %v3193_v56 = vld [vmem:[%s5474_s21] sm:$0xf] }
 0x975   :  { %3015 = vst [vmem:[#allocation2] sm:$0xff] %v3013_v15  ;;  %3016 = vst.msk [vmem:[#allocation2 + $0x8] sm:$0xff] %vm2718_vm7, %v3014_v36  ;;  %3021 = vrot.lane.b32.xlu1 %v3014_v36, %s3740_s5  ;;  %3019 = vrot.lane.b32.xlu0 %v3013_v15, %s3740_s5 }
 0x979   :  { %3030 = vrot.lane.b32.xlu1 %v3014_v36, %s3741_s26  ;;  %3028 = vrot.lane.b32.xlu0 %v3013_v15, %s3741_s26 }
 0x97c   :  { %v3093_v51 = vld [vmem:[#allocation2 + $0x8] sm:$0xff] }
 0x97d   :  { %3039 = vrot.lane.b32.xlu1 %v3014_v36, %s3751_s2  ;;  %3037 = vrot.lane.b32.xlu0 %v3013_v15, %s3751_s2 }
 0x981   :  { %3048 = vrot.lane.b32.xlu1 %v3014_v36, %s3752_s1  ;;  %3046 = vrot.lane.b32.xlu0 %v3013_v15, %s3752_s1 }
 0x985   :  { %3057 = vrot.lane.b32.xlu1 %v3014_v36, %s3753_s25  ;;  %3055 = vrot.lane.b32.xlu0 %v3013_v15, %s3753_s25 }
 0x989   :  { %3066 = vrot.lane.b32.xlu1 %v3014_v36, %s3745_s4  ;;  %3064 = vrot.lane.b32.xlu0 %v3013_v15, %s3745_s4 }
 0x98d   :  { %3075 = vrot.lane.b32.xlu1 %v3014_v36, %s3754_s24  ;;  %3073 = vrot.lane.b32.xlu0 %v3013_v15, %s3754_s24 }
 0x991   :  { %3084 = vrot.lane.b32.xlu1 %v3014_v36, %s3755_s28  ;;  %3082 = vrot.lane.b32.xlu0 %v3013_v15, %s3755_s28 }
 0x9e7   :  { %v3022_v53 = vpop.permute.xlu1 %3021  ;;  %v3020_v22 = vpop.permute.xlu0 %3019 }
 0x9e8   :  { %3027 = vst.msk [vmem:[#allocation2 + $0x38] sm:$0xff] %vm2718_vm7, %v3022_v53  ;;  %v3023_v19 = vsel %vm243_vm1, %v3020_v22, %v3022_v53 }
 0x9e9   :  { %3026 = vst [vmem:[#allocation2 + $0x30] sm:$0xff] %v3023_v19  ;;  %v3110_v34 = vpack.c.bf16 %v3023_v19, %v3013_v15 }
 0x9eb   :  { %v3031_v25 = vpop.permute.xlu1 %3030  ;;  %v3029_v31 = vpop.permute.xlu0 %3028 }
 0x9ec   :  { %3036 = vst.msk [vmem:[#allocation2 + $0x68] sm:$0xff] %vm2718_vm7, %v3031_v25  ;;  %v3032_v47 = vsel %vm292_vm3, %v3029_v31, %v3031_v25 }
 0x9ed   :  { %3035 = vst [vmem:[#allocation2 + $0x60] sm:$0xff] %v3032_v47 }
 0x9ef   :  { %v3040_v54 = vpop.permute.xlu1 %3039  ;;  %v3038_v26 = vpop.permute.xlu0 %3037  ;;  %v3095_v32 = vld [vmem:[#allocation2 + $0x38] sm:$0xff] }
 0x9f0   :  { %3045 = vst.msk [vmem:[#allocation2 + $0x98] sm:$0xff] %vm2718_vm7, %v3040_v54  ;;  %v3041_v33 = vsel %vm2770_vm10, %v3038_v26, %v3040_v54  ;;  %v3111_v13 = vpack.c.bf16 %v3095_v32, %v3093_v51 }
 0x9f1   :  { %3044 = vst [vmem:[#allocation2 + $0x90] sm:$0xff] %v3041_v33  ;;  %v3112_v48 = vpack.c.bf16 %v3041_v33, %v3032_v47 }
 0x9f2   :  { %3129 = vmatprep.subr.bf16.mxu0 %v3111_v13 }
 0x9f3   :  { %v3049_v39 = vpop.permute.xlu1 %3048  ;;  %v3047_v27 = vpop.permute.xlu0 %3046  ;;  %3130 = vmatpush1.bf16.msra.mxu0 %v3110_v34  ;;  %v3097_v42 = vld [vmem:[#allocation2 + $0x68] sm:$0xff] }
 0x9f4   :  { %3054 = vst.msk [vmem:[#allocation2 + $0xc8] sm:$0xff] %vm2718_vm7, %v3049_v39  ;;  %v3050_v29 = vsel %vm933_vm12, %v3047_v27, %v3049_v39  ;;  %v1885_v39 = vrot.slane %v5159_v43, 4  ;;  %v1886_v27 = vrot.slane %v5161_v2, 4 }
 0x9f5   :  { %3053 = vst [vmem:[#allocation2 + $0xc0] sm:$0xff] %v3050_v29 }
 0x9f7   :  { %v3058_v45 = vpop.permute.xlu1 %3057  ;;  %v3056_v50 = vpop.permute.xlu0 %3055  ;;  %v3099_v44 = vld [vmem:[#allocation2 + $0x98] sm:$0xff] }
 0x9f8   :  { %3063 = vst.msk [vmem:[#allocation2 + $0xf8] sm:$0xff] %vm2718_vm7, %v3058_v45  ;;  %v3059_v12 = vsel %vm2807_vm2, %v3056_v50, %v3058_v45  ;;  %v3113_v46 = vpack.c.bf16 %v3099_v44, %v3097_v42 }
 0x9f9   :  { %v3114_v38 = vpack.c.bf16 %v3059_v12, %v3050_v29  ;;  %v1887_v29 = vrot.slane %v5163_v35, 4 }
 0x9fa   :  { %3131 = vmatprep.subr.bf16.mxu0 %v3113_v46 }
 0x9fb   :  { %v3067_v60 = vpop.permute.xlu1 %3066  ;;  %v3065_v16 = vpop.permute.xlu0 %3064  ;;  %3132 = vmatpush1.bf16.msra.mxu0 %v3112_v48  ;;  %v3101_v59 = vld [vmem:[#allocation2 + $0xc8] sm:$0xff] }
 0x9fc   :  { %3072 = vst.msk [vmem:[#allocation2 + $0x128] sm:$0xff] %vm2718_vm7, %v3067_v60  ;;  %v3068_v20 = vsel %vm439_vm6, %v3065_v16, %v3067_v60 }
 0x9ff   :  { %v3076_v55 = vpop.permute.xlu1 %3075  ;;  %v3074_v57 = vpop.permute.xlu0 %3073  ;;  %v3103_v62 = vld [vmem:[#allocation2 + $0xf8] sm:$0xff] }
 0xa00   :  { %3081 = vst.msk [vmem:[#allocation2 + $0x158] sm:$0xff] %vm2718_vm7, %v3076_v55  ;;  %v3077_v3 = vsel %vm2844_vm8, %v3074_v57, %v3076_v55  ;;  %v3115_v58 = vpack.c.bf16 %v3103_v62, %v3101_v59 }
 0xa01   :  { %v3116_v24 = vpack.c.bf16 %v3077_v3, %v3068_v20 }
 0xa02   :  { %3133 = vmatprep.subr.bf16.mxu0 %v3115_v58 }
 0xa03   :  { %v3085_v49 = vpop.permute.xlu1 %3084  ;;  %v3083_v40 = vpop.permute.xlu0 %3082  ;;  %3134 = vmatpush1.bf16.msra.mxu0 %v3114_v38  ;;  %v3105_v18 = vld [vmem:[#allocation2 + $0x128] sm:$0xff] }
 0xa04   :  { %3090 = vst.msk [vmem:[#allocation2 + $0x188] sm:$0xff] %vm2718_vm7, %v3085_v49  ;;  %v3086_v5 = vsel %vm2863_vm9, %v3083_v40, %v3085_v49  ;;  %vm3220_vm7 = vcmask 408580  }
 0xa05   :  { %v3118_v7 = vpack.c.bf16 %v3086_v5, %v3086_v5 }
 0xa07   :  { %v3107_v23 = vld [vmem:[#allocation2 + $0x158] sm:$0xff]  ;;  %v3124_v17 = vsel %vm1264_vm14, %v3118_v7, 0 }
 0xa08   :  { %v3117_v10 = vpack.c.bf16 %v3107_v23, %v3105_v18 }
 0xa0a   :  { %3135 = vmatprep.subr.bf16.mxu0 %v3117_v10 }
 0xa0b   :  { %3136 = vmatpush1.bf16.msra.mxu0 %v3116_v24  ;;  %v3109_v8 = vld [vmem:[#allocation2 + $0x188] sm:$0xff] }
 0xa0c   :  { %v3119_v14 = vpack.c.bf16 %v3109_v8, %v3109_v8 }
 0xa0e   :  { %3501 = vmatprep.subr.msk.bf16.mxu0 %vm1264_vm14, %v3119_v14  ;;  %vm3179_vm14 = vcmask 1043544  }
 0xa0f   :  { %3138 = vmatpush1.bf16.msra.mxu0 %v3124_v17 }
 0xa12   :  { %3502 = vmatmul.mubr.msk.bf16.vlgmr.msra.gmra.mrb[24].mxu0 %vm1260_vm15, %v3091_v37  ;;  %vm3181_vm15 = vcmask 494592  }
 0xa13   :  { %3343 = vmatprep.mubr.bf16.mxu0 %v3739_v1 }
 0xae5   :  { %v3163_v6 = vpop.f32.mrb[24].mxu0 }
 0xae6   :  { %3172 = vrot.lane.b32.xlu0 %v3163_v6, %s3756_s13  ;;  %v3165_v11 = vpop.f32.mrb[25].mxu0 }
 0xae7   :  { %3174 = vrot.lane.b32.xlu1 %v3165_v11, %s3756_s13  ;;  %v3167_v41 = vpop.f32.mrb[26].mxu0 }
 0xae8   :  { %v3168_v21 = vpop.f32.mrb[27].mxu0 }
 0xaea   :  { %3188 = vperm.xlu0 %3565, %v3185_v30  }
 0xaeb   :  { %3196 = vperm.xlu1 %3566, %v3193_v56  }
 0xb58   :  { %v3173_v1 = vpop.permute.xlu0 %3172 }
 0xb59   :  { %3180 = vst.msk [vmem:[#allocation4 + $0x10] sm:$0xf] %vm3179_vm14, %v3173_v1  ;;  %v3175_v0 = vpop.permute.xlu1 %3174 }
 0xb5a   :  { %v3176_v15 = vsel %vm2985_vm5, %v3173_v1, %v3175_v0 }
 0xb5b   :  { %3182 = vst.msk [vmem:[#allocation4 + $0x18] sm:$0xf] %vm3181_vm15, %v3176_v15 }
 0xb60   :  { %v3183_v36 = vld [vmem:[#allocation4 + $0x10] sm:$0xf] }
 0xb62   :  { %v3184_v22 = vld [vmem:[#allocation4 + $0x18] sm:$0xf] }
 0xb69   :  { %v3189_v53 = vpop.permute.xlu0 %3188 }
 0xb6a   :  { %v3191_v19 = vmul.f32 %v3189_v53, %v3183_v36  ;;  %v3192_v25 = vmul.f32 %v3189_v53, %v3184_v22  ;;  %v3197_v31 = vpop.permute.xlu1 %3196 }
 0xb6c   :  { %v3199_v47 = vadd.f32 %v3197_v31, %v3191_v19  ;;  %v3200_v54 = vadd.f32 %v3197_v31, %v3192_v25 }
 0xb6e   :  { %v3201_v26 = vmax.f32 %v3199_v47, 0.0  ;;  %v3202_v51 = vmax.f32 %v3200_v54, 0.0 }
 0xb70   :  { %v3203_v32 = vmul.f32 %v3201_v26, %v5180_v63  ;;  %v3204_v33 = vmul.f32 %v3202_v51, %v5184_v4  ;;  %v1883_v63 = vrot.slane %v5155_v52, 4  ;;  %v1884_v4 = vrot.slane %v5157_v9, 4  ;;  %v3734_v26 = vld [vmem:[%s5500_s22 + $0x30] sm:$0xff] }
 0xb72   :  { %3205 = vst [vmem:[#allocation2] sm:$0xf] %v3203_v32  ;;  %3224 = vrot.lane.b32.xlu1 %v3204_v33, %s3741_s26  ;;  %3222 = vrot.lane.b32.xlu0 %v3203_v32, %s3741_s26  ;;  %3207 = vst.msk [vmem:[#allocation2 + $0x8] sm:$0xf] %vm3206_vm0, %v3204_v33  ;;  %v3211_v13 = vrot.slane %v3204_v33, 4  ;;  %v3210_v34 = vrot.slane %v3203_v32, 4 }
 0xb76   :  { %3242 = vrot.lane.b32.xlu1 %v3204_v33, %s3752_s1  ;;  %3240 = vrot.lane.b32.xlu0 %v3203_v32, %s3752_s1 }
 0xb7a   :  { %3260 = vrot.lane.b32.xlu1 %v3204_v33, %s3745_s4  ;;  %3258 = vrot.lane.b32.xlu0 %v3203_v32, %s3745_s4 }
 0xb7e   :  { %3214 = vrot.lane.b32.xlu1 %v3211_v13, %s3740_s5  ;;  %3212 = vrot.lane.b32.xlu0 %v3210_v34, %s3740_s5 }
 0xb82   :  { %3233 = vrot.lane.b32.xlu1 %v3211_v13, %s3751_s2  ;;  %3231 = vrot.lane.b32.xlu0 %v3210_v34, %s3751_s2 }
 0xb86   :  { %3251 = vrot.lane.b32.xlu1 %v3211_v13, %s3753_s25  ;;  %3249 = vrot.lane.b32.xlu0 %v3210_v34, %s3753_s25 }
 0xb8a   :  { %3269 = vrot.lane.b32.xlu1 %v3211_v13, %s3754_s24  ;;  %3267 = vrot.lane.b32.xlu0 %v3210_v34, %s3754_s24  ;;  %v3735_v13 = vld [vmem:[%s5500_s22 + $0x38] sm:$0xff] }
 0xb8e   :  { %3278 = vrot.lane.b32.xlu1 %v3204_v33, %s3755_s28  ;;  %3276 = vrot.lane.b32.xlu0 %v3203_v32, %s3755_s28  ;;  %v3285_v33 = vld [vmem:[%s5475_s19] sm:$0x3] }
 0xb92   :  { %1890 = vrot.lane.b32.xlu1 %v1884_v4, %s5508_s7  ;;  %1888 = vrot.lane.b32.xlu0 %v1883_v63, %s5508_s7 }
 0xb96   :  { %1894 = vrot.lane.b32.xlu1 %v1886_v27, %s5508_s7  ;;  %1892 = vrot.lane.b32.xlu0 %v1885_v39, %s5508_s7  ;;  %v3736_v39 = vld [vmem:[%s5500_s22 + $0x40] sm:$0xff] }
 0xb9a   :  { %1896 = vrot.lane.b32.xlu0 %v1887_v29, %s5508_s7  ;;  %v3737_v29 = vld [vmem:[%s5500_s22 + $0x48] sm:$0xff] }
 0xbe4   :  { %v3225_v45 = vpop.permute.xlu1 %3224  ;;  %v3223_v52 = vpop.permute.xlu0 %3222 }
 0xbe5   :  { %3230 = vst.msk [vmem:[#allocation2 + $0x38] sm:$0xf] %vm3206_vm0, %v3225_v45  ;;  %v3226_v9 = vsel %vm292_vm3, %v3223_v52, %v3225_v45  ;;  %vm1912_vm3 = vcmask 957444  }
 0xbe6   :  { %3229 = vst [vmem:[#allocation2 + $0x30] sm:$0xf] %v3226_v9  ;;  %v3738_v9 = vld [vmem:[%s5500_s22 + $0x50] sm:$0xff] }
 0xbe8   :  { %v3243_v50 = vpop.permute.xlu1 %3242  ;;  %v3241_v42 = vpop.permute.xlu0 %3240 }
 0xbe9   :  { %3248 = vst.msk [vmem:[#allocation2 + $0x68] sm:$0xf] %vm3206_vm0, %v3243_v50  ;;  %v3244_v43 = vsel %vm933_vm12, %v3241_v42, %v3243_v50  ;;  %vm3365_vm12 = vcmask 498692  }
 0xbea   :  { %3247 = vst [vmem:[#allocation2 + $0x60] sm:$0xf] %v3244_v43 }
 0xbec   :  { %v3261_v2 = vpop.permute.xlu1 %3260  ;;  %v3259_v44 = vpop.permute.xlu0 %3258 }
 0xbed   :  { %3266 = vst.msk [vmem:[#allocation2 + $0x98] sm:$0xf] %vm3206_vm0, %v3261_v2  ;;  %v3262_v35 = vsel %vm439_vm6, %v3259_v44, %v3261_v2  ;;  %vm5509_vm6 = vcmask 293888  }
 0xbee   :  { %3265 = vst [vmem:[#allocation2 + $0x90] sm:$0xf] %v3262_v35 }
 0xbf0   :  { %v3215_v12 = vpop.permute.xlu1 %3214  ;;  %v3213_v46 = vpop.permute.xlu0 %3212 }
 0xbf1   :  { %3221 = vst.msk [vmem:[#allocation2 + $0x8] sm:$0xf0] %vm3220_vm7, %v3215_v12  ;;  %v3216_v48 = vsel %vm243_vm1, %v3213_v46, %v3215_v12  ;;  %vm1907_vm1 = vcmask 1047708  }
 0xbf2   :  { %3219 = vst [vmem:[#allocation2] sm:$0xf0] %v3216_v48 }
 0xbf4   :  { %v3234_v60 = vpop.permute.xlu1 %3233  ;;  %v3232_v16 = vpop.permute.xlu0 %3231 }
 0xbf5   :  { %3239 = vst.msk [vmem:[#allocation2 + $0x38] sm:$0xf0] %vm3220_vm7, %v3234_v60  ;;  %v3235_v20 = vsel %vm2770_vm10, %v3232_v16, %v3234_v60 }
 0xbf6   :  { %3238 = vst [vmem:[#allocation2 + $0x30] sm:$0xf0] %v3235_v20 }
 0xbf8   :  { %v3252_v55 = vpop.permute.xlu1 %3251  ;;  %v3250_v57 = vpop.permute.xlu0 %3249  ;;  %v3287_v58 = vld [vmem:[#allocation2 + $0x8] sm:$0xff] }
 0xbf9   :  { %3257 = vst.msk [vmem:[#allocation2 + $0x68] sm:$0xf0] %vm3220_vm7, %v3252_v55  ;;  %v3253_v59 = vsel %vm2807_vm2, %v3250_v57, %v3252_v55  ;;  %v3286_v5 = vld [vmem:[#allocation2] sm:$0xff] }
 0xbfa   :  { %3256 = vst [vmem:[#allocation2 + $0x60] sm:$0xf0] %v3253_v59 }
 0xbfc   :  { %v3270_v62 = vpop.permute.xlu1 %3269  ;;  %v3268_v3 = vpop.permute.xlu0 %3267  ;;  %v3289_v38 = vld [vmem:[#allocation2 + $0x38] sm:$0xff] }
 0xbfd   :  { %3275 = vst.msk [vmem:[#allocation2 + $0x98] sm:$0xf0] %vm3220_vm7, %v3270_v62  ;;  %v3271_v49 = vsel %vm2844_vm8, %v3268_v3, %v3270_v62  ;;  %v3297_v40 = vpack.c.bf16 %v3289_v38, %v3287_v58  ;;  %v3288_v18 = vld [vmem:[#allocation2 + $0x30] sm:$0xff] }
 0xbfe   :  { %3274 = vst [vmem:[#allocation2 + $0x90] sm:$0xf0] %v3271_v49  ;;  %v3296_v23 = vpack.c.bf16 %v3288_v18, %v3286_v5 }
 0xbff   :  { %3311 = vmatprep.subr.bf16.mxu0 %v3297_v40 }
 0xc00   :  { %v3279_v10 = vpop.permute.xlu1 %3278  ;;  %v3277_v24 = vpop.permute.xlu0 %3276  ;;  %3312 = vmatpush1.bf16.msra.mxu0 %v3296_v23  ;;  %v3291_v17 = vld [vmem:[#allocation2 + $0x68] sm:$0xff] }
 0xc01   :  { %3284 = vst.msk [vmem:[#allocation2 + $0xc8] sm:$0xf] %vm3206_vm0, %v3279_v10  ;;  %v3280_v7 = vsel %vm2863_vm9, %v3277_v24, %v3279_v10  ;;  %v3290_v41 = vld [vmem:[#allocation2 + $0x60] sm:$0xff] }
 0xc02   :  { %3283 = vst [vmem:[#allocation2 + $0xc0] sm:$0xf] %v3280_v7 }
 0xc04   :  { %v1891_v8 = vpop.permute.xlu1 %1890  ;;  %v1889_v14 = vpop.permute.xlu0 %1888  ;;  %v3293_v37 = vld [vmem:[#allocation2 + $0x98] sm:$0xff] }
 0xc05   :  { %v1898_v6 = vsel %vm918_vm11, %v1889_v14, %v1891_v8  ;;  %1908 = vst.msk [vmem:[#allocation3 + $0x30] sm:$0xf0] %vm1907_vm1, %v1889_v14  ;;  %v3299_v11 = vpack.c.bf16 %v3293_v37, %v3291_v17  ;;  %v3292_v30 = vld [vmem:[#allocation2 + $0x90] sm:$0xff] }
 0xc06   :  { %1909 = vst [vmem:[#allocation3 + $0x38] sm:$0xf0] %v1898_v6  ;;  %v3298_v21 = vpack.c.bf16 %v3292_v30, %v3290_v41 }
 0xc07   :  { %3313 = vmatprep.subr.bf16.mxu0 %v3299_v11 }
 0xc08   :  { %v1895_v56 = vpop.permute.xlu1 %1894  ;;  %v1893_v1 = vpop.permute.xlu0 %1892  ;;  %3314 = vmatpush1.bf16.msra.mxu0 %v3298_v21  ;;  %v3295_v0 = vld [vmem:[#allocation2 + $0xc8] sm:$0xf] }
 0xc09   :  { %v1899_v15 = vsel %vm918_vm11, %v1891_v8, %v1893_v1  ;;  %v1900_v36 = vsel %vm918_vm11, %v1893_v1, %v1895_v56  ;;  %v3301_v53 = vpack.c.bf16 %v3295_v0, %v3295_v0  ;;  %v3294_v22 = vld [vmem:[#allocation2 + $0xc0] sm:$0xf] }
 0xc0a   :  { %1910 = vst [vmem:[#allocation3 + $0x40] sm:$0xf0] %v1899_v15  ;;  %1911 = vst [vmem:[#allocation3 + $0x48] sm:$0xf0] %v1900_v36  ;;  %v3300_v19 = vpack.c.bf16 %v3294_v22, %v3294_v22 }
 0xc0b   :  { %3503 = vmatprep.subr.msk.bf16.mxu0 %vm1740_vm4, %v3301_v53 }
 0xc0c   :  { %v1920_v25 = vld [vmem:[#allocation3 + $0x30] sm:$0xff]  ;;  %v1897_v31 = vpop.permute.xlu0 %1896  ;;  %v3306_v47 = vsel %vm1740_vm4, %v3300_v19, 0 }
 0xc0d   :  { %v1921_v54 = vld [vmem:[#allocation3 + $0x38] sm:$0xff]  ;;  %v1932_v51 = vadd.f32 %v3734_v26, %v1920_v25  ;;  %v1901_v32 = vsel %vm918_vm11, %v1895_v56, %v1897_v31  ;;  %3316 = vmatpush1.bf16.msra.mxu0 %v3306_v47  ;;  %vm3363_vm11 = vcmask 1047644  }
 0xc0e   :  { %v1933_v34 = vadd.f32 %v3735_v13, %v1921_v54  ;;  %1913 = vst.msk [vmem:[#allocation3 + $0x50] sm:$0xf0] %vm1912_vm3, %v1901_v32 }
 0xc0f   :  { %1944 = vst [vmem:[%s5501_s6 + $0x30] sm:$0xff] %v1932_v51 }
 0xc10   :  { %1945 = vst [vmem:[%s5501_s6 + $0x38] sm:$0xff] %v1933_v34  ;;  %3504 = vmatmul.mubr.msk.bf16.vlgmr.msra.gmra.mrb[28].mxu0 %vm5509_vm6, %v3285_v33 }
 0xc11   :  { %v1922_v63 = vld [vmem:[#allocation3 + $0x40] sm:$0xff]  ;;  %v1923_v4 = vld [vmem:[#allocation3 + $0x48] sm:$0xff] }
 0xc12   :  { %v1934_v27 = vadd.f32 %v3736_v39, %v1922_v63  ;;  %v1935_v45 = vadd.f32 %v3737_v29, %v1923_v4 }
 0xc14   :  { %1946 = vst [vmem:[%s5501_s6 + $0x40] sm:$0xff] %v1934_v27  ;;  %1947 = vst [vmem:[%s5501_s6 + $0x48] sm:$0xff] %v1935_v45 }
 0xc15   :  { %v1924_v52 = vld [vmem:[#allocation3 + $0x50] sm:$0xff] }
 0xc16   :  { %v1936_v50 = vadd.f32 %v3738_v9, %v1924_v52 }
 0xc18   :  { %1948 = vst [vmem:[%s5501_s6 + $0x50] sm:$0xff] %v1936_v50 }
 0xce3   :  { %v3345_v42 = vpop.f32.mrb[28].mxu0 }
 0xce4   :  { %v3354_v43 = vrot.slane %v3345_v42, 4  ;;  %v3347_v2 = vpop.f32.mrb[29].mxu0 }
 0xce5   :  { %v3355_v44 = vrot.slane %v3347_v2, 4  ;;  %v3349_v35 = vpop.f32.mrb[30].mxu0 }
 0xce6   :  { %3356 = vrot.lane.b32.xlu1 %v3354_v43, %s3756_s13  ;;  %v3350_v12 = vpop.f32.mrb[31].mxu0 }
 0xce7   :  { %3358 = vrot.lane.b32.xlu0 %v3355_v44, %s3756_s13 }
 0xd58   :  { %v3357_v46 = vpop.permute.xlu1 %3356 }
 0xd59   :  { %3364 = vst.msk [vmem:[#allocation4 + $0x10] sm:$0xf0] %vm3363_vm11, %v3357_v46  ;;  %v3359_v48 = vpop.permute.xlu0 %3358 }
 0xd5a   :  { %v3360_v60 = vsel %vm2985_vm5, %v3357_v46, %v3359_v48 }
 0xd5b   :  { %3366 = vst.msk [vmem:[#allocation4 + $0x18] sm:$0xf0] %vm3365_vm12, %v3360_v60 }
 0xd60   :  { %v3369_v16 = vld [vmem:[#allocation4 + $0x10] sm:$0xff] }
 0xd61   :  { %v3373_v20 = vadd.f32 %v5173_v28, %v3369_v16 }
 0xd62   :  { %v3370_v55 = vld [vmem:[#allocation4 + $0x18] sm:$0xff] }
 0xd63   :  { %3377 = vst [vmem:[%s5471_s23 + $0x10] sm:$0xff] %v3373_v20  ;;  %v3374_v57 = vadd.f32 %v5176_v61, %v3370_v55 }
 0xd65   :  { %3378 = vst [vmem:[%s5471_s23 + $0x18] sm:$0xff] %v3374_v57 }

</bundles_post_ra>
